<compile_context>
chip_gen: v5e
topology: v5e:2x2
jax: 0.10.0
libtpu: 0.0.40
codegen_flags: <defaults>
</compile_context>

<pallas_src>
import math
from functools import partial

import jax
import jax.numpy as jnp
from jax.experimental import pallas as pl
from jax.experimental.pallas import tpu as pltpu

F32 = jnp.float32
LN_EPS = 1e-5


# ------------------------------ in-kernel helpers ----------------------------

def _ln(x, g, b, eps=LN_EPS):
    mu = jnp.mean(x, axis=-1, keepdims=True)
    var = jnp.mean(jnp.square(x - mu), axis=-1, keepdims=True)
    return (x - mu) * jax.lax.rsqrt(var + eps) * g + b


def _softmax(s):
    m = jnp.max(s, axis=-1, keepdims=True)
    p = jnp.exp(s - m)
    return p / jnp.sum(p, axis=-1, keepdims=True)   # exact divide (precision parity)


def _attn_mask(mq, mk, n_batch, causal):
    """Rows are seq-major flattened tokens: row r -> (pos = r // N, batch = r % N).
    Mask out cross-batch pairs (and future positions when causal).  Integer div/mod
    are emulated with float floor to keep the lowering to plain VPU ops."""
    ri = jax.lax.broadcasted_iota(jnp.int32, (mq, mk), 0).astype(F32)
    ci = jax.lax.broadcasted_iota(jnp.int32, (mq, mk), 1).astype(F32)
    inv = 1.0 / float(n_batch)
    rpos = jnp.floor((ri + 0.5) * inv)
    cpos = jnp.floor((ci + 0.5) * inv)
    rb = ri - float(n_batch) * rpos
    cb = ci - float(n_batch) * cpos
    ok = rb == cb
    if causal:
        ok = jnp.logical_and(ok, cpos <= rpos)
    return jnp.where(ok, 0.0, -1e30).astype(F32)


def _mha(q, k, v, wo, bo, nhead, mask):
    """q: (Mq, d) projected queries; k, v: (Mk, d) projected keys/values;
    wo: (d, d) out-projection; bo: (1, d).  Heads split by lane slicing, per-head
    contexts concatenated once, then a single matmul against wo."""
    _, d = q.shape
    dh = d // nhead
    scale = 1.0 / math.sqrt(dh)
    ctxs = []
    for h in range(nhead):
        lo, hi = h * dh, (h + 1) * dh
        s = jax.lax.dot_general(q[:, lo:hi], k[:, lo:hi],
                                (((1,), (1,)), ((), ())),
                                preferred_element_type=F32) * scale + mask
        p = _softmax(s)
        ctxs.append(jnp.dot(p, v[:, lo:hi], preferred_element_type=F32))
    ctx = jnp.concatenate(ctxs, axis=-1)                       # (Mq, d)
    return jnp.dot(ctx, wo, preferred_element_type=F32) + bo


# --------------------------------- kernels -----------------------------------

def _encoder_stack_kernel(src_ref, pe_ref, w_src_ref, misc_ref,
                          wqkv_ref, wo_ref, w1_ref, w2_ref, small_ref,
                          mem_ref, *, nhead, n_batch, num_layers, sqrt_d):
    # misc rows: [fc_src bias | final-LN gamma | final-LN beta], width d
    # small rows per layer (width >= 3d): [bqkv, bo, b1, b2, ln1_g, ln1_b, ln2_g, ln2_b]
    d = w_src_ref.shape[1]
    dff = w1_ref.shape[2]
    misc = misc_ref[...]
    x = (jnp.dot(src_ref[...], w_src_ref[...], preferred_element_type=F32)
         + misc[0:1, :]) * sqrt_d + pe_ref[...]                # (M, d)
    m = x.shape[0]
    mask = _attn_mask(m, m, n_batch, causal=True)              # src_mask is causal in the spec

    for l in range(num_layers):                                # unrolled (static)
        sp = small_ref[l]                                      # (8, wpack)
        qkv = jnp.dot(x, wqkv_ref[l], preferred_element_type=F32) + sp[0:1, :3 * d]
        attn = _mha(qkv[:, :d], qkv[:, d:2 * d], qkv[:, 2 * d:],
                    wo_ref[l], sp[1:2, :d], nhead, mask)
        x = _ln(x + attn, sp[4:5, :d], sp[5:6, :d])
        h = jnp.maximum(jnp.dot(x, w1_ref[l], preferred_element_type=F32)
                        + sp[2:3, :dff], 0.0)
        ffn = jnp.dot(h, w2_ref[l], preferred_element_type=F32) + sp[3:4, :d]
        x = _ln(x + ffn, sp[6:7, :d], sp[7:8, :d])

    mem_ref[...] = _ln(x, misc[1:2, :], misc[2:3, :])          # final encoder LayerNorm


def _decoder_stack_kernel(tgt_ref, mem_ref, pe_ref, w_tgt_ref, misc_ref,
                          wqkv_ref, wo_s_ref, wq_c_ref, wo_c_ref, wkv_ref,
                          w1_ref, w2_ref, small_ref, w_out_ref,
                          out_ref, *, nhead, n_batch, num_layers, sqrt_d):
    # misc rows (width out_pad>=128): [fc_tgt bias | final-LN gamma | final-LN beta | fc_out bias]
    # small rows per layer: [bqkv, bo_s, bq_c, bkv_c, bo_c, b1, b2,
    #                        ln1_g, ln1_b, ln2_g, ln2_b, ln3_g, ln3_b]
    d = w_tgt_ref.shape[1]
    dff = w1_ref.shape[2]
    misc = misc_ref[...]
    mem = mem_ref[...]                                         # (Ms, d)
    x = (jnp.dot(tgt_ref[...], w_tgt_ref[...], preferred_element_type=F32)
         + misc[0:1, :d]) * sqrt_d + pe_ref[...]               # (Mt, d)
    mt = x.shape[0]
    ms = mem.shape[0]
    self_mask = _attn_mask(mt, mt, n_batch, causal=True)
    cross_mask = _attn_mask(mt, ms, n_batch, causal=False)     # memory_mask is None

    for l in range(num_layers):                                # unrolled (static)
        sp = small_ref[l]                                      # (13, wpack)
        # masked self-attention
        qkv = jnp.dot(x, wqkv_ref[l], preferred_element_type=F32) + sp[0:1, :3 * d]
        a1 = _mha(qkv[:, :d], qkv[:, d:2 * d], qkv[:, 2 * d:],
                  wo_s_ref[l], sp[1:2, :d], nhead, self_mask)
        x = _ln(x + a1, sp[7:8, :d], sp[8:9, :d])
        # cross-attention on encoder memory
        q = jnp.dot(x, wq_c_ref[l], preferred_element_type=F32) + sp[2:3, :d]
        kv = jnp.dot(mem, wkv_ref[l], preferred_element_type=F32) + sp[3:4, :2 * d]
        a2 = _mha(q, kv[:, :d], kv[:, d:], wo_c_ref[l], sp[4:5, :d], nhead, cross_mask)
        x = _ln(x + a2, sp[9:10, :d], sp[10:11, :d])
        # feed-forward
        h = jnp.maximum(jnp.dot(x, w1_ref[l], preferred_element_type=F32)
                        + sp[5:6, :dff], 0.0)
        ffn = jnp.dot(h, w2_ref[l], preferred_element_type=F32) + sp[6:7, :d]
        x = _ln(x + ffn, sp[11:12, :d], sp[12:13, :d])

    # final decoder LayerNorm + lane-padded output projection (unmasked 128-lane store)
    y = _ln(x, misc[1:2, :d], misc[2:3, :d])
    out_ref[...] = jnp.dot(y, w_out_ref[...], preferred_element_type=F32) + misc[3:4, :]


# ------------------------------ pallas wrappers -------------------------------

def _vmem_specs(n):
    return [pl.BlockSpec(memory_space=pltpu.MemorySpace.VMEM) for _ in range(n)]


def encoder_stack(src2, pe_s, params, cfg, n_batch):
    m, src_dim = src2.shape
    d, dff, nhead = cfg["d_model"], cfg["dim_feedforward"], cfg["nhead"]
    le = cfg["num_encoder_layers"]
    args = (src2, pe_s, params["w_src"], params["enc_misc"],
            params["enc_wqkv"], params["enc_wo"], params["enc_w1"],
            params["enc_w2"], params["enc_small"])
    flops = 2 * m * src_dim * d + le * (
        2 * m * d * 3 * d + 4 * m * m * d + 2 * m * d * d + 4 * m * d * dff)
    bytes_acc = sum(int(a.size) * a.dtype.itemsize for a in args) + m * d * 4
    return pl.pallas_call(
        partial(_encoder_stack_kernel, nhead=nhead, n_batch=n_batch,
                num_layers=le, sqrt_d=math.sqrt(d)),
        out_shape=jax.ShapeDtypeStruct((m, d), F32),
        in_specs=_vmem_specs(len(args)),
        out_specs=pl.BlockSpec(memory_space=pltpu.MemorySpace.VMEM),
        cost_estimate=pl.CostEstimate(flops=flops,
                                      transcendentals=le * nhead * m * m,
                                      bytes_accessed=bytes_acc),
    )(*args)


def decoder_stack(tgt2, mem, pe_t, params, cfg, n_batch):
    mt, tgt_in = tgt2.shape
    ms = mem.shape[0]
    d, dff, nhead = cfg["d_model"], cfg["dim_feedforward"], cfg["nhead"]
    ld = cfg["num_decoder_layers"]
    out_pad = params["w_out"].shape[1]
    args = (tgt2, mem, pe_t, params["w_tgt"], params["dec_misc"],
            params["dec_wqkv"], params["dec_wo_s"], params["dec_wq_c"],
            params["dec_wo_c"], params["dec_wkv_c"], params["dec_w1"],
            params["dec_w2"], params["dec_small"], params["w_out"])
    flops = 2 * mt * tgt_in * d + 2 * mt * d * out_pad + ld * (
        2 * mt * d * 3 * d + 4 * mt * mt * d + 2 * mt * d * d
        + 2 * mt * d * d + 4 * ms * d * d + 4 * mt * ms * d + 2 * mt * d * d
        + 4 * mt * d * dff)
    bytes_acc = sum(int(a.size) * a.dtype.itemsize for a in args) + mt * out_pad * 4
    return pl.pallas_call(
        partial(_decoder_stack_kernel, nhead=nhead, n_batch=n_batch,
                num_layers=ld, sqrt_d=math.sqrt(d)),
        out_shape=jax.ShapeDtypeStruct((mt, out_pad), F32),
        in_specs=_vmem_specs(len(args)),
        out_specs=pl.BlockSpec(memory_space=pltpu.MemorySpace.VMEM),
        cost_estimate=pl.CostEstimate(flops=flops,
                                      transcendentals=ld * nhead * (mt * mt + mt * ms),
                                      bytes_accessed=bytes_acc),
    )(*args)


# ----------------------------- model glue (JAX) ------------------------------

def positional_encoding(max_len, d_model):
    position = jnp.arange(max_len, dtype=F32)[:, None]
    div_term = jnp.exp(
        jnp.arange(0, d_model, 2, dtype=F32) * (-math.log(10000.0) / d_model))
    pe = jnp.zeros((max_len, d_model), F32)
    pe = pe.at[:, 0::2].set(jnp.sin(position * div_term))
    pe = pe.at[:, 1::2].set(jnp.cos(position * div_term))
    return pe                                                   # (max_len, d_model)


def custom_transformer_forward(params, src, tgt, cfg):
    """src: (S, N, src_dim), tgt: (T, N, tgt_dim)  ->  (T, N, tgt_dim)."""
    tgt_dim = cfg["tgt_dim"]
    s, n, _ = src.shape
    t = tgt.shape[0]

    # Seq-major flattening (pos outer, batch inner) -- a pure reshape, no transpose.
    src2 = src.reshape(s * n, src.shape[-1])
    tgt2 = tgt.reshape(t * n, tgt.shape[-1])
    # Positional encodings repeated over the batch rows (token row r uses pe[r // n]).
    pe_s = jnp.repeat(params["pe"][:s], n, axis=0)              # (S*N, d)
    pe_t = jnp.repeat(params["pe"][:t], n, axis=0)              # (T*N, d)

    mem = encoder_stack(src2, pe_s, params, cfg, n_batch=n)     # (S*N, d)
    y = decoder_stack(tgt2, mem, pe_t, params, cfg, n_batch=n)  # (T*N, out_pad)
    return y[:, :tgt_dim].reshape(t, n, tgt_dim)                # (T, N, tgt_dim)


# ----------------------------- deterministic init ----------------------------

def init_params(key, cfg):
    d, dff = cfg["d_model"], cfg["dim_feedforward"]
    src_dim, tgt_dim = cfg["src_dim"], cfg["tgt_dim"]
    le, ld = cfg["num_encoder_layers"], cfg["num_decoder_layers"]
    wpack = max(3 * d, dff)                        # packed small-param row width
    out_pad = ((tgt_dim + 127) // 128) * 128       # lane-dense output width

    keys = iter(jax.random.split(key, 1024))

    def w(shape, scale=0.05):
        return scale * jax.random.normal(next(keys), shape, F32)

    def stack_w(n, shape):
        return jnp.stack([w(shape) for _ in range(n)])

    def packed_rows(n_rows, ones_rows):
        rows = []
        for r in range(n_rows):
            if r in ones_rows:                     # LayerNorm gamma rows
                rows.append(jnp.concatenate([jnp.ones((d,), F32),
                                             jnp.zeros((wpack - d,), F32)]))
            else:                                  # biases / LN beta (zero init)
                rows.append(jnp.zeros((wpack,), F32))
        return jnp.stack(rows)

    # per-layer packed small params
    enc_small = jnp.stack([packed_rows(8, {4, 6}) for _ in range(le)])
    dec_small = jnp.stack([packed_rows(13, {7, 9, 11}) for _ in range(ld)])

    # per-stack misc params
    enc_misc = jnp.stack([jnp.zeros((d,), F32),    # fc_src bias
                          jnp.ones((d,), F32),     # encoder final LN gamma
                          jnp.zeros((d,), F32)])   # encoder final LN beta
    dec_misc = jnp.zeros((4, out_pad), F32).at[1, :d].set(1.0)
    # dec_misc rows: [fc_tgt bias, decoder final LN gamma, LN beta, fc_out bias]

    w_out = jnp.zeros((d, out_pad), F32).at[:, :tgt_dim].set(w((d, tgt_dim)))

    return dict(
        w_src=w((src_dim, d)), w_tgt=w((tgt_dim, d)), w_out=w_out,
        enc_wqkv=stack_w(le, (d, 3 * d)), enc_wo=stack_w(le, (d, d)),
        enc_w1=stack_w(le, (d, dff)), enc_w2=stack_w(le, (dff, d)),
        enc_small=enc_small, enc_misc=enc_misc,
        dec_wqkv=stack_w(ld, (d, 3 * d)),
        dec_wo_s=stack_w(ld, (d, d)), dec_wq_c=stack_w(ld, (d, d)),
        dec_wo_c=stack_w(ld, (d, d)), dec_wkv_c=stack_w(ld, (d, 2 * d)),
        dec_w1=stack_w(ld, (d, dff)), dec_w2=stack_w(ld, (dff, d)),
        dec_small=dec_small, dec_misc=dec_misc,
        pe=positional_encoding(cfg["max_seq_length"], d),
    )


# ------------------------------------ main -----------------------------------

if __name__ == "__main__":
    cfg = dict(src_dim=12, tgt_dim=10, d_model=32, nhead=4,
               num_encoder_layers=2, num_decoder_layers=2,
               dim_feedforward=64, dropout=0.1, max_seq_length=64)

    key = jax.random.PRNGKey(0)
    k_src, k_tgt, k_par = jax.random.split(key, 3)

    S, T, N = 8, 6, 2
    src = jax.random.normal(k_src, (S, N, cfg["src_dim"]), F32)
    tgt = jax.random.normal(k_tgt, (T, N, cfg["tgt_dim"]), F32)
    params = init_params(k_par, cfg)

    fwd = jax.jit(lambda p, s_, t_: custom_transformer_forward(p, s_, t_, cfg))
    out = fwd(params, src, tgt)
    jax.block_until_ready(out)

    assert out.shape == (T, N, cfg["tgt_dim"]), out.shape
    assert bool(jnp.all(jnp.isfinite(out)))
    # TODO(synk): dropout is implemented as identity (eval-mode); training-mode
    # stochastic dropout is not reproduced.
    print("KERNEL_OK")
</pallas_src>

<mosaic_0001>
module attributes {stable_mosaic.version = 11 : i64} {
  func.func @_encoder_stack_kernel(%arg0: memref<16x12xf32, #tpu.memory_space<vmem>>, %arg1: memref<16x32xf32, #tpu.memory_space<vmem>>, %arg2: memref<12x32xf32, #tpu.memory_space<vmem>>, %arg3: memref<3x32xf32, #tpu.memory_space<vmem>>, %arg4: memref<2x32x96xf32, #tpu.memory_space<vmem>>, %arg5: memref<2x32x32xf32, #tpu.memory_space<vmem>>, %arg6: memref<2x32x64xf32, #tpu.memory_space<vmem>>, %arg7: memref<2x64x32xf32, #tpu.memory_space<vmem>>, %arg8: memref<2x8x96xf32, #tpu.memory_space<vmem>>, %arg9: memref<16x32xf32, #tpu.memory_space<vmem>>) attributes {dimension_semantics = [], scalar_prefetch = 0 : i64, scratch_operands = 0 : i64, tpu.core_type = #tpu.core_type<tc>} {
    %c0 = arith.constant 0 : index
    %c0_0 = arith.constant 0 : index
    %0 = vector.load %arg3[%c0, %c0_0] : memref<3x32xf32, #tpu.memory_space<vmem>>, vector<3x32xf32>
    %c0_1 = arith.constant 0 : index
    %c0_2 = arith.constant 0 : index
    %1 = vector.load %arg0[%c0_1, %c0_2] : memref<16x12xf32, #tpu.memory_space<vmem>>, vector<16x12xf32>
    %c0_3 = arith.constant 0 : index
    %c0_4 = arith.constant 0 : index
    %2 = vector.load %arg2[%c0_3, %c0_4] : memref<12x32xf32, #tpu.memory_space<vmem>>, vector<12x32xf32>
    %cst = arith.constant dense<0.000000e+00> : vector<16x32xf32>
    %3 = tpu.matmul %1, %2, %cst {dimension_numbers = #tpu.dot_dimension_numbers<[1], [0], [0], [1], [0, 0, 1, 1], [], []>} : vector<16x12xf32>, vector<12x32xf32>, vector<16x32xf32> -> vector<16x32xf32>
    %4 = vector.extract_strided_slice %0 {offsets = [0, 0], sizes = [1, 32], strides = [1, 1]} : vector<3x32xf32> to vector<1x32xf32>
    %5 = vector.broadcast %4 : vector<1x32xf32> to vector<16x32xf32>
    %6 = arith.addf %3, %5 : vector<16x32xf32>
    %cst_5 = arith.constant 5.65685415 : f32
    %7 = vector.broadcast %cst_5 : f32 to vector<16x32xf32>
    %8 = arith.mulf %6, %7 : vector<16x32xf32>
    %c0_6 = arith.constant 0 : index
    %c0_7 = arith.constant 0 : index
    %9 = vector.load %arg1[%c0_6, %c0_7] : memref<16x32xf32, #tpu.memory_space<vmem>>, vector<16x32xf32>
    %10 = arith.addf %8, %9 : vector<16x32xf32>
    %11 = tpu.iota {dimensions = array<i32: 0>} : vector<16x16xi32>
    %12 = arith.sitofp %11 : vector<16x16xi32> to vector<16x16xf32>
    %13 = tpu.iota {dimensions = array<i32: 1>} : vector<16x16xi32>
    %14 = arith.sitofp %13 : vector<16x16xi32> to vector<16x16xf32>
    %cst_8 = arith.constant 5.000000e-01 : f32
    %15 = vector.broadcast %cst_8 : f32 to vector<16x16xf32>
    %16 = arith.addf %12, %15 : vector<16x16xf32>
    %cst_9 = arith.constant 5.000000e-01 : f32
    %17 = vector.broadcast %cst_9 : f32 to vector<16x16xf32>
    %18 = arith.mulf %16, %17 : vector<16x16xf32>
    %19 = math.floor %18 : vector<16x16xf32>
    %cst_10 = arith.constant 5.000000e-01 : f32
    %20 = vector.broadcast %cst_10 : f32 to vector<16x16xf32>
    %21 = arith.addf %14, %20 : vector<16x16xf32>
    %cst_11 = arith.constant 5.000000e-01 : f32
    %22 = vector.broadcast %cst_11 : f32 to vector<16x16xf32>
    %23 = arith.mulf %21, %22 : vector<16x16xf32>
    %24 = math.floor %23 : vector<16x16xf32>
    %cst_12 = arith.constant 2.000000e+00 : f32
    %25 = vector.broadcast %cst_12 : f32 to vector<16x16xf32>
    %26 = arith.mulf %25, %19 : vector<16x16xf32>
    %27 = arith.subf %12, %26 : vector<16x16xf32>
    %cst_13 = arith.constant 2.000000e+00 : f32
    %28 = vector.broadcast %cst_13 : f32 to vector<16x16xf32>
    %29 = arith.mulf %28, %24 : vector<16x16xf32>
    %30 = arith.subf %14, %29 : vector<16x16xf32>
    %31 = arith.cmpf oeq, %27, %30 : vector<16x16xf32>
    %32 = arith.cmpf ole, %24, %19 : vector<16x16xf32>
    %33 = arith.andi %31, %32 : vector<16x16xi1>
    %cst_14 = arith.constant 0.000000e+00 : f32
    %cst_15 = arith.constant -1.000000e+30 : f32
    %34 = vector.broadcast %cst_14 : f32 to vector<16x16xf32>
    %35 = vector.broadcast %cst_15 : f32 to vector<16x16xf32>
    %36 = arith.select %33, %34, %35 : vector<16x16xi1>, vector<16x16xf32>
    %c0_16 = arith.constant 0 : index
    %c0_17 = arith.constant 0 : index
    %c0_18 = arith.constant 0 : index
    %37 = vector.load %arg8[%c0_16, %c0_17, %c0_18] : memref<2x8x96xf32, #tpu.memory_space<vmem>>, vector<1x8x96xf32>
    %38 = vector.shape_cast %37 : vector<1x8x96xf32> to vector<8x96xf32>
    %c0_19 = arith.constant 0 : index
    %c0_20 = arith.constant 0 : index
    %c0_21 = arith.constant 0 : index
    %39 = vector.load %arg4[%c0_19, %c0_20, %c0_21] : memref<2x32x96xf32, #tpu.memory_space<vmem>>, vector<1x32x96xf32>
    %40 = vector.shape_cast %39 : vector<1x32x96xf32> to vector<32x96xf32>
    %cst_22 = arith.constant dense<0.000000e+00> : vector<16x96xf32>
    %41 = tpu.matmul %10, %40, %cst_22 {dimension_numbers = #tpu.dot_dimension_numbers<[1], [0], [0], [1], [0, 0, 1, 1], [], []>} : vector<16x32xf32>, vector<32x96xf32>, vector<16x96xf32> -> vector<16x96xf32>
    %42 = vector.extract_strided_slice %38 {offsets = [0, 0], sizes = [1, 96], strides = [1, 1]} : vector<8x96xf32> to vector<1x96xf32>
    %43 = vector.broadcast %42 : vector<1x96xf32> to vector<16x96xf32>
    %44 = arith.addf %41, %43 : vector<16x96xf32>
    %45 = vector.extract_strided_slice %44 {offsets = [0, 0], sizes = [16, 32], strides = [1, 1]} : vector<16x96xf32> to vector<16x32xf32>
    %46 = vector.extract_strided_slice %44 {offsets = [0, 32], sizes = [16, 32], strides = [1, 1]} : vector<16x96xf32> to vector<16x32xf32>
    %47 = vector.extract_strided_slice %44 {offsets = [0, 64], sizes = [16, 32], strides = [1, 1]} : vector<16x96xf32> to vector<16x32xf32>
    %c0_23 = arith.constant 0 : index
    %c0_24 = arith.constant 0 : index
    %c0_25 = arith.constant 0 : index
    %48 = vector.load %arg5[%c0_23, %c0_24, %c0_25] : memref<2x32x32xf32, #tpu.memory_space<vmem>>, vector<1x32x32xf32>
    %49 = vector.shape_cast %48 : vector<1x32x32xf32> to vector<32x32xf32>
    %50 = vector.extract_strided_slice %38 {offsets = [1, 0], sizes = [1, 32], strides = [1, 1]} : vector<8x96xf32> to vector<1x32xf32>
    %51 = vector.extract_strided_slice %45 {offsets = [0, 0], sizes = [16, 8], strides = [1, 1]} : vector<16x32xf32> to vector<16x8xf32>
    %52 = vector.extract_strided_slice %46 {offsets = [0, 0], sizes = [16, 8], strides = [1, 1]} : vector<16x32xf32> to vector<16x8xf32>
    %cst_26 = arith.constant dense<0.000000e+00> : vector<16x16xf32>
    %53 = tpu.matmul %51, %52, %cst_26 {dimension_numbers = #tpu.dot_dimension_numbers<[1], [1], [0], [0], [0, 0, 1, 0], [], []>} : vector<16x8xf32>, vector<16x8xf32>, vector<16x16xf32> -> vector<16x16xf32>
    %cst_27 = arith.constant 0.353553385 : f32
    %54 = vector.broadcast %cst_27 : f32 to vector<16x16xf32>
    %55 = arith.mulf %53, %54 : vector<16x16xf32>
    %56 = arith.addf %55, %36 : vector<16x16xf32>
    %cst_28 = arith.constant dense<0xFF800000> : vector<16xf32>
    %57 = vector.multi_reduction <maximumf>, %56, %cst_28 [1] : vector<16x16xf32> to vector<16xf32>
    %58 = vector.shape_cast %57 : vector<16xf32> to vector<16x1xf32>
    %59 = vector.broadcast %58 : vector<16x1xf32> to vector<16x16xf32>
    %60 = arith.subf %56, %59 : vector<16x16xf32>
    %61 = math.exp %60 : vector<16x16xf32>
    %cst_29 = arith.constant dense<0.000000e+00> : vector<16xf32>
    %62 = vector.multi_reduction <add>, %61, %cst_29 [1] : vector<16x16xf32> to vector<16xf32>
    %63 = vector.shape_cast %62 : vector<16xf32> to vector<16x1xf32>
    %64 = vector.broadcast %63 : vector<16x1xf32> to vector<16x16xf32>
    %65 = arith.divf %61, %64 : vector<16x16xf32>
    %66 = vector.extract_strided_slice %47 {offsets = [0, 0], sizes = [16, 8], strides = [1, 1]} : vector<16x32xf32> to vector<16x8xf32>
    %cst_30 = arith.constant dense<0.000000e+00> : vector<16x8xf32>
    %67 = tpu.matmul %65, %66, %cst_30 {dimension_numbers = #tpu.dot_dimension_numbers<[1], [0], [0], [1], [0, 0, 1, 1], [], []>} : vector<16x16xf32>, vector<16x8xf32>, vector<16x8xf32> -> vector<16x8xf32>
    %68 = vector.extract_strided_slice %45 {offsets = [0, 8], sizes = [16, 8], strides = [1, 1]} : vector<16x32xf32> to vector<16x8xf32>
    %69 = vector.extract_strided_slice %46 {offsets = [0, 8], sizes = [16, 8], strides = [1, 1]} : vector<16x32xf32> to vector<16x8xf32>
    %cst_31 = arith.constant dense<0.000000e+00> : vector<16x16xf32>
    %70 = tpu.matmul %68, %69, %cst_31 {dimension_numbers = #tpu.dot_dimension_numbers<[1], [1], [0], [0], [0, 0, 1, 0], [], []>} : vector<16x8xf32>, vector<16x8xf32>, vector<16x16xf32> -> vector<16x16xf32>
    %cst_32 = arith.constant 0.353553385 : f32
    %71 = vector.broadcast %cst_32 : f32 to vector<16x16xf32>
    %72 = arith.mulf %70, %71 : vector<16x16xf32>
    %73 = arith.addf %72, %36 : vector<16x16xf32>
    %cst_33 = arith.constant dense<0xFF800000> : vector<16xf32>
    %74 = vector.multi_reduction <maximumf>, %73, %cst_33 [1] : vector<16x16xf32> to vector<16xf32>
    %75 = vector.shape_cast %74 : vector<16xf32> to vector<16x1xf32>
    %76 = vector.broadcast %75 : vector<16x1xf32> to vector<16x16xf32>
    %77 = arith.subf %73, %76 : vector<16x16xf32>
    %78 = math.exp %77 : vector<16x16xf32>
    %cst_34 = arith.constant dense<0.000000e+00> : vector<16xf32>
    %79 = vector.multi_reduction <add>, %78, %cst_34 [1] : vector<16x16xf32> to vector<16xf32>
    %80 = vector.shape_cast %79 : vector<16xf32> to vector<16x1xf32>
    %81 = vector.broadcast %80 : vector<16x1xf32> to vector<16x16xf32>
    %82 = arith.divf %78, %81 : vector<16x16xf32>
    %83 = vector.extract_strided_slice %47 {offsets = [0, 8], sizes = [16, 8], strides = [1, 1]} : vector<16x32xf32> to vector<16x8xf32>
    %cst_35 = arith.constant dense<0.000000e+00> : vector<16x8xf32>
    %84 = tpu.matmul %82, %83, %cst_35 {dimension_numbers = #tpu.dot_dimension_numbers<[1], [0], [0], [1], [0, 0, 1, 1], [], []>} : vector<16x16xf32>, vector<16x8xf32>, vector<16x8xf32> -> vector<16x8xf32>
    %85 = vector.extract_strided_slice %45 {offsets = [0, 16], sizes = [16, 8], strides = [1, 1]} : vector<16x32xf32> to vector<16x8xf32>
    %86 = vector.extract_strided_slice %46 {offsets = [0, 16], sizes = [16, 8], strides = [1, 1]} : vector<16x32xf32> to vector<16x8xf32>
    %cst_36 = arith.constant dense<0.000000e+00> : vector<16x16xf32>
    %87 = tpu.matmul %85, %86, %cst_36 {dimension_numbers = #tpu.dot_dimension_numbers<[1], [1], [0], [0], [0, 0, 1, 0], [], []>} : vector<16x8xf32>, vector<16x8xf32>, vector<16x16xf32> -> vector<16x16xf32>
    %cst_37 = arith.constant 0.353553385 : f32
    %88 = vector.broadcast %cst_37 : f32 to vector<16x16xf32>
    %89 = arith.mulf %87, %88 : vector<16x16xf32>
    %90 = arith.addf %89, %36 : vector<16x16xf32>
    %cst_38 = arith.constant dense<0xFF800000> : vector<16xf32>
    %91 = vector.multi_reduction <maximumf>, %90, %cst_38 [1] : vector<16x16xf32> to vector<16xf32>
    %92 = vector.shape_cast %91 : vector<16xf32> to vector<16x1xf32>
    %93 = vector.broadcast %92 : vector<16x1xf32> to vector<16x16xf32>
    %94 = arith.subf %90, %93 : vector<16x16xf32>
    %95 = math.exp %94 : vector<16x16xf32>
    %cst_39 = arith.constant dense<0.000000e+00> : vector<16xf32>
    %96 = vector.multi_reduction <add>, %95, %cst_39 [1] : vector<16x16xf32> to vector<16xf32>
    %97 = vector.shape_cast %96 : vector<16xf32> to vector<16x1xf32>
    %98 = vector.broadcast %97 : vector<16x1xf32> to vector<16x16xf32>
    %99 = arith.divf %95, %98 : vector<16x16xf32>
    %100 = vector.extract_strided_slice %47 {offsets = [0, 16], sizes = [16, 8], strides = [1, 1]} : vector<16x32xf32> to vector<16x8xf32>
    %cst_40 = arith.constant dense<0.000000e+00> : vector<16x8xf32>
    %101 = tpu.matmul %99, %100, %cst_40 {dimension_numbers = #tpu.dot_dimension_numbers<[1], [0], [0], [1], [0, 0, 1, 1], [], []>} : vector<16x16xf32>, vector<16x8xf32>, vector<16x8xf32> -> vector<16x8xf32>
    %102 = vector.extract_strided_slice %45 {offsets = [0, 24], sizes = [16, 8], strides = [1, 1]} : vector<16x32xf32> to vector<16x8xf32>
    %103 = vector.extract_strided_slice %46 {offsets = [0, 24], sizes = [16, 8], strides = [1, 1]} : vector<16x32xf32> to vector<16x8xf32>
    %cst_41 = arith.constant dense<0.000000e+00> : vector<16x16xf32>
    %104 = tpu.matmul %102, %103, %cst_41 {dimension_numbers = #tpu.dot_dimension_numbers<[1], [1], [0], [0], [0, 0, 1, 0], [], []>} : vector<16x8xf32>, vector<16x8xf32>, vector<16x16xf32> -> vector<16x16xf32>
    %cst_42 = arith.constant 0.353553385 : f32
    %105 = vector.broadcast %cst_42 : f32 to vector<16x16xf32>
    %106 = arith.mulf %104, %105 : vector<16x16xf32>
    %107 = arith.addf %106, %36 : vector<16x16xf32>
    %cst_43 = arith.constant dense<0xFF800000> : vector<16xf32>
    %108 = vector.multi_reduction <maximumf>, %107, %cst_43 [1] : vector<16x16xf32> to vector<16xf32>
    %109 = vector.shape_cast %108 : vector<16xf32> to vector<16x1xf32>
    %110 = vector.broadcast %109 : vector<16x1xf32> to vector<16x16xf32>
    %111 = arith.subf %107, %110 : vector<16x16xf32>
    %112 = math.exp %111 : vector<16x16xf32>
    %cst_44 = arith.constant dense<0.000000e+00> : vector<16xf32>
    %113 = vector.multi_reduction <add>, %112, %cst_44 [1] : vector<16x16xf32> to vector<16xf32>
    %114 = vector.shape_cast %113 : vector<16xf32> to vector<16x1xf32>
    %115 = vector.broadcast %114 : vector<16x1xf32> to vector<16x16xf32>
    %116 = arith.divf %112, %115 : vector<16x16xf32>
    %117 = vector.extract_strided_slice %47 {offsets = [0, 24], sizes = [16, 8], strides = [1, 1]} : vector<16x32xf32> to vector<16x8xf32>
    %cst_45 = arith.constant dense<0.000000e+00> : vector<16x8xf32>
    %118 = tpu.matmul %116, %117, %cst_45 {dimension_numbers = #tpu.dot_dimension_numbers<[1], [0], [0], [1], [0, 0, 1, 1], [], []>} : vector<16x16xf32>, vector<16x8xf32>, vector<16x8xf32> -> vector<16x8xf32>
    %119 = tpu.concatenate %67, %84, %101, %118 in 1 : vector<16x8xf32>, vector<16x8xf32>, vector<16x8xf32>, vector<16x8xf32> -> vector<16x32xf32>
    %cst_46 = arith.constant dense<0.000000e+00> : vector<16x32xf32>
    %120 = tpu.matmul %119, %49, %cst_46 {dimension_numbers = #tpu.dot_dimension_numbers<[1], [0], [0], [1], [0, 0, 1, 1], [], []>} : vector<16x32xf32>, vector<32x32xf32>, vector<16x32xf32> -> vector<16x32xf32>
    %121 = vector.broadcast %50 : vector<1x32xf32> to vector<16x32xf32>
    %122 = arith.addf %120, %121 : vector<16x32xf32>
    %123 = arith.addf %10, %122 : vector<16x32xf32>
    %124 = vector.extract_strided_slice %38 {offsets = [4, 0], sizes = [1, 32], strides = [1, 1]} : vector<8x96xf32> to vector<1x32xf32>
    %125 = vector.extract_strided_slice %38 {offsets = [5, 0], sizes = [1, 32], strides = [1, 1]} : vector<8x96xf32> to vector<1x32xf32>
    %cst_47 = arith.constant dense<0.000000e+00> : vector<16xf32>
    %126 = vector.multi_reduction <add>, %123, %cst_47 [1] : vector<16x32xf32> to vector<16xf32>
    %127 = vector.shape_cast %126 : vector<16xf32> to vector<16x1xf32>
    %cst_48 = arith.constant 3.200000e+01 : f32
    %128 = vector.broadcast %cst_48 : f32 to vector<16x1xf32>
    %129 = arith.divf %127, %128 : vector<16x1xf32>
    %130 = vector.broadcast %129 : vector<16x1xf32> to vector<16x32xf32>
    %131 = arith.subf %123, %130 : vector<16x32xf32>
    %132 = arith.mulf %131, %131 : vector<16x32xf32>
    %cst_49 = arith.constant dense<0.000000e+00> : vector<16xf32>
    %133 = vector.multi_reduction <add>, %132, %cst_49 [1] : vector<16x32xf32> to vector<16xf32>
    %134 = vector.shape_cast %133 : vector<16xf32> to vector<16x1xf32>
    %cst_50 = arith.constant 3.200000e+01 : f32
    %135 = vector.broadcast %cst_50 : f32 to vector<16x1xf32>
    %136 = arith.divf %134, %135 : vector<16x1xf32>
    %137 = vector.broadcast %129 : vector<16x1xf32> to vector<16x32xf32>
    %138 = arith.subf %123, %137 : vector<16x32xf32>
    %cst_51 = arith.constant 9.99999974E-6 : f32
    %139 = vector.broadcast %cst_51 : f32 to vector<16x1xf32>
    %140 = arith.addf %136, %139 : vector<16x1xf32>
    %141 = math.rsqrt %140 : vector<16x1xf32>
    %142 = vector.broadcast %141 : vector<16x1xf32> to vector<16x32xf32>
    %143 = arith.mulf %138, %142 : vector<16x32xf32>
    %144 = vector.broadcast %124 : vector<1x32xf32> to vector<16x32xf32>
    %145 = arith.mulf %143, %144 : vector<16x32xf32>
    %146 = vector.broadcast %125 : vector<1x32xf32> to vector<16x32xf32>
    %147 = arith.addf %145, %146 : vector<16x32xf32>
    %c0_52 = arith.constant 0 : index
    %c0_53 = arith.constant 0 : index
    %c0_54 = arith.constant 0 : index
    %148 = vector.load %arg6[%c0_52, %c0_53, %c0_54] : memref<2x32x64xf32, #tpu.memory_space<vmem>>, vector<1x32x64xf32>
    %149 = vector.shape_cast %148 : vector<1x32x64xf32> to vector<32x64xf32>
    %cst_55 = arith.constant dense<0.000000e+00> : vector<16x64xf32>
    %150 = tpu.matmul %147, %149, %cst_55 {dimension_numbers = #tpu.dot_dimension_numbers<[1], [0], [0], [1], [0, 0, 1, 1], [], []>} : vector<16x32xf32>, vector<32x64xf32>, vector<16x64xf32> -> vector<16x64xf32>
    %151 = vector.extract_strided_slice %38 {offsets = [2, 0], sizes = [1, 64], strides = [1, 1]} : vector<8x96xf32> to vector<1x64xf32>
    %152 = vector.broadcast %151 : vector<1x64xf32> to vector<16x64xf32>
    %153 = arith.addf %150, %152 : vector<16x64xf32>
    %cst_56 = arith.constant 0.000000e+00 : f32
    %154 = vector.broadcast %cst_56 : f32 to vector<16x64xf32>
    %155 = arith.maximumf %153, %154 : vector<16x64xf32>
    %c0_57 = arith.constant 0 : index
    %c0_58 = arith.constant 0 : index
    %c0_59 = arith.constant 0 : index
    %156 = vector.load %arg7[%c0_57, %c0_58, %c0_59] : memref<2x64x32xf32, #tpu.memory_space<vmem>>, vector<1x64x32xf32>
    %157 = vector.shape_cast %156 : vector<1x64x32xf32> to vector<64x32xf32>
    %cst_60 = arith.constant dense<0.000000e+00> : vector<16x32xf32>
    %158 = tpu.matmul %155, %157, %cst_60 {dimension_numbers = #tpu.dot_dimension_numbers<[1], [0], [0], [1], [0, 0, 1, 1], [], []>} : vector<16x64xf32>, vector<64x32xf32>, vector<16x32xf32> -> vector<16x32xf32>
    %159 = vector.extract_strided_slice %38 {offsets = [3, 0], sizes = [1, 32], strides = [1, 1]} : vector<8x96xf32> to vector<1x32xf32>
    %160 = vector.broadcast %159 : vector<1x32xf32> to vector<16x32xf32>
    %161 = arith.addf %158, %160 : vector<16x32xf32>
    %162 = arith.addf %147, %161 : vector<16x32xf32>
    %163 = vector.extract_strided_slice %38 {offsets = [6, 0], sizes = [1, 32], strides = [1, 1]} : vector<8x96xf32> to vector<1x32xf32>
    %164 = vector.extract_strided_slice %38 {offsets = [7, 0], sizes = [1, 32], strides = [1, 1]} : vector<8x96xf32> to vector<1x32xf32>
    %cst_61 = arith.constant dense<0.000000e+00> : vector<16xf32>
    %165 = vector.multi_reduction <add>, %162, %cst_61 [1] : vector<16x32xf32> to vector<16xf32>
    %166 = vector.shape_cast %165 : vector<16xf32> to vector<16x1xf32>
    %cst_62 = arith.constant 3.200000e+01 : f32
    %167 = vector.broadcast %cst_62 : f32 to vector<16x1xf32>
    %168 = arith.divf %166, %167 : vector<16x1xf32>
    %169 = vector.broadcast %168 : vector<16x1xf32> to vector<16x32xf32>
    %170 = arith.subf %162, %169 : vector<16x32xf32>
    %171 = arith.mulf %170, %170 : vector<16x32xf32>
    %cst_63 = arith.constant dense<0.000000e+00> : vector<16xf32>
    %172 = vector.multi_reduction <add>, %171, %cst_63 [1] : vector<16x32xf32> to vector<16xf32>
    %173 = vector.shape_cast %172 : vector<16xf32> to vector<16x1xf32>
    %cst_64 = arith.constant 3.200000e+01 : f32
    %174 = vector.broadcast %cst_64 : f32 to vector<16x1xf32>
    %175 = arith.divf %173, %174 : vector<16x1xf32>
    %176 = vector.broadcast %168 : vector<16x1xf32> to vector<16x32xf32>
    %177 = arith.subf %162, %176 : vector<16x32xf32>
    %cst_65 = arith.constant 9.99999974E-6 : f32
    %178 = vector.broadcast %cst_65 : f32 to vector<16x1xf32>
    %179 = arith.addf %175, %178 : vector<16x1xf32>
    %180 = math.rsqrt %179 : vector<16x1xf32>
    %181 = vector.broadcast %180 : vector<16x1xf32> to vector<16x32xf32>
    %182 = arith.mulf %177, %181 : vector<16x32xf32>
    %183 = vector.broadcast %163 : vector<1x32xf32> to vector<16x32xf32>
    %184 = arith.mulf %182, %183 : vector<16x32xf32>
    %185 = vector.broadcast %164 : vector<1x32xf32> to vector<16x32xf32>
    %186 = arith.addf %184, %185 : vector<16x32xf32>
    %c1 = arith.constant 1 : index
    %c0_66 = arith.constant 0 : index
    %c0_67 = arith.constant 0 : index
    %187 = vector.load %arg8[%c1, %c0_66, %c0_67] : memref<2x8x96xf32, #tpu.memory_space<vmem>>, vector<1x8x96xf32>
    %188 = vector.shape_cast %187 : vector<1x8x96xf32> to vector<8x96xf32>
    %c1_68 = arith.constant 1 : index
    %c0_69 = arith.constant 0 : index
    %c0_70 = arith.constant 0 : index
    %189 = vector.load %arg4[%c1_68, %c0_69, %c0_70] : memref<2x32x96xf32, #tpu.memory_space<vmem>>, vector<1x32x96xf32>
    %190 = vector.shape_cast %189 : vector<1x32x96xf32> to vector<32x96xf32>
    %cst_71 = arith.constant dense<0.000000e+00> : vector<16x96xf32>
    %191 = tpu.matmul %186, %190, %cst_71 {dimension_numbers = #tpu.dot_dimension_numbers<[1], [0], [0], [1], [0, 0, 1, 1], [], []>} : vector<16x32xf32>, vector<32x96xf32>, vector<16x96xf32> -> vector<16x96xf32>
    %192 = vector.extract_strided_slice %188 {offsets = [0, 0], sizes = [1, 96], strides = [1, 1]} : vector<8x96xf32> to vector<1x96xf32>
    %193 = vector.broadcast %192 : vector<1x96xf32> to vector<16x96xf32>
    %194 = arith.addf %191, %193 : vector<16x96xf32>
    %195 = vector.extract_strided_slice %194 {offsets = [0, 0], sizes = [16, 32], strides = [1, 1]} : vector<16x96xf32> to vector<16x32xf32>
    %196 = vector.extract_strided_slice %194 {offsets = [0, 32], sizes = [16, 32], strides = [1, 1]} : vector<16x96xf32> to vector<16x32xf32>
    %197 = vector.extract_strided_slice %194 {offsets = [0, 64], sizes = [16, 32], strides = [1, 1]} : vector<16x96xf32> to vector<16x32xf32>
    %c1_72 = arith.constant 1 : index
    %c0_73 = arith.constant 0 : index
    %c0_74 = arith.constant 0 : index
    %198 = vector.load %arg5[%c1_72, %c0_73, %c0_74] : memref<2x32x32xf32, #tpu.memory_space<vmem>>, vector<1x32x32xf32>
    %199 = vector.shape_cast %198 : vector<1x32x32xf32> to vector<32x32xf32>
    %200 = vector.extract_strided_slice %188 {offsets = [1, 0], sizes = [1, 32], strides = [1, 1]} : vector<8x96xf32> to vector<1x32xf32>
    %201 = vector.extract_strided_slice %195 {offsets = [0, 0], sizes = [16, 8], strides = [1, 1]} : vector<16x32xf32> to vector<16x8xf32>
    %202 = vector.extract_strided_slice %196 {offsets = [0, 0], sizes = [16, 8], strides = [1, 1]} : vector<16x32xf32> to vector<16x8xf32>
    %cst_75 = arith.constant dense<0.000000e+00> : vector<16x16xf32>
    %203 = tpu.matmul %201, %202, %cst_75 {dimension_numbers = #tpu.dot_dimension_numbers<[1], [1], [0], [0], [0, 0, 1, 0], [], []>} : vector<16x8xf32>, vector<16x8xf32>, vector<16x16xf32> -> vector<16x16xf32>
    %cst_76 = arith.constant 0.353553385 : f32
    %204 = vector.broadcast %cst_76 : f32 to vector<16x16xf32>
    %205 = arith.mulf %203, %204 : vector<16x16xf32>
    %206 = arith.addf %205, %36 : vector<16x16xf32>
    %cst_77 = arith.constant dense<0xFF800000> : vector<16xf32>
    %207 = vector.multi_reduction <maximumf>, %206, %cst_77 [1] : vector<16x16xf32> to vector<16xf32>
    %208 = vector.shape_cast %207 : vector<16xf32> to vector<16x1xf32>
    %209 = vector.broadcast %208 : vector<16x1xf32> to vector<16x16xf32>
    %210 = arith.subf %206, %209 : vector<16x16xf32>
    %211 = math.exp %210 : vector<16x16xf32>
    %cst_78 = arith.constant dense<0.000000e+00> : vector<16xf32>
    %212 = vector.multi_reduction <add>, %211, %cst_78 [1] : vector<16x16xf32> to vector<16xf32>
    %213 = vector.shape_cast %212 : vector<16xf32> to vector<16x1xf32>
    %214 = vector.broadcast %213 : vector<16x1xf32> to vector<16x16xf32>
    %215 = arith.divf %211, %214 : vector<16x16xf32>
    %216 = vector.extract_strided_slice %197 {offsets = [0, 0], sizes = [16, 8], strides = [1, 1]} : vector<16x32xf32> to vector<16x8xf32>
    %cst_79 = arith.constant dense<0.000000e+00> : vector<16x8xf32>
    %217 = tpu.matmul %215, %216, %cst_79 {dimension_numbers = #tpu.dot_dimension_numbers<[1], [0], [0], [1], [0, 0, 1, 1], [], []>} : vector<16x16xf32>, vector<16x8xf32>, vector<16x8xf32> -> vector<16x8xf32>
    %218 = vector.extract_strided_slice %195 {offsets = [0, 8], sizes = [16, 8], strides = [1, 1]} : vector<16x32xf32> to vector<16x8xf32>
    %219 = vector.extract_strided_slice %196 {offsets = [0, 8], sizes = [16, 8], strides = [1, 1]} : vector<16x32xf32> to vector<16x8xf32>
    %cst_80 = arith.constant dense<0.000000e+00> : vector<16x16xf32>
    %220 = tpu.matmul %218, %219, %cst_80 {dimension_numbers = #tpu.dot_dimension_numbers<[1], [1], [0], [0], [0, 0, 1, 0], [], []>} : vector<16x8xf32>, vector<16x8xf32>, vector<16x16xf32> -> vector<16x16xf32>
    %cst_81 = arith.constant 0.353553385 : f32
    %221 = vector.broadcast %cst_81 : f32 to vector<16x16xf32>
    %222 = arith.mulf %220, %221 : vector<16x16xf32>
    %223 = arith.addf %222, %36 : vector<16x16xf32>
    %cst_82 = arith.constant dense<0xFF800000> : vector<16xf32>
    %224 = vector.multi_reduction <maximumf>, %223, %cst_82 [1] : vector<16x16xf32> to vector<16xf32>
    %225 = vector.shape_cast %224 : vector<16xf32> to vector<16x1xf32>
    %226 = vector.broadcast %225 : vector<16x1xf32> to vector<16x16xf32>
    %227 = arith.subf %223, %226 : vector<16x16xf32>
    %228 = math.exp %227 : vector<16x16xf32>
    %cst_83 = arith.constant dense<0.000000e+00> : vector<16xf32>
    %229 = vector.multi_reduction <add>, %228, %cst_83 [1] : vector<16x16xf32> to vector<16xf32>
    %230 = vector.shape_cast %229 : vector<16xf32> to vector<16x1xf32>
    %231 = vector.broadcast %230 : vector<16x1xf32> to vector<16x16xf32>
    %232 = arith.divf %228, %231 : vector<16x16xf32>
    %233 = vector.extract_strided_slice %197 {offsets = [0, 8], sizes = [16, 8], strides = [1, 1]} : vector<16x32xf32> to vector<16x8xf32>
    %cst_84 = arith.constant dense<0.000000e+00> : vector<16x8xf32>
    %234 = tpu.matmul %232, %233, %cst_84 {dimension_numbers = #tpu.dot_dimension_numbers<[1], [0], [0], [1], [0, 0, 1, 1], [], []>} : vector<16x16xf32>, vector<16x8xf32>, vector<16x8xf32> -> vector<16x8xf32>
    %235 = vector.extract_strided_slice %195 {offsets = [0, 16], sizes = [16, 8], strides = [1, 1]} : vector<16x32xf32> to vector<16x8xf32>
    %236 = vector.extract_strided_slice %196 {offsets = [0, 16], sizes = [16, 8], strides = [1, 1]} : vector<16x32xf32> to vector<16x8xf32>
    %cst_85 = arith.constant dense<0.000000e+00> : vector<16x16xf32>
    %237 = tpu.matmul %235, %236, %cst_85 {dimension_numbers = #tpu.dot_dimension_numbers<[1], [1], [0], [0], [0, 0, 1, 0], [], []>} : vector<16x8xf32>, vector<16x8xf32>, vector<16x16xf32> -> vector<16x16xf32>
    %cst_86 = arith.constant 0.353553385 : f32
    %238 = vector.broadcast %cst_86 : f32 to vector<16x16xf32>
    %239 = arith.mulf %237, %238 : vector<16x16xf32>
    %240 = arith.addf %239, %36 : vector<16x16xf32>
    %cst_87 = arith.constant dense<0xFF800000> : vector<16xf32>
    %241 = vector.multi_reduction <maximumf>, %240, %cst_87 [1] : vector<16x16xf32> to vector<16xf32>
    %242 = vector.shape_cast %241 : vector<16xf32> to vector<16x1xf32>
    %243 = vector.broadcast %242 : vector<16x1xf32> to vector<16x16xf32>
    %244 = arith.subf %240, %243 : vector<16x16xf32>
    %245 = math.exp %244 : vector<16x16xf32>
    %cst_88 = arith.constant dense<0.000000e+00> : vector<16xf32>
    %246 = vector.multi_reduction <add>, %245, %cst_88 [1] : vector<16x16xf32> to vector<16xf32>
    %247 = vector.shape_cast %246 : vector<16xf32> to vector<16x1xf32>
    %248 = vector.broadcast %247 : vector<16x1xf32> to vector<16x16xf32>
    %249 = arith.divf %245, %248 : vector<16x16xf32>
    %250 = vector.extract_strided_slice %197 {offsets = [0, 16], sizes = [16, 8], strides = [1, 1]} : vector<16x32xf32> to vector<16x8xf32>
    %cst_89 = arith.constant dense<0.000000e+00> : vector<16x8xf32>
    %251 = tpu.matmul %249, %250, %cst_89 {dimension_numbers = #tpu.dot_dimension_numbers<[1], [0], [0], [1], [0, 0, 1, 1], [], []>} : vector<16x16xf32>, vector<16x8xf32>, vector<16x8xf32> -> vector<16x8xf32>
    %252 = vector.extract_strided_slice %195 {offsets = [0, 24], sizes = [16, 8], strides = [1, 1]} : vector<16x32xf32> to vector<16x8xf32>
    %253 = vector.extract_strided_slice %196 {offsets = [0, 24], sizes = [16, 8], strides = [1, 1]} : vector<16x32xf32> to vector<16x8xf32>
    %cst_90 = arith.constant dense<0.000000e+00> : vector<16x16xf32>
    %254 = tpu.matmul %252, %253, %cst_90 {dimension_numbers = #tpu.dot_dimension_numbers<[1], [1], [0], [0], [0, 0, 1, 0], [], []>} : vector<16x8xf32>, vector<16x8xf32>, vector<16x16xf32> -> vector<16x16xf32>
    %cst_91 = arith.constant 0.353553385 : f32
    %255 = vector.broadcast %cst_91 : f32 to vector<16x16xf32>
    %256 = arith.mulf %254, %255 : vector<16x16xf32>
    %257 = arith.addf %256, %36 : vector<16x16xf32>
    %cst_92 = arith.constant dense<0xFF800000> : vector<16xf32>
    %258 = vector.multi_reduction <maximumf>, %257, %cst_92 [1] : vector<16x16xf32> to vector<16xf32>
    %259 = vector.shape_cast %258 : vector<16xf32> to vector<16x1xf32>
    %260 = vector.broadcast %259 : vector<16x1xf32> to vector<16x16xf32>
    %261 = arith.subf %257, %260 : vector<16x16xf32>
    %262 = math.exp %261 : vector<16x16xf32>
    %cst_93 = arith.constant dense<0.000000e+00> : vector<16xf32>
    %263 = vector.multi_reduction <add>, %262, %cst_93 [1] : vector<16x16xf32> to vector<16xf32>
    %264 = vector.shape_cast %263 : vector<16xf32> to vector<16x1xf32>
    %265 = vector.broadcast %264 : vector<16x1xf32> to vector<16x16xf32>
    %266 = arith.divf %262, %265 : vector<16x16xf32>
    %267 = vector.extract_strided_slice %197 {offsets = [0, 24], sizes = [16, 8], strides = [1, 1]} : vector<16x32xf32> to vector<16x8xf32>
    %cst_94 = arith.constant dense<0.000000e+00> : vector<16x8xf32>
    %268 = tpu.matmul %266, %267, %cst_94 {dimension_numbers = #tpu.dot_dimension_numbers<[1], [0], [0], [1], [0, 0, 1, 1], [], []>} : vector<16x16xf32>, vector<16x8xf32>, vector<16x8xf32> -> vector<16x8xf32>
    %269 = tpu.concatenate %217, %234, %251, %268 in 1 : vector<16x8xf32>, vector<16x8xf32>, vector<16x8xf32>, vector<16x8xf32> -> vector<16x32xf32>
    %cst_95 = arith.constant dense<0.000000e+00> : vector<16x32xf32>
    %270 = tpu.matmul %269, %199, %cst_95 {dimension_numbers = #tpu.dot_dimension_numbers<[1], [0], [0], [1], [0, 0, 1, 1], [], []>} : vector<16x32xf32>, vector<32x32xf32>, vector<16x32xf32> -> vector<16x32xf32>
    %271 = vector.broadcast %200 : vector<1x32xf32> to vector<16x32xf32>
    %272 = arith.addf %270, %271 : vector<16x32xf32>
    %273 = arith.addf %186, %272 : vector<16x32xf32>
    %274 = vector.extract_strided_slice %188 {offsets = [4, 0], sizes = [1, 32], strides = [1, 1]} : vector<8x96xf32> to vector<1x32xf32>
    %275 = vector.extract_strided_slice %188 {offsets = [5, 0], sizes = [1, 32], strides = [1, 1]} : vector<8x96xf32> to vector<1x32xf32>
    %cst_96 = arith.constant dense<0.000000e+00> : vector<16xf32>
    %276 = vector.multi_reduction <add>, %273, %cst_96 [1] : vector<16x32xf32> to vector<16xf32>
    %277 = vector.shape_cast %276 : vector<16xf32> to vector<16x1xf32>
    %cst_97 = arith.constant 3.200000e+01 : f32
    %278 = vector.broadcast %cst_97 : f32 to vector<16x1xf32>
    %279 = arith.divf %277, %278 : vector<16x1xf32>
    %280 = vector.broadcast %279 : vector<16x1xf32> to vector<16x32xf32>
    %281 = arith.subf %273, %280 : vector<16x32xf32>
    %282 = arith.mulf %281, %281 : vector<16x32xf32>
    %cst_98 = arith.constant dense<0.000000e+00> : vector<16xf32>
    %283 = vector.multi_reduction <add>, %282, %cst_98 [1] : vector<16x32xf32> to vector<16xf32>
    %284 = vector.shape_cast %283 : vector<16xf32> to vector<16x1xf32>
    %cst_99 = arith.constant 3.200000e+01 : f32
    %285 = vector.broadcast %cst_99 : f32 to vector<16x1xf32>
    %286 = arith.divf %284, %285 : vector<16x1xf32>
    %287 = vector.broadcast %279 : vector<16x1xf32> to vector<16x32xf32>
    %288 = arith.subf %273, %287 : vector<16x32xf32>
    %cst_100 = arith.constant 9.99999974E-6 : f32
    %289 = vector.broadcast %cst_100 : f32 to vector<16x1xf32>
    %290 = arith.addf %286, %289 : vector<16x1xf32>
    %291 = math.rsqrt %290 : vector<16x1xf32>
    %292 = vector.broadcast %291 : vector<16x1xf32> to vector<16x32xf32>
    %293 = arith.mulf %288, %292 : vector<16x32xf32>
    %294 = vector.broadcast %274 : vector<1x32xf32> to vector<16x32xf32>
    %295 = arith.mulf %293, %294 : vector<16x32xf32>
    %296 = vector.broadcast %275 : vector<1x32xf32> to vector<16x32xf32>
    %297 = arith.addf %295, %296 : vector<16x32xf32>
    %c1_101 = arith.constant 1 : index
    %c0_102 = arith.constant 0 : index
    %c0_103 = arith.constant 0 : index
    %298 = vector.load %arg6[%c1_101, %c0_102, %c0_103] : memref<2x32x64xf32, #tpu.memory_space<vmem>>, vector<1x32x64xf32>
    %299 = vector.shape_cast %298 : vector<1x32x64xf32> to vector<32x64xf32>
    %cst_104 = arith.constant dense<0.000000e+00> : vector<16x64xf32>
    %300 = tpu.matmul %297, %299, %cst_104 {dimension_numbers = #tpu.dot_dimension_numbers<[1], [0], [0], [1], [0, 0, 1, 1], [], []>} : vector<16x32xf32>, vector<32x64xf32>, vector<16x64xf32> -> vector<16x64xf32>
    %301 = vector.extract_strided_slice %188 {offsets = [2, 0], sizes = [1, 64], strides = [1, 1]} : vector<8x96xf32> to vector<1x64xf32>
    %302 = vector.broadcast %301 : vector<1x64xf32> to vector<16x64xf32>
    %303 = arith.addf %300, %302 : vector<16x64xf32>
    %cst_105 = arith.constant 0.000000e+00 : f32
    %304 = vector.broadcast %cst_105 : f32 to vector<16x64xf32>
    %305 = arith.maximumf %303, %304 : vector<16x64xf32>
    %c1_106 = arith.constant 1 : index
    %c0_107 = arith.constant 0 : index
    %c0_108 = arith.constant 0 : index
    %306 = vector.load %arg7[%c1_106, %c0_107, %c0_108] : memref<2x64x32xf32, #tpu.memory_space<vmem>>, vector<1x64x32xf32>
    %307 = vector.shape_cast %306 : vector<1x64x32xf32> to vector<64x32xf32>
    %cst_109 = arith.constant dense<0.000000e+00> : vector<16x32xf32>
    %308 = tpu.matmul %305, %307, %cst_109 {dimension_numbers = #tpu.dot_dimension_numbers<[1], [0], [0], [1], [0, 0, 1, 1], [], []>} : vector<16x64xf32>, vector<64x32xf32>, vector<16x32xf32> -> vector<16x32xf32>
    %309 = vector.extract_strided_slice %188 {offsets = [3, 0], sizes = [1, 32], strides = [1, 1]} : vector<8x96xf32> to vector<1x32xf32>
    %310 = vector.broadcast %309 : vector<1x32xf32> to vector<16x32xf32>
    %311 = arith.addf %308, %310 : vector<16x32xf32>
    %312 = arith.addf %297, %311 : vector<16x32xf32>
    %313 = vector.extract_strided_slice %188 {offsets = [6, 0], sizes = [1, 32], strides = [1, 1]} : vector<8x96xf32> to vector<1x32xf32>
    %314 = vector.extract_strided_slice %188 {offsets = [7, 0], sizes = [1, 32], strides = [1, 1]} : vector<8x96xf32> to vector<1x32xf32>
    %cst_110 = arith.constant dense<0.000000e+00> : vector<16xf32>
    %315 = vector.multi_reduction <add>, %312, %cst_110 [1] : vector<16x32xf32> to vector<16xf32>
    %316 = vector.shape_cast %315 : vector<16xf32> to vector<16x1xf32>
    %cst_111 = arith.constant 3.200000e+01 : f32
    %317 = vector.broadcast %cst_111 : f32 to vector<16x1xf32>
    %318 = arith.divf %316, %317 : vector<16x1xf32>
    %319 = vector.broadcast %318 : vector<16x1xf32> to vector<16x32xf32>
    %320 = arith.subf %312, %319 : vector<16x32xf32>
    %321 = arith.mulf %320, %320 : vector<16x32xf32>
    %cst_112 = arith.constant dense<0.000000e+00> : vector<16xf32>
    %322 = vector.multi_reduction <add>, %321, %cst_112 [1] : vector<16x32xf32> to vector<16xf32>
    %323 = vector.shape_cast %322 : vector<16xf32> to vector<16x1xf32>
    %cst_113 = arith.constant 3.200000e+01 : f32
    %324 = vector.broadcast %cst_113 : f32 to vector<16x1xf32>
    %325 = arith.divf %323, %324 : vector<16x1xf32>
    %326 = vector.broadcast %318 : vector<16x1xf32> to vector<16x32xf32>
    %327 = arith.subf %312, %326 : vector<16x32xf32>
    %cst_114 = arith.constant 9.99999974E-6 : f32
    %328 = vector.broadcast %cst_114 : f32 to vector<16x1xf32>
    %329 = arith.addf %325, %328 : vector<16x1xf32>
    %330 = math.rsqrt %329 : vector<16x1xf32>
    %331 = vector.broadcast %330 : vector<16x1xf32> to vector<16x32xf32>
    %332 = arith.mulf %327, %331 : vector<16x32xf32>
    %333 = vector.broadcast %313 : vector<1x32xf32> to vector<16x32xf32>
    %334 = arith.mulf %332, %333 : vector<16x32xf32>
    %335 = vector.broadcast %314 : vector<1x32xf32> to vector<16x32xf32>
    %336 = arith.addf %334, %335 : vector<16x32xf32>
    %337 = vector.extract_strided_slice %0 {offsets = [1, 0], sizes = [1, 32], strides = [1, 1]} : vector<3x32xf32> to vector<1x32xf32>
    %338 = vector.extract_strided_slice %0 {offsets = [2, 0], sizes = [1, 32], strides = [1, 1]} : vector<3x32xf32> to vector<1x32xf32>
    %cst_115 = arith.constant dense<0.000000e+00> : vector<16xf32>
    %339 = vector.multi_reduction <add>, %336, %cst_115 [1] : vector<16x32xf32> to vector<16xf32>
    %340 = vector.shape_cast %339 : vector<16xf32> to vector<16x1xf32>
    %cst_116 = arith.constant 3.200000e+01 : f32
    %341 = vector.broadcast %cst_116 : f32 to vector<16x1xf32>
    %342 = arith.divf %340, %341 : vector<16x1xf32>
    %343 = vector.broadcast %342 : vector<16x1xf32> to vector<16x32xf32>
    %344 = arith.subf %336, %343 : vector<16x32xf32>
    %345 = arith.mulf %344, %344 : vector<16x32xf32>
    %cst_117 = arith.constant dense<0.000000e+00> : vector<16xf32>
    %346 = vector.multi_reduction <add>, %345, %cst_117 [1] : vector<16x32xf32> to vector<16xf32>
    %347 = vector.shape_cast %346 : vector<16xf32> to vector<16x1xf32>
    %cst_118 = arith.constant 3.200000e+01 : f32
    %348 = vector.broadcast %cst_118 : f32 to vector<16x1xf32>
    %349 = arith.divf %347, %348 : vector<16x1xf32>
    %350 = vector.broadcast %342 : vector<16x1xf32> to vector<16x32xf32>
    %351 = arith.subf %336, %350 : vector<16x32xf32>
    %cst_119 = arith.constant 9.99999974E-6 : f32
    %352 = vector.broadcast %cst_119 : f32 to vector<16x1xf32>
    %353 = arith.addf %349, %352 : vector<16x1xf32>
    %354 = math.rsqrt %353 : vector<16x1xf32>
    %355 = vector.broadcast %354 : vector<16x1xf32> to vector<16x32xf32>
    %356 = arith.mulf %351, %355 : vector<16x32xf32>
    %357 = vector.broadcast %337 : vector<1x32xf32> to vector<16x32xf32>
    %358 = arith.mulf %356, %357 : vector<16x32xf32>
    %359 = vector.broadcast %338 : vector<1x32xf32> to vector<16x32xf32>
    %360 = arith.addf %358, %359 : vector<16x32xf32>
    %c0_120 = arith.constant 0 : index
    %c0_121 = arith.constant 0 : index
    %361 = vector.load %arg9[%c0_120, %c0_121] : memref<16x32xf32, #tpu.memory_space<vmem>>, vector<16x32xf32>
    tpu.vector_store %arg9[%c0_120, %c0_121], %360 {strides = array<i32>} : memref<16x32xf32, #tpu.memory_space<vmem>>, vector<16x32xf32>,
    return
  }
}

module attributes {stable_mosaic.version = 11 : i64} {
  func.func @_decoder_stack_kernel(%arg0: memref<12x10xf32, #tpu.memory_space<vmem>>, %arg1: memref<16x32xf32, #tpu.memory_space<vmem>>, %arg2: memref<12x32xf32, #tpu.memory_space<vmem>>, %arg3: memref<10x32xf32, #tpu.memory_space<vmem>>, %arg4: memref<4x128xf32, #tpu.memory_space<vmem>>, %arg5: memref<2x32x96xf32, #tpu.memory_space<vmem>>, %arg6: memref<2x32x32xf32, #tpu.memory_space<vmem>>, %arg7: memref<2x32x32xf32, #tpu.memory_space<vmem>>, %arg8: memref<2x32x32xf32, #tpu.memory_space<vmem>>, %arg9: memref<2x32x64xf32, #tpu.memory_space<vmem>>, %arg10: memref<2x32x64xf32, #tpu.memory_space<vmem>>, %arg11: memref<2x64x32xf32, #tpu.memory_space<vmem>>, %arg12: memref<2x13x96xf32, #tpu.memory_space<vmem>>, %arg13: memref<32x128xf32, #tpu.memory_space<vmem>>, %arg14: memref<12x128xf32, #tpu.memory_space<vmem>>) attributes {dimension_semantics = [], scalar_prefetch = 0 : i64, scratch_operands = 0 : i64, tpu.core_type = #tpu.core_type<tc>} {
    %c0 = arith.constant 0 : index
    %c0_0 = arith.constant 0 : index
    %0 = vector.load %arg4[%c0, %c0_0] : memref<4x128xf32, #tpu.memory_space<vmem>>, vector<4x128xf32>
    %c0_1 = arith.constant 0 : index
    %c0_2 = arith.constant 0 : index
    %1 = vector.load %arg1[%c0_1, %c0_2] : memref<16x32xf32, #tpu.memory_space<vmem>>, vector<16x32xf32>
    %c0_3 = arith.constant 0 : index
    %c0_4 = arith.constant 0 : index
    %2 = vector.load %arg0[%c0_3, %c0_4] : memref<12x10xf32, #tpu.memory_space<vmem>>, vector<12x10xf32>
    %c0_5 = arith.constant 0 : index
    %c0_6 = arith.constant 0 : index
    %3 = vector.load %arg3[%c0_5, %c0_6] : memref<10x32xf32, #tpu.memory_space<vmem>>, vector<10x32xf32>
    %cst = arith.constant dense<0.000000e+00> : vector<12x32xf32>
    %4 = tpu.matmul %2, %3, %cst {dimension_numbers = #tpu.dot_dimension_numbers<[1], [0], [0], [1], [0, 0, 1, 1], [], []>} : vector<12x10xf32>, vector<10x32xf32>, vector<12x32xf32> -> vector<12x32xf32>
    %5 = vector.extract_strided_slice %0 {offsets = [0, 0], sizes = [1, 32], strides = [1, 1]} : vector<4x128xf32> to vector<1x32xf32>
    %6 = vector.broadcast %5 : vector<1x32xf32> to vector<12x32xf32>
    %7 = arith.addf %4, %6 : vector<12x32xf32>
    %cst_7 = arith.constant 5.65685415 : f32
    %8 = vector.broadcast %cst_7 : f32 to vector<12x32xf32>
    %9 = arith.mulf %7, %8 : vector<12x32xf32>
    %c0_8 = arith.constant 0 : index
    %c0_9 = arith.constant 0 : index
    %10 = vector.load %arg2[%c0_8, %c0_9] : memref<12x32xf32, #tpu.memory_space<vmem>>, vector<12x32xf32>
    %11 = arith.addf %9, %10 : vector<12x32xf32>
    %12 = tpu.iota {dimensions = array<i32: 0>} : vector<12x12xi32>
    %13 = arith.sitofp %12 : vector<12x12xi32> to vector<12x12xf32>
    %14 = tpu.iota {dimensions = array<i32: 1>} : vector<12x12xi32>
    %15 = arith.sitofp %14 : vector<12x12xi32> to vector<12x12xf32>
    %cst_10 = arith.constant 5.000000e-01 : f32
    %16 = vector.broadcast %cst_10 : f32 to vector<12x12xf32>
    %17 = arith.addf %13, %16 : vector<12x12xf32>
    %cst_11 = arith.constant 5.000000e-01 : f32
    %18 = vector.broadcast %cst_11 : f32 to vector<12x12xf32>
    %19 = arith.mulf %17, %18 : vector<12x12xf32>
    %20 = math.floor %19 : vector<12x12xf32>
    %cst_12 = arith.constant 5.000000e-01 : f32
    %21 = vector.broadcast %cst_12 : f32 to vector<12x12xf32>
    %22 = arith.addf %15, %21 : vector<12x12xf32>
    %cst_13 = arith.constant 5.000000e-01 : f32
    %23 = vector.broadcast %cst_13 : f32 to vector<12x12xf32>
    %24 = arith.mulf %22, %23 : vector<12x12xf32>
    %25 = math.floor %24 : vector<12x12xf32>
    %cst_14 = arith.constant 2.000000e+00 : f32
    %26 = vector.broadcast %cst_14 : f32 to vector<12x12xf32>
    %27 = arith.mulf %26, %20 : vector<12x12xf32>
    %28 = arith.subf %13, %27 : vector<12x12xf32>
    %cst_15 = arith.constant 2.000000e+00 : f32
    %29 = vector.broadcast %cst_15 : f32 to vector<12x12xf32>
    %30 = arith.mulf %29, %25 : vector<12x12xf32>
    %31 = arith.subf %15, %30 : vector<12x12xf32>
    %32 = arith.cmpf oeq, %28, %31 : vector<12x12xf32>
    %33 = arith.cmpf ole, %25, %20 : vector<12x12xf32>
    %34 = arith.andi %32, %33 : vector<12x12xi1>
    %cst_16 = arith.constant 0.000000e+00 : f32
    %cst_17 = arith.constant -1.000000e+30 : f32
    %35 = vector.broadcast %cst_16 : f32 to vector<12x12xf32>
    %36 = vector.broadcast %cst_17 : f32 to vector<12x12xf32>
    %37 = arith.select %34, %35, %36 : vector<12x12xi1>, vector<12x12xf32>
    %38 = tpu.iota {dimensions = array<i32: 0>} : vector<12x16xi32>
    %39 = arith.sitofp %38 : vector<12x16xi32> to vector<12x16xf32>
    %40 = tpu.iota {dimensions = array<i32: 1>} : vector<12x16xi32>
    %41 = arith.sitofp %40 : vector<12x16xi32> to vector<12x16xf32>
    %cst_18 = arith.constant 5.000000e-01 : f32
    %42 = vector.broadcast %cst_18 : f32 to vector<12x16xf32>
    %43 = arith.addf %39, %42 : vector<12x16xf32>
    %cst_19 = arith.constant 5.000000e-01 : f32
    %44 = vector.broadcast %cst_19 : f32 to vector<12x16xf32>
    %45 = arith.mulf %43, %44 : vector<12x16xf32>
    %46 = math.floor %45 : vector<12x16xf32>
    %cst_20 = arith.constant 5.000000e-01 : f32
    %47 = vector.broadcast %cst_20 : f32 to vector<12x16xf32>
    %48 = arith.addf %41, %47 : vector<12x16xf32>
    %cst_21 = arith.constant 5.000000e-01 : f32
    %49 = vector.broadcast %cst_21 : f32 to vector<12x16xf32>
    %50 = arith.mulf %48, %49 : vector<12x16xf32>
    %51 = math.floor %50 : vector<12x16xf32>
    %cst_22 = arith.constant 2.000000e+00 : f32
    %52 = vector.broadcast %cst_22 : f32 to vector<12x16xf32>
    %53 = arith.mulf %52, %46 : vector<12x16xf32>
    %54 = arith.subf %39, %53 : vector<12x16xf32>
    %cst_23 = arith.constant 2.000000e+00 : f32
    %55 = vector.broadcast %cst_23 : f32 to vector<12x16xf32>
    %56 = arith.mulf %55, %51 : vector<12x16xf32>
    %57 = arith.subf %41, %56 : vector<12x16xf32>
    %58 = arith.cmpf oeq, %54, %57 : vector<12x16xf32>
    %cst_24 = arith.constant 0.000000e+00 : f32
    %cst_25 = arith.constant -1.000000e+30 : f32
    %59 = vector.broadcast %cst_24 : f32 to vector<12x16xf32>
    %60 = vector.broadcast %cst_25 : f32 to vector<12x16xf32>
    %61 = arith.select %58, %59, %60 : vector<12x16xi1>, vector<12x16xf32>
    %c0_26 = arith.constant 0 : index
    %c0_27 = arith.constant 0 : index
    %c0_28 = arith.constant 0 : index
    %62 = vector.load %arg12[%c0_26, %c0_27, %c0_28] : memref<2x13x96xf32, #tpu.memory_space<vmem>>, vector<1x13x96xf32>
    %63 = vector.shape_cast %62 : vector<1x13x96xf32> to vector<13x96xf32>
    %c0_29 = arith.constant 0 : index
    %c0_30 = arith.constant 0 : index
    %c0_31 = arith.constant 0 : index
    %64 = vector.load %arg5[%c0_29, %c0_30, %c0_31] : memref<2x32x96xf32, #tpu.memory_space<vmem>>, vector<1x32x96xf32>
    %65 = vector.shape_cast %64 : vector<1x32x96xf32> to vector<32x96xf32>
    %cst_32 = arith.constant dense<0.000000e+00> : vector<12x96xf32>
    %66 = tpu.matmul %11, %65, %cst_32 {dimension_numbers = #tpu.dot_dimension_numbers<[1], [0], [0], [1], [0, 0, 1, 1], [], []>} : vector<12x32xf32>, vector<32x96xf32>, vector<12x96xf32> -> vector<12x96xf32>
    %67 = vector.extract_strided_slice %63 {offsets = [0, 0], sizes = [1, 96], strides = [1, 1]} : vector<13x96xf32> to vector<1x96xf32>
    %68 = vector.broadcast %67 : vector<1x96xf32> to vector<12x96xf32>
    %69 = arith.addf %66, %68 : vector<12x96xf32>
    %70 = vector.extract_strided_slice %69 {offsets = [0, 0], sizes = [12, 32], strides = [1, 1]} : vector<12x96xf32> to vector<12x32xf32>
    %71 = vector.extract_strided_slice %69 {offsets = [0, 32], sizes = [12, 32], strides = [1, 1]} : vector<12x96xf32> to vector<12x32xf32>
    %72 = vector.extract_strided_slice %69 {offsets = [0, 64], sizes = [12, 32], strides = [1, 1]} : vector<12x96xf32> to vector<12x32xf32>
    %c0_33 = arith.constant 0 : index
    %c0_34 = arith.constant 0 : index
    %c0_35 = arith.constant 0 : index
    %73 = vector.load %arg6[%c0_33, %c0_34, %c0_35] : memref<2x32x32xf32, #tpu.memory_space<vmem>>, vector<1x32x32xf32>
    %74 = vector.shape_cast %73 : vector<1x32x32xf32> to vector<32x32xf32>
    %75 = vector.extract_strided_slice %63 {offsets = [1, 0], sizes = [1, 32], strides = [1, 1]} : vector<13x96xf32> to vector<1x32xf32>
    %76 = vector.extract_strided_slice %70 {offsets = [0, 0], sizes = [12, 8], strides = [1, 1]} : vector<12x32xf32> to vector<12x8xf32>
    %77 = vector.extract_strided_slice %71 {offsets = [0, 0], sizes = [12, 8], strides = [1, 1]} : vector<12x32xf32> to vector<12x8xf32>
    %cst_36 = arith.constant dense<0.000000e+00> : vector<12x12xf32>
    %78 = tpu.matmul %76, %77, %cst_36 {dimension_numbers = #tpu.dot_dimension_numbers<[1], [1], [0], [0], [0, 0, 1, 0], [], []>} : vector<12x8xf32>, vector<12x8xf32>, vector<12x12xf32> -> vector<12x12xf32>
    %cst_37 = arith.constant 0.353553385 : f32
    %79 = vector.broadcast %cst_37 : f32 to vector<12x12xf32>
    %80 = arith.mulf %78, %79 : vector<12x12xf32>
    %81 = arith.addf %80, %37 : vector<12x12xf32>
    %cst_38 = arith.constant dense<0xFF800000> : vector<12xf32>
    %82 = vector.multi_reduction <maximumf>, %81, %cst_38 [1] : vector<12x12xf32> to vector<12xf32>
    %83 = vector.shape_cast %82 : vector<12xf32> to vector<12x1xf32>
    %84 = vector.broadcast %83 : vector<12x1xf32> to vector<12x12xf32>
    %85 = arith.subf %81, %84 : vector<12x12xf32>
    %86 = math.exp %85 : vector<12x12xf32>
    %cst_39 = arith.constant dense<0.000000e+00> : vector<12xf32>
    %87 = vector.multi_reduction <add>, %86, %cst_39 [1] : vector<12x12xf32> to vector<12xf32>
    %88 = vector.shape_cast %87 : vector<12xf32> to vector<12x1xf32>
    %89 = vector.broadcast %88 : vector<12x1xf32> to vector<12x12xf32>
    %90 = arith.divf %86, %89 : vector<12x12xf32>
    %91 = vector.extract_strided_slice %72 {offsets = [0, 0], sizes = [12, 8], strides = [1, 1]} : vector<12x32xf32> to vector<12x8xf32>
    %cst_40 = arith.constant dense<0.000000e+00> : vector<12x8xf32>
    %92 = tpu.matmul %90, %91, %cst_40 {dimension_numbers = #tpu.dot_dimension_numbers<[1], [0], [0], [1], [0, 0, 1, 1], [], []>} : vector<12x12xf32>, vector<12x8xf32>, vector<12x8xf32> -> vector<12x8xf32>
    %93 = vector.extract_strided_slice %70 {offsets = [0, 8], sizes = [12, 8], strides = [1, 1]} : vector<12x32xf32> to vector<12x8xf32>
    %94 = vector.extract_strided_slice %71 {offsets = [0, 8], sizes = [12, 8], strides = [1, 1]} : vector<12x32xf32> to vector<12x8xf32>
    %cst_41 = arith.constant dense<0.000000e+00> : vector<12x12xf32>
    %95 = tpu.matmul %93, %94, %cst_41 {dimension_numbers = #tpu.dot_dimension_numbers<[1], [1], [0], [0], [0, 0, 1, 0], [], []>} : vector<12x8xf32>, vector<12x8xf32>, vector<12x12xf32> -> vector<12x12xf32>
    %cst_42 = arith.constant 0.353553385 : f32
    %96 = vector.broadcast %cst_42 : f32 to vector<12x12xf32>
    %97 = arith.mulf %95, %96 : vector<12x12xf32>
    %98 = arith.addf %97, %37 : vector<12x12xf32>
    %cst_43 = arith.constant dense<0xFF800000> : vector<12xf32>
    %99 = vector.multi_reduction <maximumf>, %98, %cst_43 [1] : vector<12x12xf32> to vector<12xf32>
    %100 = vector.shape_cast %99 : vector<12xf32> to vector<12x1xf32>
    %101 = vector.broadcast %100 : vector<12x1xf32> to vector<12x12xf32>
    %102 = arith.subf %98, %101 : vector<12x12xf32>
    %103 = math.exp %102 : vector<12x12xf32>
    %cst_44 = arith.constant dense<0.000000e+00> : vector<12xf32>
    %104 = vector.multi_reduction <add>, %103, %cst_44 [1] : vector<12x12xf32> to vector<12xf32>
    %105 = vector.shape_cast %104 : vector<12xf32> to vector<12x1xf32>
    %106 = vector.broadcast %105 : vector<12x1xf32> to vector<12x12xf32>
    %107 = arith.divf %103, %106 : vector<12x12xf32>
    %108 = vector.extract_strided_slice %72 {offsets = [0, 8], sizes = [12, 8], strides = [1, 1]} : vector<12x32xf32> to vector<12x8xf32>
    %cst_45 = arith.constant dense<0.000000e+00> : vector<12x8xf32>
    %109 = tpu.matmul %107, %108, %cst_45 {dimension_numbers = #tpu.dot_dimension_numbers<[1], [0], [0], [1], [0, 0, 1, 1], [], []>} : vector<12x12xf32>, vector<12x8xf32>, vector<12x8xf32> -> vector<12x8xf32>
    %110 = vector.extract_strided_slice %70 {offsets = [0, 16], sizes = [12, 8], strides = [1, 1]} : vector<12x32xf32> to vector<12x8xf32>
    %111 = vector.extract_strided_slice %71 {offsets = [0, 16], sizes = [12, 8], strides = [1, 1]} : vector<12x32xf32> to vector<12x8xf32>
    %cst_46 = arith.constant dense<0.000000e+00> : vector<12x12xf32>
    %112 = tpu.matmul %110, %111, %cst_46 {dimension_numbers = #tpu.dot_dimension_numbers<[1], [1], [0], [0], [0, 0, 1, 0], [], []>} : vector<12x8xf32>, vector<12x8xf32>, vector<12x12xf32> -> vector<12x12xf32>
    %cst_47 = arith.constant 0.353553385 : f32
    %113 = vector.broadcast %cst_47 : f32 to vector<12x12xf32>
    %114 = arith.mulf %112, %113 : vector<12x12xf32>
    %115 = arith.addf %114, %37 : vector<12x12xf32>
    %cst_48 = arith.constant dense<0xFF800000> : vector<12xf32>
    %116 = vector.multi_reduction <maximumf>, %115, %cst_48 [1] : vector<12x12xf32> to vector<12xf32>
    %117 = vector.shape_cast %116 : vector<12xf32> to vector<12x1xf32>
    %118 = vector.broadcast %117 : vector<12x1xf32> to vector<12x12xf32>
    %119 = arith.subf %115, %118 : vector<12x12xf32>
    %120 = math.exp %119 : vector<12x12xf32>
    %cst_49 = arith.constant dense<0.000000e+00> : vector<12xf32>
    %121 = vector.multi_reduction <add>, %120, %cst_49 [1] : vector<12x12xf32> to vector<12xf32>
    %122 = vector.shape_cast %121 : vector<12xf32> to vector<12x1xf32>
    %123 = vector.broadcast %122 : vector<12x1xf32> to vector<12x12xf32>
    %124 = arith.divf %120, %123 : vector<12x12xf32>
    %125 = vector.extract_strided_slice %72 {offsets = [0, 16], sizes = [12, 8], strides = [1, 1]} : vector<12x32xf32> to vector<12x8xf32>
    %cst_50 = arith.constant dense<0.000000e+00> : vector<12x8xf32>
    %126 = tpu.matmul %124, %125, %cst_50 {dimension_numbers = #tpu.dot_dimension_numbers<[1], [0], [0], [1], [0, 0, 1, 1], [], []>} : vector<12x12xf32>, vector<12x8xf32>, vector<12x8xf32> -> vector<12x8xf32>
    %127 = vector.extract_strided_slice %70 {offsets = [0, 24], sizes = [12, 8], strides = [1, 1]} : vector<12x32xf32> to vector<12x8xf32>
    %128 = vector.extract_strided_slice %71 {offsets = [0, 24], sizes = [12, 8], strides = [1, 1]} : vector<12x32xf32> to vector<12x8xf32>
    %cst_51 = arith.constant dense<0.000000e+00> : vector<12x12xf32>
    %129 = tpu.matmul %127, %128, %cst_51 {dimension_numbers = #tpu.dot_dimension_numbers<[1], [1], [0], [0], [0, 0, 1, 0], [], []>} : vector<12x8xf32>, vector<12x8xf32>, vector<12x12xf32> -> vector<12x12xf32>
    %cst_52 = arith.constant 0.353553385 : f32
    %130 = vector.broadcast %cst_52 : f32 to vector<12x12xf32>
    %131 = arith.mulf %129, %130 : vector<12x12xf32>
    %132 = arith.addf %131, %37 : vector<12x12xf32>
    %cst_53 = arith.constant dense<0xFF800000> : vector<12xf32>
    %133 = vector.multi_reduction <maximumf>, %132, %cst_53 [1] : vector<12x12xf32> to vector<12xf32>
    %134 = vector.shape_cast %133 : vector<12xf32> to vector<12x1xf32>
    %135 = vector.broadcast %134 : vector<12x1xf32> to vector<12x12xf32>
    %136 = arith.subf %132, %135 : vector<12x12xf32>
    %137 = math.exp %136 : vector<12x12xf32>
    %cst_54 = arith.constant dense<0.000000e+00> : vector<12xf32>
    %138 = vector.multi_reduction <add>, %137, %cst_54 [1] : vector<12x12xf32> to vector<12xf32>
    %139 = vector.shape_cast %138 : vector<12xf32> to vector<12x1xf32>
    %140 = vector.broadcast %139 : vector<12x1xf32> to vector<12x12xf32>
    %141 = arith.divf %137, %140 : vector<12x12xf32>
    %142 = vector.extract_strided_slice %72 {offsets = [0, 24], sizes = [12, 8], strides = [1, 1]} : vector<12x32xf32> to vector<12x8xf32>
    %cst_55 = arith.constant dense<0.000000e+00> : vector<12x8xf32>
    %143 = tpu.matmul %141, %142, %cst_55 {dimension_numbers = #tpu.dot_dimension_numbers<[1], [0], [0], [1], [0, 0, 1, 1], [], []>} : vector<12x12xf32>, vector<12x8xf32>, vector<12x8xf32> -> vector<12x8xf32>
    %144 = tpu.concatenate %92, %109, %126, %143 in 1 : vector<12x8xf32>, vector<12x8xf32>, vector<12x8xf32>, vector<12x8xf32> -> vector<12x32xf32>
    %cst_56 = arith.constant dense<0.000000e+00> : vector<12x32xf32>
    %145 = tpu.matmul %144, %74, %cst_56 {dimension_numbers = #tpu.dot_dimension_numbers<[1], [0], [0], [1], [0, 0, 1, 1], [], []>} : vector<12x32xf32>, vector<32x32xf32>, vector<12x32xf32> -> vector<12x32xf32>
    %146 = vector.broadcast %75 : vector<1x32xf32> to vector<12x32xf32>
    %147 = arith.addf %145, %146 : vector<12x32xf32>
    %148 = arith.addf %11, %147 : vector<12x32xf32>
    %149 = vector.extract_strided_slice %63 {offsets = [7, 0], sizes = [1, 32], strides = [1, 1]} : vector<13x96xf32> to vector<1x32xf32>
    %150 = vector.extract_strided_slice %63 {offsets = [8, 0], sizes = [1, 32], strides = [1, 1]} : vector<13x96xf32> to vector<1x32xf32>
    %cst_57 = arith.constant dense<0.000000e+00> : vector<12xf32>
    %151 = vector.multi_reduction <add>, %148, %cst_57 [1] : vector<12x32xf32> to vector<12xf32>
    %152 = vector.shape_cast %151 : vector<12xf32> to vector<12x1xf32>
    %cst_58 = arith.constant 3.200000e+01 : f32
    %153 = vector.broadcast %cst_58 : f32 to vector<12x1xf32>
    %154 = arith.divf %152, %153 : vector<12x1xf32>
    %155 = vector.broadcast %154 : vector<12x1xf32> to vector<12x32xf32>
    %156 = arith.subf %148, %155 : vector<12x32xf32>
    %157 = arith.mulf %156, %156 : vector<12x32xf32>
    %cst_59 = arith.constant dense<0.000000e+00> : vector<12xf32>
    %158 = vector.multi_reduction <add>, %157, %cst_59 [1] : vector<12x32xf32> to vector<12xf32>
    %159 = vector.shape_cast %158 : vector<12xf32> to vector<12x1xf32>
    %cst_60 = arith.constant 3.200000e+01 : f32
    %160 = vector.broadcast %cst_60 : f32 to vector<12x1xf32>
    %161 = arith.divf %159, %160 : vector<12x1xf32>
    %162 = vector.broadcast %154 : vector<12x1xf32> to vector<12x32xf32>
    %163 = arith.subf %148, %162 : vector<12x32xf32>
    %cst_61 = arith.constant 9.99999974E-6 : f32
    %164 = vector.broadcast %cst_61 : f32 to vector<12x1xf32>
    %165 = arith.addf %161, %164 : vector<12x1xf32>
    %166 = math.rsqrt %165 : vector<12x1xf32>
    %167 = vector.broadcast %166 : vector<12x1xf32> to vector<12x32xf32>
    %168 = arith.mulf %163, %167 : vector<12x32xf32>
    %169 = vector.broadcast %149 : vector<1x32xf32> to vector<12x32xf32>
    %170 = arith.mulf %168, %169 : vector<12x32xf32>
    %171 = vector.broadcast %150 : vector<1x32xf32> to vector<12x32xf32>
    %172 = arith.addf %170, %171 : vector<12x32xf32>
    %c0_62 = arith.constant 0 : index
    %c0_63 = arith.constant 0 : index
    %c0_64 = arith.constant 0 : index
    %173 = vector.load %arg7[%c0_62, %c0_63, %c0_64] : memref<2x32x32xf32, #tpu.memory_space<vmem>>, vector<1x32x32xf32>
    %174 = vector.shape_cast %173 : vector<1x32x32xf32> to vector<32x32xf32>
    %cst_65 = arith.constant dense<0.000000e+00> : vector<12x32xf32>
    %175 = tpu.matmul %172, %174, %cst_65 {dimension_numbers = #tpu.dot_dimension_numbers<[1], [0], [0], [1], [0, 0, 1, 1], [], []>} : vector<12x32xf32>, vector<32x32xf32>, vector<12x32xf32> -> vector<12x32xf32>
    %176 = vector.extract_strided_slice %63 {offsets = [2, 0], sizes = [1, 32], strides = [1, 1]} : vector<13x96xf32> to vector<1x32xf32>
    %177 = vector.broadcast %176 : vector<1x32xf32> to vector<12x32xf32>
    %178 = arith.addf %175, %177 : vector<12x32xf32>
    %c0_66 = arith.constant 0 : index
    %c0_67 = arith.constant 0 : index
    %c0_68 = arith.constant 0 : index
    %179 = vector.load %arg9[%c0_66, %c0_67, %c0_68] : memref<2x32x64xf32, #tpu.memory_space<vmem>>, vector<1x32x64xf32>
    %180 = vector.shape_cast %179 : vector<1x32x64xf32> to vector<32x64xf32>
    %cst_69 = arith.constant dense<0.000000e+00> : vector<16x64xf32>
    %181 = tpu.matmul %1, %180, %cst_69 {dimension_numbers = #tpu.dot_dimension_numbers<[1], [0], [0], [1], [0, 0, 1, 1], [], []>} : vector<16x32xf32>, vector<32x64xf32>, vector<16x64xf32> -> vector<16x64xf32>
    %182 = vector.extract_strided_slice %63 {offsets = [3, 0], sizes = [1, 64], strides = [1, 1]} : vector<13x96xf32> to vector<1x64xf32>
    %183 = vector.broadcast %182 : vector<1x64xf32> to vector<16x64xf32>
    %184 = arith.addf %181, %183 : vector<16x64xf32>
    %185 = vector.extract_strided_slice %184 {offsets = [0, 0], sizes = [16, 32], strides = [1, 1]} : vector<16x64xf32> to vector<16x32xf32>
    %186 = vector.extract_strided_slice %184 {offsets = [0, 32], sizes = [16, 32], strides = [1, 1]} : vector<16x64xf32> to vector<16x32xf32>
    %c0_70 = arith.constant 0 : index
    %c0_71 = arith.constant 0 : index
    %c0_72 = arith.constant 0 : index
    %187 = vector.load %arg8[%c0_70, %c0_71, %c0_72] : memref<2x32x32xf32, #tpu.memory_space<vmem>>, vector<1x32x32xf32>
    %188 = vector.shape_cast %187 : vector<1x32x32xf32> to vector<32x32xf32>
    %189 = vector.extract_strided_slice %63 {offsets = [4, 0], sizes = [1, 32], strides = [1, 1]} : vector<13x96xf32> to vector<1x32xf32>
    %190 = vector.extract_strided_slice %178 {offsets = [0, 0], sizes = [12, 8], strides = [1, 1]} : vector<12x32xf32> to vector<12x8xf32>
    %191 = vector.extract_strided_slice %185 {offsets = [0, 0], sizes = [16, 8], strides = [1, 1]} : vector<16x32xf32> to vector<16x8xf32>
    %cst_73 = arith.constant dense<0.000000e+00> : vector<12x16xf32>
    %192 = tpu.matmul %190, %191, %cst_73 {dimension_numbers = #tpu.dot_dimension_numbers<[1], [1], [0], [0], [0, 0, 1, 0], [], []>} : vector<12x8xf32>, vector<16x8xf32>, vector<12x16xf32> -> vector<12x16xf32>
    %cst_74 = arith.constant 0.353553385 : f32
    %193 = vector.broadcast %cst_74 : f32 to vector<12x16xf32>
    %194 = arith.mulf %192, %193 : vector<12x16xf32>
    %195 = arith.addf %194, %61 : vector<12x16xf32>
    %cst_75 = arith.constant dense<0xFF800000> : vector<12xf32>
    %196 = vector.multi_reduction <maximumf>, %195, %cst_75 [1] : vector<12x16xf32> to vector<12xf32>
    %197 = vector.shape_cast %196 : vector<12xf32> to vector<12x1xf32>
    %198 = vector.broadcast %197 : vector<12x1xf32> to vector<12x16xf32>
    %199 = arith.subf %195, %198 : vector<12x16xf32>
    %200 = math.exp %199 : vector<12x16xf32>
    %cst_76 = arith.constant dense<0.000000e+00> : vector<12xf32>
    %201 = vector.multi_reduction <add>, %200, %cst_76 [1] : vector<12x16xf32> to vector<12xf32>
    %202 = vector.shape_cast %201 : vector<12xf32> to vector<12x1xf32>
    %203 = vector.broadcast %202 : vector<12x1xf32> to vector<12x16xf32>
    %204 = arith.divf %200, %203 : vector<12x16xf32>
    %205 = vector.extract_strided_slice %186 {offsets = [0, 0], sizes = [16, 8], strides = [1, 1]} : vector<16x32xf32> to vector<16x8xf32>
    %cst_77 = arith.constant dense<0.000000e+00> : vector<12x8xf32>
    %206 = tpu.matmul %204, %205, %cst_77 {dimension_numbers = #tpu.dot_dimension_numbers<[1], [0], [0], [1], [0, 0, 1, 1], [], []>} : vector<12x16xf32>, vector<16x8xf32>, vector<12x8xf32> -> vector<12x8xf32>
    %207 = vector.extract_strided_slice %178 {offsets = [0, 8], sizes = [12, 8], strides = [1, 1]} : vector<12x32xf32> to vector<12x8xf32>
    %208 = vector.extract_strided_slice %185 {offsets = [0, 8], sizes = [16, 8], strides = [1, 1]} : vector<16x32xf32> to vector<16x8xf32>
    %cst_78 = arith.constant dense<0.000000e+00> : vector<12x16xf32>
    %209 = tpu.matmul %207, %208, %cst_78 {dimension_numbers = #tpu.dot_dimension_numbers<[1], [1], [0], [0], [0, 0, 1, 0], [], []>} : vector<12x8xf32>, vector<16x8xf32>, vector<12x16xf32> -> vector<12x16xf32>
    %cst_79 = arith.constant 0.353553385 : f32
    %210 = vector.broadcast %cst_79 : f32 to vector<12x16xf32>
    %211 = arith.mulf %209, %210 : vector<12x16xf32>
    %212 = arith.addf %211, %61 : vector<12x16xf32>
    %cst_80 = arith.constant dense<0xFF800000> : vector<12xf32>
    %213 = vector.multi_reduction <maximumf>, %212, %cst_80 [1] : vector<12x16xf32> to vector<12xf32>
    %214 = vector.shape_cast %213 : vector<12xf32> to vector<12x1xf32>
    %215 = vector.broadcast %214 : vector<12x1xf32> to vector<12x16xf32>
    %216 = arith.subf %212, %215 : vector<12x16xf32>
    %217 = math.exp %216 : vector<12x16xf32>
    %cst_81 = arith.constant dense<0.000000e+00> : vector<12xf32>
    %218 = vector.multi_reduction <add>, %217, %cst_81 [1] : vector<12x16xf32> to vector<12xf32>
    %219 = vector.shape_cast %218 : vector<12xf32> to vector<12x1xf32>
    %220 = vector.broadcast %219 : vector<12x1xf32> to vector<12x16xf32>
    %221 = arith.divf %217, %220 : vector<12x16xf32>
    %222 = vector.extract_strided_slice %186 {offsets = [0, 8], sizes = [16, 8], strides = [1, 1]} : vector<16x32xf32> to vector<16x8xf32>
    %cst_82 = arith.constant dense<0.000000e+00> : vector<12x8xf32>
    %223 = tpu.matmul %221, %222, %cst_82 {dimension_numbers = #tpu.dot_dimension_numbers<[1], [0], [0], [1], [0, 0, 1, 1], [], []>} : vector<12x16xf32>, vector<16x8xf32>, vector<12x8xf32> -> vector<12x8xf32>
    %224 = vector.extract_strided_slice %178 {offsets = [0, 16], sizes = [12, 8], strides = [1, 1]} : vector<12x32xf32> to vector<12x8xf32>
    %225 = vector.extract_strided_slice %185 {offsets = [0, 16], sizes = [16, 8], strides = [1, 1]} : vector<16x32xf32> to vector<16x8xf32>
    %cst_83 = arith.constant dense<0.000000e+00> : vector<12x16xf32>
    %226 = tpu.matmul %224, %225, %cst_83 {dimension_numbers = #tpu.dot_dimension_numbers<[1], [1], [0], [0], [0, 0, 1, 0], [], []>} : vector<12x8xf32>, vector<16x8xf32>, vector<12x16xf32> -> vector<12x16xf32>
    %cst_84 = arith.constant 0.353553385 : f32
    %227 = vector.broadcast %cst_84 : f32 to vector<12x16xf32>
    %228 = arith.mulf %226, %227 : vector<12x16xf32>
    %229 = arith.addf %228, %61 : vector<12x16xf32>
    %cst_85 = arith.constant dense<0xFF800000> : vector<12xf32>
    %230 = vector.multi_reduction <maximumf>, %229, %cst_85 [1] : vector<12x16xf32> to vector<12xf32>
    %231 = vector.shape_cast %230 : vector<12xf32> to vector<12x1xf32>
    %232 = vector.broadcast %231 : vector<12x1xf32> to vector<12x16xf32>
    %233 = arith.subf %229, %232 : vector<12x16xf32>
    %234 = math.exp %233 : vector<12x16xf32>
    %cst_86 = arith.constant dense<0.000000e+00> : vector<12xf32>
    %235 = vector.multi_reduction <add>, %234, %cst_86 [1] : vector<12x16xf32> to vector<12xf32>
    %236 = vector.shape_cast %235 : vector<12xf32> to vector<12x1xf32>
    %237 = vector.broadcast %236 : vector<12x1xf32> to vector<12x16xf32>
    %238 = arith.divf %234, %237 : vector<12x16xf32>
    %239 = vector.extract_strided_slice %186 {offsets = [0, 16], sizes = [16, 8], strides = [1, 1]} : vector<16x32xf32> to vector<16x8xf32>
    %cst_87 = arith.constant dense<0.000000e+00> : vector<12x8xf32>
    %240 = tpu.matmul %238, %239, %cst_87 {dimension_numbers = #tpu.dot_dimension_numbers<[1], [0], [0], [1], [0, 0, 1, 1], [], []>} : vector<12x16xf32>, vector<16x8xf32>, vector<12x8xf32> -> vector<12x8xf32>
    %241 = vector.extract_strided_slice %178 {offsets = [0, 24], sizes = [12, 8], strides = [1, 1]} : vector<12x32xf32> to vector<12x8xf32>
    %242 = vector.extract_strided_slice %185 {offsets = [0, 24], sizes = [16, 8], strides = [1, 1]} : vector<16x32xf32> to vector<16x8xf32>
    %cst_88 = arith.constant dense<0.000000e+00> : vector<12x16xf32>
    %243 = tpu.matmul %241, %242, %cst_88 {dimension_numbers = #tpu.dot_dimension_numbers<[1], [1], [0], [0], [0, 0, 1, 0], [], []>} : vector<12x8xf32>, vector<16x8xf32>, vector<12x16xf32> -> vector<12x16xf32>
    %cst_89 = arith.constant 0.353553385 : f32
    %244 = vector.broadcast %cst_89 : f32 to vector<12x16xf32>
    %245 = arith.mulf %243, %244 : vector<12x16xf32>
    %246 = arith.addf %245, %61 : vector<12x16xf32>
    %cst_90 = arith.constant dense<0xFF800000> : vector<12xf32>
    %247 = vector.multi_reduction <maximumf>, %246, %cst_90 [1] : vector<12x16xf32> to vector<12xf32>
    %248 = vector.shape_cast %247 : vector<12xf32> to vector<12x1xf32>
    %249 = vector.broadcast %248 : vector<12x1xf32> to vector<12x16xf32>
    %250 = arith.subf %246, %249 : vector<12x16xf32>
    %251 = math.exp %250 : vector<12x16xf32>
    %cst_91 = arith.constant dense<0.000000e+00> : vector<12xf32>
    %252 = vector.multi_reduction <add>, %251, %cst_91 [1] : vector<12x16xf32> to vector<12xf32>
    %253 = vector.shape_cast %252 : vector<12xf32> to vector<12x1xf32>
    %254 = vector.broadcast %253 : vector<12x1xf32> to vector<12x16xf32>
    %255 = arith.divf %251, %254 : vector<12x16xf32>
    %256 = vector.extract_strided_slice %186 {offsets = [0, 24], sizes = [16, 8], strides = [1, 1]} : vector<16x32xf32> to vector<16x8xf32>
    %cst_92 = arith.constant dense<0.000000e+00> : vector<12x8xf32>
    %257 = tpu.matmul %255, %256, %cst_92 {dimension_numbers = #tpu.dot_dimension_numbers<[1], [0], [0], [1], [0, 0, 1, 1], [], []>} : vector<12x16xf32>, vector<16x8xf32>, vector<12x8xf32> -> vector<12x8xf32>
    %258 = tpu.concatenate %206, %223, %240, %257 in 1 : vector<12x8xf32>, vector<12x8xf32>, vector<12x8xf32>, vector<12x8xf32> -> vector<12x32xf32>
    %cst_93 = arith.constant dense<0.000000e+00> : vector<12x32xf32>
    %259 = tpu.matmul %258, %188, %cst_93 {dimension_numbers = #tpu.dot_dimension_numbers<[1], [0], [0], [1], [0, 0, 1, 1], [], []>} : vector<12x32xf32>, vector<32x32xf32>, vector<12x32xf32> -> vector<12x32xf32>
    %260 = vector.broadcast %189 : vector<1x32xf32> to vector<12x32xf32>
    %261 = arith.addf %259, %260 : vector<12x32xf32>
    %262 = arith.addf %172, %261 : vector<12x32xf32>
    %263 = vector.extract_strided_slice %63 {offsets = [9, 0], sizes = [1, 32], strides = [1, 1]} : vector<13x96xf32> to vector<1x32xf32>
    %264 = vector.extract_strided_slice %63 {offsets = [10, 0], sizes = [1, 32], strides = [1, 1]} : vector<13x96xf32> to vector<1x32xf32>
    %cst_94 = arith.constant dense<0.000000e+00> : vector<12xf32>
    %265 = vector.multi_reduction <add>, %262, %cst_94 [1] : vector<12x32xf32> to vector<12xf32>
    %266 = vector.shape_cast %265 : vector<12xf32> to vector<12x1xf32>
    %cst_95 = arith.constant 3.200000e+01 : f32
    %267 = vector.broadcast %cst_95 : f32 to vector<12x1xf32>
    %268 = arith.divf %266, %267 : vector<12x1xf32>
    %269 = vector.broadcast %268 : vector<12x1xf32> to vector<12x32xf32>
    %270 = arith.subf %262, %269 : vector<12x32xf32>
    %271 = arith.mulf %270, %270 : vector<12x32xf32>
    %cst_96 = arith.constant dense<0.000000e+00> : vector<12xf32>
    %272 = vector.multi_reduction <add>, %271, %cst_96 [1] : vector<12x32xf32> to vector<12xf32>
    %273 = vector.shape_cast %272 : vector<12xf32> to vector<12x1xf32>
    %cst_97 = arith.constant 3.200000e+01 : f32
    %274 = vector.broadcast %cst_97 : f32 to vector<12x1xf32>
    %275 = arith.divf %273, %274 : vector<12x1xf32>
    %276 = vector.broadcast %268 : vector<12x1xf32> to vector<12x32xf32>
    %277 = arith.subf %262, %276 : vector<12x32xf32>
    %cst_98 = arith.constant 9.99999974E-6 : f32
    %278 = vector.broadcast %cst_98 : f32 to vector<12x1xf32>
    %279 = arith.addf %275, %278 : vector<12x1xf32>
    %280 = math.rsqrt %279 : vector<12x1xf32>
    %281 = vector.broadcast %280 : vector<12x1xf32> to vector<12x32xf32>
    %282 = arith.mulf %277, %281 : vector<12x32xf32>
    %283 = vector.broadcast %263 : vector<1x32xf32> to vector<12x32xf32>
    %284 = arith.mulf %282, %283 : vector<12x32xf32>
    %285 = vector.broadcast %264 : vector<1x32xf32> to vector<12x32xf32>
    %286 = arith.addf %284, %285 : vector<12x32xf32>
    %c0_99 = arith.constant 0 : index
    %c0_100 = arith.constant 0 : index
    %c0_101 = arith.constant 0 : index
    %287 = vector.load %arg10[%c0_99, %c0_100, %c0_101] : memref<2x32x64xf32, #tpu.memory_space<vmem>>, vector<1x32x64xf32>
    %288 = vector.shape_cast %287 : vector<1x32x64xf32> to vector<32x64xf32>
    %cst_102 = arith.constant dense<0.000000e+00> : vector<12x64xf32>
    %289 = tpu.matmul %286, %288, %cst_102 {dimension_numbers = #tpu.dot_dimension_numbers<[1], [0], [0], [1], [0, 0, 1, 1], [], []>} : vector<12x32xf32>, vector<32x64xf32>, vector<12x64xf32> -> vector<12x64xf32>
    %290 = vector.extract_strided_slice %63 {offsets = [5, 0], sizes = [1, 64], strides = [1, 1]} : vector<13x96xf32> to vector<1x64xf32>
    %291 = vector.broadcast %290 : vector<1x64xf32> to vector<12x64xf32>
    %292 = arith.addf %289, %291 : vector<12x64xf32>
    %cst_103 = arith.constant 0.000000e+00 : f32
    %293 = vector.broadcast %cst_103 : f32 to vector<12x64xf32>
    %294 = arith.maximumf %292, %293 : vector<12x64xf32>
    %c0_104 = arith.constant 0 : index
    %c0_105 = arith.constant 0 : index
    %c0_106 = arith.constant 0 : index
    %295 = vector.load %arg11[%c0_104, %c0_105, %c0_106] : memref<2x64x32xf32, #tpu.memory_space<vmem>>, vector<1x64x32xf32>
    %296 = vector.shape_cast %295 : vector<1x64x32xf32> to vector<64x32xf32>
    %cst_107 = arith.constant dense<0.000000e+00> : vector<12x32xf32>
    %297 = tpu.matmul %294, %296, %cst_107 {dimension_numbers = #tpu.dot_dimension_numbers<[1], [0], [0], [1], [0, 0, 1, 1], [], []>} : vector<12x64xf32>, vector<64x32xf32>, vector<12x32xf32> -> vector<12x32xf32>
    %298 = vector.extract_strided_slice %63 {offsets = [6, 0], sizes = [1, 32], strides = [1, 1]} : vector<13x96xf32> to vector<1x32xf32>
    %299 = vector.broadcast %298 : vector<1x32xf32> to vector<12x32xf32>
    %300 = arith.addf %297, %299 : vector<12x32xf32>
    %301 = arith.addf %286, %300 : vector<12x32xf32>
    %302 = vector.extract_strided_slice %63 {offsets = [11, 0], sizes = [1, 32], strides = [1, 1]} : vector<13x96xf32> to vector<1x32xf32>
    %303 = vector.extract_strided_slice %63 {offsets = [12, 0], sizes = [1, 32], strides = [1, 1]} : vector<13x96xf32> to vector<1x32xf32>
    %cst_108 = arith.constant dense<0.000000e+00> : vector<12xf32>
    %304 = vector.multi_reduction <add>, %301, %cst_108 [1] : vector<12x32xf32> to vector<12xf32>
    %305 = vector.shape_cast %304 : vector<12xf32> to vector<12x1xf32>
    %cst_109 = arith.constant 3.200000e+01 : f32
    %306 = vector.broadcast %cst_109 : f32 to vector<12x1xf32>
    %307 = arith.divf %305, %306 : vector<12x1xf32>
    %308 = vector.broadcast %307 : vector<12x1xf32> to vector<12x32xf32>
    %309 = arith.subf %301, %308 : vector<12x32xf32>
    %310 = arith.mulf %309, %309 : vector<12x32xf32>
    %cst_110 = arith.constant dense<0.000000e+00> : vector<12xf32>
    %311 = vector.multi_reduction <add>, %310, %cst_110 [1] : vector<12x32xf32> to vector<12xf32>
    %312 = vector.shape_cast %311 : vector<12xf32> to vector<12x1xf32>
    %cst_111 = arith.constant 3.200000e+01 : f32
    %313 = vector.broadcast %cst_111 : f32 to vector<12x1xf32>
    %314 = arith.divf %312, %313 : vector<12x1xf32>
    %315 = vector.broadcast %307 : vector<12x1xf32> to vector<12x32xf32>
    %316 = arith.subf %301, %315 : vector<12x32xf32>
    %cst_112 = arith.constant 9.99999974E-6 : f32
    %317 = vector.broadcast %cst_112 : f32 to vector<12x1xf32>
    %318 = arith.addf %314, %317 : vector<12x1xf32>
    %319 = math.rsqrt %318 : vector<12x1xf32>
    %320 = vector.broadcast %319 : vector<12x1xf32> to vector<12x32xf32>
    %321 = arith.mulf %316, %320 : vector<12x32xf32>
    %322 = vector.broadcast %302 : vector<1x32xf32> to vector<12x32xf32>
    %323 = arith.mulf %321, %322 : vector<12x32xf32>
    %324 = vector.broadcast %303 : vector<1x32xf32> to vector<12x32xf32>
    %325 = arith.addf %323, %324 : vector<12x32xf32>
    %c1 = arith.constant 1 : index
    %c0_113 = arith.constant 0 : index
    %c0_114 = arith.constant 0 : index
    %326 = vector.load %arg12[%c1, %c0_113, %c0_114] : memref<2x13x96xf32, #tpu.memory_space<vmem>>, vector<1x13x96xf32>
    %327 = vector.shape_cast %326 : vector<1x13x96xf32> to vector<13x96xf32>
    %c1_115 = arith.constant 1 : index
    %c0_116 = arith.constant 0 : index
    %c0_117 = arith.constant 0 : index
    %328 = vector.load %arg5[%c1_115, %c0_116, %c0_117] : memref<2x32x96xf32, #tpu.memory_space<vmem>>, vector<1x32x96xf32>
    %329 = vector.shape_cast %328 : vector<1x32x96xf32> to vector<32x96xf32>
    %cst_118 = arith.constant dense<0.000000e+00> : vector<12x96xf32>
    %330 = tpu.matmul %325, %329, %cst_118 {dimension_numbers = #tpu.dot_dimension_numbers<[1], [0], [0], [1], [0, 0, 1, 1], [], []>} : vector<12x32xf32>, vector<32x96xf32>, vector<12x96xf32> -> vector<12x96xf32>
    %331 = vector.extract_strided_slice %327 {offsets = [0, 0], sizes = [1, 96], strides = [1, 1]} : vector<13x96xf32> to vector<1x96xf32>
    %332 = vector.broadcast %331 : vector<1x96xf32> to vector<12x96xf32>
    %333 = arith.addf %330, %332 : vector<12x96xf32>
    %334 = vector.extract_strided_slice %333 {offsets = [0, 0], sizes = [12, 32], strides = [1, 1]} : vector<12x96xf32> to vector<12x32xf32>
    %335 = vector.extract_strided_slice %333 {offsets = [0, 32], sizes = [12, 32], strides = [1, 1]} : vector<12x96xf32> to vector<12x32xf32>
    %336 = vector.extract_strided_slice %333 {offsets = [0, 64], sizes = [12, 32], strides = [1, 1]} : vector<12x96xf32> to vector<12x32xf32>
    %c1_119 = arith.constant 1 : index
    %c0_120 = arith.constant 0 : index
    %c0_121 = arith.constant 0 : index
    %337 = vector.load %arg6[%c1_119, %c0_120, %c0_121] : memref<2x32x32xf32, #tpu.memory_space<vmem>>, vector<1x32x32xf32>
    %338 = vector.shape_cast %337 : vector<1x32x32xf32> to vector<32x32xf32>
    %339 = vector.extract_strided_slice %327 {offsets = [1, 0], sizes = [1, 32], strides = [1, 1]} : vector<13x96xf32> to vector<1x32xf32>
    %340 = vector.extract_strided_slice %334 {offsets = [0, 0], sizes = [12, 8], strides = [1, 1]} : vector<12x32xf32> to vector<12x8xf32>
    %341 = vector.extract_strided_slice %335 {offsets = [0, 0], sizes = [12, 8], strides = [1, 1]} : vector<12x32xf32> to vector<12x8xf32>
    %cst_122 = arith.constant dense<0.000000e+00> : vector<12x12xf32>
    %342 = tpu.matmul %340, %341, %cst_122 {dimension_numbers = #tpu.dot_dimension_numbers<[1], [1], [0], [0], [0, 0, 1, 0], [], []>} : vector<12x8xf32>, vector<12x8xf32>, vector<12x12xf32> -> vector<12x12xf32>
    %cst_123 = arith.constant 0.353553385 : f32
    %343 = vector.broadcast %cst_123 : f32 to vector<12x12xf32>
    %344 = arith.mulf %342, %343 : vector<12x12xf32>
    %345 = arith.addf %344, %37 : vector<12x12xf32>
    %cst_124 = arith.constant dense<0xFF800000> : vector<12xf32>
    %346 = vector.multi_reduction <maximumf>, %345, %cst_124 [1] : vector<12x12xf32> to vector<12xf32>
    %347 = vector.shape_cast %346 : vector<12xf32> to vector<12x1xf32>
    %348 = vector.broadcast %347 : vector<12x1xf32> to vector<12x12xf32>
    %349 = arith.subf %345, %348 : vector<12x12xf32>
    %350 = math.exp %349 : vector<12x12xf32>
    %cst_125 = arith.constant dense<0.000000e+00> : vector<12xf32>
    %351 = vector.multi_reduction <add>, %350, %cst_125 [1] : vector<12x12xf32> to vector<12xf32>
    %352 = vector.shape_cast %351 : vector<12xf32> to vector<12x1xf32>
    %353 = vector.broadcast %352 : vector<12x1xf32> to vector<12x12xf32>
    %354 = arith.divf %350, %353 : vector<12x12xf32>
    %355 = vector.extract_strided_slice %336 {offsets = [0, 0], sizes = [12, 8], strides = [1, 1]} : vector<12x32xf32> to vector<12x8xf32>
    %cst_126 = arith.constant dense<0.000000e+00> : vector<12x8xf32>
    %356 = tpu.matmul %354, %355, %cst_126 {dimension_numbers = #tpu.dot_dimension_numbers<[1], [0], [0], [1], [0, 0, 1, 1], [], []>} : vector<12x12xf32>, vector<12x8xf32>, vector<12x8xf32> -> vector<12x8xf32>
    %357 = vector.extract_strided_slice %334 {offsets = [0, 8], sizes = [12, 8], strides = [1, 1]} : vector<12x32xf32> to vector<12x8xf32>
    %358 = vector.extract_strided_slice %335 {offsets = [0, 8], sizes = [12, 8], strides = [1, 1]} : vector<12x32xf32> to vector<12x8xf32>
    %cst_127 = arith.constant dense<0.000000e+00> : vector<12x12xf32>
    %359 = tpu.matmul %357, %358, %cst_127 {dimension_numbers = #tpu.dot_dimension_numbers<[1], [1], [0], [0], [0, 0, 1, 0], [], []>} : vector<12x8xf32>, vector<12x8xf32>, vector<12x12xf32> -> vector<12x12xf32>
    %cst_128 = arith.constant 0.353553385 : f32
    %360 = vector.broadcast %cst_128 : f32 to vector<12x12xf32>
    %361 = arith.mulf %359, %360 : vector<12x12xf32>
    %362 = arith.addf %361, %37 : vector<12x12xf32>
    %cst_129 = arith.constant dense<0xFF800000> : vector<12xf32>
    %363 = vector.multi_reduction <maximumf>, %362, %cst_129 [1] : vector<12x12xf32> to vector<12xf32>
    %364 = vector.shape_cast %363 : vector<12xf32> to vector<12x1xf32>
    %365 = vector.broadcast %364 : vector<12x1xf32> to vector<12x12xf32>
    %366 = arith.subf %362, %365 : vector<12x12xf32>
    %367 = math.exp %366 : vector<12x12xf32>
    %cst_130 = arith.constant dense<0.000000e+00> : vector<12xf32>
    %368 = vector.multi_reduction <add>, %367, %cst_130 [1] : vector<12x12xf32> to vector<12xf32>
    %369 = vector.shape_cast %368 : vector<12xf32> to vector<12x1xf32>
    %370 = vector.broadcast %369 : vector<12x1xf32> to vector<12x12xf32>
    %371 = arith.divf %367, %370 : vector<12x12xf32>
    %372 = vector.extract_strided_slice %336 {offsets = [0, 8], sizes = [12, 8], strides = [1, 1]} : vector<12x32xf32> to vector<12x8xf32>
    %cst_131 = arith.constant dense<0.000000e+00> : vector<12x8xf32>
    %373 = tpu.matmul %371, %372, %cst_131 {dimension_numbers = #tpu.dot_dimension_numbers<[1], [0], [0], [1], [0, 0, 1, 1], [], []>} : vector<12x12xf32>, vector<12x8xf32>, vector<12x8xf32> -> vector<12x8xf32>
    %374 = vector.extract_strided_slice %334 {offsets = [0, 16], sizes = [12, 8], strides = [1, 1]} : vector<12x32xf32> to vector<12x8xf32>
    %375 = vector.extract_strided_slice %335 {offsets = [0, 16], sizes = [12, 8], strides = [1, 1]} : vector<12x32xf32> to vector<12x8xf32>
    %cst_132 = arith.constant dense<0.000000e+00> : vector<12x12xf32>
    %376 = tpu.matmul %374, %375, %cst_132 {dimension_numbers = #tpu.dot_dimension_numbers<[1], [1], [0], [0], [0, 0, 1, 0], [], []>} : vector<12x8xf32>, vector<12x8xf32>, vector<12x12xf32> -> vector<12x12xf32>
    %cst_133 = arith.constant 0.353553385 : f32
    %377 = vector.broadcast %cst_133 : f32 to vector<12x12xf32>
    %378 = arith.mulf %376, %377 : vector<12x12xf32>
    %379 = arith.addf %378, %37 : vector<12x12xf32>
    %cst_134 = arith.constant dense<0xFF800000> : vector<12xf32>
    %380 = vector.multi_reduction <maximumf>, %379, %cst_134 [1] : vector<12x12xf32> to vector<12xf32>
    %381 = vector.shape_cast %380 : vector<12xf32> to vector<12x1xf32>
    %382 = vector.broadcast %381 : vector<12x1xf32> to vector<12x12xf32>
    %383 = arith.subf %379, %382 : vector<12x12xf32>
    %384 = math.exp %383 : vector<12x12xf32>
    %cst_135 = arith.constant dense<0.000000e+00> : vector<12xf32>
    %385 = vector.multi_reduction <add>, %384, %cst_135 [1] : vector<12x12xf32> to vector<12xf32>
    %386 = vector.shape_cast %385 : vector<12xf32> to vector<12x1xf32>
    %387 = vector.broadcast %386 : vector<12x1xf32> to vector<12x12xf32>
    %388 = arith.divf %384, %387 : vector<12x12xf32>
    %389 = vector.extract_strided_slice %336 {offsets = [0, 16], sizes = [12, 8], strides = [1, 1]} : vector<12x32xf32> to vector<12x8xf32>
    %cst_136 = arith.constant dense<0.000000e+00> : vector<12x8xf32>
    %390 = tpu.matmul %388, %389, %cst_136 {dimension_numbers = #tpu.dot_dimension_numbers<[1], [0], [0], [1], [0, 0, 1, 1], [], []>} : vector<12x12xf32>, vector<12x8xf32>, vector<12x8xf32> -> vector<12x8xf32>
    %391 = vector.extract_strided_slice %334 {offsets = [0, 24], sizes = [12, 8], strides = [1, 1]} : vector<12x32xf32> to vector<12x8xf32>
    %392 = vector.extract_strided_slice %335 {offsets = [0, 24], sizes = [12, 8], strides = [1, 1]} : vector<12x32xf32> to vector<12x8xf32>
    %cst_137 = arith.constant dense<0.000000e+00> : vector<12x12xf32>
    %393 = tpu.matmul %391, %392, %cst_137 {dimension_numbers = #tpu.dot_dimension_numbers<[1], [1], [0], [0], [0, 0, 1, 0], [], []>} : vector<12x8xf32>, vector<12x8xf32>, vector<12x12xf32> -> vector<12x12xf32>
    %cst_138 = arith.constant 0.353553385 : f32
    %394 = vector.broadcast %cst_138 : f32 to vector<12x12xf32>
    %395 = arith.mulf %393, %394 : vector<12x12xf32>
    %396 = arith.addf %395, %37 : vector<12x12xf32>
    %cst_139 = arith.constant dense<0xFF800000> : vector<12xf32>
    %397 = vector.multi_reduction <maximumf>, %396, %cst_139 [1] : vector<12x12xf32> to vector<12xf32>
    %398 = vector.shape_cast %397 : vector<12xf32> to vector<12x1xf32>
    %399 = vector.broadcast %398 : vector<12x1xf32> to vector<12x12xf32>
    %400 = arith.subf %396, %399 : vector<12x12xf32>
    %401 = math.exp %400 : vector<12x12xf32>
    %cst_140 = arith.constant dense<0.000000e+00> : vector<12xf32>
    %402 = vector.multi_reduction <add>, %401, %cst_140 [1] : vector<12x12xf32> to vector<12xf32>
    %403 = vector.shape_cast %402 : vector<12xf32> to vector<12x1xf32>
    %404 = vector.broadcast %403 : vector<12x1xf32> to vector<12x12xf32>
    %405 = arith.divf %401, %404 : vector<12x12xf32>
    %406 = vector.extract_strided_slice %336 {offsets = [0, 24], sizes = [12, 8], strides = [1, 1]} : vector<12x32xf32> to vector<12x8xf32>
    %cst_141 = arith.constant dense<0.000000e+00> : vector<12x8xf32>
    %407 = tpu.matmul %405, %406, %cst_141 {dimension_numbers = #tpu.dot_dimension_numbers<[1], [0], [0], [1], [0, 0, 1, 1], [], []>} : vector<12x12xf32>, vector<12x8xf32>, vector<12x8xf32> -> vector<12x8xf32>
    %408 = tpu.concatenate %356, %373, %390, %407 in 1 : vector<12x8xf32>, vector<12x8xf32>, vector<12x8xf32>, vector<12x8xf32> -> vector<12x32xf32>
    %cst_142 = arith.constant dense<0.000000e+00> : vector<12x32xf32>
    %409 = tpu.matmul %408, %338, %cst_142 {dimension_numbers = #tpu.dot_dimension_numbers<[1], [0], [0], [1], [0, 0, 1, 1], [], []>} : vector<12x32xf32>, vector<32x32xf32>, vector<12x32xf32> -> vector<12x32xf32>
    %410 = vector.broadcast %339 : vector<1x32xf32> to vector<12x32xf32>
    %411 = arith.addf %409, %410 : vector<12x32xf32>
    %412 = arith.addf %325, %411 : vector<12x32xf32>
    %413 = vector.extract_strided_slice %327 {offsets = [7, 0], sizes = [1, 32], strides = [1, 1]} : vector<13x96xf32> to vector<1x32xf32>
    %414 = vector.extract_strided_slice %327 {offsets = [8, 0], sizes = [1, 32], strides = [1, 1]} : vector<13x96xf32> to vector<1x32xf32>
    %cst_143 = arith.constant dense<0.000000e+00> : vector<12xf32>
    %415 = vector.multi_reduction <add>, %412, %cst_143 [1] : vector<12x32xf32> to vector<12xf32>
    %416 = vector.shape_cast %415 : vector<12xf32> to vector<12x1xf32>
    %cst_144 = arith.constant 3.200000e+01 : f32
    %417 = vector.broadcast %cst_144 : f32 to vector<12x1xf32>
    %418 = arith.divf %416, %417 : vector<12x1xf32>
    %419 = vector.broadcast %418 : vector<12x1xf32> to vector<12x32xf32>
    %420 = arith.subf %412, %419 : vector<12x32xf32>
    %421 = arith.mulf %420, %420 : vector<12x32xf32>
    %cst_145 = arith.constant dense<0.000000e+00> : vector<12xf32>
    %422 = vector.multi_reduction <add>, %421, %cst_145 [1] : vector<12x32xf32> to vector<12xf32>
    %423 = vector.shape_cast %422 : vector<12xf32> to vector<12x1xf32>
    %cst_146 = arith.constant 3.200000e+01 : f32
    %424 = vector.broadcast %cst_146 : f32 to vector<12x1xf32>
    %425 = arith.divf %423, %424 : vector<12x1xf32>
    %426 = vector.broadcast %418 : vector<12x1xf32> to vector<12x32xf32>
    %427 = arith.subf %412, %426 : vector<12x32xf32>
    %cst_147 = arith.constant 9.99999974E-6 : f32
    %428 = vector.broadcast %cst_147 : f32 to vector<12x1xf32>
    %429 = arith.addf %425, %428 : vector<12x1xf32>
    %430 = math.rsqrt %429 : vector<12x1xf32>
    %431 = vector.broadcast %430 : vector<12x1xf32> to vector<12x32xf32>
    %432 = arith.mulf %427, %431 : vector<12x32xf32>
    %433 = vector.broadcast %413 : vector<1x32xf32> to vector<12x32xf32>
    %434 = arith.mulf %432, %433 : vector<12x32xf32>
    %435 = vector.broadcast %414 : vector<1x32xf32> to vector<12x32xf32>
    %436 = arith.addf %434, %435 : vector<12x32xf32>
    %c1_148 = arith.constant 1 : index
    %c0_149 = arith.constant 0 : index
    %c0_150 = arith.constant 0 : index
    %437 = vector.load %arg7[%c1_148, %c0_149, %c0_150] : memref<2x32x32xf32, #tpu.memory_space<vmem>>, vector<1x32x32xf32>
    %438 = vector.shape_cast %437 : vector<1x32x32xf32> to vector<32x32xf32>
    %cst_151 = arith.constant dense<0.000000e+00> : vector<12x32xf32>
    %439 = tpu.matmul %436, %438, %cst_151 {dimension_numbers = #tpu.dot_dimension_numbers<[1], [0], [0], [1], [0, 0, 1, 1], [], []>} : vector<12x32xf32>, vector<32x32xf32>, vector<12x32xf32> -> vector<12x32xf32>
    %440 = vector.extract_strided_slice %327 {offsets = [2, 0], sizes = [1, 32], strides = [1, 1]} : vector<13x96xf32> to vector<1x32xf32>
    %441 = vector.broadcast %440 : vector<1x32xf32> to vector<12x32xf32>
    %442 = arith.addf %439, %441 : vector<12x32xf32>
    %c1_152 = arith.constant 1 : index
    %c0_153 = arith.constant 0 : index
    %c0_154 = arith.constant 0 : index
    %443 = vector.load %arg9[%c1_152, %c0_153, %c0_154] : memref<2x32x64xf32, #tpu.memory_space<vmem>>, vector<1x32x64xf32>
    %444 = vector.shape_cast %443 : vector<1x32x64xf32> to vector<32x64xf32>
    %cst_155 = arith.constant dense<0.000000e+00> : vector<16x64xf32>
    %445 = tpu.matmul %1, %444, %cst_155 {dimension_numbers = #tpu.dot_dimension_numbers<[1], [0], [0], [1], [0, 0, 1, 1], [], []>} : vector<16x32xf32>, vector<32x64xf32>, vector<16x64xf32> -> vector<16x64xf32>
    %446 = vector.extract_strided_slice %327 {offsets = [3, 0], sizes = [1, 64], strides = [1, 1]} : vector<13x96xf32> to vector<1x64xf32>
    %447 = vector.broadcast %446 : vector<1x64xf32> to vector<16x64xf32>
    %448 = arith.addf %445, %447 : vector<16x64xf32>
    %449 = vector.extract_strided_slice %448 {offsets = [0, 0], sizes = [16, 32], strides = [1, 1]} : vector<16x64xf32> to vector<16x32xf32>
    %450 = vector.extract_strided_slice %448 {offsets = [0, 32], sizes = [16, 32], strides = [1, 1]} : vector<16x64xf32> to vector<16x32xf32>
    %c1_156 = arith.constant 1 : index
    %c0_157 = arith.constant 0 : index
    %c0_158 = arith.constant 0 : index
    %451 = vector.load %arg8[%c1_156, %c0_157, %c0_158] : memref<2x32x32xf32, #tpu.memory_space<vmem>>, vector<1x32x32xf32>
    %452 = vector.shape_cast %451 : vector<1x32x32xf32> to vector<32x32xf32>
    %453 = vector.extract_strided_slice %327 {offsets = [4, 0], sizes = [1, 32], strides = [1, 1]} : vector<13x96xf32> to vector<1x32xf32>
    %454 = vector.extract_strided_slice %442 {offsets = [0, 0], sizes = [12, 8], strides = [1, 1]} : vector<12x32xf32> to vector<12x8xf32>
    %455 = vector.extract_strided_slice %449 {offsets = [0, 0], sizes = [16, 8], strides = [1, 1]} : vector<16x32xf32> to vector<16x8xf32>
    %cst_159 = arith.constant dense<0.000000e+00> : vector<12x16xf32>
    %456 = tpu.matmul %454, %455, %cst_159 {dimension_numbers = #tpu.dot_dimension_numbers<[1], [1], [0], [0], [0, 0, 1, 0], [], []>} : vector<12x8xf32>, vector<16x8xf32>, vector<12x16xf32> -> vector<12x16xf32>
    %cst_160 = arith.constant 0.353553385 : f32
    %457 = vector.broadcast %cst_160 : f32 to vector<12x16xf32>
    %458 = arith.mulf %456, %457 : vector<12x16xf32>
    %459 = arith.addf %458, %61 : vector<12x16xf32>
    %cst_161 = arith.constant dense<0xFF800000> : vector<12xf32>
    %460 = vector.multi_reduction <maximumf>, %459, %cst_161 [1] : vector<12x16xf32> to vector<12xf32>
    %461 = vector.shape_cast %460 : vector<12xf32> to vector<12x1xf32>
    %462 = vector.broadcast %461 : vector<12x1xf32> to vector<12x16xf32>
    %463 = arith.subf %459, %462 : vector<12x16xf32>
    %464 = math.exp %463 : vector<12x16xf32>
    %cst_162 = arith.constant dense<0.000000e+00> : vector<12xf32>
    %465 = vector.multi_reduction <add>, %464, %cst_162 [1] : vector<12x16xf32> to vector<12xf32>
    %466 = vector.shape_cast %465 : vector<12xf32> to vector<12x1xf32>
    %467 = vector.broadcast %466 : vector<12x1xf32> to vector<12x16xf32>
    %468 = arith.divf %464, %467 : vector<12x16xf32>
    %469 = vector.extract_strided_slice %450 {offsets = [0, 0], sizes = [16, 8], strides = [1, 1]} : vector<16x32xf32> to vector<16x8xf32>
    %cst_163 = arith.constant dense<0.000000e+00> : vector<12x8xf32>
    %470 = tpu.matmul %468, %469, %cst_163 {dimension_numbers = #tpu.dot_dimension_numbers<[1], [0], [0], [1], [0, 0, 1, 1], [], []>} : vector<12x16xf32>, vector<16x8xf32>, vector<12x8xf32> -> vector<12x8xf32>
    %471 = vector.extract_strided_slice %442 {offsets = [0, 8], sizes = [12, 8], strides = [1, 1]} : vector<12x32xf32> to vector<12x8xf32>
    %472 = vector.extract_strided_slice %449 {offsets = [0, 8], sizes = [16, 8], strides = [1, 1]} : vector<16x32xf32> to vector<16x8xf32>
    %cst_164 = arith.constant dense<0.000000e+00> : vector<12x16xf32>
    %473 = tpu.matmul %471, %472, %cst_164 {dimension_numbers = #tpu.dot_dimension_numbers<[1], [1], [0], [0], [0, 0, 1, 0], [], []>} : vector<12x8xf32>, vector<16x8xf32>, vector<12x16xf32> -> vector<12x16xf32>
    %cst_165 = arith.constant 0.353553385 : f32
    %474 = vector.broadcast %cst_165 : f32 to vector<12x16xf32>
    %475 = arith.mulf %473, %474 : vector<12x16xf32>
    %476 = arith.addf %475, %61 : vector<12x16xf32>
    %cst_166 = arith.constant dense<0xFF800000> : vector<12xf32>
    %477 = vector.multi_reduction <maximumf>, %476, %cst_166 [1] : vector<12x16xf32> to vector<12xf32>
    %478 = vector.shape_cast %477 : vector<12xf32> to vector<12x1xf32>
    %479 = vector.broadcast %478 : vector<12x1xf32> to vector<12x16xf32>
    %480 = arith.subf %476, %479 : vector<12x16xf32>
    %481 = math.exp %480 : vector<12x16xf32>
    %cst_167 = arith.constant dense<0.000000e+00> : vector<12xf32>
    %482 = vector.multi_reduction <add>, %481, %cst_167 [1] : vector<12x16xf32> to vector<12xf32>
    %483 = vector.shape_cast %482 : vector<12xf32> to vector<12x1xf32>
    %484 = vector.broadcast %483 : vector<12x1xf32> to vector<12x16xf32>
    %485 = arith.divf %481, %484 : vector<12x16xf32>
    %486 = vector.extract_strided_slice %450 {offsets = [0, 8], sizes = [16, 8], strides = [1, 1]} : vector<16x32xf32> to vector<16x8xf32>
    %cst_168 = arith.constant dense<0.000000e+00> : vector<12x8xf32>
    %487 = tpu.matmul %485, %486, %cst_168 {dimension_numbers = #tpu.dot_dimension_numbers<[1], [0], [0], [1], [0, 0, 1, 1], [], []>} : vector<12x16xf32>, vector<16x8xf32>, vector<12x8xf32> -> vector<12x8xf32>
    %488 = vector.extract_strided_slice %442 {offsets = [0, 16], sizes = [12, 8], strides = [1, 1]} : vector<12x32xf32> to vector<12x8xf32>
    %489 = vector.extract_strided_slice %449 {offsets = [0, 16], sizes = [16, 8], strides = [1, 1]} : vector<16x32xf32> to vector<16x8xf32>
    %cst_169 = arith.constant dense<0.000000e+00> : vector<12x16xf32>
    %490 = tpu.matmul %488, %489, %cst_169 {dimension_numbers = #tpu.dot_dimension_numbers<[1], [1], [0], [0], [0, 0, 1, 0], [], []>} : vector<12x8xf32>, vector<16x8xf32>, vector<12x16xf32> -> vector<12x16xf32>
    %cst_170 = arith.constant 0.353553385 : f32
    %491 = vector.broadcast %cst_170 : f32 to vector<12x16xf32>
    %492 = arith.mulf %490, %491 : vector<12x16xf32>
    %493 = arith.addf %492, %61 : vector<12x16xf32>
    %cst_171 = arith.constant dense<0xFF800000> : vector<12xf32>
    %494 = vector.multi_reduction <maximumf>, %493, %cst_171 [1] : vector<12x16xf32> to vector<12xf32>
    %495 = vector.shape_cast %494 : vector<12xf32> to vector<12x1xf32>
    %496 = vector.broadcast %495 : vector<12x1xf32> to vector<12x16xf32>
    %497 = arith.subf %493, %496 : vector<12x16xf32>
    %498 = math.exp %497 : vector<12x16xf32>
    %cst_172 = arith.constant dense<0.000000e+00> : vector<12xf32>
    %499 = vector.multi_reduction <add>, %498, %cst_172 [1] : vector<12x16xf32> to vector<12xf32>
    %500 = vector.shape_cast %499 : vector<12xf32> to vector<12x1xf32>
    %501 = vector.broadcast %500 : vector<12x1xf32> to vector<12x16xf32>
    %502 = arith.divf %498, %501 : vector<12x16xf32>
    %503 = vector.extract_strided_slice %450 {offsets = [0, 16], sizes = [16, 8], strides = [1, 1]} : vector<16x32xf32> to vector<16x8xf32>
    %cst_173 = arith.constant dense<0.000000e+00> : vector<12x8xf32>
    %504 = tpu.matmul %502, %503, %cst_173 {dimension_numbers = #tpu.dot_dimension_numbers<[1], [0], [0], [1], [0, 0, 1, 1], [], []>} : vector<12x16xf32>, vector<16x8xf32>, vector<12x8xf32> -> vector<12x8xf32>
    %505 = vector.extract_strided_slice %442 {offsets = [0, 24], sizes = [12, 8], strides = [1, 1]} : vector<12x32xf32> to vector<12x8xf32>
    %506 = vector.extract_strided_slice %449 {offsets = [0, 24], sizes = [16, 8], strides = [1, 1]} : vector<16x32xf32> to vector<16x8xf32>
    %cst_174 = arith.constant dense<0.000000e+00> : vector<12x16xf32>
    %507 = tpu.matmul %505, %506, %cst_174 {dimension_numbers = #tpu.dot_dimension_numbers<[1], [1], [0], [0], [0, 0, 1, 0], [], []>} : vector<12x8xf32>, vector<16x8xf32>, vector<12x16xf32> -> vector<12x16xf32>
    %cst_175 = arith.constant 0.353553385 : f32
    %508 = vector.broadcast %cst_175 : f32 to vector<12x16xf32>
    %509 = arith.mulf %507, %508 : vector<12x16xf32>
    %510 = arith.addf %509, %61 : vector<12x16xf32>
    %cst_176 = arith.constant dense<0xFF800000> : vector<12xf32>
    %511 = vector.multi_reduction <maximumf>, %510, %cst_176 [1] : vector<12x16xf32> to vector<12xf32>
    %512 = vector.shape_cast %511 : vector<12xf32> to vector<12x1xf32>
    %513 = vector.broadcast %512 : vector<12x1xf32> to vector<12x16xf32>
    %514 = arith.subf %510, %513 : vector<12x16xf32>
    %515 = math.exp %514 : vector<12x16xf32>
    %cst_177 = arith.constant dense<0.000000e+00> : vector<12xf32>
    %516 = vector.multi_reduction <add>, %515, %cst_177 [1] : vector<12x16xf32> to vector<12xf32>
    %517 = vector.shape_cast %516 : vector<12xf32> to vector<12x1xf32>
    %518 = vector.broadcast %517 : vector<12x1xf32> to vector<12x16xf32>
    %519 = arith.divf %515, %518 : vector<12x16xf32>
    %520 = vector.extract_strided_slice %450 {offsets = [0, 24], sizes = [16, 8], strides = [1, 1]} : vector<16x32xf32> to vector<16x8xf32>
    %cst_178 = arith.constant dense<0.000000e+00> : vector<12x8xf32>
    %521 = tpu.matmul %519, %520, %cst_178 {dimension_numbers = #tpu.dot_dimension_numbers<[1], [0], [0], [1], [0, 0, 1, 1], [], []>} : vector<12x16xf32>, vector<16x8xf32>, vector<12x8xf32> -> vector<12x8xf32>
    %522 = tpu.concatenate %470, %487, %504, %521 in 1 : vector<12x8xf32>, vector<12x8xf32>, vector<12x8xf32>, vector<12x8xf32> -> vector<12x32xf32>
    %cst_179 = arith.constant dense<0.000000e+00> : vector<12x32xf32>
    %523 = tpu.matmul %522, %452, %cst_179 {dimension_numbers = #tpu.dot_dimension_numbers<[1], [0], [0], [1], [0, 0, 1, 1], [], []>} : vector<12x32xf32>, vector<32x32xf32>, vector<12x32xf32> -> vector<12x32xf32>
    %524 = vector.broadcast %453 : vector<1x32xf32> to vector<12x32xf32>
    %525 = arith.addf %523, %524 : vector<12x32xf32>
    %526 = arith.addf %436, %525 : vector<12x32xf32>
    %527 = vector.extract_strided_slice %327 {offsets = [9, 0], sizes = [1, 32], strides = [1, 1]} : vector<13x96xf32> to vector<1x32xf32>
    %528 = vector.extract_strided_slice %327 {offsets = [10, 0], sizes = [1, 32], strides = [1, 1]} : vector<13x96xf32> to vector<1x32xf32>
    %cst_180 = arith.constant dense<0.000000e+00> : vector<12xf32>
    %529 = vector.multi_reduction <add>, %526, %cst_180 [1] : vector<12x32xf32> to vector<12xf32>
    %530 = vector.shape_cast %529 : vector<12xf32> to vector<12x1xf32>
    %cst_181 = arith.constant 3.200000e+01 : f32
    %531 = vector.broadcast %cst_181 : f32 to vector<12x1xf32>
    %532 = arith.divf %530, %531 : vector<12x1xf32>
    %533 = vector.broadcast %532 : vector<12x1xf32> to vector<12x32xf32>
    %534 = arith.subf %526, %533 : vector<12x32xf32>
    %535 = arith.mulf %534, %534 : vector<12x32xf32>
    %cst_182 = arith.constant dense<0.000000e+00> : vector<12xf32>
    %536 = vector.multi_reduction <add>, %535, %cst_182 [1] : vector<12x32xf32> to vector<12xf32>
    %537 = vector.shape_cast %536 : vector<12xf32> to vector<12x1xf32>
    %cst_183 = arith.constant 3.200000e+01 : f32
    %538 = vector.broadcast %cst_183 : f32 to vector<12x1xf32>
    %539 = arith.divf %537, %538 : vector<12x1xf32>
    %540 = vector.broadcast %532 : vector<12x1xf32> to vector<12x32xf32>
    %541 = arith.subf %526, %540 : vector<12x32xf32>
    %cst_184 = arith.constant 9.99999974E-6 : f32
    %542 = vector.broadcast %cst_184 : f32 to vector<12x1xf32>
    %543 = arith.addf %539, %542 : vector<12x1xf32>
    %544 = math.rsqrt %543 : vector<12x1xf32>
    %545 = vector.broadcast %544 : vector<12x1xf32> to vector<12x32xf32>
    %546 = arith.mulf %541, %545 : vector<12x32xf32>
    %547 = vector.broadcast %527 : vector<1x32xf32> to vector<12x32xf32>
    %548 = arith.mulf %546, %547 : vector<12x32xf32>
    %549 = vector.broadcast %528 : vector<1x32xf32> to vector<12x32xf32>
    %550 = arith.addf %548, %549 : vector<12x32xf32>
    %c1_185 = arith.constant 1 : index
    %c0_186 = arith.constant 0 : index
    %c0_187 = arith.constant 0 : index
    %551 = vector.load %arg10[%c1_185, %c0_186, %c0_187] : memref<2x32x64xf32, #tpu.memory_space<vmem>>, vector<1x32x64xf32>
    %552 = vector.shape_cast %551 : vector<1x32x64xf32> to vector<32x64xf32>
    %cst_188 = arith.constant dense<0.000000e+00> : vector<12x64xf32>
    %553 = tpu.matmul %550, %552, %cst_188 {dimension_numbers = #tpu.dot_dimension_numbers<[1], [0], [0], [1], [0, 0, 1, 1], [], []>} : vector<12x32xf32>, vector<32x64xf32>, vector<12x64xf32> -> vector<12x64xf32>
    %554 = vector.extract_strided_slice %327 {offsets = [5, 0], sizes = [1, 64], strides = [1, 1]} : vector<13x96xf32> to vector<1x64xf32>
    %555 = vector.broadcast %554 : vector<1x64xf32> to vector<12x64xf32>
    %556 = arith.addf %553, %555 : vector<12x64xf32>
    %cst_189 = arith.constant 0.000000e+00 : f32
    %557 = vector.broadcast %cst_189 : f32 to vector<12x64xf32>
    %558 = arith.maximumf %556, %557 : vector<12x64xf32>
    %c1_190 = arith.constant 1 : index
    %c0_191 = arith.constant 0 : index
    %c0_192 = arith.constant 0 : index
    %559 = vector.load %arg11[%c1_190, %c0_191, %c0_192] : memref<2x64x32xf32, #tpu.memory_space<vmem>>, vector<1x64x32xf32>
    %560 = vector.shape_cast %559 : vector<1x64x32xf32> to vector<64x32xf32>
    %cst_193 = arith.constant dense<0.000000e+00> : vector<12x32xf32>
    %561 = tpu.matmul %558, %560, %cst_193 {dimension_numbers = #tpu.dot_dimension_numbers<[1], [0], [0], [1], [0, 0, 1, 1], [], []>} : vector<12x64xf32>, vector<64x32xf32>, vector<12x32xf32> -> vector<12x32xf32>
    %562 = vector.extract_strided_slice %327 {offsets = [6, 0], sizes = [1, 32], strides = [1, 1]} : vector<13x96xf32> to vector<1x32xf32>
    %563 = vector.broadcast %562 : vector<1x32xf32> to vector<12x32xf32>
    %564 = arith.addf %561, %563 : vector<12x32xf32>
    %565 = arith.addf %550, %564 : vector<12x32xf32>
    %566 = vector.extract_strided_slice %327 {offsets = [11, 0], sizes = [1, 32], strides = [1, 1]} : vector<13x96xf32> to vector<1x32xf32>
    %567 = vector.extract_strided_slice %327 {offsets = [12, 0], sizes = [1, 32], strides = [1, 1]} : vector<13x96xf32> to vector<1x32xf32>
    %cst_194 = arith.constant dense<0.000000e+00> : vector<12xf32>
    %568 = vector.multi_reduction <add>, %565, %cst_194 [1] : vector<12x32xf32> to vector<12xf32>
    %569 = vector.shape_cast %568 : vector<12xf32> to vector<12x1xf32>
    %cst_195 = arith.constant 3.200000e+01 : f32
    %570 = vector.broadcast %cst_195 : f32 to vector<12x1xf32>
    %571 = arith.divf %569, %570 : vector<12x1xf32>
    %572 = vector.broadcast %571 : vector<12x1xf32> to vector<12x32xf32>
    %573 = arith.subf %565, %572 : vector<12x32xf32>
    %574 = arith.mulf %573, %573 : vector<12x32xf32>
    %cst_196 = arith.constant dense<0.000000e+00> : vector<12xf32>
    %575 = vector.multi_reduction <add>, %574, %cst_196 [1] : vector<12x32xf32> to vector<12xf32>
    %576 = vector.shape_cast %575 : vector<12xf32> to vector<12x1xf32>
    %cst_197 = arith.constant 3.200000e+01 : f32
    %577 = vector.broadcast %cst_197 : f32 to vector<12x1xf32>
    %578 = arith.divf %576, %577 : vector<12x1xf32>
    %579 = vector.broadcast %571 : vector<12x1xf32> to vector<12x32xf32>
    %580 = arith.subf %565, %579 : vector<12x32xf32>
    %cst_198 = arith.constant 9.99999974E-6 : f32
    %581 = vector.broadcast %cst_198 : f32 to vector<12x1xf32>
    %582 = arith.addf %578, %581 : vector<12x1xf32>
    %583 = math.rsqrt %582 : vector<12x1xf32>
    %584 = vector.broadcast %583 : vector<12x1xf32> to vector<12x32xf32>
    %585 = arith.mulf %580, %584 : vector<12x32xf32>
    %586 = vector.broadcast %566 : vector<1x32xf32> to vector<12x32xf32>
    %587 = arith.mulf %585, %586 : vector<12x32xf32>
    %588 = vector.broadcast %567 : vector<1x32xf32> to vector<12x32xf32>
    %589 = arith.addf %587, %588 : vector<12x32xf32>
    %590 = vector.extract_strided_slice %0 {offsets = [1, 0], sizes = [1, 32], strides = [1, 1]} : vector<4x128xf32> to vector<1x32xf32>
    %591 = vector.extract_strided_slice %0 {offsets = [2, 0], sizes = [1, 32], strides = [1, 1]} : vector<4x128xf32> to vector<1x32xf32>
    %cst_199 = arith.constant dense<0.000000e+00> : vector<12xf32>
    %592 = vector.multi_reduction <add>, %589, %cst_199 [1] : vector<12x32xf32> to vector<12xf32>
    %593 = vector.shape_cast %592 : vector<12xf32> to vector<12x1xf32>
    %cst_200 = arith.constant 3.200000e+01 : f32
    %594 = vector.broadcast %cst_200 : f32 to vector<12x1xf32>
    %595 = arith.divf %593, %594 : vector<12x1xf32>
    %596 = vector.broadcast %595 : vector<12x1xf32> to vector<12x32xf32>
    %597 = arith.subf %589, %596 : vector<12x32xf32>
    %598 = arith.mulf %597, %597 : vector<12x32xf32>
    %cst_201 = arith.constant dense<0.000000e+00> : vector<12xf32>
    %599 = vector.multi_reduction <add>, %598, %cst_201 [1] : vector<12x32xf32> to vector<12xf32>
    %600 = vector.shape_cast %599 : vector<12xf32> to vector<12x1xf32>
    %cst_202 = arith.constant 3.200000e+01 : f32
    %601 = vector.broadcast %cst_202 : f32 to vector<12x1xf32>
    %602 = arith.divf %600, %601 : vector<12x1xf32>
    %603 = vector.broadcast %595 : vector<12x1xf32> to vector<12x32xf32>
    %604 = arith.subf %589, %603 : vector<12x32xf32>
    %cst_203 = arith.constant 9.99999974E-6 : f32
    %605 = vector.broadcast %cst_203 : f32 to vector<12x1xf32>
    %606 = arith.addf %602, %605 : vector<12x1xf32>
    %607 = math.rsqrt %606 : vector<12x1xf32>
    %608 = vector.broadcast %607 : vector<12x1xf32> to vector<12x32xf32>
    %609 = arith.mulf %604, %608 : vector<12x32xf32>
    %610 = vector.broadcast %590 : vector<1x32xf32> to vector<12x32xf32>
    %611 = arith.mulf %609, %610 : vector<12x32xf32>
    %612 = vector.broadcast %591 : vector<1x32xf32> to vector<12x32xf32>
    %613 = arith.addf %611, %612 : vector<12x32xf32>
    %c0_204 = arith.constant 0 : index
    %c0_205 = arith.constant 0 : index
    %614 = vector.load %arg13[%c0_204, %c0_205] : memref<32x128xf32, #tpu.memory_space<vmem>>, vector<32x128xf32>
    %cst_206 = arith.constant dense<0.000000e+00> : vector<12x128xf32>
    %615 = tpu.matmul %613, %614, %cst_206 {dimension_numbers = #tpu.dot_dimension_numbers<[1], [0], [0], [1], [0, 0, 1, 1], [], []>} : vector<12x32xf32>, vector<32x128xf32>, vector<12x128xf32> -> vector<12x128xf32>
    %616 = vector.extract_strided_slice %0 {offsets = [3, 0], sizes = [1, 128], strides = [1, 1]} : vector<4x128xf32> to vector<1x128xf32>
    %617 = vector.broadcast %616 : vector<1x128xf32> to vector<12x128xf32>
    %618 = arith.addf %615, %617 : vector<12x128xf32>
    %c0_207 = arith.constant 0 : index
    %c0_208 = arith.constant 0 : index
    %619 = vector.load %arg14[%c0_207, %c0_208] : memref<12x128xf32, #tpu.memory_space<vmem>>, vector<12x128xf32>
    tpu.vector_store %arg14[%c0_207, %c0_208], %618 {strides = array<i32>} : memref<12x128xf32, #tpu.memory_space<vmem>>, vector<12x128xf32>,
    return
  }
}

</mosaic_0001>

<bundles_post_ra>
// kernel: _lambda_.2
= control target key start
LH: loop header
LB: loop body
LE: loop exit
PB: predicated region body
PF: predicated region fallthrough
CT: control target
= control target key end

     0   :  { %14 = vsyncpa [#allocation3], 0  ;;  %s2018_s12 = smov [#allocation2]   ;;  %s2019_s14 = smov 128   ;;  %s2711_s0 = inlined_call_operand.vmem [shape: f32[16,12], index: 0, kind: input, shape index: {}]   ;;  %s2712_s1 = inlined_call_operand.vmem [shape: f32[16,32], index: 1, kind: input, shape index: {}]   ;;  %s2713_s2 = inlined_call_operand.vmem [shape: f32[12,32], index: 2, kind: input, shape index: {}]   ;;  %s2714_s3 = inlined_call_operand.vmem [shape: f32[3,32], index: 3, kind: input, shape index: {}]   ;;  %s2715_s4 = inlined_call_operand.vmem [shape: f32[2,32,96], index: 4, kind: input, shape index: {}]   ;;  %s2716_s5 = inlined_call_operand.vmem [shape: f32[2,32,32], index: 5, kind: input, shape index: {}]   ;;  %s2717_s6 = inlined_call_operand.vmem [shape: f32[2,32,64], index: 6, kind: input, shape index: {}]   ;;  %s2718_s7 = inlined_call_operand.vmem [shape: f32[2,64,32], index: 7, kind: input, shape index: {}]   ;;  %s2719_s8 = inlined_call_operand.hbm [shape: f32[2,8,96], index: 8, kind: input, shape index: {}]   ;;  %s2720_s9 = inlined_call_operand.vmem [shape: f32[16,32], index: 9, kind: output, shape index: {}]  }
   0x1   :  { %s35_s11 = sshll.u32 %s2719_s8, 4  ;;  %s37_s13 = sshll.u32 %s2018_s12, 4  ;;  %s36_s11 = int_to_ptr.hbm [resolvable:$true] %s35_s11  ;;  %s38_s13 = int_to_ptr.vmem [resolvable:$true] %s37_s13 }
   0x2   :  { %s2020_s15 = smov 8  }
   0x3   :  { %43 = dma.hbm_to_vmem [thread:$0]  %s36_s11, 256, %s38_s13, [#allocation3], %s2019_s14, %s2019_s14, %s2020_s15  }
   0x4   :  { %2016 = dma.done.wait [#allocation3], 256  }
   0x5   :  { %2017 = vsyncadd [#allocation3], 4294967040  ;;  %vm61_vm0 = vcmask 1043456   ;;  %v52_v0 = vld [vmem:[%s2713_s2 + $0x8] sm:$0xf]  ;;  %v51_v1 = vld [vmem:[%s2713_s2] sm:$0xff]  ;;  %v94_v40 = vlaneseq }
   0x6   :  { %1757 = vmatpush.msk.msra.mxu0 %vm61_vm0, %v52_v0  ;;  %1844 = vmatpush.msk.msra.mxu3 %vm61_vm0, %v52_v0  ;;  %v49_v2 = vld [vmem:[%s2711_s0] sm:$0xff]  ;;  %vm54_vm1 = vcmask 97280   ;;  %v50_v3 = vld [vmem:[%s2711_s0 + $0x8] sm:$0xff]  ;;  %v129_v4 = vld [vmem:[%s2715_s4 + $0x18] sm:$0xff]  ;;  %vm131_vm2 = vcmask 261120   ;;  %s2021_s14 = smov 120  }
   0x7   :  { %150 = vmatpush.msra.mxu1 %v129_v4  ;;  %v128_v5 = vld [vmem:[%s2715_s4 + $0x10] sm:$0xff]  ;;  %v127_v6 = vld [vmem:[%s2715_s4 + $0x8] sm:$0xff]  ;;  %v126_v7 = vld [vmem:[%s2715_s4] sm:$0xff]  ;;  %s2023_s16 = smov 96   ;;  %s2024_s17 = smov 80   ;;  %vm171_vm3 = vcmask 64512  }
   0x8   :  { %80 = vmatpush.msra.mxu0 %v51_v1  ;;  %1845 = vmatpush.msra.mxu3 %v51_v1  ;;  %v48_v8 = vld [vmem:[%s2714_s3] sm:$0x7]  ;;  %v91_v17 = vld [vmem:[%s2712_s1 + $0x8] sm:$0xff]  ;;  %s2025_s18 = smov 72   ;;  %s2026_s19 = smov 104   ;;  %v95_v41 = vshrl.u32 %v94_v40, 7 }
   0x9   :  { %1758 = vmatmul.msk.f32.vlgmr.msra.gmra.mxu0 %vm54_vm1, %v49_v2  ;;  %1759 = vmatmul.msk.f32.vlgmr.msra.gmra.mxu3 %vm54_vm1, %v50_v3  ;;  %v53_v9 = vperm.slane %v48_v8, 0  ;;  %v90_v12 = vld [vmem:[%s2712_s1] sm:$0xff]  ;;  %s2022_s1 = smov 88   ;;  %s2027_s8 = smov 112   ;;  %v100_v42 = vand.u32 127, %v94_v40  ;;  %vm207_vm7 = vcmask 130048  }
   0xa   :  { %151 = vmatpush.msra.mxu1 %v128_v5  ;;  %v2131_v20 = vld [vmem:[#allocation2] sm:$0xff]  ;;  %v97_v43 = vcvt.s32.f32 %v95_v41  ;;  %v96_v49 = vadd.s32 8, %v95_v41  ;;  %v2028_v62 = vmov -1e+30   ;;  %s2029_s20 = smov 64   ;;  %s2030_s21 = smov 56  }
   0xb   :  { %v130_v21 = vperm.slane %v2131_v20, 0  ;;  %v101_v44 = vcvt.s32.f32 %v100_v42  ;;  %s2031_s22 = smov 40   ;;  %s2032_s23 = smov 48  }
   0xc   :  { %152 = vmatpush.msra.mxu1 %v127_v6  ;;  %v102_v45 = vadd.f32 0.5, %v97_v43  ;;  %v98_v52 = vcvt.s32.f32 %v96_v49  ;;  %s2033_s24 = smov 16   ;;  %s2034_s2 = smov 24  }
   0xd   :  { %v108_v46 = vadd.f32 0.5, %v101_v44 }
   0xe   :  { %153 = vmatpush.msra.mxu1 %v126_v7  ;;  %v104_v47 = vmul.f32 0.5, %v102_v45  ;;  %v103_v55 = vadd.f32 0.5, %v98_v52 }
   0xf   :  { %v109_v48 = vmul.f32 0.5, %v108_v46 }
  0x10   :  { %v106_v50 = vfloor.f32 %v104_v47  ;;  %v105_v58 = vmul.f32 0.5, %v103_v55 }
  0x11   :  { %v110_v51 = vfloor.f32 %v109_v48 }
  0x12   :  { %v111_v53 = vmul.f32 2.0, %v106_v50  ;;  %v107_v59 = vfloor.f32 %v105_v58 }
  0x13   :  { %v115_v54 = vmul.f32 2.0, %v110_v51  ;;  %vm119_vm5 = vcmp.le.f32.partialorder %v110_v51, %v106_v50 }
  0x14   :  { %v113_v56 = vsub.f32 %v97_v43, %v111_v53  ;;  %v112_v60 = vmul.f32 2.0, %v107_v59  ;;  %vm120_vm9 = vcmp.le.f32.partialorder %v110_v51, %v107_v59 }
  0x15   :  { %v116_v57 = vsub.f32 %v101_v44, %v115_v54 }
  0x16   :  { %v114_v1 = vsub.f32 %v98_v52, %v112_v60 }
  0x17   :  { %vm117_vm4 = vcmp.eq.f32.partialorder %v113_v56, %v116_v57 }
  0x18   :  { %vm121_vm6 = vmand %vm117_vm4, %vm119_vm5  ;;  %vm118_vm8 = vcmp.eq.f32.partialorder %v114_v1, %v116_v57 }
  0x19   :  { %v2184_v63 = vsel %vm121_vm6, 0.0, %v2028_v62  ;;  %vm122_vm10 = vmand %vm118_vm8, %vm120_vm9 }
  0x86   :  { %v82_v10 = vpop.f32.mrf.mxu0 }
  0x87   :  { %v83_v11 = vadd.f32 %v82_v10, %v53_v9  ;;  %v2190_v10 = vsel %vm122_vm10, 0.0, %v2028_v62 }
  0x89   :  { %v88_v13 = vmul.f32 5.656854, %v83_v11 }
  0x8b   :  { %v2120_v14 = vadd.f32 %v90_v12, %v88_v13 }
  0x8c   :  { %v85_v15 = vpop.f32.mrf.mxu3 }
  0x8d   :  { %1760 = vmatmul.msk.f32.vlgmr.msra.gmra.mxu1 %vm131_vm2, %v2120_v14  ;;  %v86_v16 = vadd.f32 %v85_v15, %v53_v9 }
  0x8f   :  { %v89_v18 = vmul.f32 5.656854, %v86_v16 }
  0x91   :  { %v2127_v19 = vadd.f32 %v91_v17, %v89_v18 }
  0x95   :  { %1761 = vmatmul.msk.f32.gmra.mxu1 %vm131_vm2, %v2127_v19 }
 0x10a   :  { %v155_v22 = vpop.f32.mrf.mxu1 }
 0x10b   :  { %v2134_v23 = vadd.f32 %v155_v22, %v130_v21 }
 0x10d   :  { %291 = vrot.lane.b32.xlu2 %v2134_v23, %s2021_s14 }
 0x112   :  { %v158_v24 = vpop.f32.mrf.mxu1 }
 0x113   :  { %v2138_v25 = vadd.f32 %v158_v24, %v130_v21 }
 0x115   :  { %297 = vrot.lane.b32.xlu1 %v2138_v25, %s2022_s1  ;;  %169 = vrot.lane.b32.xlu0 %v2138_v25, %s2023_s16 }
 0x116   :  { %421 = vrot.lane.b32.xlu2 %v2134_v23, %s2024_s17 }
 0x11d   :  { %295 = vrot.lane.b32.xlu1 %v2134_v23, %s2022_s1  ;;  %167 = vrot.lane.b32.xlu0 %v2134_v23, %s2023_s16 }
 0x11e   :  { %293 = vrot.lane.b32.xlu2 %v2138_v25, %s2021_s14 }
 0x125   :  { %549 = vrot.lane.b32.xlu1 %v2138_v25, %s2025_s18  ;;  %423 = vrot.lane.b32.xlu0 %v2138_v25, %s2024_s17 }
 0x126   :  { %543 = vrot.lane.b32.xlu2 %v2134_v23, %s2026_s19 }
 0x12d   :  { %417 = vrot.lane.b32.xlu1 %v2134_v23, %s2027_s8  ;;  %547 = vrot.lane.b32.xlu0 %v2134_v23, %s2025_s18 }
 0x135   :  { %545 = vrot.lane.b32.xlu1 %v2138_v25, %s2026_s19  ;;  %419 = vrot.lane.b32.xlu0 %v2138_v25, %s2027_s8 }
 0x167   :  { %v292_v26 = vpop.permute.xlu2 %291 }
 0x170   :  { %v422_v29 = vpop.permute.xlu2 %421 }
 0x178   :  { %v294_v34 = vpop.permute.xlu2 %293 }
 0x180   :  { %v544_v37 = vpop.permute.xlu2 %543 }
 0x187   :  { %v298_v27 = vpop.permute.xlu1 %297  ;;  %v170_v28 = vpop.permute.xlu0 %169 }
 0x188   :  { %1762 = vmatpush.xpose.msk.msra.mxu2 %vm171_vm3, %v170_v28  ;;  %1768 = vmatpush.xpose.msk.msrb.mxu0 %vm171_vm3, %v298_v27 }
 0x18f   :  { %v296_v30 = vpop.permute.xlu1 %295  ;;  %v168_v31 = vpop.permute.xlu0 %167 }
 0x190   :  { %1763 = vmatpush.xpose.msk.msra.mxu2 %vm171_vm3, %v168_v31  ;;  %1769 = vmatpush.xpose.msk.msrb.mxu0 %vm171_vm3, %v296_v30 }
 0x193   :  { %1764 = vmatmul.msk.f32.vlgmr.msra.gmra.mxu2 %vm171_vm3, %v2134_v23  ;;  %1770 = vmatmul.msk.f32.vlgmr.msrb.gmra.mxu0 %vm171_vm3, %v292_v26 }
 0x197   :  { %v550_v32 = vpop.permute.xlu1 %549  ;;  %v424_v33 = vpop.permute.xlu0 %423 }
 0x198   :  { %1774 = vmatpush.xpose.msk.msrb.mxu1 %vm171_vm3, %v424_v33  ;;  %1780 = vmatpush.xpose.msk.msra.mxu0 %vm171_vm3, %v550_v32 }
 0x19b   :  { %1765 = vmatmul.msk.f32.gmra.mxu2 %vm171_vm3, %v2138_v25  ;;  %1771 = vmatmul.msk.f32.gmra.mxu0 %vm171_vm3, %v294_v34 }
 0x19c   :  { %1775 = vmatpush.xpose.msk.msrb.mxu1 %vm171_vm3, %v422_v29 }
 0x19f   :  { %v418_v35 = vpop.permute.xlu1 %417  ;;  %v548_v36 = vpop.permute.xlu0 %547 }
 0x1a0   :  { %1776 = vmatmul.msk.f32.vlgmr.msrb.gmra.mxu1 %vm171_vm3, %v418_v35  ;;  %1781 = vmatpush.xpose.msk.msra.mxu0 %vm171_vm3, %v548_v36 }
 0x1a3   :  { %1782 = vmatmul.msk.f32.vlgmr.msra.gmra.mxu0 %vm171_vm3, %v544_v37 }
 0x1a7   :  { %v420_v38 = vpop.permute.xlu0 %419  ;;  %v546_v39 = vpop.permute.xlu1 %545 }
 0x1a8   :  { %1777 = vmatmul.msk.f32.gmra.mxu1 %vm171_vm3, %v420_v38 }
 0x1ab   :  { %1783 = vmatmul.msk.f32.gmra.mxu0 %vm171_vm3, %v546_v39 }
 0x210   :  { %v324_v61 = vpop.f32.mrf.mxu0 }
 0x211   :  { %v330_v0 = vmul.f32 0.35355338, %v324_v61 }
 0x213   :  { %v332_v2 = vadd.f32 %v330_v0, %v2184_v63 }
 0x215   :  { %v334_v3 = vsel %vm207_vm7, %v332_v2, -inf }
 0x216   :  { %335 = vmax.xlane.f32.xlu1 %v334_v3  ;;  %v197_v4 = vpop.f32.mrf.mxu2 }
 0x217   :  { %v203_v5 = vmul.f32 0.35355338, %v197_v4 }
 0x218   :  { %v327_v6 = vpop.f32.mrf.mxu0 }
 0x219   :  { %v205_v7 = vadd.f32 %v203_v5, %v2184_v63  ;;  %v331_v8 = vmul.f32 0.35355338, %v327_v6  ;;  %v1864_v6 = vpack.i.bf16 %v2134_v23, %v2138_v25 }
 0x21b   :  { %v208_v9 = vsel %vm207_vm7, %v205_v7, -inf  ;;  %v333_v15 = vadd.f32 %v331_v8, %v2190_v10 }
 0x21c   :  { %209 = vmax.xlane.f32.xlu2 %v208_v9 }
 0x21d   :  { %v450_v11 = vpop.f32.mrf.mxu1  ;;  %v337_v22 = vsel %vm207_vm7, %v333_v15, -inf }
 0x21e   :  { %v200_v12 = vpop.f32.mrf.mxu2  ;;  %v456_v18 = vmul.f32 0.35355338, %v450_v11 }
 0x21f   :  { %v204_v13 = vmul.f32 0.35355338, %v200_v12 }
 0x220   :  { %v576_v16 = vpop.f32.mrf.mxu0  ;;  %v458_v28 = vadd.f32 %v456_v18, %v2184_v63 }
 0x221   :  { %v206_v17 = vadd.f32 %v204_v13, %v2190_v10  ;;  %v582_v21 = vmul.f32 0.35355338, %v576_v16 }
 0x222   :  { %v460_v34 = vsel %vm207_vm7, %v458_v28, -inf }
 0x223   :  { %v211_v24 = vsel %vm207_vm7, %v206_v17, -inf  ;;  %v584_v29 = vadd.f32 %v582_v21, %v2184_v63 }
 0x224   :  { %338 = vmax.xlane.f32.xlu2 %v337_v22  ;;  %212 = vmax.xlane.f32.xlu0 %v211_v24 }
 0x225   :  { %v453_v26 = vpop.f32.mrf.mxu1  ;;  %v586_v35 = vsel %vm207_vm7, %v584_v29, -inf }
 0x226   :  { %v457_v27 = vmul.f32 0.35355338, %v453_v26 }
 0x228   :  { %v579_v30 = vpop.f32.mrf.mxu0  ;;  %v459_v31 = vadd.f32 %v457_v27, %v2190_v10 }
 0x229   :  { %v583_v33 = vmul.f32 0.35355338, %v579_v30 }
 0x22a   :  { %v463_v32 = vsel %vm207_vm7, %v459_v31, -inf }
 0x22b   :  { %464 = vmax.xlane.f32.xlu1 %v463_v32  ;;  %v585_v36 = vadd.f32 %v583_v33, %v2190_v10 }
 0x22c   :  { %461 = vmax.xlane.f32.xlu2 %v460_v34  ;;  %587 = vmax.xlane.f32.xlu0 %v586_v35 }
 0x22d   :  { %v589_v37 = vsel %vm207_vm7, %v585_v36, -inf }
 0x234   :  { %590 = vmax.xlane.f32.xlu2 %v589_v37 }
 0x289   :  { %v336_v38 = vpop.xlane.xlu1 %335 }
 0x28a   :  { %v340_v39 = vsub.f32 %v332_v2, %v336_v38 }
 0x28c   :  { %v342_v40 = vmul.f32 1.442695, %v340_v39 }
 0x28e   :  { %1904 = vpow2.f32 %v342_v40 }
 0x28f   :  { %v210_v41 = vpop.xlane.xlu2 %209 }
 0x290   :  { %v214_v42 = vsub.f32 %v205_v7, %v210_v41 }
 0x292   :  { %v216_v43 = vmul.f32 1.442695, %v214_v42 }
 0x294   :  { %v2204_v44 = vpop.eup %1904  ;;  %1906 = vpow2.f32 %v216_v43 }
 0x295   :  { %v346_v45 = vsel %vm207_vm7, %v2204_v44, 0.0 }
 0x296   :  { %347 = vadd.xlane.f32.xlu2 %v346_v45 }
 0x297   :  { %v339_v46 = vpop.xlane.xlu2 %338  ;;  %v213_v51 = vpop.xlane.xlu0 %212 }
 0x298   :  { %v341_v47 = vsub.f32 %v333_v15, %v339_v46  ;;  %v215_v58 = vsub.f32 %v206_v17, %v213_v51 }
 0x29a   :  { %v2208_v48 = vpop.eup %1906  ;;  %v344_v49 = vmul.f32 1.442695, %v341_v47  ;;  %v218_v61 = vmul.f32 1.442695, %v215_v58 }
 0x29b   :  { %v220_v50 = vsel %vm207_vm7, %v2208_v48, 0.0 }
 0x29c   :  { %1908 = vpow2.f32 %v344_v49  ;;  %221 = vadd.xlane.f32.xlu0 %v220_v50 }
 0x29e   :  { %v465_v52 = vpop.xlane.xlu1 %464 }
 0x29f   :  { %v467_v53 = vsub.f32 %v459_v31, %v465_v52  ;;  %v462_v54 = vpop.xlane.xlu2 %461  ;;  %v588_v62 = vpop.xlane.xlu0 %587 }
 0x2a0   :  { %v466_v55 = vsub.f32 %v458_v28, %v462_v54  ;;  %v592_v2 = vsub.f32 %v584_v29, %v588_v62 }
 0x2a1   :  { %v470_v56 = vmul.f32 1.442695, %v467_v53 }
 0x2a2   :  { %v2212_v57 = vpop.eup %1908  ;;  %v468_v59 = vmul.f32 1.442695, %v466_v55  ;;  %v594_v5 = vmul.f32 1.442695, %v592_v2 }
 0x2a3   :  { %1910 = vpow2.f32 %v470_v56  ;;  %v349_v60 = vsel %vm207_vm7, %v2212_v57, 0.0 }
 0x2a4   :  { %1912 = vpow2.f32 %v468_v59  ;;  %350 = vadd.xlane.f32.xlu1 %v349_v60 }
 0x2a5   :  { %1914 = vpow2.f32 %v218_v61 }
 0x2a6   :  { %1916 = vpow2.f32 %v594_v5 }
 0x2a7   :  { %v591_v23 = vpop.xlane.xlu2 %590 }
 0x2a8   :  { %v593_v25 = vsub.f32 %v585_v36, %v591_v23 }
 0x2a9   :  { %v2216_v0 = vpop.eup %1910 }
 0x2aa   :  { %v2218_v1 = vpop.eup %1912  ;;  %v475_v3 = vsel %vm207_vm7, %v2216_v0, 0.0  ;;  %v596_v12 = vmul.f32 1.442695, %v593_v25 }
 0x2ab   :  { %v472_v4 = vsel %vm207_vm7, %v2218_v1, 0.0  ;;  %v2226_v7 = vpop.eup %1914 }
 0x2ac   :  { %473 = vadd.xlane.f32.xlu2 %v472_v4  ;;  %476 = vadd.xlane.f32.xlu1 %v475_v3  ;;  %v223_v8 = vsel %vm207_vm7, %v2226_v7, 0.0  ;;  %v2231_v9 = vpop.eup %1916  ;;  %1918 = vpow2.f32 %v596_v12 }
 0x2ad   :  { %v598_v11 = vsel %vm207_vm7, %v2231_v9, 0.0 }
 0x2b0   :  { %1865 = vrot.lane.b32.xlu0 %v1864_v6, %s2029_s20 }
 0x2b2   :  { %v2238_v13 = vpop.eup %1918 }
 0x2b3   :  { %v601_v15 = vsel %vm207_vm7, %v2238_v13, 0.0 }
 0x2b4   :  { %224 = vadd.xlane.f32.xlu1 %v223_v8 }
 0x2bc   :  { %599 = vadd.xlane.f32.xlu1 %v598_v11 }
 0x2c4   :  { %1870 = vrot.lane.b32.xlu2 %v1864_v6, %s2030_s21 }
 0x2cc   :  { %1880 = vrot.lane.b32.xlu2 %v1864_v6, %s2031_s22 }
 0x2d5   :  { %1875 = vrot.lane.b32.xlu1 %v1864_v6, %s2032_s23 }
 0x2da   :  { %602 = vadd.xlane.f32.xlu0 %v601_v15 }
 0x309   :  { %v2242_v18 = vpop.xlane.xlu2 %347 }
 0x30a   :  { %v363_v11 = vand.u32 2147483648, %v2242_v18  ;;  %vm357_vm6 = vweird.f32 %v2242_v18  ;;  %v361_v25 = vand.u32 2147483647, %v2242_v18 }
 0x30c   :  { %vm362_vm9 = vcmp.eq.f32.partialorder %v361_v25, 8.507059e+37 }
 0x30f   :  { %v222_v16 = vpop.xlane.xlu0 %221 }
 0x310   :  { %1920 = vrcp.f32 %v222_v16  ;;  %v237_v28 = vand.u32 2147483648, %v222_v16  ;;  %vm231_vm12 = vweird.f32 %v222_v16  ;;  %v235_v29 = vand.u32 2147483647, %v222_v16 }
 0x311   :  { %1922 = vrcp.f32 %v2242_v18 }
 0x312   :  { %v238_v33 = vor.u32 1.1754944e-38, %v237_v28  ;;  %vm236_vm14 = vcmp.eq.f32.partialorder %v235_v29, 8.507059e+37 }
 0x316   :  { %v1921_v17 = vpop.eup %1920 }
 0x317   :  { %v227_v21 = vmul.f32 %v1921_v17, %v222_v16  ;;  %v2244_v22 = vpop.xlane.xlu1 %350  ;;  %vm232_vm11 = vweird.f32 %v1921_v17  ;;  %v1923_v39 = vpop.eup %1922 }
 0x318   :  { %vm233_vm13 = vmor %vm231_vm12, %vm232_vm11  ;;  %v353_v43 = vmul.f32 %v1923_v39, %v2242_v18  ;;  %vm358_vm1 = vweird.f32 %v1923_v39  ;;  %vm372_vm11 = vweird.f32 %v2244_v22 }
 0x319   :  { %v228_v24 = vsub.f32 1.0, %v227_v21  ;;  %vm359_vm8 = vmor %vm357_vm6, %vm358_vm1 }
 0x31a   :  { %v354_v47 = vsub.f32 1.0, %v353_v43 }
 0x31b   :  { %v229_v26 = vmul.f32 %v1921_v17, %v228_v24 }
 0x31c   :  { %v355_v55 = vmul.f32 %v1923_v39, %v354_v47 }
 0x31d   :  { %v230_v27 = vadd.f32 %v1921_v17, %v229_v26  ;;  %v364_v26 = vor.u32 1.1754944e-38, %v363_v11 }
 0x31e   :  { %v356_v4 = vadd.f32 %v1923_v39, %v355_v55 }
 0x31f   :  { %v2246_v30 = vpop.xlane.xlu2 %473  ;;  %v2248_v31 = vpop.xlane.xlu1 %476  ;;  %v234_v32 = vsel %vm233_vm13, %v1921_v17, %v230_v27 }
 0x320   :  { %v239_v36 = vsel %vm236_vm14, %v238_v33, %v234_v32  ;;  %v360_v17 = vsel %vm359_vm8, %v1923_v39, %v356_v4  ;;  %v378_v32 = vand.u32 2147483648, %v2244_v22  ;;  %v376_v33 = vand.u32 2147483647, %v2244_v22 }
 0x321   :  { %v240_v38 = vmul.f32 %v2208_v48, %v239_v36  ;;  %vm483_vm14 = vweird.f32 %v2246_v30 }
 0x322   :  { %v1866_v34 = vpop.permute.xlu0 %1865 }
 0x323   :  { %v1867_v35 = vunpack.i.l.bf16 %v1866_v34  ;;  %v1868_v37 = vunpack.i.h.bf16 %v1866_v34 }
 0x325   :  { %282 = vmatpush.msrb.mxu3 %v1867_v35 }
 0x327   :  { %v1871_v40 = vpop.permute.xlu2 %1870  ;;  %v225_v41 = vpop.xlane.xlu1 %224  ;;  %283 = vmatpush.msrb.mxu3 %v1868_v37  ;;  %v489_v37 = vand.u32 2147483648, %v2246_v30 }
 0x328   :  { %v1872_v42 = vunpack.i.l.bf16 %v1871_v40  ;;  %1924 = vrcp.f32 %v225_v41  ;;  %1766 = vmatmul.msk.f32.vlgmr.msrb.gmra.mxu3 %vm207_vm7, %v240_v38  ;;  %v1873_v45 = vunpack.i.h.bf16 %v1871_v40  ;;  %v252_v56 = vand.u32 2147483648, %v225_v41 }
 0x329   :  { %1926 = vrcp.f32 %v2244_v22  ;;  %v250_v61 = vand.u32 2147483647, %v225_v41  ;;  %vm246_vm0 = vweird.f32 %v225_v41  ;;  %v487_v38 = vand.u32 2147483647, %v2246_v30 }
 0x32a   :  { %408 = vmatpush.msra.mxu3 %v1872_v42  ;;  %1928 = vrcp.f32 %v2246_v30  ;;  %v253_v3 = vor.u32 1.1754944e-38, %v252_v56  ;;  %v379_v40 = vor.u32 1.1754944e-38, %v378_v32  ;;  %v490_v42 = vor.u32 1.1754944e-38, %v489_v37 }
 0x32b   :  { %vm251_vm5 = vcmp.eq.f32.partialorder %v250_v61, 8.507059e+37  ;;  %vm488_vm1 = vcmp.eq.f32.partialorder %v487_v38, 8.507059e+37 }
 0x32c   :  { %409 = vmatpush.msra.mxu3 %v1873_v45 }
 0x32e   :  { %v1925_v46 = vpop.eup %1924 }
 0x32f   :  { %v242_v48 = vmul.f32 %v1925_v46, %v225_v41  ;;  %v1881_v49 = vpop.permute.xlu2 %1880  ;;  %v2256_v50 = vpop.xlane.xlu1 %599  ;;  %vm247_vm15 = vweird.f32 %v1925_v46 }
 0x330   :  { %v2258_v51 = vpop.eup %1926  ;;  %v1882_v52 = vunpack.i.l.bf16 %v1881_v49  ;;  %v1883_v58 = vunpack.i.h.bf16 %v1881_v49  ;;  %1930 = vrcp.f32 %v2256_v50  ;;  %vm248_vm4 = vmor %vm246_vm0, %vm247_vm15  ;;  %vm377_vm0 = vcmp.eq.f32.partialorder %v376_v33, 8.507059e+37 }
 0x331   :  { %v243_v53 = vsub.f32 1.0, %v242_v48  ;;  %v2260_v54 = vpop.eup %1928  ;;  %v368_v59 = vmul.f32 %v2258_v51, %v2244_v22  ;;  %1932 = vrcp.f32 %v2248_v31  ;;  %vm373_vm10 = vweird.f32 %v2258_v51 }
 0x332   :  { %660 = vmatpush.msrb.mxu3 %v1882_v52  ;;  %v479_v62 = vmul.f32 %v2260_v54, %v2246_v30  ;;  %vm484_vm12 = vweird.f32 %v2260_v54  ;;  %vm374_vm13 = vmor %vm372_vm11, %vm373_vm10  ;;  %vm609_vm6 = vweird.f32 %v2256_v50  ;;  %v613_v49 = vand.u32 2147483647, %v2256_v50 }
 0x333   :  { %v244_v60 = vmul.f32 %v1925_v46, %v243_v53  ;;  %v369_v5 = vsub.f32 1.0, %v368_v59  ;;  %vm485_vm15 = vmor %vm483_vm14, %vm484_vm12  ;;  %v504_v53 = vand.u32 2147483648, %v2248_v31 }
 0x334   :  { %661 = vmatpush.msrb.mxu3 %v1883_v58  ;;  %v480_v12 = vsub.f32 1.0, %v479_v62  ;;  %vm614_vm11 = vcmp.eq.f32.partialorder %v613_v49, 8.507059e+37 }
 0x335   :  { %v245_v2 = vadd.f32 %v1925_v46, %v244_v60  ;;  %v370_v21 = vmul.f32 %v2258_v51, %v369_v5  ;;  %v505_v61 = vor.u32 1.1754944e-38, %v504_v53 }
 0x336   :  { %v2268_v8 = vpop.eup %1930  ;;  %v481_v27 = vmul.f32 %v2260_v54, %v480_v12 }
 0x337   :  { %v249_v6 = vsel %vm248_vm4, %v1925_v46, %v245_v2  ;;  %v2274_v16 = vpop.eup %1932  ;;  %v605_v24 = vmul.f32 %v2268_v8, %v2256_v50  ;;  %v371_v29 = vadd.f32 %v2258_v51, %v370_v21  ;;  %vm610_vm4 = vweird.f32 %v2268_v8 }
 0x338   :  { %v254_v23 = vsel %vm251_vm5, %v253_v3, %v249_v6  ;;  %v494_v18 = vmul.f32 %v2274_v16, %v2248_v31  ;;  %v482_v34 = vadd.f32 %v2260_v54, %v481_v27  ;;  %v615_v46 = vand.u32 2147483648, %v2256_v50  ;;  %vm2309_vm8 = vmor %vm609_vm6, %vm610_vm4 }
 0x339   :  { %v255_v15 = vmul.f32 %v2226_v7, %v254_v23  ;;  %v365_v7 = vsel %vm362_vm9, %v364_v26, %v360_v17  ;;  %v606_v28 = vsub.f32 1.0, %v605_v24  ;;  %v375_v22 = vsel %vm374_vm13, %v2258_v51, %v371_v29  ;;  %v161_v29 = vld [vmem:[%s2716_s5] sm:$0xff] }
 0x33a   :  { %v495_v35 = vsub.f32 1.0, %v494_v18  ;;  %v366_v36 = vmul.f32 %v2204_v44, %v365_v7  ;;  %v486_v44 = vsel %vm485_vm15, %v2260_v54, %v482_v34  ;;  %v380_v43 = vsel %vm377_vm0, %v379_v40, %v375_v22  ;;  %v164_v18 = vld [vmem:[%s2716_s5 + $0x18] sm:$0xff]  ;;  %v163_v7 = vld [vmem:[%s2716_s5 + $0x10] sm:$0xff] }
 0x33b   :  { %1767 = vmatmul.msk.f32.gmra.mxu3 %vm207_vm7, %v255_v15  ;;  %v607_v39 = vmul.f32 %v2268_v8, %v606_v28  ;;  %v491_v48 = vsel %vm488_vm1, %v490_v42, %v486_v44  ;;  %vm499_vm5 = vweird.f32 %v2274_v16  ;;  %v381_v51 = vmul.f32 %v2212_v57, %v380_v43  ;;  %719 = vmatpush.msra.mxu1 %v164_v18  ;;  %v162_v28 = vld [vmem:[%s2716_s5 + $0x8] sm:$0xff] }
 0x33c   :  { %v496_v41 = vmul.f32 %v2274_v16, %v495_v35  ;;  %vm498_vm9 = vweird.f32 %v2248_v31  ;;  %v492_v57 = vmul.f32 %v2218_v1, %v491_v48  ;;  %v502_v50 = vand.u32 2147483647, %v2248_v31 }
 0x33d   :  { %v608_v45 = vadd.f32 %v2268_v8, %v607_v39  ;;  %v616_v58 = vor.u32 1.1754944e-38, %v615_v46  ;;  %vm500_vm10 = vmor %vm498_vm9, %vm499_vm5  ;;  %720 = vmatpush.msra.mxu1 %v163_v7  ;;  %vm697_vm1 = vcmask 195584   ;;  %v700_v42 = vperm.slane %v2131_v20, 1 }
 0x33e   :  { %v497_v52 = vadd.f32 %v2274_v16, %v496_v41  ;;  %vm503_vm12 = vcmp.eq.f32.partialorder %v502_v50, 8.507059e+37 }
 0x33f   :  { %v612_v56 = vsel %vm2309_vm8, %v2268_v8, %v608_v45  ;;  %721 = vmatpush.msra.mxu1 %v162_v28 }
 0x340   :  { %v501_v60 = vsel %vm500_vm10, %v2274_v16, %v497_v52  ;;  %v617_v62 = vsel %vm614_vm11, %v616_v58, %v612_v56  ;;  %v2035_v52 = vmov 32.0  }
 0x341   :  { %v506_v2 = vsel %vm503_vm12, %v505_v61, %v501_v60  ;;  %v618_v1 = vmul.f32 %v2231_v9, %v617_v62  ;;  %722 = vmatpush.msra.mxu1 %v161_v29  ;;  %v783_v29 = vperm.slane %v2131_v20, 4  ;;  %vm834_vm12 = vcmask 523264  }
 0x342   :  { %v507_v31 = vmul.f32 %v2216_v0, %v506_v2 }
 0x343   :  { %1772 = vmatmul.msk.f32.vlgmr.msra.gmra.mxu3 %vm207_vm7, %v366_v36 }
 0x347   :  { %v1876_v30 = vpop.permute.xlu1 %1875 }
 0x348   :  { %v1877_v47 = vunpack.i.l.bf16 %v1876_v30  ;;  %v1878_v55 = vunpack.i.h.bf16 %v1876_v30 }
 0x34a   :  { %534 = vmatpush.msrb.mxu2 %v1877_v47 }
 0x34b   :  { %1773 = vmatmul.msk.f32.gmra.mxu3 %vm207_vm7, %v381_v51 }
 0x34c   :  { %535 = vmatpush.msrb.mxu2 %v1878_v55 }
 0x34d   :  { %1778 = vmatmul.msk.f32.vlgmr.msrb.gmra.mxu2 %vm207_vm7, %v492_v57  ;;  %v603_v59 = vpop.xlane.xlu0 %602 }
 0x34e   :  { %1934 = vrcp.f32 %v603_v59  ;;  %v630_v6 = vand.u32 2147483648, %v603_v59  ;;  %v628_v11 = vand.u32 2147483647, %v603_v59  ;;  %vm624_vm14 = vweird.f32 %v603_v59 }
 0x34f   :  { %1936 = vrcp.f32 %v2035_v52 }
 0x350   :  { %v631_v25 = vor.u32 1.1754944e-38, %v630_v6  ;;  %vm629_vm0 = vcmp.eq.f32.partialorder %v628_v11, 8.507059e+37  ;;  %v789_v6 = vld [vmem:[%s2717_s6] sm:$0xff] }
 0x353   :  { %1784 = vmatmul.msk.f32.vlgmr.msrb.gmra.mxu3 %vm207_vm7, %v618_v1 }
 0x354   :  { %v1935_v3 = vpop.eup %1934 }
 0x355   :  { %v620_v4 = vmul.f32 %v1935_v3, %v603_v59  ;;  %1779 = vmatmul.msk.f32.gmra.mxu2 %vm207_vm7, %v507_v31  ;;  %vm625_vm13 = vweird.f32 %v1935_v3  ;;  %v1937_v53 = vpop.eup %1936 }
 0x356   :  { %vm626_vm15 = vmor %vm624_vm14, %vm625_vm13  ;;  %v739_v54 = vmul.f32 32.0, %v1937_v53  ;;  %vm743_vm4 = vweird.f32 %v1937_v53 }
 0x357   :  { %v621_v5 = vsub.f32 1.0, %v620_v4  ;;  %v791_v4 = vld [vmem:[%s2717_s6 + $0x10] sm:$0xff] }
 0x358   :  { %v740_v55 = vsub.f32 1.0, %v739_v54 }
 0x359   :  { %v622_v8 = vmul.f32 %v1935_v3, %v621_v5  ;;  %v790_v5 = vld [vmem:[%s2717_s6 + $0x8] sm:$0xff] }
 0x35a   :  { %v741_v56 = vmul.f32 %v1937_v53, %v740_v55  ;;  %v833_v55 = vperm.slane %v2131_v20, 3 }
 0x35b   :  { %v623_v23 = vadd.f32 %v1935_v3, %v622_v8 }
 0x35c   :  { %v742_v57 = vadd.f32 %v1937_v53, %v741_v56 }
 0x35d   :  { %v627_v12 = vsel %vm626_vm15, %v1935_v3, %v623_v23  ;;  %v792_v3 = vld [vmem:[%s2717_s6 + $0x18] sm:$0xff] }
 0x35e   :  { %v632_v9 = vsel %vm629_vm0, %v631_v25, %v627_v12  ;;  %v2361_v50 = vsel %vm743_vm4, %v1937_v53, %v742_v57  ;;  %812 = vmatpush.msra.mxu2 %v792_v3  ;;  %v832_v25 = vld [vmem:[%s2718_s7 + $0x38] sm:$0xff]  ;;  %v831_v12 = vld [vmem:[%s2718_s7 + $0x30] sm:$0xff] }
 0x35f   :  { %v633_v15 = vmul.f32 %v2238_v13, %v632_v9  ;;  %849 = vmatpush.msrb.mxu0 %v832_v25  ;;  %v830_v9 = vld [vmem:[%s2718_s7 + $0x28] sm:$0xff] }
 0x360   :  { %813 = vmatpush.msra.mxu2 %v791_v4  ;;  %v1793_v25 = vld [vmem:[%s2715_s4 + $0x28] sm:$0xff] }
 0x361   :  { %1785 = vmatmul.msk.f32.gmra.mxu3 %vm207_vm7, %v633_v15  ;;  %850 = vmatpush.msrb.mxu0 %v831_v12  ;;  %v1792_v12 = vld [vmem:[%s2715_s4 + $0x20] sm:$0xff] }
 0x362   :  { %814 = vmatpush.msra.mxu2 %v790_v5 }
 0x363   :  { %851 = vmatpush.msrb.mxu0 %v830_v9 }
 0x364   :  { %815 = vmatpush.msra.mxu2 %v789_v6 }
 0x3ab   :  { %v285_v0 = vpop.f32.mrf.mxu3 }
 0x3be   :  { %v288_v16 = vpop.f32.mrf.mxu3 }
 0x3c6   :  { %v411_v17 = vpop.f32.mrf.mxu3 }
 0x3c7   :  { %671 = vrot.lane.b32.xlu2 %v411_v17, %s2020_s15 }
 0x3ce   :  { %v414_v21 = vpop.f32.mrf.mxu3 }
 0x3d0   :  { %v537_v24 = vpop.f32.mrf.mxu2 }
 0x3d1   :  { %679 = vrot.lane.b32.xlu1 %v537_v24, %s2033_s24 }
 0x3d6   :  { %v663_v26 = vpop.f32.mrf.mxu3 }
 0x3d7   :  { %687 = vrot.lane.b32.xlu2 %v663_v26, %s2034_s2  ;;  %v828_v26 = vld [vmem:[%s2718_s7 + $0x18] sm:$0xff] }
 0x3d8   :  { %v540_v27 = vpop.f32.mrf.mxu2 }
 0x3d9   :  { %681 = vrot.lane.b32.xlu0 %v540_v27, %s2033_s24  ;;  %673 = vrot.lane.b32.xlu1 %v414_v21, %s2020_s15 }
 0x3e4   :  { %v666_v13 = vpop.f32.mrf.mxu3 }
 0x3e5   :  { %689 = vrot.lane.b32.xlu2 %v666_v13, %s2034_s2 }
 0x421   :  { %v672_v32 = vpop.permute.xlu2 %671 }
 0x422   :  { %v693_v33 = vsel %vm171_vm3, %v285_v0, %v672_v32 }
 0x431   :  { %v688_v35 = vpop.permute.xlu2 %687 }
 0x43f   :  { %v690_v40 = vpop.permute.xlu2 %689 }
 0x443   :  { %v680_v34 = vpop.permute.xlu1 %679 }
 0x444   :  { %v695_v36 = vsel %vm207_vm7, %v693_v33, %v680_v34 }
 0x445   :  { %v698_v37 = vsel %vm697_vm1, %v695_v36, %v688_v35  ;;  %v786_v36 = vperm.slane %v2131_v20, 5 }
 0x446   :  { %1786 = vmatmul.msk.f32.vlgmr.msra.gmra.mxu1 %vm131_vm2, %v698_v37 }
 0x44b   :  { %v682_v38 = vpop.permute.xlu0 %681  ;;  %v674_v39 = vpop.permute.xlu1 %673 }
 0x44c   :  { %v694_v22 = vsel %vm171_vm3, %v288_v16, %v674_v39  ;;  %v829_v16 = vld [vmem:[%s2718_s7 + $0x20] sm:$0xff] }
 0x44d   :  { %v696_v41 = vsel %vm207_vm7, %v694_v22, %v682_v38  ;;  %852 = vmatpush.msrb.mxu0 %v829_v16 }
 0x44e   :  { %v699_v44 = vsel %vm697_vm1, %v696_v41, %v690_v40 }
 0x44f   :  { %1787 = vmatmul.msk.f32.gmra.mxu1 %vm131_vm2, %v699_v44  ;;  %853 = vmatpush.msrb.mxu0 %v828_v26 }
 0x4c3   :  { %v724_v43 = vpop.f32.mrf.mxu1 }
 0x4c4   :  { %v725_v45 = vadd.f32 %v724_v43, %v700_v42 }
 0x4c6   :  { %v730_v30 = vadd.f32 %v725_v45, %v2120_v14  ;;  %v827_v45 = vld [vmem:[%s2718_s7 + $0x10] sm:$0xff] }
 0x4c7   :  { %854 = vmatpush.msrb.mxu0 %v827_v45 }
 0x4c8   :  { %v732_v46 = vsel %vm131_vm2, %v730_v30, 0.0 }
 0x4c9   :  { %733 = vadd.xlane.f32.xlu1 %v732_v46  ;;  %v825_v46 = vld [vmem:[%s2718_s7] sm:$0xff] }
 0x4cc   :  { %v727_v47 = vpop.f32.mrf.mxu1 }
 0x4cd   :  { %v728_v48 = vadd.f32 %v727_v47, %v700_v42  ;;  %v793_v47 = vperm.slane %v2131_v20, 2 }
 0x4cf   :  { %v731_v49 = vadd.f32 %v728_v48, %v2127_v19 }
 0x4d1   :  { %v735_v51 = vsel %vm131_vm2, %v731_v49, 0.0 }
 0x4d2   :  { %736 = vadd.xlane.f32.xlu2 %v735_v51 }
 0x53c   :  { %v734_v14 = vpop.xlane.xlu1 %733 }
 0x53d   :  { %v745_v58 = vmul.f32 %v2361_v50, %v734_v14 }
 0x53f   :  { %v747_v59 = vsub.f32 %v730_v30, %v745_v58  ;;  %v826_v30 = vld [vmem:[%s2718_s7 + $0x8] sm:$0xff] }
 0x540   :  { %855 = vmatpush.msrb.mxu0 %v826_v30  ;;  %v2441_v30 = vld [vmem:[#allocation2 + $0x8] sm:$0xff] }
 0x541   :  { %v749_v60 = vmul.f32 %v747_v59, %v747_v59 }
 0x542   :  { %856 = vmatpush.msrb.mxu0 %v825_v46  ;;  %v923_v46 = vperm.slane %v2441_v30, 0 }
 0x543   :  { %v751_v19 = vsel %vm131_vm2, %v749_v60, 0.0 }
 0x544   :  { %752 = vadd.xlane.f32.xlu0 %v751_v19 }
 0x545   :  { %v737_v61 = vpop.xlane.xlu2 %736 }
 0x546   :  { %v746_v62 = vmul.f32 %v2361_v50, %v737_v61 }
 0x548   :  { %v748_v2 = vsub.f32 %v731_v49, %v746_v62 }
 0x54a   :  { %v750_v1 = vmul.f32 %v748_v2, %v748_v2 }
 0x54c   :  { %v754_v31 = vsel %vm131_vm2, %v750_v1, 0.0 }
 0x54d   :  { %755 = vadd.xlane.f32.xlu1 %v754_v31 }
 0x5b7   :  { %v753_v8 = vpop.xlane.xlu0 %752 }
 0x5b8   :  { %v757_v11 = vmul.f32 %v753_v8, %v2361_v50 }
 0x5ba   :  { %v759_v23 = vadd.f32 1e-05, %v757_v11  ;;  %v1795_v11 = vld [vmem:[%s2715_s4 + $0x38] sm:$0xff] }
 0x5bb   :  { %942 = vmatpush.msra.mxu3 %v1795_v11 }
 0x5bc   :  { %1938 = vrsqrt.f32 %v759_v23  ;;  %vm767_vm6 = vweird.f32 %v759_v23 }
 0x5c0   :  { %v756_v15 = vpop.xlane.xlu1 %755 }
 0x5c1   :  { %v758_v0 = vmul.f32 %v756_v15, %v2361_v50 }
 0x5c2   :  { %v1939_v17 = vpop.eup %1938 }
 0x5c3   :  { %v762_v21 = vmul.f32 %v1939_v17, %v759_v23  ;;  %v760_v24 = vadd.f32 1e-05, %v758_v0  ;;  %vm768_vm5 = vweird.f32 %v1939_v17  ;;  %v1794_v23 = vld [vmem:[%s2715_s4 + $0x30] sm:$0xff] }
 0x5c4   :  { %vm769_vm8 = vmor %vm767_vm6, %vm768_vm5  ;;  %943 = vmatpush.msra.mxu3 %v1794_v23 }
 0x5c5   :  { %v763_v27 = vmul.f32 %v1939_v17, %v762_v21  ;;  %1940 = vrsqrt.f32 %v760_v24  ;;  %vm777_vm10 = vweird.f32 %v760_v24 }
 0x5c6   :  { %944 = vmatpush.msra.mxu3 %v1793_v25 }
 0x5c7   :  { %v764_v13 = vmul.f32 0.5, %v763_v27 }
 0x5c8   :  { %945 = vmatpush.msra.mxu3 %v1792_v12 }
 0x5c9   :  { %v765_v18 = vsub.f32 1.5, %v764_v13 }
 0x5cb   :  { %v1941_v7 = vpop.eup %1940  ;;  %v766_v28 = vmul.f32 %v1939_v17, %v765_v18 }
 0x5cc   :  { %v772_v32 = vmul.f32 %v1941_v7, %v760_v24  ;;  %vm778_vm9 = vweird.f32 %v1941_v7 }
 0x5cd   :  { %v770_v33 = vsel %vm769_vm8, %v1939_v17, %v766_v28  ;;  %vm779_vm11 = vmor %vm777_vm10, %vm778_vm9 }
 0x5ce   :  { %v781_v34 = vmul.f32 %v770_v33, %v747_v59  ;;  %v773_v35 = vmul.f32 %v1941_v7, %v772_v32 }
 0x5d0   :  { %v784_v37 = vmul.f32 %v783_v29, %v781_v34  ;;  %v774_v38 = vmul.f32 0.5, %v773_v35 }
 0x5d2   :  { %v775_v39 = vsub.f32 1.5, %v774_v38  ;;  %v787_v22 = vadd.f32 %v786_v36, %v784_v37 }
 0x5d4   :  { %v776_v40 = vmul.f32 %v1941_v7, %v775_v39  ;;  %1788 = vmatmul.msk.f32.vlgmr.msra.gmra.mxu2 %vm131_vm2, %v787_v22 }
 0x5d6   :  { %v780_v41 = vsel %vm779_vm11, %v1941_v7, %v776_v40 }
 0x5d7   :  { %v782_v44 = vmul.f32 %v780_v41, %v748_v2 }
 0x5d9   :  { %v785_v42 = vmul.f32 %v783_v29, %v782_v44  ;;  %v1990_v29 = vld [vmem:[#allocation2] sm:$0xff] }
 0x5da   :  { %v910_v32 = vperm.slane %v1990_v29, 6  ;;  %v913_v37 = vperm.slane %v1990_v29, 7 }
 0x5db   :  { %v788_v43 = vadd.f32 %v786_v36, %v785_v42 }
 0x5dd   :  { %1789 = vmatmul.msk.f32.gmra.mxu2 %vm131_vm2, %v788_v43 }
 0x657   :  { %v817_v48 = vpop.f32.mrf.mxu2 }
 0x658   :  { %v818_v49 = vadd.f32 %v817_v48, %v793_v47 }
 0x65a   :  { %v823_v51 = vmax.f32 %v818_v49, 0.0 }
 0x65c   :  { %1790 = vmatmul.msk.f32.vlgmr.msrb.gmra.mxu0 %vm834_vm12, %v823_v51 }
 0x660   :  { %v820_v52 = vpop.f32.mrf.mxu2 }
 0x661   :  { %v821_v53 = vadd.f32 %v820_v52, %v793_v47 }
 0x663   :  { %v824_v54 = vmax.f32 %v821_v53, 0.0 }
 0x665   :  { %1791 = vmatmul.msk.f32.gmra.mxu0 %vm834_vm12, %v824_v54 }
 0x6d9   :  { %v858_v56 = vpop.f32.mrf.mxu0 }
 0x6da   :  { %v859_v57 = vadd.f32 %v858_v56, %v833_v55 }
 0x6dc   :  { %v864_v14 = vadd.f32 %v859_v57, %v787_v22 }
 0x6de   :  { %v866_v58 = vsel %vm131_vm2, %v864_v14, 0.0 }
 0x6df   :  { %867 = vadd.xlane.f32.xlu2 %v866_v58 }
 0x6e2   :  { %v861_v59 = vpop.f32.mrf.mxu0 }
 0x6e3   :  { %v862_v60 = vadd.f32 %v861_v59, %v833_v55 }
 0x6e5   :  { %v865_v19 = vadd.f32 %v862_v60, %v788_v43 }
 0x6e7   :  { %v869_v61 = vsel %vm131_vm2, %v865_v19, 0.0 }
 0x6e8   :  { %870 = vadd.xlane.f32.xlu1 %v869_v61 }
 0x752   :  { %v868_v62 = vpop.xlane.xlu2 %867 }
 0x753   :  { %v872_v2 = vmul.f32 %v868_v62, %v2361_v50 }
 0x755   :  { %v874_v1 = vsub.f32 %v864_v14, %v872_v2 }
 0x757   :  { %v876_v31 = vmul.f32 %v874_v1, %v874_v1 }
 0x759   :  { %v878_v3 = vsel %vm131_vm2, %v876_v31, 0.0 }
 0x75a   :  { %879 = vadd.xlane.f32.xlu2 %v878_v3 }
 0x75b   :  { %v871_v20 = vpop.xlane.xlu1 %870 }
 0x75c   :  { %v873_v4 = vmul.f32 %v871_v20, %v2361_v50 }
 0x75e   :  { %v875_v5 = vsub.f32 %v865_v19, %v873_v4 }
 0x760   :  { %v877_v6 = vmul.f32 %v875_v5, %v875_v5 }
 0x762   :  { %v881_v8 = vsel %vm131_vm2, %v877_v6, 0.0 }
 0x763   :  { %882 = vadd.xlane.f32.xlu1 %v881_v8 }
 0x7cd   :  { %v880_v9 = vpop.xlane.xlu2 %879 }
 0x7ce   :  { %v884_v15 = vmul.f32 %v880_v9, %v2361_v50 }
 0x7d0   :  { %v886_v0 = vadd.f32 1e-05, %v884_v15 }
 0x7d2   :  { %1942 = vrsqrt.f32 %v886_v0  ;;  %vm894_vm14 = vweird.f32 %v886_v0 }
 0x7d6   :  { %v883_v16 = vpop.xlane.xlu1 %882 }
 0x7d7   :  { %v885_v17 = vmul.f32 %v883_v16, %v2361_v50 }
 0x7d8   :  { %v1943_v21 = vpop.eup %1942 }
 0x7d9   :  { %v889_v24 = vmul.f32 %v1943_v21, %v886_v0  ;;  %v887_v26 = vadd.f32 1e-05, %v885_v17  ;;  %vm895_vm13 = vweird.f32 %v1943_v21 }
 0x7da   :  { %vm896_vm15 = vmor %vm894_vm14, %vm895_vm13 }
 0x7db   :  { %v890_v27 = vmul.f32 %v1943_v21, %v889_v24  ;;  %1944 = vrsqrt.f32 %v887_v26  ;;  %vm904_vm4 = vweird.f32 %v887_v26 }
 0x7dd   :  { %v891_v13 = vmul.f32 0.5, %v890_v27 }
 0x7df   :  { %v892_v18 = vsub.f32 1.5, %v891_v13 }
 0x7e1   :  { %v1945_v7 = vpop.eup %1944  ;;  %v893_v28 = vmul.f32 %v1943_v21, %v892_v18 }
 0x7e2   :  { %v899_v33 = vmul.f32 %v1945_v7, %v887_v26  ;;  %vm905_vm0 = vweird.f32 %v1945_v7 }
 0x7e3   :  { %v897_v34 = vsel %vm896_vm15, %v1943_v21, %v893_v28  ;;  %vm906_vm5 = vmor %vm904_vm4, %vm905_vm0 }
 0x7e4   :  { %v908_v35 = vmul.f32 %v897_v34, %v874_v1  ;;  %v900_v36 = vmul.f32 %v1945_v7, %v899_v33 }
 0x7e6   :  { %v911_v38 = vmul.f32 %v910_v32, %v908_v35  ;;  %v901_v39 = vmul.f32 0.5, %v900_v36 }
 0x7e8   :  { %v902_v22 = vsub.f32 1.5, %v901_v39  ;;  %v2433_v40 = vadd.f32 %v913_v37, %v911_v38 }
 0x7ea   :  { %v903_v41 = vmul.f32 %v1945_v7, %v902_v22  ;;  %1796 = vmatmul.msk.f32.vlgmr.msra.gmra.mxu3 %vm131_vm2, %v2433_v40 }
 0x7ec   :  { %v907_v44 = vsel %vm906_vm5, %v1945_v7, %v903_v41 }
 0x7ed   :  { %v909_v42 = vmul.f32 %v907_v44, %v875_v5 }
 0x7ef   :  { %v912_v43 = vmul.f32 %v910_v32, %v909_v42 }
 0x7f1   :  { %v2437_v45 = vadd.f32 %v913_v37, %v912_v43 }
 0x7f3   :  { %1797 = vmatmul.msk.f32.gmra.mxu3 %vm131_vm2, %v2437_v45 }
 0x86d   :  { %v947_v47 = vpop.f32.mrf.mxu3 }
 0x86e   :  { %v2444_v48 = vadd.f32 %v947_v47, %v923_v46 }
 0x870   :  { %1086 = vrot.lane.b32.xlu0 %v2444_v48, %s2022_s1  ;;  %960 = vrot.lane.b32.xlu1 %v2444_v48, %s2023_s16 }
 0x876   :  { %v950_v49 = vpop.f32.mrf.mxu3 }
 0x877   :  { %v2450_v51 = vadd.f32 %v950_v49, %v923_v46 }
 0x879   :  { %1088 = vrot.lane.b32.xlu2 %v2450_v51, %s2022_s1  ;;  %962 = vrot.lane.b32.xlu0 %v2450_v51, %s2023_s16 }
 0x87a   :  { %1214 = vrot.lane.b32.xlu1 %v2450_v51, %s2024_s17 }
 0x881   :  { %1212 = vrot.lane.b32.xlu2 %v2444_v48, %s2024_s17  ;;  %1082 = vrot.lane.b32.xlu0 %v2444_v48, %s2021_s14 }
 0x882   :  { %1338 = vrot.lane.b32.xlu1 %v2444_v48, %s2025_s18 }
 0x889   :  { %1084 = vrot.lane.b32.xlu2 %v2450_v51, %s2021_s14  ;;  %1340 = vrot.lane.b32.xlu0 %v2450_v51, %s2025_s18 }
 0x88a   :  { %1210 = vrot.lane.b32.xlu1 %v2450_v51, %s2027_s8 }
 0x891   :  { %1334 = vrot.lane.b32.xlu2 %v2444_v48, %s2026_s19  ;;  %1208 = vrot.lane.b32.xlu0 %v2444_v48, %s2027_s8 }
 0x899   :  { %1336 = vrot.lane.b32.xlu0 %v2450_v51, %s2026_s19 }
 0x8d3   :  { %v1089_v52 = vpop.permute.xlu2 %1088 }
 0x8d4   :  { %1808 = vmatpush.xpose.msk.msra.mxu0 %vm171_vm3, %v1089_v52 }
 0x8db   :  { %v1213_v56 = vpop.permute.xlu2 %1212 }
 0x8e2   :  { %v1087_v53 = vpop.permute.xlu0 %1086  ;;  %v961_v54 = vpop.permute.xlu1 %960 }
 0x8e3   :  { %1809 = vmatpush.xpose.msk.msra.mxu0 %vm171_vm3, %v1087_v53  ;;  %v1085_v58 = vpop.permute.xlu2 %1084 }
 0x8eb   :  { %v963_v55 = vpop.permute.xlu0 %962  ;;  %v1335_v19 = vpop.permute.xlu2 %1334 }
 0x8ec   :  { %1802 = vmatpush.xpose.msk.msrb.mxu1 %vm171_vm3, %v963_v55  ;;  %v1215_v57 = vpop.permute.xlu1 %1214 }
 0x8f0   :  { %1803 = vmatpush.xpose.msk.msrb.mxu1 %vm171_vm3, %v961_v54 }
 0x8f3   :  { %v1083_v14 = vpop.permute.xlu0 %1082  ;;  %1804 = vmatmul.msk.f32.vlgmr.msrb.gmra.mxu1 %vm171_vm3, %v2444_v48 }
 0x8f4   :  { %1814 = vmatpush.xpose.msk.msra.mxu1 %vm171_vm3, %v1215_v57  ;;  %1810 = vmatmul.msk.f32.vlgmr.msra.gmra.mxu0 %vm171_vm3, %v1083_v14  ;;  %v1339_v60 = vpop.permute.xlu1 %1338 }
 0x8f8   :  { %1815 = vmatpush.xpose.msk.msra.mxu1 %vm171_vm3, %v1213_v56 }
 0x8fb   :  { %v1341_v59 = vpop.permute.xlu0 %1340  ;;  %1805 = vmatmul.msk.f32.gmra.mxu1 %vm171_vm3, %v2450_v51 }
 0x8fc   :  { %1811 = vmatmul.msk.f32.gmra.mxu0 %vm171_vm3, %v1085_v58  ;;  %v1211_v62 = vpop.permute.xlu1 %1210 }
 0x8fd   :  { %1820 = vmatpush.xpose.msk.msrb.mxu0 %vm171_vm3, %v1341_v59 }
 0x901   :  { %1821 = vmatpush.xpose.msk.msrb.mxu0 %vm171_vm3, %v1339_v60 }
 0x903   :  { %v1209_v61 = vpop.permute.xlu0 %1208 }
 0x904   :  { %1816 = vmatmul.msk.f32.vlgmr.msra.gmra.mxu1 %vm171_vm3, %v1209_v61  ;;  %1822 = vmatmul.msk.f32.vlgmr.msrb.gmra.mxu0 %vm171_vm3, %v1335_v19 }
 0x90b   :  { %v1337_v2 = vpop.permute.xlu0 %1336 }
 0x90c   :  { %1817 = vmatmul.msk.f32.gmra.mxu1 %vm171_vm3, %v1211_v62  ;;  %1823 = vmatmul.msk.f32.gmra.mxu0 %vm171_vm3, %v1337_v2 }
 0x970   :  { %v989_v1 = vpop.f32.mrf.mxu1 }
 0x971   :  { %v995_v31 = vmul.f32 0.35355338, %v989_v1  ;;  %v1115_v3 = vpop.f32.mrf.mxu0 }
 0x972   :  { %v1121_v20 = vmul.f32 0.35355338, %v1115_v3 }
 0x973   :  { %v997_v4 = vadd.f32 %v995_v31, %v2184_v63 }
 0x974   :  { %v1123_v5 = vadd.f32 %v1121_v20, %v2184_v63 }
 0x975   :  { %v999_v6 = vsel %vm207_vm7, %v997_v4, -inf }
 0x976   :  { %1000 = vmax.xlane.f32.xlu2 %v999_v6  ;;  %v1125_v8 = vsel %vm207_vm7, %v1123_v5, -inf }
 0x977   :  { %1126 = vmax.xlane.f32.xlu1 %v1125_v8 }
 0x978   :  { %v992_v11 = vpop.f32.mrf.mxu1 }
 0x979   :  { %v996_v23 = vmul.f32 0.35355338, %v992_v11  ;;  %v1118_v25 = vpop.f32.mrf.mxu0 }
 0x97a   :  { %v1122_v12 = vmul.f32 0.35355338, %v1118_v25 }
 0x97b   :  { %v998_v9 = vadd.f32 %v996_v23, %v2190_v10 }
 0x97c   :  { %v1124_v15 = vadd.f32 %v1122_v12, %v2190_v10 }
 0x97d   :  { %v1002_v0 = vsel %vm207_vm7, %v998_v9, -inf }
 0x97e   :  { %1003 = vmax.xlane.f32.xlu0 %v1002_v0  ;;  %v1128_v16 = vsel %vm207_vm7, %v1124_v15, -inf }
 0x97f   :  { %1129 = vmax.xlane.f32.xlu2 %v1128_v16 }
 0x981   :  { %v1241_v17 = vpop.f32.mrf.mxu1  ;;  %v1367_v21 = vpop.f32.mrf.mxu0 }
 0x982   :  { %v1247_v24 = vmul.f32 0.35355338, %v1241_v17  ;;  %v1373_v26 = vmul.f32 0.35355338, %v1367_v21 }
 0x984   :  { %v1249_v27 = vadd.f32 %v1247_v24, %v2184_v63  ;;  %v1375_v13 = vadd.f32 %v1373_v26, %v2184_v63  ;;  %v2512_v63 = vpack.i.bf16 %v2444_v48, %v2450_v51 }
 0x986   :  { %v1251_v18 = vsel %vm207_vm7, %v1249_v27, -inf  ;;  %v1377_v7 = vsel %vm207_vm7, %v1375_v13, -inf }
 0x987   :  { %1252 = vmax.xlane.f32.xlu1 %v1251_v18  ;;  %1378 = vmax.xlane.f32.xlu2 %v1377_v7 }
 0x989   :  { %v1244_v28 = vpop.f32.mrf.mxu1  ;;  %v1370_v29 = vpop.f32.mrf.mxu0 }
 0x98a   :  { %v1248_v32 = vmul.f32 0.35355338, %v1244_v28  ;;  %v1374_v33 = vmul.f32 0.35355338, %v1370_v29 }
 0x98c   :  { %v1376_v34 = vadd.f32 %v1374_v33, %v2190_v10  ;;  %v1250_v35 = vadd.f32 %v1248_v32, %v2190_v10 }
 0x98e   :  { %v1380_v36 = vsel %vm207_vm7, %v1376_v34, -inf  ;;  %v1254_v37 = vsel %vm207_vm7, %v1250_v35, -inf }
 0x98f   :  { %1381 = vmax.xlane.f32.xlu1 %v1380_v36  ;;  %1255 = vmax.xlane.f32.xlu0 %v1254_v37 }
 0x9a3   :  { %1890 = vrot.lane.b32.xlu0 %v2512_v63, %s2030_s21 }
 0x9a8   :  { %1885 = vrot.lane.b32.xlu1 %v2512_v63, %s2029_s20 }
 0x9e9   :  { %v1001_v38 = vpop.xlane.xlu2 %1000 }
 0x9ea   :  { %v1005_v39 = vsub.f32 %v997_v4, %v1001_v38  ;;  %v1127_v22 = vpop.xlane.xlu1 %1126 }
 0x9eb   :  { %v1131_v10 = vsub.f32 %v1123_v5, %v1127_v22 }
 0x9ec   :  { %v1007_v41 = vmul.f32 1.442695, %v1005_v39 }
 0x9ed   :  { %v1133_v44 = vmul.f32 1.442695, %v1131_v10 }
 0x9ee   :  { %1946 = vpow2.f32 %v1007_v41 }
 0x9ef   :  { %1948 = vpow2.f32 %v1133_v44 }
 0x9f1   :  { %v1004_v42 = vpop.xlane.xlu0 %1003 }
 0x9f2   :  { %v1006_v43 = vsub.f32 %v998_v9, %v1004_v42  ;;  %v1130_v46 = vpop.xlane.xlu2 %1129 }
 0x9f3   :  { %v1132_v47 = vsub.f32 %v1124_v15, %v1130_v46 }
 0x9f4   :  { %v2518_v48 = vpop.eup %1946  ;;  %v1009_v49 = vmul.f32 1.442695, %v1006_v43 }
 0x9f5   :  { %v2520_v51 = vpop.eup %1948  ;;  %v1135_v52 = vmul.f32 1.442695, %v1132_v47  ;;  %v1011_v53 = vsel %vm207_vm7, %v2518_v48, 0.0 }
 0x9f6   :  { %1950 = vpow2.f32 %v1009_v49  ;;  %1012 = vadd.xlane.f32.xlu2 %v1011_v53  ;;  %v1137_v54 = vsel %vm207_vm7, %v2520_v51, 0.0 }
 0x9f7   :  { %1952 = vpow2.f32 %v1135_v52  ;;  %1138 = vadd.xlane.f32.xlu0 %v1137_v54 }
 0x9fa   :  { %v1379_v55 = vpop.xlane.xlu2 %1378  ;;  %v1253_v56 = vpop.xlane.xlu1 %1252 }
 0x9fb   :  { %v1383_v57 = vsub.f32 %v1375_v13, %v1379_v55  ;;  %v1257_v14 = vsub.f32 %v1249_v27, %v1253_v56 }
 0x9fc   :  { %v2526_v58 = vpop.eup %1950 }
 0x9fd   :  { %v2528_v59 = vpop.eup %1952  ;;  %v1385_v60 = vmul.f32 1.442695, %v1383_v57  ;;  %v1259_v19 = vmul.f32 1.442695, %v1257_v14  ;;  %v1014_v61 = vsel %vm207_vm7, %v2526_v58, 0.0 }
 0x9fe   :  { %1015 = vadd.xlane.f32.xlu1 %v1014_v61  ;;  %v1140_v62 = vsel %vm207_vm7, %v2528_v59, 0.0 }
 0x9ff   :  { %1954 = vpow2.f32 %v1385_v60  ;;  %1141 = vadd.xlane.f32.xlu2 %v1140_v62 }
 0xa00   :  { %1956 = vpow2.f32 %v1259_v19 }
 0xa02   :  { %v1256_v2 = vpop.xlane.xlu0 %1255  ;;  %v1382_v1 = vpop.xlane.xlu1 %1381 }
 0xa03   :  { %v1258_v31 = vsub.f32 %v1250_v35, %v1256_v2  ;;  %v1384_v4 = vsub.f32 %v1376_v34, %v1382_v1 }
 0xa05   :  { %v2534_v3 = vpop.eup %1954  ;;  %v1261_v20 = vmul.f32 1.442695, %v1258_v31  ;;  %v1387_v11 = vmul.f32 1.442695, %v1384_v4 }
 0xa06   :  { %v2536_v5 = vpop.eup %1956  ;;  %v1389_v6 = vsel %vm207_vm7, %v2534_v3, 0.0 }
 0xa07   :  { %1958 = vpow2.f32 %v1261_v20  ;;  %1390 = vadd.xlane.f32.xlu2 %v1389_v6  ;;  %v1263_v8 = vsel %vm207_vm7, %v2536_v5, 0.0 }
 0xa08   :  { %1264 = vadd.xlane.f32.xlu0 %v1263_v8  ;;  %1960 = vpow2.f32 %v1387_v11 }
 0xa0d   :  { %v2542_v23 = vpop.eup %1958 }
 0xa0e   :  { %v1266_v25 = vsel %vm207_vm7, %v2542_v23, 0.0  ;;  %v2546_v12 = vpop.eup %1960 }
 0xa0f   :  { %1267 = vadd.xlane.f32.xlu2 %v1266_v25  ;;  %v1392_v0 = vsel %vm207_vm7, %v2546_v12, 0.0 }
 0xa15   :  { %v1891_v9 = vpop.permute.xlu0 %1890 }
 0xa16   :  { %v1892_v15 = vunpack.i.l.bf16 %v1891_v9  ;;  %v1893_v16 = vunpack.i.h.bf16 %v1891_v9 }
 0xa17   :  { %1900 = vrot.lane.b32.xlu1 %v2512_v63, %s2031_s22  ;;  %1393 = vadd.xlane.f32.xlu2 %v1392_v0 }
 0xa18   :  { %1199 = vmatpush.msrb.mxu3 %v1892_v15 }
 0xa1a   :  { %1200 = vmatpush.msrb.mxu3 %v1893_v16  ;;  %v1886_v17 = vpop.permute.xlu1 %1885 }
 0xa1b   :  { %v1887_v21 = vunpack.i.l.bf16 %v1886_v17  ;;  %v1888_v24 = vunpack.i.h.bf16 %v1886_v17 }
 0xa1c   :  { %1895 = vrot.lane.b32.xlu0 %v2512_v63, %s2032_s23 }
 0xa1d   :  { %1073 = vmatpush.msrb.mxu2 %v1887_v21 }
 0xa1f   :  { %1074 = vmatpush.msrb.mxu2 %v1888_v24 }
 0xa69   :  { %v1013_v26 = vpop.xlane.xlu2 %1012 }
 0xa6a   :  { %1962 = vrcp.f32 %v1013_v26  ;;  %v1139_v27 = vpop.xlane.xlu0 %1138  ;;  %v1028_v36 = vand.u32 2147483648, %v1013_v26  ;;  %v1026_v37 = vand.u32 2147483647, %v1013_v26  ;;  %vm1022_vm9 = vweird.f32 %v1013_v26 }
 0xa6b   :  { %1964 = vrcp.f32 %v1139_v27  ;;  %v1154_v38 = vand.u32 2147483648, %v1139_v27  ;;  %v1152_v22 = vand.u32 2147483647, %v1139_v27  ;;  %vm1148_vm11 = vweird.f32 %v1139_v27 }
 0xa6c   :  { %v1029_v43 = vor.u32 1.1754944e-38, %v1028_v36  ;;  %vm1027_vm14 = vcmp.eq.f32.partialorder %v1026_v37, 8.507059e+37 }
 0xa6d   :  { %v1155_v49 = vor.u32 1.1754944e-38, %v1154_v38  ;;  %vm1153_vm15 = vcmp.eq.f32.partialorder %v1152_v22, 8.507059e+37 }
 0xa70   :  { %v1963_v13 = vpop.eup %1962 }
 0xa71   :  { %v1965_v18 = vpop.eup %1964  ;;  %v1018_v7 = vmul.f32 %v1963_v13, %v1013_v26  ;;  %v1016_v28 = vpop.xlane.xlu1 %1015  ;;  %vm1023_vm6 = vweird.f32 %v1963_v13 }
 0xa72   :  { %v1144_v29 = vmul.f32 %v1965_v18, %v1139_v27  ;;  %1966 = vrcp.f32 %v1016_v28  ;;  %v2554_v32 = vpop.xlane.xlu2 %1141  ;;  %vm1149_vm8 = vweird.f32 %v1965_v18  ;;  %vm1024_vm10 = vmor %vm1022_vm9, %vm1023_vm6  ;;  %v1043_v14 = vand.u32 2147483648, %v1016_v28 }
 0xa73   :  { %v1019_v33 = vsub.f32 1.0, %v1018_v7  ;;  %1968 = vrcp.f32 %v2554_v32  ;;  %vm1150_vm13 = vmor %vm1148_vm11, %vm1149_vm8  ;;  %v1041_v61 = vand.u32 2147483647, %v1016_v28  ;;  %v1169_v2 = vand.u32 2147483648, %v2554_v32 }
 0xa74   :  { %v1145_v34 = vsub.f32 1.0, %v1144_v29  ;;  %vm1037_vm5 = vweird.f32 %v1016_v28  ;;  %v1167_v4 = vand.u32 2147483647, %v2554_v32  ;;  %v1044_v6 = vor.u32 1.1754944e-38, %v1043_v14 }
 0xa75   :  { %v1020_v35 = vmul.f32 %v1963_v13, %v1019_v33  ;;  %vm1163_vm6 = vweird.f32 %v2554_v32  ;;  %vm1042_vm9 = vcmp.eq.f32.partialorder %v1041_v61, 8.507059e+37  ;;  %v1170_v9 = vor.u32 1.1754944e-38, %v1169_v2 }
 0xa76   :  { %v1146_v63 = vmul.f32 %v1965_v18, %v1145_v34  ;;  %vm1168_vm11 = vcmp.eq.f32.partialorder %v1167_v4, 8.507059e+37 }
 0xa77   :  { %v1021_v39 = vadd.f32 %v1963_v13, %v1020_v35 }
 0xa78   :  { %v1967_v10 = vpop.eup %1966  ;;  %v1147_v41 = vadd.f32 %v1965_v18, %v1146_v63 }
 0xa79   :  { %v1969_v44 = vpop.eup %1968  ;;  %v1025_v42 = vsel %vm1024_vm10, %v1963_v13, %v1021_v39  ;;  %v1033_v46 = vmul.f32 %v1967_v10, %v1016_v28  ;;  %vm1038_vm0 = vweird.f32 %v1967_v10 }
 0xa7a   :  { %v1151_v47 = vsel %vm1150_vm13, %v1965_v18, %v1147_v41  ;;  %v1159_v52 = vmul.f32 %v1969_v44, %v2554_v32  ;;  %v2558_v53 = vpop.xlane.xlu2 %1390  ;;  %v1030_v54 = vsel %vm1027_vm14, %v1029_v43, %v1025_v42  ;;  %vm1164_vm4 = vweird.f32 %v1969_v44  ;;  %vm1039_vm8 = vmor %vm1037_vm5, %vm1038_vm0 }
 0xa7b   :  { %v1034_v55 = vsub.f32 1.0, %v1033_v46  ;;  %1970 = vrcp.f32 %v2558_v53  ;;  %v2561_v56 = vpop.xlane.xlu0 %1264  ;;  %v1156_v57 = vsel %vm1153_vm15, %v1155_v49, %v1151_v47  ;;  %v1031_v1 = vmul.f32 %v2518_v48, %v1030_v54  ;;  %vm1165_vm10 = vmor %vm1163_vm6, %vm1164_vm4 }
 0xa7c   :  { %v1160_v60 = vsub.f32 1.0, %v1159_v52  ;;  %1972 = vrcp.f32 %v2561_v56  ;;  %v1157_v31 = vmul.f32 %v2520_v51, %v1156_v57  ;;  %v1406_v27 = vand.u32 2147483648, %v2558_v53 }
 0xa7d   :  { %v1035_v19 = vmul.f32 %v1967_v10, %v1034_v55  ;;  %1806 = vmatmul.msk.f32.vlgmr.msrb.gmra.mxu2 %vm207_vm7, %v1031_v1  ;;  %v1404_v28 = vand.u32 2147483647, %v2558_v53  ;;  %vm1400_vm14 = vweird.f32 %v2558_v53  ;;  %vm1274_vm15 = vweird.f32 %v2561_v56 }
 0xa7e   :  { %v1161_v62 = vmul.f32 %v1969_v44, %v1160_v60  ;;  %1812 = vmatmul.msk.f32.vlgmr.msrb.gmra.mxu3 %vm207_vm7, %v1157_v31  ;;  %v1407_v33 = vor.u32 1.1754944e-38, %v1406_v27  ;;  %v1278_v35 = vand.u32 2147483647, %v2561_v56 }
 0xa7f   :  { %v1036_v20 = vadd.f32 %v1967_v10, %v1035_v19  ;;  %vm1405_vm5 = vcmp.eq.f32.partialorder %v1404_v28, 8.507059e+37 }
 0xa80   :  { %v1162_v8 = vadd.f32 %v1969_v44, %v1161_v62 }
 0xa81   :  { %v1971_v11 = vpop.eup %1970  ;;  %v1040_v25 = vsel %vm1039_vm8, %v1967_v10, %v1036_v20  ;;  %vm1279_vm8 = vcmp.eq.f32.partialorder %v1278_v35, 8.507059e+37 }
 0xa82   :  { %v1973_v48 = vpop.eup %1972  ;;  %v1396_v51 = vmul.f32 %v1971_v11, %v2558_v53  ;;  %v2572_v15 = vpop.xlane.xlu2 %1267  ;;  %v1045_v0 = vsel %vm1042_vm9, %v1044_v6, %v1040_v25  ;;  %v1166_v16 = vsel %vm1165_vm10, %v1969_v44, %v1162_v8  ;;  %vm1401_vm13 = vweird.f32 %v1971_v11 }
 0xa83   :  { %v1270_v17 = vmul.f32 %v1973_v48, %v2561_v56  ;;  %1974 = vrcp.f32 %v2572_v15  ;;  %v1046_v24 = vmul.f32 %v2526_v58, %v1045_v0  ;;  %v1171_v26 = vsel %vm1168_vm11, %v1170_v9, %v1166_v16  ;;  %vm1402_vm4 = vmor %vm1400_vm14, %vm1401_vm13  ;;  %v1801_v16 = vld [vmem:[%s2716_s5 + $0x38] sm:$0xff] }
 0xa84   :  { %v1397_v21 = vsub.f32 1.0, %v1396_v51  ;;  %v1172_v18 = vmul.f32 %v2528_v59, %v1171_v26  ;;  %vm1275_vm0 = vweird.f32 %v1973_v48  ;;  %v1280_v59 = vand.u32 2147483648, %v2561_v56  ;;  %1509 = vmatpush.msrb.mxu1 %v1801_v16 }
 0xa85   :  { %v1271_v13 = vsub.f32 1.0, %v1270_v17  ;;  %1807 = vmatmul.msk.f32.gmra.mxu2 %vm207_vm7, %v1046_v24  ;;  %vm1276_vm6 = vmor %vm1274_vm15, %vm1275_vm0  ;;  %v1295_v55 = vand.u32 2147483648, %v2572_v15  ;;  %vm1289_vm10 = vweird.f32 %v2572_v15  ;;  %v1293_v14 = vand.u32 2147483647, %v2572_v15  ;;  %v1800_v17 = vld [vmem:[%s2716_s5 + $0x30] sm:$0xff]  ;;  %v1798_v24 = vld [vmem:[%s2716_s5 + $0x20] sm:$0xff] }
 0xa86   :  { %v1398_v7 = vmul.f32 %v1971_v11, %v1397_v21  ;;  %1813 = vmatmul.msk.f32.gmra.mxu3 %vm207_vm7, %v1172_v18  ;;  %v1281_v42 = vor.u32 1.1754944e-38, %v1280_v59  ;;  %v1799_v21 = vld [vmem:[%s2716_s5 + $0x28] sm:$0xff]  ;;  %1510 = vmatpush.msrb.mxu1 %v1800_v17  ;;  %v1490_v59 = vperm.slane %v2441_v30, 1 }
 0xa87   :  { %v1272_v29 = vmul.f32 %v1973_v48, %v1271_v13  ;;  %v1296_v61 = vor.u32 1.1754944e-38, %v1295_v55  ;;  %vm1294_vm13 = vcmp.eq.f32.partialorder %v1293_v14, 8.507059e+37  ;;  %v1830_v55 = vld [vmem:[%s2717_s6 + $0x30] sm:$0xff] }
 0xa88   :  { %v1399_v32 = vadd.f32 %v1971_v11, %v1398_v7  ;;  %1511 = vmatpush.msrb.mxu1 %v1799_v21 }
 0xa89   :  { %v1975_v58 = vpop.eup %1974  ;;  %v1273_v34 = vadd.f32 %v1973_v48, %v1272_v29  ;;  %v1901_v36 = vpop.permute.xlu1 %1900 }
 0xa8a   :  { %v1403_v37 = vsel %vm1402_vm4, %v1971_v11, %v1399_v32  ;;  %v1285_v63 = vmul.f32 %v1975_v58, %v2572_v15  ;;  %v1902_v38 = vunpack.i.l.bf16 %v1901_v36  ;;  %v1394_v39 = vpop.xlane.xlu2 %1393  ;;  %v1903_v44 = vunpack.i.h.bf16 %v1901_v36  ;;  %1512 = vmatpush.msrb.mxu1 %v1798_v24 }
 0xa8b   :  { %v1408_v22 = vsel %vm1405_vm5, %v1407_v33, %v1403_v37  ;;  %1976 = vrcp.f32 %v1394_v39  ;;  %v1277_v10 = vsel %vm1276_vm6, %v1973_v48, %v1273_v34  ;;  %vm1290_vm9 = vweird.f32 %v1975_v58 }
 0xa8c   :  { %v1286_v41 = vsub.f32 1.0, %v1285_v63  ;;  %1451 = vmatpush.msra.mxu3 %v1902_v38  ;;  %v1409_v43 = vmul.f32 %v2534_v3, %v1408_v22  ;;  %v1282_v49 = vsel %vm1279_vm8, %v1281_v42, %v1277_v10  ;;  %vm1291_vm11 = vmor %vm1289_vm10, %vm1290_vm9  ;;  %v1421_v62 = vand.u32 2147483648, %v1394_v39 }
 0xa8d   :  { %v1283_v3 = vmul.f32 %v2536_v5, %v1282_v49  ;;  %v1419_v1 = vand.u32 2147483647, %v1394_v39  ;;  %vm1415_vm15 = vweird.f32 %v1394_v39 }
 0xa8e   :  { %v1287_v46 = vmul.f32 %v1975_v58, %v1286_v41  ;;  %v1896_v47 = vpop.permute.xlu0 %1895  ;;  %1452 = vmatpush.msra.mxu3 %v1903_v44  ;;  %v1422_v4 = vor.u32 1.1754944e-38, %v1421_v62  ;;  %v1841_v62 = vld [vmem:[%s2718_s7 + $0x78] sm:$0xff] }
 0xa8f   :  { %v1897_v52 = vunpack.i.l.bf16 %v1896_v47  ;;  %v1898_v56 = vunpack.i.h.bf16 %v1896_v47  ;;  %1824 = vmatmul.msk.f32.vlgmr.msra.gmra.mxu3 %vm207_vm7, %v1409_v43  ;;  %vm1420_vm4 = vcmp.eq.f32.partialorder %v1419_v1, 8.507059e+37  ;;  %1633 = vmatpush.msra.mxu0 %v1841_v62 }
 0xa90   :  { %v1288_v53 = vadd.f32 %v1975_v58, %v1287_v46 }
 0xa91   :  { %v1977_v54 = vpop.eup %1976  ;;  %1325 = vmatpush.msra.mxu2 %v1897_v52 }
 0xa92   :  { %v1411_v57 = vmul.f32 %v1977_v54, %v1394_v39  ;;  %v1292_v19 = vsel %vm1291_vm11, %v1975_v58, %v1288_v53  ;;  %vm1416_vm14 = vweird.f32 %v1977_v54 }
 0xa93   :  { %1326 = vmatpush.msra.mxu2 %v1898_v56  ;;  %v1297_v31 = vsel %vm1294_vm13, %v1296_v61, %v1292_v19  ;;  %vm1417_vm0 = vmor %vm1415_vm15, %vm1416_vm14  ;;  %v1829_v56 = vld [vmem:[%s2717_s6 + $0x28] sm:$0xff] }
 0xa94   :  { %v1412_v60 = vsub.f32 1.0, %v1411_v57  ;;  %1818 = vmatmul.msk.f32.vlgmr.msra.gmra.mxu2 %vm207_vm7, %v1283_v3  ;;  %v1298_v5 = vmul.f32 %v2542_v23, %v1297_v31  ;;  %v1828_v57 = vld [vmem:[%s2717_s6 + $0x20] sm:$0xff]  ;;  %v1839_v31 = vld [vmem:[%s2718_s7 + $0x68] sm:$0xff] }
 0xa96   :  { %v1413_v2 = vmul.f32 %v1977_v54, %v1412_v60 }
 0xa98   :  { %v1414_v20 = vadd.f32 %v1977_v54, %v1413_v2  ;;  %v1840_v2 = vld [vmem:[%s2718_s7 + $0x70] sm:$0xff] }
 0xa99   :  { %1634 = vmatpush.msra.mxu0 %v1840_v2 }
 0xa9a   :  { %v1418_v6 = vsel %vm1417_vm0, %v1977_v54, %v1414_v20 }
 0xa9b   :  { %v1423_v8 = vsel %vm1420_vm4, %v1422_v4, %v1418_v6  ;;  %v1838_v6 = vld [vmem:[%s2718_s7 + $0x60] sm:$0xff]  ;;  %1635 = vmatpush.msra.mxu0 %v1839_v31 }
 0xa9c   :  { %1819 = vmatmul.msk.f32.gmra.mxu2 %vm207_vm7, %v1298_v5  ;;  %v1424_v11 = vmul.f32 %v2546_v12, %v1423_v8 }
 0xa9d   :  { %1636 = vmatpush.msra.mxu0 %v1838_v6  ;;  %v1694_v6 = vperm.slane %v2441_v30, 6 }
 0xa9e   :  { %1825 = vmatmul.msk.f32.gmra.mxu3 %vm207_vm7, %v1424_v11 }
 0xb00   :  { %v1076_v48 = vpop.f32.mrf.mxu2 }
 0xb01   :  { %v1202_v25 = vpop.f32.mrf.mxu3 }
 0xb02   :  { %1462 = vrot.lane.b32.xlu2 %v1202_v25, %s2020_s15  ;;  %v1837_v25 = vld [vmem:[%s2718_s7 + $0x58] sm:$0xff] }
 0xb03   :  { %1637 = vmatpush.msra.mxu0 %v1837_v25  ;;  %v1697_v25 = vperm.slane %v2441_v30, 7 }
 0xb08   :  { %v1079_v51 = vpop.f32.mrf.mxu2 }
 0xb09   :  { %v1205_v9 = vpop.f32.mrf.mxu3 }
 0xb12   :  { %v1454_v15 = vpop.f32.mrf.mxu3 }
 0xb13   :  { %1478 = vrot.lane.b32.xlu1 %v1454_v15, %s2034_s2 }
 0xb17   :  { %v1328_v0 = vpop.f32.mrf.mxu2 }
 0xb18   :  { %1470 = vrot.lane.b32.xlu0 %v1328_v0, %s2033_s24  ;;  %v1569_v0 = vperm.slane %v2441_v30, 5 }
 0xb1f   :  { %v1331_v23 = vpop.f32.mrf.mxu2 }
 0xb20   :  { %1464 = vrot.lane.b32.xlu0 %v1205_v9, %s2020_s15  ;;  %1472 = vrot.lane.b32.xlu1 %v1331_v23, %s2033_s24  ;;  %v1566_v9 = vperm.slane %v2441_v30, 4 }
 0xb21   :  { %v1457_v12 = vpop.f32.mrf.mxu3 }
 0xb28   :  { %1480 = vrot.lane.b32.xlu0 %v1457_v12, %s2034_s2 }
 0xb5c   :  { %v1463_v26 = vpop.permute.xlu2 %1462 }
 0xb5d   :  { %v1484_v27 = vsel %vm171_vm3, %v1076_v48, %v1463_v26 }
 0xb85   :  { %v1479_v18 = vpop.permute.xlu1 %1478 }
 0xb8a   :  { %v1471_v13 = vpop.permute.xlu0 %1470 }
 0xb8b   :  { %v1486_v7 = vsel %vm207_vm7, %v1484_v27, %v1471_v13 }
 0xb8c   :  { %v1488_v28 = vsel %vm697_vm1, %v1486_v7, %v1479_v18 }
 0xb8d   :  { %1826 = vmatmul.msk.f32.vlgmr.msrb.gmra.mxu1 %vm131_vm2, %v1488_v28 }
 0xb92   :  { %v1465_v29 = vpop.permute.xlu0 %1464  ;;  %v1473_v58 = vpop.permute.xlu1 %1472 }
 0xb93   :  { %v1485_v32 = vsel %vm171_vm3, %v1079_v51, %v1465_v29  ;;  %v1836_v29 = vld [vmem:[%s2718_s7 + $0x50] sm:$0xff] }
 0xb94   :  { %v1487_v33 = vsel %vm207_vm7, %v1485_v32, %v1473_v58  ;;  %1638 = vmatpush.msra.mxu0 %v1836_v29  ;;  %v1835_v32 = vld [vmem:[%s2718_s7 + $0x48] sm:$0xff]  ;;  %v1834_v58 = vld [vmem:[%s2718_s7 + $0x40] sm:$0xff] }
 0xb96   :  { %1639 = vmatpush.msra.mxu0 %v1835_v32 }
 0xb98   :  { %1640 = vmatpush.msra.mxu0 %v1834_v58 }
 0xb9a   :  { %v1481_v34 = vpop.permute.xlu0 %1480 }
 0xb9b   :  { %v1489_v35 = vsel %vm697_vm1, %v1487_v33, %v1481_v34  ;;  %v1577_v33 = vperm.slane %v2441_v30, 2 }
 0xb9c   :  { %1827 = vmatmul.msk.f32.gmra.mxu1 %vm131_vm2, %v1489_v35 }
 0xc0a   :  { %v1514_v36 = vpop.f32.mrf.mxu1 }
 0xc0b   :  { %v1515_v37 = vadd.f32 %v1514_v36, %v1490_v59 }
 0xc0d   :  { %v1520_v63 = vadd.f32 %v1515_v37, %v2433_v40 }
 0xc0f   :  { %v1522_v38 = vsel %vm131_vm2, %v1520_v63, 0.0 }
 0xc10   :  { %1523 = vadd.xlane.f32.xlu1 %v1522_v38  ;;  %v1618_v38 = vperm.slane %v2441_v30, 3 }
 0xc19   :  { %v1517_v39 = vpop.f32.mrf.mxu1 }
 0xc1a   :  { %v1518_v22 = vadd.f32 %v1517_v39, %v1490_v59 }
 0xc1c   :  { %v1521_v10 = vadd.f32 %v1518_v22, %v2437_v45  ;;  %v1831_v45 = vld [vmem:[%s2717_s6 + $0x38] sm:$0xff] }
 0xc1d   :  { %1596 = vmatpush.msrb.mxu2 %v1831_v45 }
 0xc1e   :  { %v1525_v41 = vsel %vm131_vm2, %v1521_v10, 0.0 }
 0xc1f   :  { %1526 = vadd.xlane.f32.xlu2 %v1525_v41  ;;  %1597 = vmatpush.msrb.mxu2 %v1830_v55 }
 0xc21   :  { %1598 = vmatpush.msrb.mxu2 %v1829_v56 }
 0xc23   :  { %1599 = vmatpush.msrb.mxu2 %v1828_v57 }
 0xc83   :  { %v1524_v44 = vpop.xlane.xlu1 %1523 }
 0xc84   :  { %v1528_v42 = vmul.f32 %v1524_v44, %v2361_v50 }
 0xc86   :  { %v1530_v43 = vsub.f32 %v1520_v63, %v1528_v42 }
 0xc88   :  { %v1532_v46 = vmul.f32 %v1530_v43, %v1530_v43 }
 0xc8a   :  { %v1534_v47 = vsel %vm131_vm2, %v1532_v46, 0.0 }
 0xc8b   :  { %1535 = vadd.xlane.f32.xlu0 %v1534_v47 }
 0xc92   :  { %v1527_v49 = vpop.xlane.xlu2 %1526 }
 0xc93   :  { %v1529_v40 = vmul.f32 %v1527_v49, %v2361_v50 }
 0xc95   :  { %v1531_v52 = vsub.f32 %v1521_v10, %v1529_v40 }
 0xc97   :  { %v1533_v53 = vmul.f32 %v1531_v52, %v1531_v52 }
 0xc99   :  { %v1537_v54 = vsel %vm131_vm2, %v1533_v53, 0.0 }
 0xc9a   :  { %1538 = vadd.xlane.f32.xlu1 %v1537_v54 }
 0xcfe   :  { %v1536_v3 = vpop.xlane.xlu0 %1535 }
 0xcff   :  { %v1540_v14 = vmul.f32 %v1536_v3, %v2361_v50 }
 0xd01   :  { %v1542_v60 = vadd.f32 1e-05, %v1540_v14 }
 0xd03   :  { %1978 = vrsqrt.f32 %v1542_v60  ;;  %vm1550_vm7 = vweird.f32 %v1542_v60 }
 0xd09   :  { %v1979_v19 = vpop.eup %1978 }
 0xd0a   :  { %v1545_v61 = vmul.f32 %v1979_v19, %v1542_v60  ;;  %vm1551_vm3 = vweird.f32 %v1979_v19 }
 0xd0b   :  { %vm1552_vm1 = vmor %vm1550_vm7, %vm1551_vm3 }
 0xd0c   :  { %v1546_v1 = vmul.f32 %v1979_v19, %v1545_v61 }
 0xd0d   :  { %v1539_v20 = vpop.xlane.xlu1 %1538 }
 0xd0e   :  { %v1547_v4 = vmul.f32 0.5, %v1546_v1  ;;  %v1541_v5 = vmul.f32 %v1539_v20, %v2361_v50 }
 0xd10   :  { %v1548_v8 = vsub.f32 1.5, %v1547_v4  ;;  %v1543_v11 = vadd.f32 1e-05, %v1541_v5 }
 0xd12   :  { %v1549_v48 = vmul.f32 %v1979_v19, %v1548_v8  ;;  %1980 = vrsqrt.f32 %v1543_v11  ;;  %vm1560_vm6 = vweird.f32 %v1543_v11 }
 0xd14   :  { %v1553_v51 = vsel %vm1552_vm1, %v1979_v19, %v1549_v48 }
 0xd15   :  { %v1564_v15 = vmul.f32 %v1553_v51, %v1530_v43 }
 0xd17   :  { %v1567_v23 = vmul.f32 %v1566_v9, %v1564_v15 }
 0xd18   :  { %v1981_v12 = vpop.eup %1980 }
 0xd19   :  { %v1555_v16 = vmul.f32 %v1981_v12, %v1543_v11  ;;  %v1570_v17 = vadd.f32 %v1569_v0, %v1567_v23  ;;  %vm1561_vm5 = vweird.f32 %v1981_v12 }
 0xd1a   :  { %vm1562_vm8 = vmor %vm1560_vm6, %vm1561_vm5 }
 0xd1b   :  { %v1556_v21 = vmul.f32 %v1981_v12, %v1555_v16  ;;  %1832 = vmatmul.msk.f32.vlgmr.msrb.gmra.mxu2 %vm131_vm2, %v1570_v17 }
 0xd1d   :  { %v1557_v24 = vmul.f32 0.5, %v1556_v21 }
 0xd1f   :  { %v1558_v26 = vsub.f32 1.5, %v1557_v24 }
 0xd21   :  { %v1559_v27 = vmul.f32 %v1981_v12, %v1558_v26 }
 0xd23   :  { %v1563_v13 = vsel %vm1562_vm8, %v1981_v12, %v1559_v27 }
 0xd24   :  { %v1565_v18 = vmul.f32 %v1563_v13, %v1531_v52 }
 0xd26   :  { %v1568_v7 = vmul.f32 %v1566_v9, %v1565_v18 }
 0xd28   :  { %v1571_v28 = vadd.f32 %v1569_v0, %v1568_v7 }
 0xd2a   :  { %1833 = vmatmul.msk.f32.gmra.mxu2 %vm131_vm2, %v1571_v28 }
 0xd9e   :  { %v1601_v34 = vpop.f32.mrf.mxu2 }
 0xd9f   :  { %v1602_v35 = vadd.f32 %v1601_v34, %v1577_v33 }
 0xda1   :  { %v1607_v59 = vmax.f32 %v1602_v35, 0.0 }
 0xda3   :  { %1842 = vmatmul.msk.f32.vlgmr.msra.gmra.mxu0 %vm834_vm12, %v1607_v59 }
 0xdad   :  { %v1604_v36 = vpop.f32.mrf.mxu2 }
 0xdae   :  { %v1605_v37 = vadd.f32 %v1604_v36, %v1577_v33 }
 0xdb0   :  { %v1608_v63 = vmax.f32 %v1605_v37, 0.0 }
 0xdb2   :  { %1843 = vmatmul.msk.f32.gmra.mxu0 %vm834_vm12, %v1608_v63 }
 0xe20   :  { %v1642_v39 = vpop.f32.mrf.mxu0 }
 0xe21   :  { %v1643_v22 = vadd.f32 %v1642_v39, %v1618_v38 }
 0xe23   :  { %v1648_v10 = vadd.f32 %v1643_v22, %v1570_v17 }
 0xe25   :  { %v1650_v41 = vsel %vm131_vm2, %v1648_v10, 0.0 }
 0xe26   :  { %1651 = vadd.xlane.f32.xlu2 %v1650_v41 }
 0xe2f   :  { %v1645_v44 = vpop.f32.mrf.mxu0 }
 0xe30   :  { %v1646_v42 = vadd.f32 %v1645_v44, %v1618_v38 }
 0xe32   :  { %v1649_v43 = vadd.f32 %v1646_v42, %v1571_v28 }
 0xe34   :  { %v1653_v46 = vsel %vm131_vm2, %v1649_v43, 0.0 }
 0xe35   :  { %1654 = vadd.xlane.f32.xlu0 %v1653_v46  ;;  %v1991_v46 = vld [vmem:[%s2714_s3] sm:$0x7] }
 0xe99   :  { %v1652_v47 = vpop.xlane.xlu2 %1651 }
 0xe9a   :  { %v1656_v49 = vmul.f32 %v1652_v47, %v2361_v50  ;;  %v1744_v47 = vperm.slane %v1991_v46, 1 }
 0xe9c   :  { %v1658_v40 = vsub.f32 %v1648_v10, %v1656_v49 }
 0xe9e   :  { %v1660_v52 = vmul.f32 %v1658_v40, %v1658_v40 }
 0xea0   :  { %v1662_v53 = vsel %vm131_vm2, %v1660_v52, 0.0 }
 0xea1   :  { %1663 = vadd.xlane.f32.xlu1 %v1662_v53 }
 0xea8   :  { %v1655_v54 = vpop.xlane.xlu0 %1654 }
 0xea9   :  { %v1657_v45 = vmul.f32 %v1655_v54, %v2361_v50 }
 0xeab   :  { %v1659_v55 = vsub.f32 %v1649_v43, %v1657_v45 }
 0xead   :  { %v1661_v56 = vmul.f32 %v1659_v55, %v1659_v55 }
 0xeaf   :  { %v1665_v57 = vsel %vm131_vm2, %v1661_v56, 0.0 }
 0xeb0   :  { %1666 = vadd.xlane.f32.xlu2 %v1665_v57 }
 0xf14   :  { %v1664_v3 = vpop.xlane.xlu1 %1663 }
 0xf15   :  { %v1668_v14 = vmul.f32 %v1664_v3, %v2361_v50 }
 0xf17   :  { %v1670_v60 = vadd.f32 1e-05, %v1668_v14 }
 0xf19   :  { %1982 = vrsqrt.f32 %v1670_v60  ;;  %vm1678_vm9 = vweird.f32 %v1670_v60 }
 0xf1f   :  { %v1983_v19 = vpop.eup %1982 }
 0xf20   :  { %v1673_v61 = vmul.f32 %v1983_v19, %v1670_v60  ;;  %vm1679_vm12 = vweird.f32 %v1983_v19 }
 0xf21   :  { %vm1680_vm10 = vmor %vm1678_vm9, %vm1679_vm12 }
 0xf22   :  { %v1674_v62 = vmul.f32 %v1983_v19, %v1673_v61 }
 0xf23   :  { %v1667_v2 = vpop.xlane.xlu2 %1666 }
 0xf24   :  { %v1675_v1 = vmul.f32 0.5, %v1674_v62  ;;  %v1669_v31 = vmul.f32 %v1667_v2, %v2361_v50 }
 0xf26   :  { %v1676_v20 = vsub.f32 1.5, %v1675_v1  ;;  %v1671_v4 = vadd.f32 1e-05, %v1669_v31 }
 0xf28   :  { %v1677_v5 = vmul.f32 %v1983_v19, %v1676_v20  ;;  %1984 = vrsqrt.f32 %v1671_v4  ;;  %vm1688_vm13 = vweird.f32 %v1671_v4 }
 0xf2a   :  { %v1681_v8 = vsel %vm1680_vm10, %v1983_v19, %v1677_v5 }
 0xf2b   :  { %v1692_v11 = vmul.f32 %v1681_v8, %v1658_v40  ;;  %v1747_v40 = vperm.slane %v1991_v46, 2 }
 0xf2d   :  { %v1695_v48 = vmul.f32 %v1694_v6, %v1692_v11 }
 0xf2e   :  { %v1985_v9 = vpop.eup %1984 }
 0xf2f   :  { %v1683_v51 = vmul.f32 %v1985_v9, %v1671_v4  ;;  %v1698_v15 = vadd.f32 %v1697_v25, %v1695_v48  ;;  %vm1689_vm11 = vweird.f32 %v1985_v9 }
 0xf30   :  { %vm1690_vm14 = vmor %vm1688_vm13, %vm1689_vm11 }
 0xf31   :  { %v1684_v0 = vmul.f32 %v1985_v9, %v1683_v51  ;;  %v1700_v23 = vsel %vm131_vm2, %v1698_v15, 0.0 }
 0xf32   :  { %1701 = vadd.xlane.f32.xlu0 %v1700_v23 }
 0xf33   :  { %v1685_v12 = vmul.f32 0.5, %v1684_v0 }
 0xf35   :  { %v1686_v16 = vsub.f32 1.5, %v1685_v12 }
 0xf37   :  { %v1687_v17 = vmul.f32 %v1985_v9, %v1686_v16 }
 0xf39   :  { %v1691_v21 = vsel %vm1690_vm14, %v1985_v9, %v1687_v17 }
 0xf3a   :  { %v1693_v24 = vmul.f32 %v1691_v21, %v1659_v55 }
 0xf3c   :  { %v1696_v26 = vmul.f32 %v1694_v6, %v1693_v24 }
 0xf3e   :  { %v1699_v27 = vadd.f32 %v1697_v25, %v1696_v26 }
 0xf40   :  { %v1703_v30 = vsel %vm131_vm2, %v1699_v27, 0.0 }
 0xf41   :  { %1704 = vadd.xlane.f32.xlu1 %v1703_v30 }
 0xfa5   :  { %v1702_v13 = vpop.xlane.xlu0 %1701 }
 0xfa6   :  { %v1706_v18 = vmul.f32 %v1702_v13, %v2361_v50 }
 0xfa8   :  { %v1708_v7 = vsub.f32 %v1698_v15, %v1706_v18 }
 0xfaa   :  { %v1710_v28 = vmul.f32 %v1708_v7, %v1708_v7 }
 0xfac   :  { %v1712_v29 = vsel %vm131_vm2, %v1710_v28, 0.0 }
 0xfad   :  { %1713 = vadd.xlane.f32.xlu2 %v1712_v29 }
 0xfb4   :  { %v1705_v32 = vpop.xlane.xlu1 %1704 }
 0xfb5   :  { %v1707_v58 = vmul.f32 %v1705_v32, %v2361_v50 }
 0xfb7   :  { %v1709_v33 = vsub.f32 %v1699_v27, %v1707_v58 }
 0xfb9   :  { %v1711_v34 = vmul.f32 %v1709_v33, %v1709_v33 }
 0xfbb   :  { %v1715_v35 = vsel %vm131_vm2, %v1711_v34, 0.0 }
 0xfbc   :  { %1716 = vadd.xlane.f32.xlu0 %v1715_v35 }
0x1020   :  { %v1714_v59 = vpop.xlane.xlu2 %1713 }
0x1021   :  { %v1718_v36 = vmul.f32 %v1714_v59, %v2361_v50 }
0x1023   :  { %v1720_v37 = vadd.f32 1e-05, %v1718_v36 }
0x1025   :  { %1986 = vrsqrt.f32 %v1720_v37  ;;  %vm1728_vm0 = vweird.f32 %v1720_v37 }
0x102b   :  { %v1987_v63 = vpop.eup %1986 }
0x102c   :  { %v1723_v38 = vmul.f32 %v1987_v63, %v1720_v37  ;;  %vm1729_vm15 = vweird.f32 %v1987_v63 }
0x102d   :  { %vm1730_vm4 = vmor %vm1728_vm0, %vm1729_vm15 }
0x102e   :  { %v1724_v39 = vmul.f32 %v1987_v63, %v1723_v38 }
0x102f   :  { %v1717_v22 = vpop.xlane.xlu0 %1716 }
0x1030   :  { %v1725_v10 = vmul.f32 0.5, %v1724_v39  ;;  %v1719_v41 = vmul.f32 %v1717_v22, %v2361_v50 }
0x1032   :  { %v1726_v44 = vsub.f32 1.5, %v1725_v10  ;;  %v1721_v42 = vadd.f32 1e-05, %v1719_v41 }
0x1034   :  { %v1727_v43 = vmul.f32 %v1987_v63, %v1726_v44  ;;  %1988 = vrsqrt.f32 %v1721_v42  ;;  %vm1738_vm7 = vweird.f32 %v1721_v42 }
0x1036   :  { %v1731_v49 = vsel %vm1730_vm4, %v1987_v63, %v1727_v43 }
0x1037   :  { %v1742_v52 = vmul.f32 %v1731_v49, %v1708_v7 }
0x1039   :  { %v1745_v53 = vmul.f32 %v1744_v47, %v1742_v52 }
0x103a   :  { %v1989_v54 = vpop.eup %1988 }
0x103b   :  { %v1748_v45 = vadd.f32 %v1747_v40, %v1745_v53  ;;  %v1733_v55 = vmul.f32 %v1989_v54, %v1721_v42  ;;  %vm1739_vm3 = vweird.f32 %v1989_v54 }
0x103c   :  { %vm1740_vm1 = vmor %vm1738_vm7, %vm1739_vm3 }
0x103d   :  { %1750 = vst.msk [vmem:[%s2720_s9] sm:$0xff] %vm131_vm2, %v1748_v45  ;;  %v1734_v50 = vmul.f32 %v1989_v54, %v1733_v55 }
0x103f   :  { %v1735_v56 = vmul.f32 0.5, %v1734_v50 }
0x1041   :  { %v1736_v57 = vsub.f32 1.5, %v1735_v56 }
0x1043   :  { %v1737_v3 = vmul.f32 %v1989_v54, %v1736_v57 }
0x1045   :  { %v1741_v14 = vsel %vm1740_vm1, %v1989_v54, %v1737_v3 }
0x1046   :  { %v1743_v60 = vmul.f32 %v1741_v14, %v1709_v33 }
0x1048   :  { %v1746_v19 = vmul.f32 %v1744_v47, %v1743_v60 }
0x104a   :  { %v1749_v61 = vadd.f32 %v1747_v40, %v1746_v19 }
0x104c   :  { %1751 = vst.msk [vmem:[%s2720_s9 + $0x8] sm:$0xff] %vm131_vm2, %v1749_v61 }
0x104d   :  { %1756 = vsyncpa [#allocation3], 1 }

// kernel: _lambda_.3
= control target key start
LH: loop header
LB: loop body
LE: loop exit
PB: predicated region body
PF: predicated region fallthrough
CT: control target
= control target key end

     0   :  { %19 = vsyncpa [#allocation3], 0  ;;  %s3606_s16 = smov [#allocation2]   ;;  %s4791_s0 = inlined_call_operand.vmem [shape: f32[12,10], index: 0, kind: input, shape index: {}]   ;;  %s4792_s1 = inlined_call_operand.vmem [shape: f32[16,32], index: 1, kind: input, shape index: {}]   ;;  %s4793_s2 = inlined_call_operand.vmem [shape: f32[12,32], index: 2, kind: input, shape index: {}]   ;;  %s4794_s3 = inlined_call_operand.vmem [shape: f32[10,32], index: 3, kind: input, shape index: {}]   ;;  %s4795_s4 = inlined_call_operand.hbm [shape: f32[4,128], index: 4, kind: input, shape index: {}]   ;;  %s4796_s5 = inlined_call_operand.vmem [shape: f32[2,32,96], index: 5, kind: input, shape index: {}]   ;;  %s4797_s6 = inlined_call_operand.vmem [shape: f32[2,32,32], index: 6, kind: input, shape index: {}]   ;;  %s4798_s7 = inlined_call_operand.vmem [shape: f32[2,32,32], index: 7, kind: input, shape index: {}]   ;;  %s4799_s8 = inlined_call_operand.vmem [shape: f32[2,32,32], index: 8, kind: input, shape index: {}]   ;;  %s4800_s9 = inlined_call_operand.vmem [shape: f32[2,32,64], index: 9, kind: input, shape index: {}]   ;;  %s4801_s10 = inlined_call_operand.vmem [shape: f32[2,32,64], index: 10, kind: input, shape index: {}]   ;;  %s4802_s11 = inlined_call_operand.vmem [shape: f32[2,64,32], index: 11, kind: input, shape index: {}]   ;;  %s4803_s12 = inlined_call_operand.vmem [shape: f32[2,13,96], index: 12, kind: input, shape index: {}]   ;;  %s4804_s13 = inlined_call_operand.vmem [shape: f32[32,128], index: 13, kind: input, shape index: {}]   ;;  %s4805_s14 = inlined_call_operand.vmem [shape: f32[12,128], index: 14, kind: output, shape index: {}]  }
   0x1   :  { %s33_s15 = sshll.u32 %s4795_s4, 4  ;;  %s35_s17 = sshll.u32 %s3606_s16, 4  ;;  %s34_s15 = int_to_ptr.hbm [resolvable:$true] %s33_s15  ;;  %s36_s17 = int_to_ptr.vmem [resolvable:$true] %s35_s17 }
   0x2   :  { %38 = dma.hbm_to_vmem [thread:$0]  %s34_s15, 64, %s36_s17, [#allocation3]  }
   0x3   :  { %3604 = dma.done.wait [#allocation3], 64  }
   0x4   :  { %3605 = vsyncadd [#allocation3], 4294967232  ;;  %vm76_vm0 = vcmask 1041408   ;;  %v67_v0 = vld [vmem:[%s4794_s3 + $0x8] sm:$0x3]  ;;  %v66_v1 = vld [vmem:[%s4794_s3] sm:$0xff]  ;;  %v109_v42 = vlaneseq }
   0x5   :  { %3188 = vmatpush.msk.msra.mxu0 %vm76_vm0, %v67_v0  ;;  %v64_v2 = vld [vmem:[%s4791_s0] sm:$0xff]  ;;  %vm69_vm1 = vcmask 80896   ;;  %v65_v3 = vld [vmem:[%s4791_s0 + $0x8] sm:$0xf]  ;;  %v147_v4 = vld [vmem:[%s4796_s5 + $0x18] sm:$0xff]  ;;  %vm149_vm2 = vcmask 261120  }
   0x6   :  { %168 = vmatpush.msra.mxu1 %v147_v4  ;;  %v146_v5 = vld [vmem:[%s4796_s5 + $0x10] sm:$0xff]  ;;  %v145_v6 = vld [vmem:[%s4796_s5 + $0x8] sm:$0xff]  ;;  %v144_v7 = vld [vmem:[%s4796_s5] sm:$0xff]  ;;  %s3607_s21 = smov 120   ;;  %s3609_s22 = smov 96   ;;  %vm189_vm3 = vcmask 64512  }
   0x7   :  { %95 = vmatpush.msra.mxu0 %v66_v1  ;;  %v61_v8 = vld [vmem:[#allocation2] sm:$0xf]  ;;  %v106_v17 = vld [vmem:[%s4793_s2 + $0x8] sm:$0xf]  ;;  %s3610_s23 = smov 80   ;;  %s3611_s4 = smov 72  }
   0x8   :  { %3189 = vmatmul.msk.f32.vlgmr.msra.gmra.mxu0 %vm69_vm1, %v64_v2  ;;  %169 = vmatpush.msra.mxu1 %v146_v5  ;;  %v68_v9 = vperm.slane %v61_v8, 0  ;;  %v105_v12 = vld [vmem:[%s4793_s2] sm:$0xff]  ;;  %s3608_s2 = smov 88   ;;  %s3612_s24 = smov 104   ;;  %vm286_vm4 = vcmask 1043456   ;;  %v110_v43 = vshrl.u32 %v109_v42, 7 }
   0x9   :  { %v3742_v20 = vld [vmem:[%s4803_s12] sm:$0xff]  ;;  %s3613_s25 = smov 112   ;;  %s3614_s26 = smov 64   ;;  %v115_v44 = vand.u32 127, %v109_v42  ;;  %v3615_v63 = vmov -1e+30  }
   0xa   :  { %170 = vmatpush.msra.mxu1 %v145_v6  ;;  %v148_v21 = vperm.slane %v3742_v20, 0  ;;  %v112_v45 = vcvt.s32.f32 %v110_v43  ;;  %v111_v53 = vadd.s32 8, %v110_v43  ;;  %vm225_vm8 = vcmask 97280   ;;  %s4808_s27 = smov 48   ;;  %s4810_s3 = smov 56  }
   0xb   :  { %v116_v46 = vcvt.s32.f32 %v115_v44  ;;  %vm229_vm12 = vcmask 93184   ;;  %s4806_s28 = smov 40   ;;  %s3619_s29 = smov 16  }
   0xc   :  { %171 = vmatpush.msra.mxu1 %v144_v7  ;;  %v117_v47 = vadd.f32 0.5, %v112_v45  ;;  %v113_v56 = vcvt.s32.f32 %v111_v53  ;;  %s3620_s30 = smov 8   ;;  %s3621_s15 = smov 24  }
   0xd   :  { %v123_v48 = vadd.f32 0.5, %v116_v46  ;;  %s4816_s16 = smov 56   ;;  %s4817_s17 = smov 48  }
   0xe   :  { %v119_v49 = vmul.f32 0.5, %v117_v47  ;;  %v118_v59 = vadd.f32 0.5, %v113_v56  ;;  %s4818_s18 = smov 40  }
   0xf   :  { %v124_v50 = vmul.f32 0.5, %v123_v48 }
  0x10   :  { %3190 = vmatmul.msk.f32.gmra.mxu0 %vm69_vm1, %v65_v3  ;;  %v121_v51 = vfloor.f32 %v119_v49  ;;  %v120_v60 = vmul.f32 0.5, %v118_v59 }
  0x11   :  { %v125_v52 = vfloor.f32 %v124_v50 }
  0x12   :  { %v126_v54 = vmul.f32 2.0, %v121_v51  ;;  %v122_v61 = vfloor.f32 %v120_v60 }
  0x13   :  { %v130_v55 = vmul.f32 2.0, %v125_v52  ;;  %vm134_vm6 = vcmp.le.f32.partialorder %v125_v52, %v121_v51 }
  0x14   :  { %v3800_v57 = vsub.f32 %v112_v45, %v126_v54  ;;  %v127_v2 = vmul.f32 2.0, %v122_v61  ;;  %vm135_vm10 = vcmp.le.f32.partialorder %v125_v52, %v122_v61 }
  0x15   :  { %v3802_v58 = vsub.f32 %v116_v46, %v130_v55 }
  0x16   :  { %v3814_v6 = vsub.f32 %v113_v56, %v127_v2 }
  0x17   :  { %vm132_vm5 = vcmp.eq.f32.partialorder %v3800_v57, %v3802_v58 }
  0x18   :  { %vm136_vm7 = vmand %vm132_vm5, %vm134_vm6  ;;  %vm133_vm9 = vcmp.eq.f32.partialorder %v3814_v6, %v3802_v58 }
  0x19   :  { %v3810_v0 = vsel %vm136_vm7, 0.0, %v3615_v63  ;;  %vm137_vm11 = vmand %vm133_vm9, %vm135_vm10  ;;  %v4090_v57 = vsel %vm133_vm9, 0.0, %v3615_v63 }
  0x85   :  { %v97_v10 = vpop.f32.mrf.mxu0 }
  0x86   :  { %v98_v11 = vadd.f32 %v97_v10, %v68_v9 }
  0x88   :  { %v103_v13 = vmul.f32 5.656854, %v98_v11 }
  0x8a   :  { %v3728_v14 = vadd.f32 %v105_v12, %v103_v13 }
  0x8c   :  { %3191 = vmatmul.msk.f32.vlgmr.msra.gmra.mxu1 %vm149_vm2, %v3728_v14 }
  0x8d   :  { %v100_v15 = vpop.f32.mrf.mxu0 }
  0x8e   :  { %v101_v16 = vadd.f32 %v100_v15, %v68_v9  ;;  %v3823_v15 = vsel %vm137_vm11, 0.0, %v3615_v63 }
  0x90   :  { %v104_v18 = vmul.f32 5.656854, %v101_v16 }
  0x92   :  { %v3735_v19 = vadd.f32 %v106_v17, %v104_v18 }
  0x94   :  { %3192 = vmatmul.msk.f32.gmra.mxu1 %vm149_vm2, %v3735_v19 }
 0x109   :  { %v173_v22 = vpop.f32.mrf.mxu1 }
 0x10a   :  { %v3745_v23 = vadd.f32 %v173_v22, %v148_v21 }
 0x10c   :  { %312 = vrot.lane.b32.xlu2 %v3745_v23, %s3607_s21 }
 0x111   :  { %v176_v24 = vpop.f32.mrf.mxu1 }
 0x112   :  { %v3749_v25 = vadd.f32 %v176_v24, %v148_v21 }
 0x114   :  { %318 = vrot.lane.b32.xlu1 %v3749_v25, %s3608_s2  ;;  %187 = vrot.lane.b32.xlu0 %v3749_v25, %s3609_s22 }
 0x115   :  { %443 = vrot.lane.b32.xlu2 %v3745_v23, %s3610_s23 }
 0x11c   :  { %316 = vrot.lane.b32.xlu1 %v3745_v23, %s3608_s2  ;;  %185 = vrot.lane.b32.xlu0 %v3745_v23, %s3609_s22 }
 0x11d   :  { %314 = vrot.lane.b32.xlu2 %v3749_v25, %s3607_s21 }
 0x124   :  { %572 = vrot.lane.b32.xlu1 %v3749_v25, %s3611_s4  ;;  %445 = vrot.lane.b32.xlu0 %v3749_v25, %s3610_s23 }
 0x125   :  { %566 = vrot.lane.b32.xlu2 %v3745_v23, %s3612_s24 }
 0x12c   :  { %439 = vrot.lane.b32.xlu1 %v3745_v23, %s3613_s25  ;;  %570 = vrot.lane.b32.xlu0 %v3745_v23, %s3611_s4 }
 0x134   :  { %568 = vrot.lane.b32.xlu1 %v3749_v25, %s3612_s24  ;;  %441 = vrot.lane.b32.xlu0 %v3749_v25, %s3613_s25 }
 0x13c   :  { %275 = vrot.lane.b32.xlu1 %v3745_v23, %s3614_s26  ;;  %277 = vrot.lane.b32.xlu0 %v3749_v25, %s3614_s26 }
 0x166   :  { %v313_v26 = vpop.permute.xlu2 %312 }
 0x16f   :  { %v444_v29 = vpop.permute.xlu2 %443 }
 0x177   :  { %v315_v34 = vpop.permute.xlu2 %314 }
 0x17f   :  { %v567_v37 = vpop.permute.xlu2 %566 }
 0x186   :  { %v319_v27 = vpop.permute.xlu1 %318  ;;  %v188_v28 = vpop.permute.xlu0 %187 }
 0x187   :  { %3193 = vmatpush.xpose.msk.msra.mxu2 %vm189_vm3, %v188_v28  ;;  %3200 = vmatpush.xpose.msk.msrb.mxu0 %vm189_vm3, %v319_v27 }
 0x18e   :  { %v317_v30 = vpop.permute.xlu1 %316  ;;  %v186_v31 = vpop.permute.xlu0 %185 }
 0x18f   :  { %3194 = vmatpush.xpose.msk.msra.mxu2 %vm189_vm3, %v186_v31  ;;  %3201 = vmatpush.xpose.msk.msrb.mxu0 %vm189_vm3, %v317_v30 }
 0x192   :  { %3195 = vmatmul.msk.f32.vlgmr.msra.gmra.mxu2 %vm189_vm3, %v3745_v23  ;;  %3202 = vmatmul.msk.f32.vlgmr.msrb.gmra.mxu0 %vm189_vm3, %v313_v26 }
 0x196   :  { %v573_v32 = vpop.permute.xlu1 %572  ;;  %v446_v33 = vpop.permute.xlu0 %445 }
 0x197   :  { %3207 = vmatpush.xpose.msk.msrb.mxu1 %vm189_vm3, %v446_v33  ;;  %3214 = vmatpush.xpose.msk.msra.mxu0 %vm189_vm3, %v573_v32 }
 0x19a   :  { %3196 = vmatmul.msk.f32.gmra.mxu2 %vm189_vm3, %v3749_v25  ;;  %3203 = vmatmul.msk.f32.gmra.mxu0 %vm189_vm3, %v315_v34 }
 0x19b   :  { %3208 = vmatpush.xpose.msk.msrb.mxu1 %vm189_vm3, %v444_v29 }
 0x19e   :  { %v440_v35 = vpop.permute.xlu1 %439  ;;  %v571_v36 = vpop.permute.xlu0 %570 }
 0x19f   :  { %3209 = vmatmul.msk.f32.vlgmr.msrb.gmra.mxu1 %vm189_vm3, %v440_v35  ;;  %3215 = vmatpush.xpose.msk.msra.mxu0 %vm189_vm3, %v571_v36 }
 0x1a2   :  { %3216 = vmatmul.msk.f32.vlgmr.msra.gmra.mxu0 %vm189_vm3, %v567_v37 }
 0x1a6   :  { %v569_v38 = vpop.permute.xlu1 %568  ;;  %v442_v39 = vpop.permute.xlu0 %441 }
 0x1a7   :  { %3210 = vmatmul.msk.f32.gmra.mxu1 %vm189_vm3, %v442_v39 }
 0x1aa   :  { %3217 = vmatmul.msk.f32.gmra.mxu0 %vm189_vm3, %v569_v38 }
 0x1ae   :  { %v278_v40 = vpop.permute.xlu0 %277  ;;  %v276_v41 = vpop.permute.xlu1 %275 }
 0x1af   :  { %3197 = vmatpush.msk.msra.mxu3 %vm286_vm4, %v278_v40 }
 0x1b1   :  { %304 = vmatpush.msra.mxu3 %v276_v41 }
 0x20f   :  { %v345_v62 = vpop.f32.mrf.mxu0 }
 0x210   :  { %v351_v1 = vmul.f32 0.35355338, %v345_v62 }
 0x212   :  { %v353_v3 = vadd.f32 %v351_v1, %v3810_v0 }
 0x214   :  { %v355_v4 = vsel %vm225_vm8, %v353_v3, -inf }
 0x215   :  { %356 = vmax.xlane.f32.xlu1 %v355_v4  ;;  %v215_v5 = vpop.f32.mrf.mxu2 }
 0x216   :  { %v221_v17 = vmul.f32 0.35355338, %v215_v5 }
 0x217   :  { %v348_v7 = vpop.f32.mrf.mxu0 }
 0x218   :  { %v223_v27 = vadd.f32 %v221_v17, %v3810_v0  ;;  %v352_v33 = vmul.f32 0.35355338, %v348_v7 }
 0x21a   :  { %v226_v30 = vsel %vm225_vm8, %v223_v27, -inf  ;;  %v354_v34 = vadd.f32 %v352_v33, %v3823_v15 }
 0x21c   :  { %v472_v8 = vpop.f32.mrf.mxu1  ;;  %v358_v37 = vsel %vm229_vm12, %v354_v34, -inf }
 0x21d   :  { %v478_v9 = vmul.f32 0.35355338, %v472_v8  ;;  %v218_v10 = vpop.f32.mrf.mxu2 }
 0x21e   :  { %v222_v11 = vmul.f32 0.35355338, %v218_v10 }
 0x21f   :  { %v599_v12 = vpop.f32.mrf.mxu0  ;;  %v480_v13 = vadd.f32 %v478_v9, %v3810_v0 }
 0x220   :  { %v224_v16 = vadd.f32 %v222_v11, %v3823_v15  ;;  %v605_v21 = vmul.f32 0.35355338, %v599_v12 }
 0x221   :  { %v482_v18 = vsel %vm225_vm8, %v480_v13, -inf }
 0x222   :  { %483 = vmax.xlane.f32.xlu2 %v482_v18  ;;  %v230_v22 = vsel %vm229_vm12, %v224_v16, -inf  ;;  %v607_v28 = vadd.f32 %v605_v21, %v3810_v0 }
 0x223   :  { %231 = vmax.xlane.f32.xlu0 %v230_v22 }
 0x224   :  { %v475_v24 = vpop.f32.mrf.mxu1  ;;  %v609_v32 = vsel %vm225_vm8, %v607_v28, -inf }
 0x225   :  { %v479_v26 = vmul.f32 0.35355338, %v475_v24 }
 0x227   :  { %v481_v29 = vadd.f32 %v479_v26, %v3823_v15  ;;  %v602_v35 = vpop.f32.mrf.mxu0 }
 0x228   :  { %v606_v36 = vmul.f32 0.35355338, %v602_v35 }
 0x229   :  { %v485_v31 = vsel %vm229_vm12, %v481_v29, -inf }
 0x22a   :  { %227 = vmax.xlane.f32.xlu2 %v226_v30  ;;  %486 = vmax.xlane.f32.xlu1 %v485_v31  ;;  %v608_v38 = vadd.f32 %v606_v36, %v3823_v15 }
 0x22b   :  { %610 = vmax.xlane.f32.xlu0 %v609_v32 }
 0x22c   :  { %v612_v39 = vsel %vm229_vm12, %v608_v38, -inf }
 0x23f   :  { %532 = vrot.lane.b32.xlu0 %v3749_v25, %s4808_s27 }
 0x242   :  { %405 = vrot.lane.b32.xlu2 %v3749_v25, %s4810_s3 }
 0x243   :  { %403 = vrot.lane.b32.xlu1 %v3745_v23, %s4810_s3 }
 0x26b   :  { %359 = vmax.xlane.f32.xlu2 %v358_v37 }
 0x273   :  { %613 = vmax.xlane.f32.xlu2 %v612_v39 }
 0x288   :  { %v357_v40 = vpop.xlane.xlu1 %356 }
 0x289   :  { %v361_v41 = vsub.f32 %v353_v3, %v357_v40 }
 0x28b   :  { %v363_v42 = vmul.f32 1.442695, %v361_v41 }
 0x28d   :  { %3416 = vpow2.f32 %v363_v42 }
 0x293   :  { %v3844_v43 = vpop.eup %3416 }
 0x294   :  { %v367_v44 = vsel %vm225_vm8, %v3844_v43, 0.0 }
 0x295   :  { %v484_v45 = vpop.xlane.xlu2 %483  ;;  %368 = vadd.xlane.f32.xlu2 %v367_v44 }
 0x296   :  { %v488_v46 = vsub.f32 %v480_v13, %v484_v45  ;;  %v232_v47 = vpop.xlane.xlu0 %231 }
 0x297   :  { %v234_v60 = vsub.f32 %v224_v16, %v232_v47 }
 0x298   :  { %v490_v48 = vmul.f32 1.442695, %v488_v46 }
 0x299   :  { %v237_v1 = vmul.f32 1.442695, %v234_v60 }
 0x29a   :  { %3418 = vpow2.f32 %v490_v48 }
 0x29d   :  { %v228_v49 = vpop.xlane.xlu2 %227  ;;  %v487_v50 = vpop.xlane.xlu1 %486 }
 0x29e   :  { %v233_v51 = vsub.f32 %v223_v27, %v228_v49  ;;  %v489_v52 = vsub.f32 %v481_v29, %v487_v50  ;;  %v611_v53 = vpop.xlane.xlu0 %610 }
 0x29f   :  { %v615_v59 = vsub.f32 %v607_v28, %v611_v53 }
 0x2a0   :  { %v3848_v54 = vpop.eup %3418  ;;  %v235_v55 = vmul.f32 1.442695, %v233_v51  ;;  %v492_v56 = vmul.f32 1.442695, %v489_v52 }
 0x2a1   :  { %v494_v61 = vsel %vm225_vm8, %v3848_v54, 0.0  ;;  %v617_v62 = vmul.f32 1.442695, %v615_v59 }
 0x2a2   :  { %3420 = vpow2.f32 %v235_v55  ;;  %495 = vadd.xlane.f32.xlu2 %v494_v61 }
 0x2a3   :  { %3422 = vpow2.f32 %v492_v56 }
 0x2a4   :  { %3424 = vpow2.f32 %v617_v62 }
 0x2a5   :  { %v406_v2 = vpop.permute.xlu2 %405  ;;  %3426 = vpow2.f32 %v237_v1 }
 0x2a6   :  { %3204 = vmatpush.msk.msrb.mxu3 %vm286_vm4, %v406_v2 }
 0x2a8   :  { %v3853_v3 = vpop.eup %3420 }
 0x2a9   :  { %v3855_v4 = vpop.eup %3422  ;;  %v239_v5 = vsel %vm225_vm8, %v3853_v3, 0.0 }
 0x2aa   :  { %240 = vadd.xlane.f32.xlu0 %v239_v5  ;;  %v497_v7 = vsel %vm229_vm12, %v3855_v4, 0.0  ;;  %v3861_v8 = vpop.eup %3424 }
 0x2ab   :  { %498 = vadd.xlane.f32.xlu1 %v497_v7  ;;  %v3863_v9 = vpop.eup %3426  ;;  %v621_v11 = vsel %vm225_vm8, %v3861_v8, 0.0 }
 0x2ac   :  { %v242_v12 = vsel %vm229_vm12, %v3863_v9, 0.0 }
 0x2b1   :  { %v533_v10 = vpop.permute.xlu0 %532 }
 0x2b2   :  { %622 = vadd.xlane.f32.xlu0 %v621_v11  ;;  %3211 = vmatpush.msk.msrb.mxu2 %vm286_vm4, %v533_v10 }
 0x2b3   :  { %243 = vadd.xlane.f32.xlu1 %v242_v12 }
 0x2b5   :  { %v404_v13 = vpop.permute.xlu1 %403 }
 0x2b6   :  { %431 = vmatpush.msrb.mxu3 %v404_v13 }
 0x2c6   :  { %530 = vrot.lane.b32.xlu0 %v3745_v23, %s4808_s27 }
 0x2cc   :  { %659 = vrot.lane.b32.xlu1 %v3749_v25, %s4806_s28 }
 0x2de   :  { %v360_v16 = vpop.xlane.xlu2 %359 }
 0x2df   :  { %v362_v17 = vsub.f32 %v354_v34, %v360_v16 }
 0x2e1   :  { %v365_v18 = vmul.f32 1.442695, %v362_v17 }
 0x2e3   :  { %3428 = vpow2.f32 %v365_v18 }
 0x2e6   :  { %v614_v21 = vpop.xlane.xlu2 %613 }
 0x2e7   :  { %v616_v22 = vsub.f32 %v608_v38, %v614_v21 }
 0x2e9   :  { %v3874_v24 = vpop.eup %3428  ;;  %v619_v26 = vmul.f32 1.442695, %v616_v22 }
 0x2ea   :  { %v370_v27 = vsel %vm229_vm12, %v3874_v24, 0.0 }
 0x2eb   :  { %3430 = vpow2.f32 %v619_v26  ;;  %371 = vadd.xlane.f32.xlu2 %v370_v27 }
 0x2f1   :  { %v3878_v28 = vpop.eup %3430 }
 0x2f2   :  { %v624_v29 = vsel %vm229_vm12, %v3878_v28, 0.0 }
 0x2f3   :  { %625 = vadd.xlane.f32.xlu2 %v624_v29 }
 0x308   :  { %v3884_v25 = vpop.xlane.xlu2 %368 }
 0x309   :  { %vm378_vm11 = vweird.f32 %v3884_v25  ;;  %v384_v29 = vand.u32 2147483648, %v3884_v25 }
 0x30b   :  { %657 = vrot.lane.b32.xlu2 %v3745_v23, %s4806_s28 }
 0x315   :  { %v496_v30 = vpop.xlane.xlu2 %495 }
 0x316   :  { %3432 = vrcp.f32 %v496_v30  ;;  %vm505_vm6 = vweird.f32 %v496_v30  ;;  %v511_v60 = vand.u32 2147483648, %v496_v30  ;;  %v509_v5 = vand.u32 2147483647, %v496_v30 }
 0x318   :  { %v512_v16 = vor.u32 1.1754944e-38, %v511_v60 }
 0x31c   :  { %v3433_v32 = vpop.eup %3432 }
 0x31d   :  { %v241_v31 = vpop.xlane.xlu0 %240  ;;  %v501_v34 = vmul.f32 %v3433_v32, %v496_v30  ;;  %vm506_vm0 = vweird.f32 %v3433_v32 }
 0x31e   :  { %v3886_v33 = vpop.xlane.xlu1 %498  ;;  %3434 = vrcp.f32 %v241_v31  ;;  %v256_v42 = vand.u32 2147483648, %v241_v31  ;;  %v254_v46 = vand.u32 2147483647, %v241_v31  ;;  %vm250_vm14 = vweird.f32 %v241_v31  ;;  %vm3899_vm7 = vmor %vm505_vm6, %vm506_vm0 }
 0x31f   :  { %3436 = vrcp.f32 %v3884_v25  ;;  %v502_v37 = vsub.f32 1.0, %v501_v34 }
 0x320   :  { %3438 = vrcp.f32 %v3886_v33  ;;  %v257_v50 = vor.u32 1.1754944e-38, %v256_v42  ;;  %vm255_vm1 = vcmp.eq.f32.partialorder %v254_v46, 8.507059e+37 }
 0x321   :  { %v503_v44 = vmul.f32 %v3433_v32, %v502_v37 }
 0x323   :  { %v504_v53 = vadd.f32 %v3433_v32, %v503_v44 }
 0x324   :  { %v3435_v35 = vpop.eup %3434 }
 0x325   :  { %v3890_v36 = vpop.eup %3436  ;;  %v246_v38 = vmul.f32 %v3435_v35, %v241_v31  ;;  %vm251_vm13 = vweird.f32 %v3435_v35  ;;  %v3903_v2 = vpop.xlane.xlu0 %622  ;;  %v508_v11 = vsel %vm3899_vm7, %v3433_v32, %v504_v53  ;;  %v382_v31 = vand.u32 2147483647, %v3884_v25 }
 0x326   :  { %v244_v23 = vpop.xlane.xlu1 %243  ;;  %v3892_v39 = vpop.eup %3438  ;;  %v374_v41 = vmul.f32 %v3890_v36, %v3884_v25  ;;  %vm252_vm15 = vmor %vm250_vm14, %vm251_vm13  ;;  %vm510_vm14 = vcmp.eq.f32.partialorder %v509_v5, 8.507059e+37  ;;  %v526_v32 = vand.u32 2147483648, %v3886_v33  ;;  %v638_v5 = vand.u32 2147483648, %v3903_v2 }
 0x327   :  { %v247_v40 = vsub.f32 1.0, %v246_v38  ;;  %3440 = vrcp.f32 %v244_v23  ;;  %v516_v47 = vmul.f32 %v3892_v39, %v3886_v33  ;;  %v271_v10 = vand.u32 2147483648, %v244_v23 }
 0x328   :  { %v375_v49 = vsub.f32 1.0, %v374_v41  ;;  %v269_v13 = vand.u32 2147483647, %v244_v23  ;;  %vm265_vm13 = vweird.f32 %v244_v23  ;;  %v513_v21 = vsel %vm510_vm14, %v512_v16, %v508_v11 }
 0x329   :  { %v248_v45 = vmul.f32 %v3435_v35, %v247_v40  ;;  %v517_v55 = vsub.f32 1.0, %v516_v47  ;;  %v272_v18 = vor.u32 1.1754944e-38, %v271_v10  ;;  %vm521_vm6 = vweird.f32 %v3892_v39 }
 0x32a   :  { %v376_v7 = vmul.f32 %v3890_v36, %v375_v49  ;;  %v514_v38 = vmul.f32 %v3848_v54, %v513_v21  ;;  %v385_v41 = vor.u32 1.1754944e-38, %v384_v29  ;;  %3442 = vrcp.f32 %v3903_v2 }
 0x32b   :  { %v249_v48 = vadd.f32 %v3435_v35, %v248_v45  ;;  %v636_v10 = vand.u32 2147483647, %v3903_v2  ;;  %v639_v16 = vor.u32 1.1754944e-38, %v638_v5  ;;  %v849_v5 = vld [vmem:[%s4800_s9] sm:$0xff] }
 0x32c   :  { %v377_v22 = vadd.f32 %v3890_v36, %v376_v7 }
 0x32d   :  { %v3441_v51 = vpop.eup %3440  ;;  %v253_v52 = vsel %vm252_vm15, %v3435_v35, %v249_v48  ;;  %vm379_vm15 = vweird.f32 %v3890_v36 }
 0x32e   :  { %v261_v56 = vmul.f32 %v3441_v51, %v244_v23  ;;  %v258_v59 = vsel %vm255_vm1, %v257_v50, %v253_v52  ;;  %vm266_vm10 = vweird.f32 %v3441_v51  ;;  %vm270_vm1 = vcmp.eq.f32.partialorder %v269_v13, 8.507059e+37  ;;  %vm3920_vm7 = vmor %vm378_vm11, %vm379_vm15 }
 0x32f   :  { %v259_v61 = vmul.f32 %v3853_v3, %v258_v59  ;;  %v518_v3 = vmul.f32 %v3892_v39, %v517_v55  ;;  %vm267_vm0 = vmor %vm265_vm13, %vm266_vm10  ;;  %vm520_vm10 = vweird.f32 %v3886_v33  ;;  %v524_v23 = vand.u32 2147483647, %v3886_v33 }
 0x330   :  { %v262_v1 = vsub.f32 1.0, %v261_v56  ;;  %vm522_vm13 = vmor %vm520_vm10, %vm521_vm6  ;;  %v381_v25 = vsel %vm3920_vm7, %v3890_v36, %v377_v22  ;;  %vm383_vm11 = vcmp.eq.f32.partialorder %v382_v31, 8.507059e+37  ;;  %vm632_vm10 = vweird.f32 %v3903_v2 }
 0x331   :  { %3198 = vmatmul.msk.f32.vlgmr.msra.gmra.mxu3 %vm225_vm8, %v259_v61  ;;  %v519_v27 = vadd.f32 %v3892_v39, %v518_v3  ;;  %vm525_vm14 = vcmp.eq.f32.partialorder %v524_v23, 8.507059e+37  ;;  %v386_v54 = vsel %vm383_vm11, %v385_v41, %v381_v25  ;;  %vm637_vm11 = vcmp.eq.f32.partialorder %v636_v10, 8.507059e+37  ;;  %v181_v23 = vld [vmem:[%s4797_s6 + $0x10] sm:$0xff]  ;;  %v180_v25 = vld [vmem:[%s4797_s6 + $0x8] sm:$0xff]  ;;  %v62_v10 = vld [vmem:[%s4792_s1] sm:$0xff] }
 0x332   :  { %v263_v12 = vmul.f32 %v3441_v51, %v262_v1  ;;  %v387_v33 = vmul.f32 %v3844_v43, %v386_v54 }
 0x333   :  { %v523_v40 = vsel %vm522_vm13, %v3892_v39, %v519_v27  ;;  %v3443_v39 = vpop.eup %3442 }
 0x334   :  { %v264_v17 = vadd.f32 %v3441_v51, %v263_v12  ;;  %v628_v46 = vmul.f32 %v3443_v39, %v3903_v2 }
 0x336   :  { %v268_v26 = vsel %vm267_vm0, %v3441_v51, %v264_v17  ;;  %v629_v48 = vsub.f32 1.0, %v628_v46 }
 0x337   :  { %v273_v30 = vsel %vm270_vm1, %v272_v18, %v268_v26  ;;  %vm633_vm1 = vweird.f32 %v3443_v39 }
 0x338   :  { %v531_v35 = vpop.permute.xlu0 %530  ;;  %v274_v37 = vmul.f32 %v3863_v9, %v273_v30  ;;  %v527_v9 = vor.u32 1.1754944e-38, %v526_v32  ;;  %v630_v52 = vmul.f32 %v3443_v39, %v629_v48  ;;  %vm634_vm13 = vmor %vm632_vm10, %vm633_vm1  ;;  %vm760_vm10 = vcmask 257024  }
 0x339   :  { %558 = vmatpush.msrb.mxu2 %v531_v35 }
 0x33a   :  { %3199 = vmatmul.msk.f32.gmra.mxu3 %vm225_vm8, %v274_v37  ;;  %3212 = vmatmul.msk.f32.vlgmr.msrb.gmra.mxu2 %vm225_vm8, %v514_v38  ;;  %v528_v42 = vsel %vm525_vm14, %v527_v9, %v523_v40  ;;  %v631_v60 = vadd.f32 %v3443_v39, %v630_v52  ;;  %v182_v38 = vld [vmem:[%s4797_s6 + $0x18] sm:$0xff]  ;;  %v179_v40 = vld [vmem:[%s4797_s6] sm:$0xff] }
 0x33b   :  { %v529_v45 = vmul.f32 %v3855_v4, %v528_v42  ;;  %744 = vmatpush.msra.mxu1 %v182_v38 }
 0x33c   :  { %v635_v13 = vsel %vm634_vm13, %v3443_v39, %v631_v60 }
 0x33d   :  { %v640_v17 = vsel %vm637_vm11, %v639_v16, %v635_v13  ;;  %745 = vmatpush.msra.mxu1 %v181_v23  ;;  %v63_v13 = vld [vmem:[%s4792_s1 + $0x8] sm:$0xff] }
 0x33e   :  { %v660_v44 = vpop.permute.xlu1 %659  ;;  %v641_v22 = vmul.f32 %v3861_v8, %v640_v17 }
 0x33f   :  { %3218 = vmatpush.msk.msra.mxu3 %vm286_vm4, %v660_v44  ;;  %746 = vmatpush.msra.mxu1 %v180_v25 }
 0x341   :  { %747 = vmatpush.msra.mxu1 %v179_v40 }
 0x342   :  { %3205 = vmatmul.msk.f32.vlgmr.msrb.gmra.mxu3 %vm225_vm8, %v387_v33  ;;  %3213 = vmatmul.msk.f32.gmra.mxu2 %vm225_vm8, %v529_v45 }
 0x35e   :  { %v372_v36 = vpop.xlane.xlu2 %371 }
 0x35f   :  { %3444 = vrcp.f32 %v372_v36  ;;  %v399_v43 = vand.u32 2147483648, %v372_v36  ;;  %v397_v53 = vand.u32 2147483647, %v372_v36  ;;  %vm393_vm0 = vweird.f32 %v372_v36 }
 0x361   :  { %v400_v59 = vor.u32 1.1754944e-38, %v399_v43  ;;  %vm398_vm7 = vcmp.eq.f32.partialorder %v397_v53, 8.507059e+37 }
 0x365   :  { %v3445_v47 = vpop.eup %3444 }
 0x366   :  { %v389_v49 = vmul.f32 %v3445_v47, %v372_v36  ;;  %v626_v50 = vpop.xlane.xlu2 %625  ;;  %vm394_vm15 = vweird.f32 %v3445_v47 }
 0x367   :  { %3446 = vrcp.f32 %v626_v50  ;;  %vm395_vm6 = vmor %vm393_vm0, %vm394_vm15  ;;  %v653_v21 = vand.u32 2147483648, %v626_v50  ;;  %vm647_vm15 = vweird.f32 %v626_v50  ;;  %v651_v26 = vand.u32 2147483647, %v626_v50 }
 0x368   :  { %v390_v51 = vsub.f32 1.0, %v389_v49  ;;  %v725_v49 = vperm.slane %v3742_v20, 1 }
 0x369   :  { %v654_v2 = vor.u32 1.1754944e-38, %v653_v21  ;;  %vm652_vm1 = vcmp.eq.f32.partialorder %v651_v26, 8.507059e+37 }
 0x36a   :  { %v391_v4 = vmul.f32 %v3445_v47, %v390_v51 }
 0x36c   :  { %v392_v55 = vadd.f32 %v3445_v47, %v391_v4 }
 0x36d   :  { %v3447_v56 = vpop.eup %3446 }
 0x36e   :  { %v643_v61 = vmul.f32 %v3447_v56, %v626_v50  ;;  %v658_v62 = vpop.permute.xlu2 %657  ;;  %v396_v1 = vsel %vm395_vm6, %v3445_v47, %v392_v55  ;;  %vm648_vm14 = vweird.f32 %v3447_v56  ;;  %vm719_vm6 = vcmask 130048  }
 0x36f   :  { %685 = vmatpush.msra.mxu3 %v658_v62  ;;  %v401_v7 = vsel %vm398_vm7, %v400_v59, %v396_v1  ;;  %vm649_vm0 = vmor %vm647_vm15, %vm648_vm14  ;;  %vm722_vm7 = vcmask 195584   ;;  %v3622_v59 = vmov 32.0   ;;  %v852_v62 = vld [vmem:[%s4800_s9 + $0x18] sm:$0xff] }
 0x370   :  { %v644_v11 = vsub.f32 1.0, %v643_v61  ;;  %v402_v12 = vmul.f32 %v3874_v24, %v401_v7  ;;  %3448 = vrcp.f32 %v3622_v59  ;;  %872 = vmatpush.msrb.mxu0 %v852_v62 }
 0x372   :  { %3206 = vmatmul.msk.f32.gmra.mxu3 %vm225_vm8, %v402_v12  ;;  %v645_v3 = vmul.f32 %v3447_v56, %v644_v11 }
 0x374   :  { %v646_v18 = vadd.f32 %v3447_v56, %v645_v3 }
 0x376   :  { %v650_v24 = vsel %vm649_vm0, %v3447_v56, %v646_v18  ;;  %v3449_v60 = vpop.eup %3448 }
 0x377   :  { %v655_v27 = vsel %vm652_vm1, %v654_v2, %v650_v24  ;;  %v765_v61 = vmul.f32 32.0, %v3449_v60  ;;  %vm769_vm13 = vweird.f32 %v3449_v60 }
 0x378   :  { %v656_v29 = vmul.f32 %v3878_v28, %v655_v27 }
 0x379   :  { %v766_v1 = vsub.f32 1.0, %v765_v61 }
 0x37a   :  { %3219 = vmatmul.msk.f32.vlgmr.msra.gmra.mxu3 %vm225_vm8, %v641_v22 }
 0x37b   :  { %v767_v7 = vmul.f32 %v3449_v60, %v766_v1 }
 0x37d   :  { %v768_v11 = vadd.f32 %v3449_v60, %v767_v7 }
 0x37f   :  { %v3998_v12 = vsel %vm769_vm13, %v3449_v60, %v768_v11 }
 0x382   :  { %3220 = vmatmul.msk.f32.gmra.mxu3 %vm225_vm8, %v656_v29  ;;  %v818_v29 = vld [vmem:[%s4798_s7 + $0x18] sm:$0xff] }
 0x383   :  { %838 = vmatpush.msra.mxu2 %v818_v29 }
 0x3b4   :  { %v306_v30 = vpop.f32.mrf.mxu3 }
 0x3bd   :  { %v309_v31 = vpop.f32.mrf.mxu3  ;;  %v560_v32 = vpop.f32.mrf.mxu2 }
 0x3be   :  { %703 = vrot.lane.b32.xlu0 %v560_v32, %s3619_s29  ;;  %v815_v32 = vld [vmem:[%s4798_s7] sm:$0xff] }
 0x3c5   :  { %v433_v8 = vpop.f32.mrf.mxu3  ;;  %v563_v28 = vpop.f32.mrf.mxu2 }
 0x3c6   :  { %695 = vrot.lane.b32.xlu0 %v433_v8, %s3620_s30 }
 0x3f5   :  { %v436_v34 = vpop.f32.mrf.mxu3 }
 0x3f6   :  { %697 = vrot.lane.b32.xlu0 %v436_v34, %s3620_s30 }
 0x3fd   :  { %v687_v35 = vpop.f32.mrf.mxu3 }
 0x3fe   :  { %711 = vrot.lane.b32.xlu1 %v687_v35, %s3621_s15 }
 0x405   :  { %v690_v37 = vpop.f32.mrf.mxu3 }
 0x406   :  { %713 = vrot.lane.b32.xlu2 %v690_v37, %s3621_s15  ;;  %705 = vrot.lane.b32.xlu1 %v563_v28, %s3619_s29  ;;  %v853_v28 = vperm.slane %v3742_v20, 3 }
 0x430   :  { %v704_v41 = vpop.permute.xlu0 %703 }
 0x438   :  { %v696_v9 = vpop.permute.xlu0 %695 }
 0x439   :  { %v717_v54 = vsel %vm189_vm3, %v306_v30, %v696_v9  ;;  %v817_v30 = vld [vmem:[%s4798_s7 + $0x10] sm:$0xff] }
 0x43a   :  { %v720_v44 = vsel %vm719_vm6, %v717_v54, %v704_v41  ;;  %839 = vmatpush.msra.mxu2 %v817_v30 }
 0x460   :  { %v714_v46 = vpop.permute.xlu2 %713 }
 0x468   :  { %v698_v45 = vpop.permute.xlu0 %697 }
 0x469   :  { %v718_v36 = vsel %vm189_vm3, %v309_v31, %v698_v45  ;;  %v816_v31 = vld [vmem:[%s4798_s7 + $0x8] sm:$0xff] }
 0x46a   :  { %840 = vmatpush.msra.mxu2 %v816_v31 }
 0x46c   :  { %841 = vmatpush.msra.mxu2 %v815_v32 }
 0x470   :  { %v712_v42 = vpop.permute.xlu1 %711 }
 0x471   :  { %v723_v33 = vsel %vm722_vm7, %v720_v44, %v712_v42 }
 0x472   :  { %3221 = vmatmul.msk.f32.vlgmr.msra.gmra.mxu1 %vm149_vm2, %v723_v33 }
 0x478   :  { %v706_v39 = vpop.permute.xlu1 %705 }
 0x479   :  { %v721_v47 = vsel %vm719_vm6, %v718_v36, %v706_v39 }
 0x47a   :  { %v724_v48 = vsel %vm722_vm7, %v721_v47, %v714_v46  ;;  %v4038_v46 = vld [vmem:[%s4803_s12 + $0x8] sm:$0x1f]  ;;  %v809_v47 = vperm.slane %v3742_v20, 7 }
 0x47b   :  { %3222 = vmatmul.msk.f32.gmra.mxu1 %vm149_vm2, %v724_v48 }
 0x4ef   :  { %v749_v50 = vpop.f32.mrf.mxu1 }
 0x4f0   :  { %v750_v51 = vadd.f32 %v749_v50, %v725_v49 }
 0x4f2   :  { %v755_v43 = vadd.f32 %v750_v51, %v3728_v14  ;;  %v851_v14 = vld [vmem:[%s4800_s9 + $0x10] sm:$0xff] }
 0x4f3   :  { %873 = vmatpush.msrb.mxu0 %v851_v14 }
 0x4f4   :  { %v757_v52 = vsel %vm149_vm2, %v755_v43, 0.0 }
 0x4f5   :  { %758 = vadd.xlane.f32.xlu0 %v757_v52 }
 0x4f8   :  { %v752_v4 = vpop.f32.mrf.mxu1 }
 0x4f9   :  { %v753_v53 = vadd.f32 %v752_v4, %v725_v49 }
 0x4fb   :  { %v756_v55 = vadd.f32 %v753_v53, %v3735_v19  ;;  %v850_v19 = vld [vmem:[%s4800_s9 + $0x8] sm:$0xff] }
 0x4fc   :  { %874 = vmatpush.msrb.mxu0 %v850_v19  ;;  %v819_v19 = vperm.slane %v3742_v20, 2 }
 0x4fd   :  { %v761_v56 = vsel %vm760_vm10, %v756_v55, 0.0 }
 0x4fe   :  { %762 = vadd.xlane.f32.xlu1 %v761_v56  ;;  %875 = vmatpush.msrb.mxu0 %v849_v5 }
 0x4ff   :  { %3225 = vmatmul.msk.f32.vlgmr.msrb.gmra.mxu0 %vm149_vm2, %v62_v10 }
 0x507   :  { %3226 = vmatmul.msk.f32.gmra.mxu0 %vm149_vm2, %v63_v13 }
 0x568   :  { %v759_v3 = vpop.xlane.xlu0 %758 }
 0x569   :  { %v771_v16 = vmul.f32 %v3998_v12, %v759_v3 }
 0x56b   :  { %v773_v17 = vsub.f32 %v755_v43, %v771_v16  ;;  %v812_v43 = vperm.slane %v4038_v46, 0 }
 0x56d   :  { %v775_v18 = vmul.f32 %v773_v17, %v773_v17 }
 0x56f   :  { %v777_v21 = vsel %vm149_vm2, %v775_v18, 0.0 }
 0x570   :  { %778 = vadd.xlane.f32.xlu2 %v777_v21 }
 0x571   :  { %v763_v22 = vpop.xlane.xlu1 %762 }
 0x572   :  { %v772_v26 = vmul.f32 %v3998_v12, %v763_v22 }
 0x574   :  { %v774_v24 = vsub.f32 %v756_v55, %v772_v26  ;;  %v4080_v26 = vsel %vm132_vm5, 0.0, %v3615_v63  ;;  %vm929_vm5 = vcmask 125952  }
 0x576   :  { %v776_v2 = vmul.f32 %v774_v24, %v774_v24 }
 0x578   :  { %v780_v27 = vsel %vm760_vm10, %v776_v2, 0.0 }
 0x579   :  { %781 = vadd.xlane.f32.xlu0 %v780_v27 }
 0x57c   :  { %v877_v37 = vpop.f32.mrf.mxu0 }
 0x57d   :  { %v4022_v38 = vadd.f32 %v877_v37, %v853_v28 }
 0x584   :  { %v880_v42 = vpop.f32.mrf.mxu0 }
 0x585   :  { %v4027_v44 = vadd.f32 %v880_v42, %v853_v28 }
 0x587   :  { %1016 = vrot.lane.b32.xlu1 %v4027_v44, %s3607_s21  ;;  %3227 = vmatpush.xpose.msk.msrb.mxu3 %vm189_vm3, %v4027_v44 }
 0x588   :  { %1014 = vrot.lane.b32.xlu2 %v4022_v38, %s3607_s21 }
 0x58b   :  { %3228 = vmatpush.xpose.msk.msrb.mxu3 %vm189_vm3, %v4022_v38 }
 0x58f   :  { %1140 = vrot.lane.b32.xlu1 %v4022_v38, %s3613_s25 }
 0x590   :  { %1268 = vrot.lane.b32.xlu2 %v4027_v44, %s3612_s24 }
 0x5e3   :  { %v779_v8 = vpop.xlane.xlu2 %778 }
 0x5e4   :  { %v783_v34 = vmul.f32 %v779_v8, %v3998_v12 }
 0x5e6   :  { %v785_v35 = vadd.f32 1e-05, %v783_v34 }
 0x5e8   :  { %3450 = vrsqrt.f32 %v785_v35  ;;  %vm793_vm14 = vweird.f32 %v785_v35 }
 0x5eb   :  { %v1015_v14 = vpop.permute.xlu2 %1014 }
 0x5ec   :  { %v782_v23 = vpop.xlane.xlu0 %781 }
 0x5ed   :  { %v784_v25 = vmul.f32 %v782_v23, %v3998_v12 }
 0x5ee   :  { %v3451_v40 = vpop.eup %3450 }
 0x5ef   :  { %v788_v41 = vmul.f32 %v3451_v40, %v785_v35  ;;  %v786_v9 = vadd.f32 1e-05, %v784_v25  ;;  %vm794_vm11 = vweird.f32 %v3451_v40 }
 0x5f0   :  { %vm795_vm15 = vmor %vm793_vm14, %vm794_vm11 }
 0x5f1   :  { %v789_v54 = vmul.f32 %v3451_v40, %v788_v41  ;;  %3452 = vrsqrt.f32 %v786_v9  ;;  %vm803_vm1 = vweird.f32 %v786_v9 }
 0x5f3   :  { %v790_v33 = vmul.f32 0.5, %v789_v54  ;;  %v1269_v10 = vpop.permute.xlu2 %1268 }
 0x5f5   :  { %v791_v45 = vsub.f32 1.5, %v790_v33 }
 0x5f7   :  { %v3453_v36 = vpop.eup %3452  ;;  %v792_v39 = vmul.f32 %v3451_v40, %v791_v45 }
 0x5f8   :  { %v798_v48 = vmul.f32 %v3453_v36, %v786_v9  ;;  %vm804_vm0 = vweird.f32 %v3453_v36 }
 0x5f9   :  { %v796_v49 = vsel %vm795_vm15, %v3451_v40, %v792_v39  ;;  %vm805_vm13 = vmor %vm803_vm1, %vm804_vm0  ;;  %v1017_v1 = vpop.permute.xlu1 %1016 }
 0x5fa   :  { %v807_v50 = vmul.f32 %v796_v49, %v773_v17  ;;  %v799_v51 = vmul.f32 %v3453_v36, %v798_v48  ;;  %3233 = vmatpush.xpose.msk.msrb.mxu2 %vm189_vm3, %v1017_v1 }
 0x5fc   :  { %v810_v52 = vmul.f32 %v809_v47, %v807_v50  ;;  %v800_v4 = vmul.f32 0.5, %v799_v51 }
 0x5fe   :  { %v801_v53 = vsub.f32 1.5, %v800_v4  ;;  %v4046_v55 = vadd.f32 %v812_v43, %v810_v52  ;;  %3234 = vmatpush.xpose.msk.msrb.mxu2 %vm189_vm3, %v1015_v14 }
 0x600   :  { %v802_v56 = vmul.f32 %v3453_v36, %v801_v53  ;;  %3223 = vmatmul.msk.f32.vlgmr.msra.gmra.mxu2 %vm149_vm2, %v4046_v55 }
 0x601   :  { %v1141_v3 = vpop.permute.xlu1 %1140 }
 0x602   :  { %v806_v59 = vsel %vm805_vm13, %v3453_v36, %v802_v56  ;;  %3245 = vmatpush.xpose.msk.msra.mxu2 %vm189_vm3, %v1269_v10  ;;  %v4117_v10 = vpack.i.bf16 %v4022_v38, %v4027_v44 }
 0x603   :  { %v808_v60 = vmul.f32 %v806_v59, %v774_v24 }
 0x605   :  { %v811_v61 = vmul.f32 %v809_v47, %v808_v60 }
 0x607   :  { %v4050_v62 = vadd.f32 %v812_v43, %v811_v61 }
 0x609   :  { %3224 = vmatmul.msk.f32.gmra.mxu2 %vm149_vm2, %v4050_v62 }
 0x683   :  { %v843_v5 = vpop.f32.mrf.mxu2 }
 0x684   :  { %v844_v7 = vadd.f32 %v843_v5, %v819_v19 }
 0x686   :  { %1136 = vrot.lane.b32.xlu2 %v844_v7, %s3613_s25  ;;  %1010 = vrot.lane.b32.xlu0 %v844_v7, %s3607_s21 }
 0x687   :  { %3229 = vmatmul.msk.f32.vlgmr.msrb.gmra.mxu3 %vm189_vm3, %v844_v7 }
 0x68c   :  { %v846_v11 = vpop.f32.mrf.mxu2 }
 0x68d   :  { %v847_v13 = vadd.f32 %v846_v11, %v819_v19 }
 0x68e   :  { %1142 = vrot.lane.b32.xlu0 %v4027_v44, %s3613_s25 }
 0x68f   :  { %1012 = vrot.lane.b32.xlu1 %v847_v13, %s3607_s21  ;;  %1264 = vrot.lane.b32.xlu2 %v847_v13, %s3612_s24 }
 0x690   :  { %3230 = vmatmul.msk.f32.gmra.mxu3 %vm189_vm3, %v847_v13 }
 0x696   :  { %1266 = vrot.lane.b32.xlu0 %v4022_v38, %s3612_s24 }
 0x697   :  { %1262 = vrot.lane.b32.xlu1 %v844_v7, %s3612_s24 }
 0x69e   :  { %1138 = vrot.lane.b32.xlu0 %v847_v13, %s3613_s25 }
 0x6e0   :  { %v1137_v18 = vpop.permute.xlu2 %1136 }
 0x6e9   :  { %v1265_v31 = vpop.permute.xlu2 %1264 }
 0x6f8   :  { %v1011_v20 = vpop.permute.xlu0 %1010 }
 0x6f9   :  { %3235 = vmatmul.msk.f32.vlgmr.msrb.gmra.mxu2 %vm189_vm3, %v1011_v20 }
 0x700   :  { %v1143_v16 = vpop.permute.xlu0 %1142 }
 0x701   :  { %v1013_v17 = vpop.permute.xlu1 %1012  ;;  %3239 = vmatpush.xpose.msk.msra.mxu3 %vm189_vm3, %v1143_v16 }
 0x702   :  { %3236 = vmatmul.msk.f32.gmra.mxu2 %vm189_vm3, %v1013_v17 }
 0x705   :  { %3240 = vmatpush.xpose.msk.msra.mxu3 %vm189_vm3, %v1141_v3 }
 0x708   :  { %v1267_v21 = vpop.permute.xlu0 %1266  ;;  %3241 = vmatmul.msk.f32.vlgmr.msra.gmra.mxu3 %vm189_vm3, %v1137_v18 }
 0x709   :  { %3246 = vmatpush.xpose.msk.msra.mxu2 %vm189_vm3, %v1267_v21  ;;  %v1263_v24 = vpop.permute.xlu1 %1262 }
 0x70a   :  { %v916_v22 = vpop.f32.mrf.mxu3 }
 0x70b   :  { %v922_v2 = vmul.f32 0.35355338, %v916_v22 }
 0x70c   :  { %3247 = vmatmul.msk.f32.vlgmr.msra.gmra.mxu2 %vm189_vm3, %v1263_v24 }
 0x70d   :  { %v924_v27 = vadd.f32 %v922_v2, %v4080_v26 }
 0x70f   :  { %v926_v29 = vsel %vm719_vm6, %v924_v27, -inf }
 0x710   :  { %927 = vmax.xlane.f32.xlu1 %v926_v29  ;;  %v1139_v30 = vpop.permute.xlu0 %1138 }
 0x711   :  { %3242 = vmatmul.msk.f32.gmra.mxu3 %vm189_vm3, %v1139_v30 }
 0x713   :  { %v919_v32 = vpop.f32.mrf.mxu3 }
 0x714   :  { %v923_v8 = vmul.f32 0.35355338, %v919_v32  ;;  %3248 = vmatmul.msk.f32.gmra.mxu2 %vm189_vm3, %v1265_v31 }
 0x716   :  { %v925_v34 = vadd.f32 %v923_v8, %v4090_v57 }
 0x718   :  { %v930_v35 = vsel %vm929_vm5, %v925_v34, -inf }
 0x719   :  { %931 = vmax.xlane.f32.xlu2 %v930_v35 }
 0x77c   :  { %v1043_v28 = vpop.f32.mrf.mxu2 }
 0x77d   :  { %v1049_v37 = vmul.f32 0.35355338, %v1043_v28 }
 0x77f   :  { %v1051_v23 = vadd.f32 %v1049_v37, %v4080_v26 }
 0x781   :  { %v1053_v25 = vsel %vm719_vm6, %v1051_v23, -inf }
 0x782   :  { %1054 = vmax.xlane.f32.xlu0 %v1053_v25 }
 0x783   :  { %v928_v40 = vpop.xlane.xlu1 %927 }
 0x784   :  { %v933_v58 = vsub.f32 %v924_v27, %v928_v40 }
 0x785   :  { %v1046_v63 = vpop.f32.mrf.mxu2 }
 0x786   :  { %v935_v6 = vmul.f32 1.442695, %v933_v58  ;;  %v1050_v41 = vmul.f32 0.35355338, %v1046_v63 }
 0x788   :  { %3454 = vpow2.f32 %v935_v6  ;;  %v1052_v9 = vadd.f32 %v1050_v41, %v4090_v57 }
 0x78a   :  { %v1056_v54 = vsel %vm929_vm5, %v1052_v9, -inf }
 0x78b   :  { %1057 = vmax.xlane.f32.xlu1 %v1056_v54  ;;  %v1169_v42 = vpop.f32.mrf.mxu3 }
 0x78c   :  { %v1175_v33 = vmul.f32 0.35355338, %v1169_v42  ;;  %v932_v48 = vpop.xlane.xlu2 %931 }
 0x78d   :  { %v934_v51 = vsub.f32 %v925_v34, %v932_v48 }
 0x78e   :  { %v4099_v45 = vpop.eup %3454  ;;  %v1177_v36 = vadd.f32 %v1175_v33, %v4080_v26 }
 0x78f   :  { %v1295_v39 = vpop.f32.mrf.mxu2  ;;  %v939_v47 = vsel %vm719_vm6, %v4099_v45, 0.0  ;;  %v937_v53 = vmul.f32 1.442695, %v934_v51 }
 0x790   :  { %v1301_v49 = vmul.f32 0.35355338, %v1295_v39  ;;  %940 = vadd.xlane.f32.xlu2 %v939_v47  ;;  %v1179_v50 = vsel %vm719_vm6, %v1177_v36, -inf }
 0x791   :  { %1180 = vmax.xlane.f32.xlu0 %v1179_v50  ;;  %3456 = vpow2.f32 %v937_v53 }
 0x792   :  { %v1303_v43 = vadd.f32 %v1301_v49, %v4080_v26 }
 0x794   :  { %v1172_v52 = vpop.f32.mrf.mxu3  ;;  %v1305_v59 = vsel %vm719_vm6, %v1303_v43, -inf }
 0x795   :  { %v1176_v4 = vmul.f32 0.35355338, %v1172_v52 }
 0x797   :  { %v1298_v56 = vpop.f32.mrf.mxu2  ;;  %v1178_v60 = vadd.f32 %v1176_v4, %v4090_v57  ;;  %v4111_v5 = vpop.eup %3456 }
 0x798   :  { %v1302_v61 = vmul.f32 0.35355338, %v1298_v56  ;;  %1306 = vmax.xlane.f32.xlu2 %v1305_v59  ;;  %v942_v7 = vsel %vm929_vm5, %v4111_v5, 0.0 }
 0x799   :  { %v1182_v14 = vsel %vm929_vm5, %v1178_v60, -inf }
 0x79a   :  { %1183 = vmax.xlane.f32.xlu1 %v1182_v14  ;;  %v1304_v1 = vadd.f32 %v1302_v61, %v4090_v57 }
 0x79c   :  { %v1308_v19 = vsel %vm929_vm5, %v1304_v1, -inf }
 0x79d   :  { %1309 = vmax.xlane.f32.xlu0 %v1308_v19 }
 0x7a5   :  { %943 = vadd.xlane.f32.xlu0 %v942_v7 }
 0x7b9   :  { %3377 = vrot.lane.b32.xlu0 %v4117_v10, %s3609_s22 }
 0x7c1   :  { %3387 = vrot.lane.b32.xlu0 %v4117_v10, %s3610_s23 }
 0x7f5   :  { %v1055_v11 = vpop.xlane.xlu0 %1054 }
 0x7f6   :  { %v1059_v13 = vsub.f32 %v1051_v23, %v1055_v11 }
 0x7f8   :  { %v1061_v20 = vmul.f32 1.442695, %v1059_v13 }
 0x7fa   :  { %3458 = vpow2.f32 %v1061_v20 }
 0x7fe   :  { %v1058_v3 = vpop.xlane.xlu1 %1057 }
 0x7ff   :  { %v1060_v16 = vsub.f32 %v1052_v9, %v1058_v3 }
 0x800   :  { %v4123_v17 = vpop.eup %3458 }
 0x801   :  { %v1063_v18 = vmul.f32 1.442695, %v1060_v16  ;;  %v1065_v21 = vsel %vm719_vm6, %v4123_v17, 0.0 }
 0x802   :  { %1066 = vadd.xlane.f32.xlu1 %v1065_v21 }
 0x803   :  { %3460 = vpow2.f32 %v1063_v18  ;;  %v941_v38 = vpop.xlane.xlu2 %940 }
 0x804   :  { %v1181_v44 = vpop.xlane.xlu0 %1180  ;;  %v956_v50 = vand.u32 2147483648, %v941_v38  ;;  %vm950_vm11 = vweird.f32 %v941_v38  ;;  %v954_v51 = vand.u32 2147483647, %v941_v38 }
 0x805   :  { %v1185_v22 = vsub.f32 %v1177_v36, %v1181_v44 }
 0x806   :  { %v957_v53 = vor.u32 1.1754944e-38, %v956_v50  ;;  %vm955_vm15 = vcmp.eq.f32.partialorder %v954_v51, 8.507059e+37 }
 0x807   :  { %v1187_v24 = vmul.f32 1.442695, %v1185_v22 }
 0x809   :  { %v4127_v2 = vpop.eup %3460  ;;  %3462 = vpow2.f32 %v1187_v24 }
 0x80a   :  { %v1068_v27 = vsel %vm929_vm5, %v4127_v2, 0.0  ;;  %3464 = vrcp.f32 %v941_v38 }
 0x80b   :  { %1069 = vadd.xlane.f32.xlu2 %v1068_v27  ;;  %v1307_v29 = vpop.xlane.xlu2 %1306 }
 0x80c   :  { %v1311_v8 = vsub.f32 %v1303_v43, %v1307_v29 }
 0x80d   :  { %v1184_v30 = vpop.xlane.xlu1 %1183 }
 0x80e   :  { %v1186_v31 = vsub.f32 %v1178_v60, %v1184_v30  ;;  %v1313_v37 = vmul.f32 1.442695, %v1311_v8 }
 0x80f   :  { %v4131_v32 = vpop.eup %3462 }
 0x810   :  { %v1189_v34 = vmul.f32 1.442695, %v1186_v31  ;;  %v1310_v35 = vpop.xlane.xlu0 %1309  ;;  %v1191_v28 = vsel %vm719_vm6, %v4131_v32, 0.0  ;;  %v3465_v23 = vpop.eup %3464 }
 0x811   :  { %1192 = vadd.xlane.f32.xlu1 %v1191_v28  ;;  %v1312_v40 = vsub.f32 %v1304_v1, %v1310_v35  ;;  %v946_v63 = vmul.f32 %v3465_v23, %v941_v38  ;;  %vm951_vm9 = vweird.f32 %v3465_v23 }
 0x812   :  { %3466 = vpow2.f32 %v1189_v34  ;;  %vm952_vm14 = vmor %vm950_vm11, %vm951_vm9 }
 0x813   :  { %3468 = vpow2.f32 %v1313_v37  ;;  %v1315_v41 = vmul.f32 1.442695, %v1312_v40  ;;  %v947_v9 = vsub.f32 1.0, %v946_v63 }
 0x815   :  { %v948_v33 = vmul.f32 %v3465_v23, %v947_v9 }
 0x817   :  { %v949_v47 = vadd.f32 %v3465_v23, %v948_v33 }
 0x818   :  { %v4135_v25 = vpop.eup %3466  ;;  %v944_v58 = vpop.xlane.xlu0 %943 }
 0x819   :  { %3470 = vrcp.f32 %v944_v58  ;;  %v1194_v6 = vsel %vm929_vm5, %v4135_v25, 0.0  ;;  %v4139_v54 = vpop.eup %3468  ;;  %v953_v43 = vsel %vm952_vm14, %v3465_v23, %v949_v47  ;;  %v971_v14 = vand.u32 2147483648, %v944_v58 }
 0x81a   :  { %1195 = vadd.xlane.f32.xlu2 %v1194_v6  ;;  %3472 = vpow2.f32 %v1315_v41  ;;  %v1317_v39 = vsel %vm719_vm6, %v4139_v54, 0.0  ;;  %v958_v59 = vsel %vm955_vm15, %v957_v53, %v953_v43  ;;  %vm965_vm1 = vweird.f32 %v944_v58 }
 0x81b   :  { %v959_v19 = vmul.f32 %v4099_v45, %v958_v59  ;;  %v969_v7 = vand.u32 2147483647, %v944_v58  ;;  %v972_v13 = vor.u32 1.1754944e-38, %v971_v14 }
 0x81d   :  { %vm970_vm9 = vcmp.eq.f32.partialorder %v969_v7, 8.507059e+37 }
 0x81f   :  { %v3471_v42 = vpop.eup %3470 }
 0x820   :  { %v961_v36 = vmul.f32 %v3471_v42, %v944_v58  ;;  %v4143_v49 = vpop.eup %3472  ;;  %vm966_vm0 = vweird.f32 %v3471_v42 }
 0x821   :  { %v1320_v4 = vsel %vm929_vm5, %v4143_v49, 0.0  ;;  %vm967_vm13 = vmor %vm965_vm1, %vm966_vm0 }
 0x822   :  { %1318 = vadd.xlane.f32.xlu2 %v1317_v39  ;;  %v962_v48 = vsub.f32 1.0, %v961_v36 }
 0x824   :  { %v963_v52 = vmul.f32 %v3471_v42, %v962_v48 }
 0x826   :  { %v964_v61 = vadd.f32 %v3471_v42, %v963_v52 }
 0x828   :  { %v968_v11 = vsel %vm967_vm13, %v3471_v42, %v964_v61 }
 0x829   :  { %v973_v16 = vsel %vm970_vm9, %v972_v13, %v968_v11 }
 0x82a   :  { %3382 = vrot.lane.b32.xlu1 %v4117_v10, %s3608_s2  ;;  %1321 = vadd.xlane.f32.xlu2 %v1320_v4  ;;  %v974_v21 = vmul.f32 %v4111_v5, %v973_v16 }
 0x82b   :  { %v3378_v56 = vpop.permute.xlu0 %3377 }
 0x82c   :  { %v3379_v60 = vunpack.i.l.bf16 %v3378_v56  ;;  %v3380_v1 = vunpack.i.h.bf16 %v3378_v56 }
 0x82e   :  { %1001 = vmatpush.msrb.mxu1 %v3379_v60 }
 0x830   :  { %1002 = vmatpush.msrb.mxu1 %v3380_v1 }
 0x831   :  { %3231 = vmatmul.msk.f32.vlgmr.msrb.gmra.mxu1 %vm719_vm6, %v959_v19 }
 0x833   :  { %v3388_v20 = vpop.permute.xlu0 %3387 }
 0x834   :  { %v3389_v3 = vunpack.i.l.bf16 %v3388_v20  ;;  %v3390_v18 = vunpack.i.h.bf16 %v3388_v20 }
 0x836   :  { %1253 = vmatpush.msra.mxu1 %v3389_v3 }
 0x838   :  { %1254 = vmatpush.msra.mxu1 %v3390_v18 }
 0x839   :  { %3232 = vmatmul.msk.f32.gmra.mxu1 %vm719_vm6, %v974_v21 }
 0x842   :  { %3392 = vrot.lane.b32.xlu2 %v4117_v10, %s3611_s4 }
 0x875   :  { %v1067_v45 = vpop.xlane.xlu1 %1066 }
 0x876   :  { %3474 = vrcp.f32 %v1067_v45  ;;  %v1082_v33 = vand.u32 2147483648, %v1067_v45  ;;  %vm1076_vm13 = vweird.f32 %v1067_v45  ;;  %v1080_v39 = vand.u32 2147483647, %v1067_v45 }
 0x878   :  { %v1083_v52 = vor.u32 1.1754944e-38, %v1082_v33 }
 0x87c   :  { %v3475_v22 = vpop.eup %3474 }
 0x87d   :  { %v1072_v24 = vmul.f32 %v3475_v22, %v1067_v45  ;;  %vm1077_vm1 = vweird.f32 %v3475_v22 }
 0x87e   :  { %v4155_v44 = vpop.xlane.xlu2 %1069  ;;  %vm1078_vm9 = vmor %vm1076_vm13, %vm1077_vm1 }
 0x87f   :  { %v1073_v30 = vsub.f32 1.0, %v1072_v24  ;;  %v1097_v13 = vand.u32 2147483648, %v4155_v44  ;;  %v1095_v45 = vand.u32 2147483647, %v4155_v44 }
 0x881   :  { %v1074_v28 = vmul.f32 %v3475_v22, %v1073_v30  ;;  %v1098_v24 = vor.u32 1.1754944e-38, %v1097_v13 }
 0x883   :  { %v1075_v6 = vadd.f32 %v3475_v22, %v1074_v28 }
 0x884   :  { %v1193_v38 = vpop.xlane.xlu1 %1192 }
 0x885   :  { %3476 = vrcp.f32 %v1193_v38  ;;  %v1208_v34 = vand.u32 2147483648, %v1193_v38  ;;  %v1206_v35 = vand.u32 2147483647, %v1193_v38  ;;  %vm1202_vm14 = vweird.f32 %v1193_v38 }
 0x886   :  { %3478 = vrcp.f32 %v4155_v44  ;;  %v1079_v50 = vsel %vm1078_vm9, %v3475_v22, %v1075_v6  ;;  %vm1091_vm9 = vweird.f32 %v4155_v44 }
 0x887   :  { %v1209_v40 = vor.u32 1.1754944e-38, %v1208_v34  ;;  %vm1207_vm0 = vcmp.eq.f32.partialorder %v1206_v35, 8.507059e+37 }
 0x88b   :  { %v3477_v27 = vpop.eup %3476 }
 0x88c   :  { %v1198_v29 = vmul.f32 %v3477_v27, %v1193_v38  ;;  %v4158_v8 = vpop.eup %3478  ;;  %vm1203_vm11 = vweird.f32 %v3477_v27 }
 0x88d   :  { %v1196_v5 = vpop.xlane.xlu2 %1195  ;;  %v1087_v37 = vmul.f32 %v4158_v8, %v4155_v44  ;;  %vm1204_vm15 = vmor %vm1202_vm14, %vm1203_vm11  ;;  %vm1081_vm14 = vcmp.eq.f32.partialorder %v1080_v39, 8.507059e+37  ;;  %vm1092_vm1 = vweird.f32 %v4158_v8 }
 0x88e   :  { %v1199_v31 = vsub.f32 1.0, %v1198_v29  ;;  %3480 = vrcp.f32 %v1196_v5  ;;  %v1223_v43 = vand.u32 2147483648, %v1196_v5  ;;  %v1221_v53 = vand.u32 2147483647, %v1196_v5 }
 0x88f   :  { %v1088_v36 = vsub.f32 1.0, %v1087_v37  ;;  %v1084_v60 = vsel %vm1081_vm14, %v1083_v52, %v1079_v50  ;;  %vm1096_vm14 = vcmp.eq.f32.partialorder %v1095_v45, 8.507059e+37  ;;  %v884_v52 = vld [vmem:[%s4799_s8 + $0x8] sm:$0xff] }
 0x890   :  { %v1200_v10 = vmul.f32 %v3477_v27, %v1199_v31  ;;  %v1224_v14 = vor.u32 1.1754944e-38, %v1223_v43  ;;  %vm1222_vm13 = vcmp.eq.f32.partialorder %v1221_v53, 8.507059e+37  ;;  %v1085_v21 = vmul.f32 %v4123_v17, %v1084_v60  ;;  %v885_v43 = vld [vmem:[%s4799_s8 + $0x10] sm:$0xff] }
 0x891   :  { %v1089_v4 = vmul.f32 %v4158_v8, %v1088_v36 }
 0x892   :  { %v1201_v23 = vadd.f32 %v3477_v27, %v1200_v10 }
 0x893   :  { %v1090_v11 = vadd.f32 %v4158_v8, %v1089_v4  ;;  %v883_v4 = vld [vmem:[%s4799_s8] sm:$0xff] }
 0x894   :  { %v3481_v58 = vpop.eup %3480  ;;  %v1205_v63 = vsel %vm1204_vm15, %v3477_v27, %v1201_v23  ;;  %vm1217_vm15 = vweird.f32 %v1196_v5 }
 0x895   :  { %v1210_v41 = vsel %vm1207_vm0, %v1209_v40, %v1205_v63  ;;  %v1213_v9 = vmul.f32 %v3481_v58, %v1196_v5  ;;  %v4162_v42 = vpop.xlane.xlu2 %1318  ;;  %vm1218_vm11 = vweird.f32 %v3481_v58 }
 0x896   :  { %3482 = vrcp.f32 %v4162_v42  ;;  %v1211_v48 = vmul.f32 %v4131_v32, %v1210_v41  ;;  %vm1219_vm0 = vmor %vm1217_vm15, %vm1218_vm11  ;;  %v1334_v5 = vand.u32 2147483648, %v4162_v42  ;;  %v1332_v34 = vand.u32 2147483647, %v4162_v42 }
 0x897   :  { %v1214_v47 = vsub.f32 1.0, %v1213_v9  ;;  %vm1093_vm11 = vmor %vm1091_vm9, %vm1092_vm1 }
 0x898   :  { %3243 = vmatmul.msk.f32.vlgmr.msra.gmra.mxu1 %vm719_vm6, %v1211_v48  ;;  %v1094_v22 = vsel %vm1093_vm11, %v4158_v8, %v1090_v11  ;;  %v1335_v37 = vor.u32 1.1754944e-38, %v1334_v5 }
 0x899   :  { %v1215_v51 = vmul.f32 %v3481_v58, %v1214_v47  ;;  %v1099_v30 = vsel %vm1096_vm14, %v1098_v24, %v1094_v22 }
 0x89a   :  { %v1100_v10 = vmul.f32 %v4127_v2, %v1099_v30 }
 0x89b   :  { %v1216_v56 = vadd.f32 %v3481_v58, %v1215_v51 }
 0x89c   :  { %v3483_v59 = vpop.eup %3482  ;;  %v3383_v61 = vpop.permute.xlu1 %3382 }
 0x89d   :  { %v1324_v32 = vmul.f32 %v3483_v59, %v4162_v42  ;;  %v3384_v1 = vunpack.i.l.bf16 %v3383_v61  ;;  %v1322_v19 = vpop.xlane.xlu2 %1321  ;;  %v1220_v7 = vsel %vm1219_vm0, %v3481_v58, %v1216_v56  ;;  %v3385_v3 = vunpack.i.h.bf16 %v3383_v61 }
 0x89e   :  { %3484 = vrcp.f32 %v1322_v19  ;;  %v1225_v16 = vsel %vm1222_vm13, %v1224_v14, %v1220_v7  ;;  %vm1329_vm15 = vweird.f32 %v3483_v59  ;;  %vm1328_vm0 = vweird.f32 %v4162_v42 }
 0x89f   :  { %v1325_v20 = vsub.f32 1.0, %v1324_v32  ;;  %1127 = vmatpush.msra.mxu0 %v3384_v1  ;;  %v1226_v18 = vmul.f32 %v4135_v25, %v1225_v16  ;;  %vm1330_vm1 = vmor %vm1328_vm0, %vm1329_vm15  ;;  %vm1333_vm13 = vcmp.eq.f32.partialorder %v1332_v34, 8.507059e+37  ;;  %v1349_v58 = vand.u32 2147483648, %v1322_v19 }
 0x8a0   :  { %vm1343_vm11 = vweird.f32 %v1322_v19  ;;  %v1347_v6 = vand.u32 2147483647, %v1322_v19 }
 0x8a1   :  { %1128 = vmatpush.msra.mxu0 %v3385_v3  ;;  %v1326_v38 = vmul.f32 %v3483_v59, %v1325_v20  ;;  %3244 = vmatmul.msk.f32.gmra.mxu1 %vm719_vm6, %v1226_v18  ;;  %v1350_v41 = vor.u32 1.1754944e-38, %v1349_v58  ;;  %v4219_v20 = vld [vmem:[%s4803_s12] sm:$0xff]  ;;  %v1543_v58 = vld [vmem:[%s4802_s11 + $0x38] sm:$0xff] }
 0x8a2   :  { %3237 = vmatmul.msk.f32.vlgmr.msra.gmra.mxu0 %vm719_vm6, %v1085_v21  ;;  %vm1348_vm15 = vcmp.eq.f32.partialorder %v1347_v6, 8.507059e+37  ;;  %v1418_v3 = vperm.slane %v4219_v20, 4  ;;  %1560 = vmatpush.msrb.mxu2 %v1543_v58  ;;  %v1541_v6 = vld [vmem:[%s4802_s11 + $0x28] sm:$0xff]  ;;  %v3262_v58 = vld [vmem:[%s4796_s5 + $0x38] sm:$0xff] }
 0x8a3   :  { %v1327_v17 = vadd.f32 %v3483_v59, %v1326_v38 }
 0x8a4   :  { %v3485_v27 = vpop.eup %3484 }
 0x8a5   :  { %v1339_v29 = vmul.f32 %v3485_v27, %v1322_v19  ;;  %v3393_v25 = vpop.permute.xlu2 %3392  ;;  %v1331_v35 = vsel %vm1330_vm1, %v3483_v59, %v1327_v17  ;;  %vm1344_vm9 = vweird.f32 %v3485_v27 }
 0x8a6   :  { %v3394_v44 = vunpack.i.l.bf16 %v3393_v25  ;;  %v3395_v8 = vunpack.i.h.bf16 %v3393_v25  ;;  %v1336_v23 = vsel %vm1333_vm13, %v1335_v37, %v1331_v35  ;;  %vm1345_vm14 = vmor %vm1343_vm11, %vm1344_vm9  ;;  %v1501_v35 = vld [vmem:[%s4801_s10 + $0x8] sm:$0xff] }
 0x8a7   :  { %v1340_v31 = vsub.f32 1.0, %v1339_v29  ;;  %v1337_v63 = vmul.f32 %v4139_v54, %v1336_v23 }
 0x8a8   :  { %1379 = vmatpush.msrb.mxu0 %v3394_v44 }
 0x8a9   :  { %v1341_v28 = vmul.f32 %v3485_v27, %v1340_v31 }
 0x8aa   :  { %3238 = vmatmul.msk.f32.gmra.mxu0 %vm719_vm6, %v1100_v10 }
 0x8ab   :  { %1380 = vmatpush.msrb.mxu0 %v3395_v8  ;;  %v1342_v40 = vadd.f32 %v3485_v27, %v1341_v28  ;;  %v1502_v8 = vld [vmem:[%s4801_s10 + $0x10] sm:$0xff]  ;;  %v1500_v28 = vld [vmem:[%s4801_s10] sm:$0xff] }
 0x8ad   :  { %v1346_v2 = vsel %vm1345_vm14, %v3485_v27, %v1342_v40  ;;  %1654 = vmatpush.msra.mxu0 %v3262_v58 }
 0x8ae   :  { %v1351_v9 = vsel %vm1348_vm15, %v1350_v41, %v1346_v2  ;;  %v1004_v33 = vpop.f32.mrf.mxu1  ;;  %vm1545_vm15 = vcmask 523264  }
 0x8af   :  { %v1352_v42 = vmul.f32 %v4143_v49, %v1351_v9  ;;  %v886_v49 = vld [vmem:[%s4799_s8 + $0x18] sm:$0xff]  ;;  %v1540_v9 = vld [vmem:[%s4802_s11 + $0x20] sm:$0xff] }
 0x8b0   :  { %1437 = vmatpush.msrb.mxu3 %v886_v49  ;;  %v1494_v49 = vperm.slane %v4038_v46, 1 }
 0x8b2   :  { %3249 = vmatmul.msk.f32.vlgmr.msrb.gmra.mxu0 %vm719_vm6, %v1337_v63  ;;  %1438 = vmatpush.msrb.mxu3 %v885_v43  ;;  %v1542_v63 = vld [vmem:[%s4802_s11 + $0x30] sm:$0xff] }
 0x8b3   :  { %1561 = vmatpush.msrb.mxu2 %v1542_v63  ;;  %v3261_v63 = vld [vmem:[%s4796_s5 + $0x30] sm:$0xff] }
 0x8b4   :  { %1439 = vmatpush.msrb.mxu3 %v884_v52  ;;  %1655 = vmatpush.msra.mxu0 %v3261_v63 }
 0x8b5   :  { %1562 = vmatpush.msrb.mxu2 %v1541_v6  ;;  %v3260_v6 = vld [vmem:[%s4796_s5 + $0x28] sm:$0xff] }
 0x8b6   :  { %v1007_v36 = vpop.f32.mrf.mxu1  ;;  %1440 = vmatpush.msrb.mxu3 %v883_v4  ;;  %1656 = vmatpush.msra.mxu0 %v3260_v6 }
 0x8b7   :  { %1563 = vmatpush.msrb.mxu2 %v1540_v9 }
 0x8ba   :  { %3250 = vmatmul.msk.f32.gmra.mxu0 %vm719_vm6, %v1352_v42 }
 0x915   :  { %v1256_v39 = vpop.f32.mrf.mxu1 }
 0x916   :  { %1398 = vrot.lane.b32.xlu1 %v1256_v39, %s3619_s29  ;;  %v1539_v39 = vld [vmem:[%s4802_s11 + $0x18] sm:$0xff] }
 0x917   :  { %1564 = vmatpush.msrb.mxu2 %v1539_v39 }
 0x91e   :  { %v1259_v50 = vpop.f32.mrf.mxu1 }
 0x91f   :  { %v1130_v47 = vpop.f32.mrf.mxu0 }
 0x920   :  { %1390 = vrot.lane.b32.xlu0 %v1130_v47, %s3620_s30 }
 0x927   :  { %v1133_v54 = vpop.f32.mrf.mxu0 }
 0x928   :  { %1392 = vrot.lane.b32.xlu1 %v1133_v54, %s3620_s30 }
 0x92f   :  { %v1382_v48 = vpop.f32.mrf.mxu0 }
 0x930   :  { %1406 = vrot.lane.b32.xlu0 %v1382_v48, %s3621_s15 }
 0x937   :  { %v1385_v51 = vpop.f32.mrf.mxu0 }
 0x938   :  { %1400 = vrot.lane.b32.xlu0 %v1259_v50, %s3619_s29  ;;  %1408 = vrot.lane.b32.xlu1 %v1385_v51, %s3621_s15 }
 0x988   :  { %v1399_v53 = vpop.permute.xlu1 %1398 }
 0x992   :  { %v1391_v56 = vpop.permute.xlu0 %1390 }
 0x993   :  { %v1412_v59 = vsel %vm189_vm3, %v1004_v33, %v1391_v56  ;;  %v1497_v56 = vperm.slane %v4038_v46, 2  ;;  %v1538_v46 = vld [vmem:[%s4802_s11 + $0x10] sm:$0xff] }
 0x994   :  { %v1414_v61 = vsel %vm719_vm6, %v1412_v59, %v1399_v53  ;;  %1565 = vmatpush.msrb.mxu2 %v1538_v46 }
 0x99a   :  { %v1393_v60 = vpop.permute.xlu1 %1392 }
 0x99b   :  { %v1413_v1 = vsel %vm189_vm3, %v1007_v36, %v1393_v60 }
 0x9a2   :  { %v1407_v14 = vpop.permute.xlu0 %1406 }
 0x9a3   :  { %v1416_v32 = vsel %vm722_vm7, %v1414_v61, %v1407_v14 }
 0x9a4   :  { %3251 = vmatmul.msk.f32.vlgmr.msrb.gmra.mxu3 %vm149_vm2, %v1416_v32 }
 0x9aa   :  { %v1401_v19 = vpop.permute.xlu0 %1400  ;;  %v1409_v7 = vpop.permute.xlu1 %1408 }
 0x9ab   :  { %v1415_v11 = vsel %vm719_vm6, %v1413_v1, %v1401_v19 }
 0x9ac   :  { %v1417_v13 = vsel %vm722_vm7, %v1415_v11, %v1409_v7 }
 0x9ad   :  { %3252 = vmatmul.msk.f32.gmra.mxu3 %vm149_vm2, %v1417_v13  ;;  %v1537_v13 = vld [vmem:[%s4802_s11 + $0x8] sm:$0xff] }
 0x9ae   :  { %1566 = vmatpush.msrb.mxu2 %v1537_v13 }
 0xa27   :  { %v1442_v16 = vpop.f32.mrf.mxu3 }
 0xa28   :  { %v1443_v18 = vadd.f32 %v1442_v16, %v1418_v3  ;;  %v1504_v16 = vperm.slane %v4219_v20, 5 }
 0xa2a   :  { %v1448_v21 = vadd.f32 %v1443_v18, %v4046_v55 }
 0xa2c   :  { %v1450_v45 = vsel %vm149_vm2, %v1448_v21, 0.0 }
 0xa2d   :  { %1451 = vadd.xlane.f32.xlu2 %v1450_v45 }
 0xa30   :  { %v1445_v38 = vpop.f32.mrf.mxu3 }
 0xa31   :  { %v1446_v22 = vadd.f32 %v1445_v38, %v1418_v3  ;;  %v1536_v3 = vld [vmem:[%s4802_s11] sm:$0xff] }
 0xa32   :  { %1567 = vmatpush.msrb.mxu2 %v1536_v3 }
 0xa33   :  { %v1449_v24 = vadd.f32 %v1446_v22, %v4050_v62  ;;  %v1503_v62 = vld [vmem:[%s4801_s10 + $0x18] sm:$0xff] }
 0xa34   :  { %1523 = vmatpush.msrb.mxu1 %v1503_v62 }
 0xa35   :  { %v1453_v27 = vsel %vm760_vm10, %v1449_v24, 0.0 }
 0xa36   :  { %1454 = vadd.xlane.f32.xlu0 %v1453_v27  ;;  %1524 = vmatpush.msrb.mxu1 %v1502_v8  ;;  %v1544_v27 = vperm.slane %v4219_v20, 6 }
 0xa38   :  { %1525 = vmatpush.msrb.mxu1 %v1501_v35 }
 0xa3a   :  { %1526 = vmatpush.msrb.mxu1 %v1500_v28 }
 0xaa0   :  { %v1452_v29 = vpop.xlane.xlu2 %1451 }
 0xaa1   :  { %v1456_v25 = vmul.f32 %v1452_v29, %v3998_v12 }
 0xaa3   :  { %v1458_v30 = vsub.f32 %v1448_v21, %v1456_v25 }
 0xaa5   :  { %v1460_v17 = vmul.f32 %v1458_v30, %v1458_v30 }
 0xaa7   :  { %v1462_v44 = vsel %vm149_vm2, %v1460_v17, 0.0 }
 0xaa8   :  { %1463 = vadd.xlane.f32.xlu1 %v1462_v44 }
 0xaa9   :  { %v1455_v5 = vpop.xlane.xlu0 %1454 }
 0xaaa   :  { %v1457_v55 = vmul.f32 %v1455_v5, %v3998_v12 }
 0xaac   :  { %v1459_v31 = vsub.f32 %v1449_v24, %v1457_v55 }
 0xaae   :  { %v1461_v34 = vmul.f32 %v1459_v31, %v1459_v31 }
 0xab0   :  { %v1465_v10 = vsel %vm760_vm10, %v1461_v34, 0.0 }
 0xab1   :  { %1466 = vadd.xlane.f32.xlu2 %v1465_v10 }
 0xb1b   :  { %v1464_v37 = vpop.xlane.xlu1 %1463 }
 0xb1c   :  { %v1468_v23 = vmul.f32 %v1464_v37, %v3998_v12 }
 0xb1e   :  { %v1470_v40 = vadd.f32 1e-05, %v1468_v23 }
 0xb20   :  { %3486 = vrsqrt.f32 %v1470_v40  ;;  %vm1478_vm1 = vweird.f32 %v1470_v40 }
 0xb24   :  { %v1467_v2 = vpop.xlane.xlu2 %1466 }
 0xb25   :  { %v1469_v41 = vmul.f32 %v1467_v2, %v3998_v12  ;;  %v3259_v2 = vld [vmem:[%s4796_s5 + $0x20] sm:$0xff] }
 0xb26   :  { %v3487_v42 = vpop.eup %3486  ;;  %1657 = vmatpush.msra.mxu0 %v3259_v2 }
 0xb27   :  { %v1473_v33 = vmul.f32 %v3487_v42, %v1470_v40  ;;  %v1471_v36 = vadd.f32 1e-05, %v1469_v41  ;;  %vm1479_vm0 = vweird.f32 %v3487_v42 }
 0xb28   :  { %vm1480_vm13 = vmor %vm1478_vm1, %vm1479_vm0 }
 0xb29   :  { %v1474_v47 = vmul.f32 %v3487_v42, %v1473_v33  ;;  %3488 = vrsqrt.f32 %v1471_v36  ;;  %vm1488_vm11 = vweird.f32 %v1471_v36 }
 0xb2b   :  { %v1475_v54 = vmul.f32 0.5, %v1474_v47 }
 0xb2d   :  { %v1476_v48 = vsub.f32 1.5, %v1475_v54 }
 0xb2f   :  { %v3489_v50 = vpop.eup %3488  ;;  %v1477_v51 = vmul.f32 %v3487_v42, %v1476_v48 }
 0xb30   :  { %v1483_v43 = vmul.f32 %v3489_v50, %v1471_v36  ;;  %vm1489_vm9 = vweird.f32 %v3489_v50 }
 0xb31   :  { %v1481_v52 = vsel %vm1480_vm13, %v3487_v42, %v1477_v51  ;;  %vm1490_vm14 = vmor %vm1488_vm11, %vm1489_vm9 }
 0xb32   :  { %v1492_v4 = vmul.f32 %v1481_v52, %v1458_v30  ;;  %v1484_v53 = vmul.f32 %v3489_v50, %v1483_v43  ;;  %v3575_v52 = vld [vmem:[%s4803_s12 + $0x8] sm:$0x1f] }
 0xb34   :  { %v1495_v59 = vmul.f32 %v1494_v49, %v1492_v4  ;;  %v1485_v60 = vmul.f32 0.5, %v1484_v53  ;;  %v1621_v4 = vperm.slane %v3575_v52, 3 }
 0xb36   :  { %v1486_v61 = vsub.f32 1.5, %v1485_v60  ;;  %v1498_v14 = vadd.f32 %v1497_v56, %v1495_v59 }
 0xb38   :  { %v1487_v32 = vmul.f32 %v3489_v50, %v1486_v61  ;;  %3253 = vmatmul.msk.f32.vlgmr.msrb.gmra.mxu1 %vm149_vm2, %v1498_v14  ;;  %v1624_v61 = vperm.slane %v3575_v52, 4 }
 0xb3a   :  { %v1491_v1 = vsel %vm1490_vm14, %v3489_v50, %v1487_v32 }
 0xb3b   :  { %v1493_v19 = vmul.f32 %v1491_v1, %v1459_v31 }
 0xb3d   :  { %v1496_v7 = vmul.f32 %v1494_v49, %v1493_v19 }
 0xb3f   :  { %v1499_v11 = vadd.f32 %v1497_v56, %v1496_v7 }
 0xb41   :  { %3254 = vmatmul.msk.f32.gmra.mxu1 %vm149_vm2, %v1499_v11 }
 0xbb5   :  { %v1528_v18 = vpop.f32.mrf.mxu1 }
 0xbb6   :  { %v1529_v21 = vadd.f32 %v1528_v18, %v1504_v16 }
 0xbb8   :  { %v1534_v45 = vmax.f32 %v1529_v21, 0.0 }
 0xbba   :  { %3255 = vmatmul.msk.f32.vlgmr.msrb.gmra.mxu2 %vm1545_vm15, %v1534_v45 }
 0xbbe   :  { %v1531_v38 = vpop.f32.mrf.mxu1 }
 0xbbf   :  { %v1532_v22 = vadd.f32 %v1531_v38, %v1504_v16  ;;  %v4310_v16 = vld [vmem:[%s4803_s12 + $0x10] sm:$0xff] }
 0xbc0   :  { %v1635_v18 = vperm.slane %v4310_v16, 0 }
 0xbc1   :  { %v1535_v24 = vmax.f32 %v1532_v22, 0.0 }
 0xbc3   :  { %3256 = vmatmul.msk.f32.gmra.mxu2 %vm1545_vm15, %v1535_v24 }
 0xc3d   :  { %v1569_v29 = vpop.f32.mrf.mxu2 }
 0xc3e   :  { %v1570_v25 = vadd.f32 %v1569_v29, %v1544_v27 }
 0xc40   :  { %v1575_v30 = vadd.f32 %v1570_v25, %v1498_v14 }
 0xc42   :  { %v1577_v17 = vsel %vm149_vm2, %v1575_v30, 0.0 }
 0xc43   :  { %1578 = vadd.xlane.f32.xlu0 %v1577_v17 }
 0xc46   :  { %v1572_v44 = vpop.f32.mrf.mxu2 }
 0xc47   :  { %v1573_v5 = vadd.f32 %v1572_v44, %v1544_v27 }
 0xc49   :  { %v1576_v55 = vadd.f32 %v1573_v5, %v1499_v11 }
 0xc4b   :  { %v1580_v31 = vsel %vm760_vm10, %v1576_v55, 0.0 }
 0xc4c   :  { %1581 = vadd.xlane.f32.xlu2 %v1580_v31 }
 0xcb6   :  { %v1579_v34 = vpop.xlane.xlu0 %1578 }
 0xcb7   :  { %v1583_v10 = vmul.f32 %v1579_v34, %v3998_v12 }
 0xcb9   :  { %v1585_v62 = vsub.f32 %v1575_v30, %v1583_v10 }
 0xcbb   :  { %v1587_v8 = vmul.f32 %v1585_v62, %v1585_v62 }
 0xcbd   :  { %v1589_v35 = vsel %vm149_vm2, %v1587_v8, 0.0 }
 0xcbe   :  { %1590 = vadd.xlane.f32.xlu1 %v1589_v35 }
 0xcbf   :  { %v1582_v20 = vpop.xlane.xlu2 %1581 }
 0xcc0   :  { %v1584_v28 = vmul.f32 %v1582_v20, %v3998_v12 }
 0xcc2   :  { %v1586_v37 = vsub.f32 %v1576_v55, %v1584_v28 }
 0xcc4   :  { %v1588_v23 = vmul.f32 %v1586_v37, %v1586_v37 }
 0xcc6   :  { %v1592_v40 = vsel %vm760_vm10, %v1588_v23, 0.0 }
 0xcc7   :  { %1593 = vadd.xlane.f32.xlu0 %v1592_v40 }
 0xd31   :  { %v1591_v41 = vpop.xlane.xlu1 %1590 }
 0xd32   :  { %v1595_v9 = vmul.f32 %v1591_v41, %v3998_v12 }
 0xd34   :  { %v1597_v42 = vadd.f32 1e-05, %v1595_v9 }
 0xd36   :  { %3490 = vrsqrt.f32 %v1597_v42  ;;  %vm1605_vm1 = vweird.f32 %v1597_v42 }
 0xd3a   :  { %v1594_v33 = vpop.xlane.xlu0 %1593 }
 0xd3b   :  { %v1596_v36 = vmul.f32 %v1594_v33, %v3998_v12 }
 0xd3c   :  { %v3491_v39 = vpop.eup %3490 }
 0xd3d   :  { %v1600_v47 = vmul.f32 %v3491_v39, %v1597_v42  ;;  %v1598_v54 = vadd.f32 1e-05, %v1596_v36  ;;  %vm1606_vm0 = vweird.f32 %v3491_v39 }
 0xd3e   :  { %vm1607_vm13 = vmor %vm1605_vm1, %vm1606_vm0 }
 0xd3f   :  { %v1601_v48 = vmul.f32 %v3491_v39, %v1600_v47  ;;  %3492 = vrsqrt.f32 %v1598_v54  ;;  %vm1615_vm11 = vweird.f32 %v1598_v54 }
 0xd41   :  { %v1602_v50 = vmul.f32 0.5, %v1601_v48 }
 0xd43   :  { %v1603_v51 = vsub.f32 1.5, %v1602_v50 }
 0xd45   :  { %v3493_v49 = vpop.eup %3492  ;;  %v1604_v43 = vmul.f32 %v3491_v39, %v1603_v51 }
 0xd46   :  { %v1610_v53 = vmul.f32 %v3493_v49, %v1598_v54  ;;  %vm1616_vm9 = vweird.f32 %v3493_v49 }
 0xd47   :  { %v1608_v56 = vsel %vm1607_vm13, %v3491_v39, %v1604_v43  ;;  %vm1617_vm14 = vmor %vm1615_vm11, %vm1616_vm9 }
 0xd48   :  { %v1619_v59 = vmul.f32 %v1608_v56, %v1585_v62  ;;  %v1611_v60 = vmul.f32 %v3493_v49, %v1610_v53 }
 0xd4a   :  { %v1622_v14 = vmul.f32 %v1621_v4, %v1619_v59  ;;  %v1612_v32 = vmul.f32 0.5, %v1611_v60 }
 0xd4c   :  { %v1613_v1 = vsub.f32 1.5, %v1612_v32  ;;  %v4299_v19 = vadd.f32 %v1624_v61, %v1622_v14 }
 0xd4e   :  { %v1614_v7 = vmul.f32 %v3493_v49, %v1613_v1  ;;  %3263 = vmatmul.msk.f32.vlgmr.msra.gmra.mxu0 %vm149_vm2, %v4299_v19 }
 0xd50   :  { %v1618_v11 = vsel %vm1617_vm14, %v3493_v49, %v1614_v7 }
 0xd51   :  { %v1620_v46 = vmul.f32 %v1618_v11, %v1586_v37 }
 0xd53   :  { %v1623_v13 = vmul.f32 %v1621_v4, %v1620_v46 }
 0xd55   :  { %v4303_v3 = vadd.f32 %v1624_v61, %v1623_v13 }
 0xd57   :  { %3264 = vmatmul.msk.f32.gmra.mxu0 %vm149_vm2, %v4303_v3 }
 0xdcb   :  { %v1659_v21 = vpop.f32.mrf.mxu0 }
 0xdcc   :  { %v4313_v45 = vadd.f32 %v1659_v21, %v1635_v18 }
 0xdce   :  { %1672 = vrot.lane.b32.xlu0 %v4313_v45, %s3609_s22 }
 0xdd4   :  { %v1662_v38 = vpop.f32.mrf.mxu0 }
 0xdd5   :  { %v4317_v22 = vadd.f32 %v1662_v38, %v1635_v18 }
 0xdd6   :  { %1795 = vrot.lane.b32.xlu0 %v4313_v45, %s3607_s21 }
 0xdd7   :  { %1801 = vrot.lane.b32.xlu1 %v4317_v22, %s3608_s2  ;;  %1674 = vrot.lane.b32.xlu2 %v4317_v22, %s3609_s22 }
 0xdde   :  { %2055 = vrot.lane.b32.xlu0 %v4317_v22, %s3611_s4 }
 0xddf   :  { %1926 = vrot.lane.b32.xlu1 %v4313_v45, %s3610_s23  ;;  %1799 = vrot.lane.b32.xlu2 %v4313_v45, %s3608_s2 }
 0xde6   :  { %1922 = vrot.lane.b32.xlu0 %v4313_v45, %s3613_s25 }
 0xde7   :  { %1797 = vrot.lane.b32.xlu1 %v4317_v22, %s3607_s21  ;;  %1928 = vrot.lane.b32.xlu2 %v4317_v22, %s3610_s23 }
 0xdee   :  { %2051 = vrot.lane.b32.xlu0 %v4317_v22, %s3612_s24 }
 0xdef   :  { %2049 = vrot.lane.b32.xlu1 %v4313_v45, %s3612_s24  ;;  %2053 = vrot.lane.b32.xlu2 %v4313_v45, %s3611_s4 }
 0xdf7   :  { %1924 = vrot.lane.b32.xlu2 %v4317_v22, %s3613_s25 }
 0xdff   :  { %1761 = vrot.lane.b32.xlu2 %v4317_v22, %s3614_s26 }
 0xe31   :  { %v1675_v24 = vpop.permute.xlu2 %1674 }
 0xe32   :  { %3269 = vmatpush.xpose.msk.msra.mxu3 %vm189_vm3, %v1675_v24 }
 0xe39   :  { %v1800_v27 = vpop.permute.xlu2 %1799 }
 0xe40   :  { %v1673_v29 = vpop.permute.xlu0 %1672 }
 0xe41   :  { %v1929_v25 = vpop.permute.xlu2 %1928  ;;  %3270 = vmatpush.xpose.msk.msra.mxu3 %vm189_vm3, %v1673_v29 }
 0xe44   :  { %3271 = vmatmul.msk.f32.vlgmr.msra.gmra.mxu3 %vm189_vm3, %v4313_v45 }
 0xe45   :  { %3283 = vmatpush.xpose.msk.msrb.mxu3 %vm189_vm3, %v1929_v25 }
 0xe48   :  { %v1796_v30 = vpop.permute.xlu0 %1795 }
 0xe49   :  { %v1802_v17 = vpop.permute.xlu1 %1801  ;;  %v2054_v44 = vpop.permute.xlu2 %2053 }
 0xe4a   :  { %3276 = vmatpush.xpose.msk.msra.mxu2 %vm189_vm3, %v1802_v17 }
 0xe4c   :  { %3272 = vmatmul.msk.f32.gmra.mxu3 %vm189_vm3, %v4317_v22 }
 0xe4e   :  { %3277 = vmatpush.xpose.msk.msra.mxu2 %vm189_vm3, %v1800_v27 }
 0xe50   :  { %v2056_v5 = vpop.permute.xlu0 %2055 }
 0xe51   :  { %v1927_v55 = vpop.permute.xlu1 %1926  ;;  %v1925_v31 = vpop.permute.xlu2 %1924  ;;  %3278 = vmatmul.msk.f32.vlgmr.msra.gmra.mxu2 %vm189_vm3, %v1796_v30 }
 0xe52   :  { %3290 = vmatpush.xpose.msk.msrb.mxu2 %vm189_vm3, %v2056_v5  ;;  %3284 = vmatpush.xpose.msk.msrb.mxu3 %vm189_vm3, %v1927_v55 }
 0xe56   :  { %3291 = vmatpush.xpose.msk.msrb.mxu2 %vm189_vm3, %v2054_v44 }
 0xe58   :  { %v1923_v34 = vpop.permute.xlu0 %1922 }
 0xe59   :  { %v1798_v10 = vpop.permute.xlu1 %1797  ;;  %v1762_v62 = vpop.permute.xlu2 %1761  ;;  %3285 = vmatmul.msk.f32.vlgmr.msrb.gmra.mxu3 %vm189_vm3, %v1923_v34 }
 0xe5a   :  { %3273 = vmatpush.msk.msra.mxu1 %vm286_vm4, %v1762_v62  ;;  %3279 = vmatmul.msk.f32.gmra.mxu2 %vm189_vm3, %v1798_v10 }
 0xe60   :  { %v2052_v35 = vpop.permute.xlu0 %2051 }
 0xe61   :  { %v2050_v8 = vpop.permute.xlu1 %2049  ;;  %3286 = vmatmul.msk.f32.gmra.mxu3 %vm189_vm3, %v1925_v31 }
 0xe62   :  { %3292 = vmatmul.msk.f32.vlgmr.msrb.gmra.mxu2 %vm189_vm3, %v2050_v8 }
 0xe6a   :  { %3293 = vmatmul.msk.f32.gmra.mxu2 %vm189_vm3, %v2052_v35 }
 0xec7   :  { %v1701_v20 = vpop.f32.mrf.mxu3 }
 0xec8   :  { %v1707_v28 = vmul.f32 0.35355338, %v1701_v20 }
 0xeca   :  { %v1709_v37 = vadd.f32 %v1707_v28, %v3810_v0 }
 0xecc   :  { %v1711_v23 = vsel %vm225_vm8, %v1709_v37, -inf }
 0xecd   :  { %1712 = vmax.xlane.f32.xlu1 %v1711_v23 }
 0xecf   :  { %v1704_v40 = vpop.f32.mrf.mxu3 }
 0xed0   :  { %v1708_v58 = vmul.f32 0.35355338, %v1704_v40 }
 0xed2   :  { %v1710_v63 = vadd.f32 %v1708_v58, %v3823_v15 }
 0xed4   :  { %v1828_v6 = vpop.f32.mrf.mxu2  ;;  %v1714_v2 = vsel %vm229_vm12, %v1710_v63, -inf }
 0xed5   :  { %v1834_v41 = vmul.f32 0.35355338, %v1828_v6  ;;  %1715 = vmax.xlane.f32.xlu0 %v1714_v2 }
 0xed7   :  { %v1836_v9 = vadd.f32 %v1834_v41, %v3810_v0 }
 0xed9   :  { %v1838_v42 = vsel %vm225_vm8, %v1836_v9, -inf }
 0xeda   :  { %1839 = vmax.xlane.f32.xlu2 %v1838_v42 }
 0xedc   :  { %v1955_v33 = vpop.f32.mrf.mxu3 }
 0xedd   :  { %v1961_v36 = vmul.f32 0.35355338, %v1955_v33  ;;  %v1831_v39 = vpop.f32.mrf.mxu2 }
 0xede   :  { %v1835_v47 = vmul.f32 0.35355338, %v1831_v39 }
 0xedf   :  { %v4373_v54 = vadd.f32 %v1961_v36, %v3810_v0 }
 0xee0   :  { %v1837_v48 = vadd.f32 %v1835_v47, %v3823_v15 }
 0xee1   :  { %v1965_v50 = vsel %vm225_vm8, %v4373_v54, -inf }
 0xee2   :  { %1966 = vmax.xlane.f32.xlu2 %v1965_v50  ;;  %v1841_v51 = vsel %vm229_vm12, %v1837_v48, -inf }
 0xee3   :  { %1842 = vmax.xlane.f32.xlu1 %v1841_v51 }
 0xee4   :  { %v1958_v49 = vpop.f32.mrf.mxu3 }
 0xee5   :  { %v1962_v43 = vmul.f32 0.35355338, %v1958_v49  ;;  %v2082_v52 = vpop.f32.mrf.mxu2 }
 0xee6   :  { %v2088_v4 = vmul.f32 0.35355338, %v2082_v52 }
 0xee7   :  { %v4380_v53 = vadd.f32 %v1962_v43, %v3823_v15 }
 0xee8   :  { %v2090_v56 = vadd.f32 %v2088_v4, %v3810_v0 }
 0xee9   :  { %v1968_v59 = vsel %vm229_vm12, %v4380_v53, -inf }
 0xeea   :  { %v2092_v60 = vsel %vm225_vm8, %v2090_v56, -inf }
 0xeeb   :  { %2093 = vmax.xlane.f32.xlu0 %v2092_v60  ;;  %1969 = vmax.xlane.f32.xlu1 %v1968_v59 }
 0xeed   :  { %v2085_v61 = vpop.f32.mrf.mxu2 }
 0xeee   :  { %v2089_v14 = vmul.f32 0.35355338, %v2085_v61 }
 0xef0   :  { %v2091_v32 = vadd.f32 %v2089_v14, %v3823_v15 }
 0xef2   :  { %v2095_v1 = vsel %vm229_vm12, %v2091_v32, -inf }
 0xef3   :  { %2096 = vmax.xlane.f32.xlu2 %v2095_v1 }
 0xf0b   :  { %1886 = vrot.lane.b32.xlu2 %v4313_v45, %s4816_s16 }
 0xf40   :  { %v1713_v7 = vpop.xlane.xlu1 %1712 }
 0xf41   :  { %v1717_v11 = vsub.f32 %v1709_v37, %v1713_v7 }
 0xf43   :  { %v1719_v0 = vmul.f32 1.442695, %v1717_v11 }
 0xf45   :  { %3494 = vpow2.f32 %v1719_v0 }
 0xf48   :  { %v1716_v46 = vpop.xlane.xlu0 %1715 }
 0xf49   :  { %v1718_v13 = vsub.f32 %v1710_v63, %v1716_v46 }
 0xf4b   :  { %v4390_v18 = vpop.eup %3494  ;;  %v1721_v21 = vmul.f32 1.442695, %v1718_v13 }
 0xf4c   :  { %v1723_v38 = vsel %vm225_vm8, %v4390_v18, 0.0 }
 0xf4d   :  { %3496 = vpow2.f32 %v1721_v21  ;;  %v1840_v15 = vpop.xlane.xlu2 %1839  ;;  %1724 = vadd.xlane.f32.xlu0 %v1723_v38 }
 0xf4e   :  { %v1844_v24 = vsub.f32 %v1836_v9, %v1840_v15 }
 0xf50   :  { %v1846_v27 = vmul.f32 1.442695, %v1844_v24 }
 0xf52   :  { %3498 = vpow2.f32 %v1846_v27 }
 0xf53   :  { %v4394_v29 = vpop.eup %3496 }
 0xf54   :  { %v1726_v25 = vsel %vm229_vm12, %v4394_v29, 0.0 }
 0xf55   :  { %1727 = vadd.xlane.f32.xlu2 %v1726_v25  ;;  %v1967_v31 = vpop.xlane.xlu2 %1966 }
 0xf56   :  { %v1843_v44 = vpop.xlane.xlu1 %1842  ;;  %v1971_v28 = vsub.f32 %v4373_v54, %v1967_v31 }
 0xf57   :  { %v1845_v5 = vsub.f32 %v1837_v48, %v1843_v44 }
 0xf58   :  { %v4398_v30 = vpop.eup %3498  ;;  %v1973_v40 = vmul.f32 1.442695, %v1971_v28 }
 0xf59   :  { %v1850_v17 = vsel %vm225_vm8, %v4398_v30, 0.0  ;;  %v1848_v55 = vmul.f32 1.442695, %v1845_v5 }
 0xf5a   :  { %1851 = vadd.xlane.f32.xlu1 %v1850_v17 }
 0xf5b   :  { %3500 = vpow2.f32 %v1848_v55 }
 0xf5e   :  { %v2094_v34 = vpop.xlane.xlu0 %2093  ;;  %v1970_v58 = vpop.xlane.xlu1 %1969 }
 0xf5f   :  { %v2098_v10 = vsub.f32 %v2090_v56, %v2094_v34  ;;  %v1972_v63 = vsub.f32 %v4380_v53, %v1970_v58 }
 0xf61   :  { %1759 = vrot.lane.b32.xlu0 %v4313_v45, %s3614_s26  ;;  %v2100_v62 = vmul.f32 1.442695, %v2098_v10  ;;  %v4414_v35 = vpop.eup %3500  ;;  %v1975_v2 = vmul.f32 1.442695, %v1972_v63 }
 0xf63   :  { %3502 = vpow2.f32 %v2100_v62 }
 0xf66   :  { %v2097_v8 = vpop.xlane.xlu2 %2096 }
 0xf67   :  { %v2099_v20 = vsub.f32 %v2091_v32, %v2097_v8 }
 0xf69   :  { %v2102_v37 = vmul.f32 1.442695, %v2099_v20  ;;  %v4419_v23 = vpop.eup %3502 }
 0xf6b   :  { %3504 = vpow2.f32 %v2102_v37 }
 0xf6c   :  { %3506 = vpow2.f32 %v1973_v40 }
 0xf6d   :  { %2015 = vrot.lane.b32.xlu2 %v4317_v22, %s4817_s17  ;;  %3508 = vpow2.f32 %v1975_v2 }
 0xf6e   :  { %v4436_v39 = vpop.permute.xlu2 %1886 }
 0xf71   :  { %v4424_v6 = vpop.eup %3504 }
 0xf72   :  { %v4426_v41 = vpop.eup %3506  ;;  %v2107_v9 = vsel %vm229_vm12, %v4424_v6, 0.0 }
 0xf73   :  { %1888 = vrot.lane.b32.xlu1 %v4317_v22, %s4816_s16  ;;  %v1977_v42 = vsel %vm225_vm8, %v4426_v41, 0.0  ;;  %v4432_v33 = vpop.eup %3508 }
 0xf74   :  { %v1980_v36 = vsel %vm229_vm12, %v4432_v33, 0.0 }
 0xf75   :  { %2142 = vrot.lane.b32.xlu2 %v4317_v22, %s4818_s18  ;;  %v1853_v22 = vsel %vm229_vm12, %v4414_v35, 0.0 }
 0xf7d   :  { %2013 = vrot.lane.b32.xlu2 %v4313_v45, %s4817_s17 }
 0xf85   :  { %2140 = vrot.lane.b32.xlu2 %v4313_v45, %s4818_s18  ;;  %v2104_v45 = vsel %vm225_vm8, %v4419_v23, 0.0 }
 0xf8b   :  { %1854 = vadd.xlane.f32.xlu0 %v1853_v22 }
 0xf93   :  { %2105 = vadd.xlane.f32.xlu0 %v2104_v45 }
 0xf9b   :  { %2108 = vadd.xlane.f32.xlu0 %v2107_v9 }
 0xf9d   :  { %1978 = vadd.xlane.f32.xlu1 %v1977_v42 }
 0xfa5   :  { %1981 = vadd.xlane.f32.xlu1 %v1980_v36 }
 0xfc0   :  { %v1725_v47 = vpop.xlane.xlu0 %1724 }
 0xfc1   :  { %3510 = vrcp.f32 %v1725_v47  ;;  %v1740_v49 = vand.u32 2147483648, %v1725_v47  ;;  %v1738_v52 = vand.u32 2147483647, %v1725_v47  ;;  %vm1734_vm1 = vweird.f32 %v1725_v47 }
 0xfc3   :  { %v1741_v59 = vor.u32 1.1754944e-38, %v1740_v49  ;;  %vm1739_vm13 = vcmp.eq.f32.partialorder %v1738_v52, 8.507059e+37 }
 0xfc7   :  { %v3511_v54 = vpop.eup %3510 }
 0xfc8   :  { %v1730_v48 = vmul.f32 %v3511_v54, %v1725_v47  ;;  %v1728_v50 = vpop.xlane.xlu2 %1727  ;;  %vm1735_vm0 = vweird.f32 %v3511_v54 }
 0xfc9   :  { %3512 = vrcp.f32 %v1728_v50  ;;  %vm1736_vm12 = vmor %vm1734_vm1, %vm1735_vm0  ;;  %v1755_v11 = vand.u32 2147483648, %v1728_v50  ;;  %v1753_v21 = vand.u32 2147483647, %v1728_v50  ;;  %vm1749_vm11 = vweird.f32 %v1728_v50 }
 0xfca   :  { %v1731_v51 = vsub.f32 1.0, %v1730_v48 }
 0xfcb   :  { %v1756_v24 = vor.u32 1.1754944e-38, %v1755_v11  ;;  %vm1754_vm0 = vcmp.eq.f32.partialorder %v1753_v21, 8.507059e+37 }
 0xfcc   :  { %v1732_v43 = vmul.f32 %v3511_v54, %v1731_v51 }
 0xfcd   :  { %v1852_v4 = vpop.xlane.xlu1 %1851 }
 0xfce   :  { %v1733_v53 = vadd.f32 %v3511_v54, %v1732_v43  ;;  %3514 = vrcp.f32 %v1852_v4  ;;  %v1867_v31 = vand.u32 2147483648, %v1852_v4  ;;  %v1865_v34 = vand.u32 2147483647, %v1852_v4 }
 0xfcf   :  { %v3513_v56 = vpop.eup %3512 }
 0xfd0   :  { %v1737_v60 = vsel %vm1736_vm12, %v3511_v54, %v1733_v53  ;;  %v1745_v61 = vmul.f32 %v3513_v56, %v1728_v50  ;;  %v2016_v14 = vpop.permute.xlu2 %2015  ;;  %vm1750_vm9 = vweird.f32 %v3513_v56  ;;  %vm1861_vm12 = vweird.f32 %v1852_v4 }
 0xfd1   :  { %v1742_v32 = vsel %vm1739_vm13, %v1741_v59, %v1737_v60  ;;  %vm1751_vm14 = vmor %vm1749_vm11, %vm1750_vm9  ;;  %v1868_v8 = vor.u32 1.1754944e-38, %v1867_v31  ;;  %vm1866_vm9 = vcmp.eq.f32.partialorder %v1865_v34, 8.507059e+37 }
 0xfd2   :  { %v1746_v1 = vsub.f32 1.0, %v1745_v61  ;;  %v1743_v7 = vmul.f32 %v4390_v18, %v1742_v32 }
 0xfd3   :  { %v1760_v0 = vpop.permute.xlu0 %1759 }
 0xfd4   :  { %v3515_v46 = vpop.eup %3514  ;;  %v1747_v13 = vmul.f32 %v3513_v56, %v1746_v1  ;;  %1787 = vmatpush.msra.mxu1 %v1760_v0 }
 0xfd5   :  { %v1857_v38 = vmul.f32 %v3515_v46, %v1852_v4  ;;  %3274 = vmatmul.msk.f32.vlgmr.msra.gmra.mxu1 %vm225_vm8, %v1743_v7  ;;  %vm1862_vm1 = vweird.f32 %v3515_v46 }
 0xfd6   :  { %3287 = vmatpush.msk.msrb.mxu1 %vm286_vm4, %v2016_v14  ;;  %v1748_v15 = vadd.f32 %v3513_v56, %v1747_v13  ;;  %vm1863_vm13 = vmor %vm1861_vm12, %vm1862_vm1 }
 0xfd7   :  { %v1858_v27 = vsub.f32 1.0, %v1857_v38 }
 0xfd8   :  { %v2143_v25 = vpop.permute.xlu2 %2142  ;;  %v1752_v17 = vsel %vm1751_vm14, %v3513_v56, %v1748_v15 }
 0xfd9   :  { %v1859_v18 = vmul.f32 %v3515_v46, %v1858_v27  ;;  %v1757_v44 = vsel %vm1754_vm0, %v1756_v24, %v1752_v17 }
 0xfda   :  { %v1758_v5 = vmul.f32 %v4394_v29, %v1757_v44 }
 0xfdb   :  { %v1860_v55 = vadd.f32 %v3515_v46, %v1859_v18 }
 0xfdd   :  { %3275 = vmatmul.msk.f32.gmra.mxu1 %vm225_vm8, %v1758_v5  ;;  %v1864_v62 = vsel %vm1863_vm13, %v3515_v46, %v1860_v55 }
 0xfde   :  { %v1869_v20 = vsel %vm1866_vm9, %v1868_v8, %v1864_v62 }
 0xfdf   :  { %v1870_v28 = vmul.f32 %v4398_v30, %v1869_v20 }
 0xfe0   :  { %v2014_v10 = vpop.permute.xlu2 %2013 }
 0xfe1   :  { %2041 = vmatpush.msrb.mxu1 %v2014_v10 }
 0xfe5   :  { %v1889_v22 = vpop.permute.xlu1 %1888 }
 0xfe6   :  { %3280 = vmatpush.msk.msrb.mxu0 %vm286_vm4, %v1889_v22 }
 0xfe8   :  { %1914 = vmatpush.msrb.mxu0 %v4436_v39  ;;  %v2141_v29 = vpop.permute.xlu2 %2140 }
 0xfe9   :  { %3281 = vmatmul.msk.f32.vlgmr.msrb.gmra.mxu0 %vm225_vm8, %v1870_v28 }
 0xfea   :  { %3294 = vmatpush.msk.msra.mxu0 %vm286_vm4, %v2143_v25 }
 0xfec   :  { %2168 = vmatpush.msra.mxu0 %v2141_v29 }
 0xffe   :  { %v1855_v37 = vpop.xlane.xlu0 %1854 }
 0xfff   :  { %3516 = vrcp.f32 %v1855_v37  ;;  %v1882_v2 = vand.u32 2147483648, %v1855_v37  ;;  %v1880_v42 = vand.u32 2147483647, %v1855_v37  ;;  %vm1876_vm14 = vweird.f32 %v1855_v37 }
0x1001   :  { %v1883_v39 = vor.u32 1.1754944e-38, %v1882_v2  ;;  %vm1881_vm4 = vcmp.eq.f32.partialorder %v1880_v42, 8.507059e+37 }
0x1005   :  { %v3517_v40 = vpop.eup %3516 }
0x1006   :  { %v1872_v58 = vmul.f32 %v3517_v40, %v1855_v37  ;;  %v2106_v45 = vpop.xlane.xlu0 %2105  ;;  %vm1877_vm11 = vweird.f32 %v3517_v40 }
0x1007   :  { %3518 = vrcp.f32 %v2106_v45  ;;  %vm1878_vm0 = vmor %vm1876_vm14, %vm1877_vm11  ;;  %v2121_v52 = vand.u32 2147483648, %v2106_v45  ;;  %v2119_v53 = vand.u32 2147483647, %v2106_v45  ;;  %vm2115_vm12 = vweird.f32 %v2106_v45 }
0x1008   :  { %v1873_v63 = vsub.f32 1.0, %v1872_v58 }
0x1009   :  { %v2122_v60 = vor.u32 1.1754944e-38, %v2121_v52  ;;  %vm2120_vm9 = vcmp.eq.f32.partialorder %v2119_v53, 8.507059e+37 }
0x100a   :  { %v1874_v9 = vmul.f32 %v3517_v40, %v1873_v63 }
0x100c   :  { %v1875_v30 = vadd.f32 %v3517_v40, %v1874_v9 }
0x100d   :  { %v3519_v36 = vpop.eup %3518 }
0x100e   :  { %v2111_v47 = vmul.f32 %v3519_v36, %v2106_v45  ;;  %v2109_v54 = vpop.xlane.xlu0 %2108  ;;  %v1879_v48 = vsel %vm1878_vm0, %v3517_v40, %v1875_v30  ;;  %vm2116_vm1 = vweird.f32 %v3519_v36 }
0x100f   :  { %3520 = vrcp.f32 %v2109_v54  ;;  %v1884_v50 = vsel %vm1881_vm4, %v1883_v39, %v1879_v48  ;;  %vm2117_vm13 = vmor %vm2115_vm12, %vm2116_vm1  ;;  %v2136_v46 = vand.u32 2147483648, %v2109_v54  ;;  %v2134_v38 = vand.u32 2147483647, %v2109_v54  ;;  %v3268_v39 = vld [vmem:[%s4797_s6 + $0x38] sm:$0xff]  ;;  %v3265_v48 = vld [vmem:[%s4797_s6 + $0x20] sm:$0xff] }
0x1010   :  { %v2112_v51 = vsub.f32 1.0, %v2111_v47  ;;  %v1979_v49 = vpop.xlane.xlu1 %1978  ;;  %v1885_v43 = vmul.f32 %v4414_v35, %v1884_v50  ;;  %vm2130_vm14 = vweird.f32 %v2109_v54  ;;  %v3267_v47 = vld [vmem:[%s4797_s6 + $0x30] sm:$0xff]  ;;  %2225 = vmatpush.msra.mxu3 %v3268_v39 }
0x1011   :  { %3522 = vrcp.f32 %v1979_v49  ;;  %v1994_v15 = vand.u32 2147483648, %v1979_v49  ;;  %v1992_v27 = vand.u32 2147483647, %v1979_v49  ;;  %v2137_v17 = vor.u32 1.1754944e-38, %v2136_v46 }
0x1012   :  { %v2113_v4 = vmul.f32 %v3519_v36, %v2112_v51  ;;  %3282 = vmatmul.msk.f32.gmra.mxu0 %vm225_vm8, %v1885_v43  ;;  %vm1988_vm1 = vweird.f32 %v1979_v49  ;;  %vm2135_vm12 = vcmp.eq.f32.partialorder %v2134_v38, 8.507059e+37  ;;  %2226 = vmatpush.msra.mxu3 %v3267_v47  ;;  %v3308_v38 = vld [vmem:[%s4800_s9 + $0x38] sm:$0xff] }
0x1013   :  { %v1995_v5 = vor.u32 1.1754944e-38, %v1994_v15  ;;  %v3307_v15 = vld [vmem:[%s4800_s9 + $0x30] sm:$0xff]  ;;  %2341 = vmatpush.msra.mxu2 %v3308_v38 }
0x1014   :  { %v2114_v56 = vadd.f32 %v3519_v36, %v2113_v4 }
0x1015   :  { %v3521_v59 = vpop.eup %3520  ;;  %2342 = vmatpush.msra.mxu2 %v3307_v15 }
0x1016   :  { %v2118_v61 = vsel %vm2117_vm13, %v3519_v36, %v2114_v56  ;;  %v2126_v14 = vmul.f32 %v3521_v59, %v2109_v54  ;;  %vm2131_vm11 = vweird.f32 %v3521_v59  ;;  %v3266_v54 = vld [vmem:[%s4797_s6 + $0x28] sm:$0xff] }
0x1017   :  { %v3523_v32 = vpop.eup %3522  ;;  %v2123_v1 = vsel %vm2120_vm9, %v2122_v60, %v2118_v61  ;;  %vm2132_vm4 = vmor %vm2130_vm14, %vm2131_vm11  ;;  %vm1993_vm9 = vcmp.eq.f32.partialorder %v1992_v27, 8.507059e+37  ;;  %2227 = vmatpush.msra.mxu3 %v3266_v54 }
0x1018   :  { %v2127_v7 = vsub.f32 1.0, %v2126_v14  ;;  %v1984_v11 = vmul.f32 %v3523_v32, %v1979_v49  ;;  %v1982_v35 = vpop.xlane.xlu1 %1981  ;;  %v2124_v0 = vmul.f32 %v4419_v23, %v2123_v1  ;;  %vm1989_vm0 = vweird.f32 %v3523_v32 }
0x1019   :  { %3524 = vrcp.f32 %v1982_v35  ;;  %vm1990_vm13 = vmor %vm1988_vm1, %vm1989_vm0  ;;  %v2009_v22 = vand.u32 2147483648, %v1982_v35  ;;  %v2007_v29 = vand.u32 2147483647, %v1982_v35  ;;  %vm2003_vm14 = vweird.f32 %v1982_v35  ;;  %2228 = vmatpush.msra.mxu3 %v3265_v48 }
0x101a   :  { %v2128_v13 = vmul.f32 %v3521_v59, %v2127_v7  ;;  %v1985_v21 = vsub.f32 1.0, %v1984_v11  ;;  %3295 = vmatmul.msk.f32.vlgmr.msra.gmra.mxu0 %vm225_vm8, %v2124_v0 }
0x101b   :  { %v2010_v40 = vor.u32 1.1754944e-38, %v2009_v22  ;;  %v3299_v22 = vld [vmem:[%s4798_s7 + $0x20] sm:$0xff] }
0x101c   :  { %v1986_v24 = vmul.f32 %v3523_v32, %v1985_v21  ;;  %v2129_v25 = vadd.f32 %v3521_v59, %v2128_v13 }
0x101e   :  { %v1987_v18 = vadd.f32 %v3523_v32, %v1986_v24  ;;  %v2133_v44 = vsel %vm2132_vm4, %v3521_v59, %v2129_v25  ;;  %vm2008_vm4 = vcmp.eq.f32.partialorder %v2007_v29, 8.507059e+37  ;;  %v3576_v24 = vld [vmem:[%s4792_s1] sm:$0xff]  ;;  %v3577_v25 = vld [vmem:[%s4792_s1 + $0x8] sm:$0xff] }
0x101f   :  { %v3525_v23 = vpop.eup %3524  ;;  %v2138_v55 = vsel %vm2135_vm12, %v2137_v17, %v2133_v44 }
0x1020   :  { %v1991_v31 = vsel %vm1990_vm13, %v3523_v32, %v1987_v18  ;;  %v1999_v34 = vmul.f32 %v3525_v23, %v1982_v35  ;;  %v2139_v10 = vmul.f32 %v4424_v6, %v2138_v55  ;;  %vm2004_vm11 = vweird.f32 %v3525_v23 }
0x1021   :  { %v1996_v62 = vsel %vm1993_vm9, %v1995_v5, %v1991_v31  ;;  %vm2005_vm0 = vmor %vm2003_vm14, %vm2004_vm11  ;;  %v2206_v32 = vperm.slane %v4310_v16, 1 }
0x1022   :  { %v2000_v8 = vsub.f32 1.0, %v1999_v34  ;;  %3296 = vmatmul.msk.f32.gmra.mxu0 %vm225_vm8, %v2139_v10  ;;  %v1997_v20 = vmul.f32 %v4426_v41, %v1996_v62  ;;  %v3302_v62 = vld [vmem:[%s4798_s7 + $0x38] sm:$0xff] }
0x1023   :  { %2312 = vmatpush.msra.mxu1 %v3302_v62 }
0x1024   :  { %v2001_v28 = vmul.f32 %v3525_v23, %v2000_v8  ;;  %3288 = vmatmul.msk.f32.vlgmr.msrb.gmra.mxu1 %vm225_vm8, %v1997_v20  ;;  %v3301_v8 = vld [vmem:[%s4798_s7 + $0x30] sm:$0xff]  ;;  %v3300_v20 = vld [vmem:[%s4798_s7 + $0x28] sm:$0xff] }
0x1025   :  { %2313 = vmatpush.msra.mxu1 %v3301_v8 }
0x1026   :  { %v2002_v37 = vadd.f32 %v3525_v23, %v2001_v28 }
0x1027   :  { %2314 = vmatpush.msra.mxu1 %v3300_v20 }
0x1028   :  { %v2006_v58 = vsel %vm2005_vm0, %v3525_v23, %v2002_v37 }
0x1029   :  { %v2011_v45 = vsel %vm2008_vm4, %v2010_v40, %v2006_v58  ;;  %2315 = vmatpush.msra.mxu1 %v3299_v22  ;;  %v2328_v40 = vperm.slane %v4310_v16, 3 }
0x102a   :  { %v2012_v6 = vmul.f32 %v4432_v33, %v2011_v45 }
0x102c   :  { %3289 = vmatmul.msk.f32.gmra.mxu1 %vm225_vm8, %v2012_v6 }
0x1052   :  { %v1789_v41 = vpop.f32.mrf.mxu1 }
0x105a   :  { %v1792_v42 = vpop.f32.mrf.mxu1 }
0x1066   :  { %v1916_v63 = vpop.f32.mrf.mxu0 }
0x1067   :  { %2178 = vrot.lane.b32.xlu2 %v1916_v63, %s3620_s30 }
0x108f   :  { %v1919_v2 = vpop.f32.mrf.mxu0 }
0x1090   :  { %2180 = vrot.lane.b32.xlu2 %v1919_v2, %s3620_s30 }
0x1097   :  { %v2170_v9 = vpop.f32.mrf.mxu0 }
0x1098   :  { %2194 = vrot.lane.b32.xlu0 %v2170_v9, %s3621_s15 }
0x109f   :  { %v2173_v33 = vpop.f32.mrf.mxu0 }
0x10a1   :  { %v2043_v30 = vpop.f32.mrf.mxu1 }
0x10a2   :  { %2186 = vrot.lane.b32.xlu1 %v2043_v30, %s3619_s29 }
0x10a9   :  { %v2046_v36 = vpop.f32.mrf.mxu1 }
0x10aa   :  { %2188 = vrot.lane.b32.xlu2 %v2046_v36, %s3619_s29 }
0x10b2   :  { %2196 = vrot.lane.b32.xlu2 %v2173_v33, %s3621_s15 }
0x10c1   :  { %v2179_v50 = vpop.permute.xlu2 %2178 }
0x10c2   :  { %v2200_v43 = vsel %vm189_vm3, %v1789_v41, %v2179_v50  ;;  %v4543_v50 = vld [vmem:[%s4803_s12 + $0x18] sm:$0x1f] }
0x10ea   :  { %v2181_v51 = vpop.permute.xlu2 %2180 }
0x10eb   :  { %v2201_v60 = vsel %vm189_vm3, %v1792_v42, %v2181_v51  ;;  %v2282_v51 = vperm.slane %v4310_v16, 7 }
0x1104   :  { %v2189_v49 = vpop.permute.xlu2 %2188 }
0x1105   :  { %v2203_v61 = vsel %vm719_vm6, %v2201_v60, %v2189_v49 }
0x110a   :  { %v2195_v4 = vpop.permute.xlu0 %2194 }
0x110c   :  { %v2197_v59 = vpop.permute.xlu2 %2196 }
0x110d   :  { %v2205_v14 = vsel %vm722_vm7, %v2203_v61, %v2197_v59 }
0x1114   :  { %v2187_v52 = vpop.permute.xlu1 %2186 }
0x1115   :  { %v2202_v53 = vsel %vm719_vm6, %v2200_v43, %v2187_v52 }
0x1116   :  { %v2204_v56 = vsel %vm722_vm7, %v2202_v53, %v2195_v4  ;;  %v2285_v4 = vperm.slane %v4543_v50, 0 }
0x1117   :  { %3297 = vmatmul.msk.f32.vlgmr.msra.gmra.mxu3 %vm149_vm2, %v2204_v56 }
0x111f   :  { %3298 = vmatmul.msk.f32.gmra.mxu3 %vm149_vm2, %v2205_v14 }
0x119a   :  { %v2230_v1 = vpop.f32.mrf.mxu3 }
0x119b   :  { %v2231_v7 = vadd.f32 %v2230_v1, %v2206_v32 }
0x119d   :  { %v2236_v11 = vadd.f32 %v2231_v7, %v4299_v19  ;;  %v3306_v19 = vld [vmem:[%s4800_s9 + $0x28] sm:$0xff] }
0x119e   :  { %2343 = vmatpush.msra.mxu2 %v3306_v19 }
0x119f   :  { %v2238_v35 = vsel %vm149_vm2, %v2236_v11, 0.0 }
0x11a0   :  { %2239 = vadd.xlane.f32.xlu0 %v2238_v35  ;;  %v2293_v35 = vperm.slane %v4310_v16, 2 }
0x11a2   :  { %v2233_v0 = vpop.f32.mrf.mxu3 }
0x11a3   :  { %v2234_v46 = vadd.f32 %v2233_v0, %v2206_v32 }
0x11a5   :  { %v2237_v13 = vadd.f32 %v2234_v46, %v4303_v3  ;;  %v3305_v3 = vld [vmem:[%s4800_s9 + $0x20] sm:$0xff] }
0x11a6   :  { %2344 = vmatpush.msra.mxu2 %v3305_v3 }
0x11a7   :  { %v2241_v21 = vsel %vm760_vm10, %v2237_v13, 0.0  ;;  %3309 = vmatmul.msk.f32.vlgmr.msra.gmra.mxu2 %vm149_vm2, %v3576_v24 }
0x11a8   :  { %2242 = vadd.xlane.f32.xlu1 %v2241_v21 }
0x11af   :  { %3310 = vmatmul.msk.f32.gmra.mxu2 %vm149_vm2, %v3577_v25 }
0x1213   :  { %v2240_v27 = vpop.xlane.xlu0 %2239 }
0x1214   :  { %v2244_v17 = vmul.f32 %v2240_v27, %v3998_v12 }
0x1216   :  { %v2246_v18 = vsub.f32 %v2236_v11, %v2244_v17 }
0x1218   :  { %v2248_v44 = vmul.f32 %v2246_v18, %v2246_v18 }
0x121a   :  { %v2250_v23 = vsel %vm149_vm2, %v2248_v44, 0.0 }
0x121b   :  { %v2243_v5 = vpop.xlane.xlu1 %2242  ;;  %2251 = vadd.xlane.f32.xlu2 %v2250_v23 }
0x121c   :  { %v2245_v55 = vmul.f32 %v2243_v5, %v3998_v12 }
0x121e   :  { %v2247_v31 = vsub.f32 %v2237_v13, %v2245_v55 }
0x1220   :  { %v2249_v34 = vmul.f32 %v2247_v31, %v2247_v31 }
0x1222   :  { %v2253_v10 = vsel %vm760_vm10, %v2249_v34, 0.0 }
0x1223   :  { %2254 = vadd.xlane.f32.xlu0 %v2253_v10 }
0x122a   :  { %v2346_v58 = vpop.f32.mrf.mxu2 }
0x122b   :  { %v4527_v45 = vadd.f32 %v2346_v58, %v2328_v40 }
0x1232   :  { %v2349_v42 = vpop.f32.mrf.mxu2 }
0x1233   :  { %2483 = vrot.lane.b32.xlu2 %v4527_v45, %s3607_s21  ;;  %v4532_v36 = vadd.f32 %v2349_v42, %v2328_v40 }
0x1235   :  { %2485 = vrot.lane.b32.xlu1 %v4532_v36, %s3607_s21  ;;  %3315 = vmatpush.xpose.msk.msrb.mxu0 %vm189_vm3, %v4532_v36 }
0x1239   :  { %3316 = vmatpush.xpose.msk.msrb.mxu0 %vm189_vm3, %v4527_v45 }
0x123b   :  { %2609 = vrot.lane.b32.xlu2 %v4527_v45, %s3613_s25 }
0x123d   :  { %2737 = vrot.lane.b32.xlu1 %v4532_v36, %s3612_s24 }
0x128e   :  { %v2252_v28 = vpop.xlane.xlu2 %2251 }
0x128f   :  { %v2256_v29 = vmul.f32 %v2252_v28, %v3998_v12 }
0x1291   :  { %v2258_v37 = vadd.f32 1e-05, %v2256_v29 }
0x1293   :  { %3526 = vrsqrt.f32 %v2258_v37  ;;  %vm2266_vm1 = vweird.f32 %v2258_v37 }
0x1296   :  { %v2255_v6 = vpop.xlane.xlu0 %2254  ;;  %v2484_v0 = vpop.permute.xlu2 %2483 }
0x1297   :  { %v2257_v63 = vmul.f32 %v2255_v6, %v3998_v12 }
0x1299   :  { %v3527_v41 = vpop.eup %3526  ;;  %v2259_v2 = vadd.f32 1e-05, %v2257_v63 }
0x129a   :  { %v2261_v9 = vmul.f32 %v3527_v41, %v2258_v37  ;;  %vm2267_vm8 = vweird.f32 %v3527_v41 }
0x129b   :  { %3528 = vrsqrt.f32 %v2259_v2  ;;  %vm2268_vm12 = vmor %vm2266_vm1, %vm2267_vm8  ;;  %vm2276_vm9 = vweird.f32 %v2259_v2 }
0x129c   :  { %v2262_v30 = vmul.f32 %v3527_v41, %v2261_v9 }
0x129e   :  { %v2263_v33 = vmul.f32 0.5, %v2262_v30  ;;  %v2610_v15 = vpop.permute.xlu2 %2609 }
0x12a0   :  { %v2264_v39 = vsub.f32 1.5, %v2263_v33 }
0x12a1   :  { %v3529_v47 = vpop.eup %3528 }
0x12a2   :  { %v2265_v54 = vmul.f32 %v3527_v41, %v2264_v39  ;;  %v2271_v48 = vmul.f32 %v3529_v47, %v2259_v2  ;;  %vm2277_vm13 = vweird.f32 %v3529_v47 }
0x12a3   :  { %vm2278_vm11 = vmor %vm2276_vm9, %vm2277_vm13 }
0x12a4   :  { %v2269_v49 = vsel %vm2268_vm12, %v3527_v41, %v2265_v54  ;;  %v2272_v43 = vmul.f32 %v3529_v47, %v2271_v48 }
0x12a5   :  { %v2280_v52 = vmul.f32 %v2269_v49, %v2246_v18 }
0x12a6   :  { %v2273_v53 = vmul.f32 0.5, %v2272_v43 }
0x12a7   :  { %v2283_v56 = vmul.f32 %v2282_v51, %v2280_v52  ;;  %v2486_v11 = vpop.permute.xlu1 %2485 }
0x12a8   :  { %v2274_v59 = vsub.f32 1.5, %v2273_v53  ;;  %3321 = vmatpush.xpose.msk.msrb.mxu1 %vm189_vm3, %v2486_v11 }
0x12a9   :  { %v4551_v60 = vadd.f32 %v2285_v4, %v2283_v56 }
0x12aa   :  { %v2275_v61 = vmul.f32 %v3529_v47, %v2274_v59 }
0x12ab   :  { %3303 = vmatmul.msk.f32.vlgmr.msra.gmra.mxu1 %vm149_vm2, %v4551_v60 }
0x12ac   :  { %v2279_v14 = vsel %vm2278_vm11, %v3529_v47, %v2275_v61  ;;  %3322 = vmatpush.xpose.msk.msrb.mxu1 %vm189_vm3, %v2484_v0  ;;  %v4610_v0 = vpack.i.bf16 %v4527_v45, %v4532_v36 }
0x12ad   :  { %v2281_v32 = vmul.f32 %v2279_v14, %v2247_v31 }
0x12af   :  { %v2284_v1 = vmul.f32 %v2282_v51, %v2281_v32  ;;  %v2738_v16 = vpop.permute.xlu1 %2737 }
0x12b0   :  { %3333 = vmatpush.xpose.msk.msra.mxu1 %vm189_vm3, %v2738_v16 }
0x12b1   :  { %v4555_v7 = vadd.f32 %v2285_v4, %v2284_v1 }
0x12b3   :  { %3304 = vmatmul.msk.f32.gmra.mxu1 %vm149_vm2, %v4555_v7 }
0x1328   :  { %v2317_v46 = vpop.f32.mrf.mxu1 }
0x1329   :  { %v2318_v13 = vadd.f32 %v2317_v46, %v2293_v35 }
0x132b   :  { %2605 = vrot.lane.b32.xlu1 %v2318_v13, %s3613_s25  ;;  %2479 = vrot.lane.b32.xlu0 %v2318_v13, %s3607_s21 }
0x132c   :  { %3317 = vmatmul.msk.f32.vlgmr.msrb.gmra.mxu0 %vm189_vm3, %v2318_v13 }
0x1330   :  { %v2320_v21 = vpop.f32.mrf.mxu1 }
0x1331   :  { %v2321_v38 = vadd.f32 %v2320_v21, %v2293_v35 }
0x1333   :  { %2611 = vrot.lane.b32.xlu0 %v4532_v36, %s3613_s25  ;;  %2733 = vrot.lane.b32.xlu1 %v2321_v38, %s3612_s24 }
0x1334   :  { %2481 = vrot.lane.b32.xlu2 %v2321_v38, %s3607_s21  ;;  %3318 = vmatmul.msk.f32.gmra.mxu0 %vm189_vm3, %v2321_v38 }
0x133b   :  { %2735 = vrot.lane.b32.xlu0 %v4527_v45, %s3612_s24 }
0x133c   :  { %2731 = vrot.lane.b32.xlu2 %v2318_v13, %s3612_s24 }
0x1343   :  { %2607 = vrot.lane.b32.xlu0 %v2321_v38, %s3613_s25 }
0x138e   :  { %v2482_v3 = vpop.permute.xlu2 %2481 }
0x1396   :  { %v2732_v5 = vpop.permute.xlu2 %2731 }
0x139d   :  { %v2480_v19 = vpop.permute.xlu0 %2479  ;;  %v2606_v17 = vpop.permute.xlu1 %2605 }
0x139e   :  { %3323 = vmatmul.msk.f32.vlgmr.msrb.gmra.mxu1 %vm189_vm3, %v2480_v19 }
0x13a5   :  { %v2612_v24 = vpop.permute.xlu0 %2611  ;;  %v2734_v8 = vpop.permute.xlu1 %2733 }
0x13a6   :  { %3324 = vmatmul.msk.f32.gmra.mxu1 %vm189_vm3, %v2482_v3  ;;  %3327 = vmatpush.xpose.msk.msra.mxu0 %vm189_vm3, %v2612_v24 }
0x13a9   :  { %v2386_v27 = vpop.f32.mrf.mxu0 }
0x13aa   :  { %v2392_v25 = vmul.f32 0.35355338, %v2386_v27  ;;  %3328 = vmatpush.xpose.msk.msra.mxu0 %vm189_vm3, %v2610_v15 }
0x13ac   :  { %v2394_v18 = vadd.f32 %v2392_v25, %v4080_v26 }
0x13ad   :  { %3329 = vmatmul.msk.f32.vlgmr.msra.gmra.mxu0 %vm189_vm3, %v2606_v17  ;;  %v2736_v44 = vpop.permute.xlu0 %2735 }
0x13ae   :  { %v2396_v23 = vsel %vm719_vm6, %v2394_v18, -inf  ;;  %3334 = vmatpush.xpose.msk.msra.mxu1 %vm189_vm3, %v2736_v44 }
0x13af   :  { %2397 = vmax.xlane.f32.xlu2 %v2396_v23 }
0x13b1   :  { %v2389_v55 = vpop.f32.mrf.mxu0  ;;  %3335 = vmatmul.msk.f32.vlgmr.msra.gmra.mxu1 %vm189_vm3, %v2732_v5 }
0x13b2   :  { %v2393_v31 = vmul.f32 0.35355338, %v2389_v55 }
0x13b4   :  { %v2395_v34 = vadd.f32 %v2393_v31, %v4090_v57 }
0x13b5   :  { %v2608_v10 = vpop.permute.xlu0 %2607 }
0x13b6   :  { %v2399_v62 = vsel %vm929_vm5, %v2395_v34, -inf  ;;  %3330 = vmatmul.msk.f32.gmra.mxu0 %vm189_vm3, %v2608_v10 }
0x13b7   :  { %2400 = vmax.xlane.f32.xlu1 %v2399_v62 }
0x13b9   :  { %3336 = vmatmul.msk.f32.gmra.mxu1 %vm189_vm3, %v2734_v8 }
0x141b   :  { %v2512_v20 = vpop.f32.mrf.mxu1 }
0x141c   :  { %v2518_v22 = vmul.f32 0.35355338, %v2512_v20 }
0x141e   :  { %v2520_v28 = vadd.f32 %v2518_v22, %v4080_v26 }
0x1420   :  { %v2522_v29 = vsel %vm719_vm6, %v2520_v28, -inf }
0x1421   :  { %2523 = vmax.xlane.f32.xlu0 %v2522_v29 }
0x1422   :  { %v2398_v37 = vpop.xlane.xlu2 %2397 }
0x1423   :  { %v2402_v40 = vsub.f32 %v2394_v18, %v2398_v37  ;;  %v2515_v58 = vpop.f32.mrf.mxu1 }
0x1424   :  { %v2519_v6 = vmul.f32 0.35355338, %v2515_v58 }
0x1425   :  { %v2404_v63 = vmul.f32 1.442695, %v2402_v40 }
0x1426   :  { %v2521_v41 = vadd.f32 %v2519_v6, %v4090_v57 }
0x1427   :  { %3530 = vpow2.f32 %v2404_v63 }
0x1428   :  { %v2525_v2 = vsel %vm929_vm5, %v2521_v41, -inf }
0x1429   :  { %2526 = vmax.xlane.f32.xlu2 %v2525_v2 }
0x142a   :  { %v2638_v9 = vpop.f32.mrf.mxu0  ;;  %v2401_v54 = vpop.xlane.xlu1 %2400 }
0x142b   :  { %v2644_v42 = vmul.f32 0.35355338, %v2638_v9  ;;  %v2403_v49 = vsub.f32 %v2395_v34, %v2401_v54 }
0x142d   :  { %v4592_v30 = vpop.eup %3530  ;;  %v2646_v33 = vadd.f32 %v2644_v42, %v4080_v26  ;;  %v2406_v53 = vmul.f32 1.442695, %v2403_v49 }
0x142e   :  { %v2408_v39 = vsel %vm719_vm6, %v4592_v30, 0.0  ;;  %v2764_v47 = vpop.f32.mrf.mxu1 }
0x142f   :  { %2409 = vadd.xlane.f32.xlu1 %v2408_v39  ;;  %v2770_v48 = vmul.f32 0.35355338, %v2764_v47  ;;  %v2648_v51 = vsel %vm719_vm6, %v2646_v33, -inf  ;;  %3532 = vpow2.f32 %v2406_v53 }
0x1430   :  { %2649 = vmax.xlane.f32.xlu0 %v2648_v51 }
0x1431   :  { %v2772_v43 = vadd.f32 %v2770_v48, %v4080_v26 }
0x1433   :  { %v2641_v52 = vpop.f32.mrf.mxu0  ;;  %v2774_v59 = vsel %vm719_vm6, %v2772_v43, -inf }
0x1434   :  { %v2645_v4 = vmul.f32 0.35355338, %v2641_v52 }
0x1435   :  { %v4604_v26 = vpop.eup %3532 }
0x1436   :  { %v2647_v56 = vadd.f32 %v2645_v4, %v4090_v57  ;;  %v2767_v61 = vpop.f32.mrf.mxu1  ;;  %v2411_v35 = vsel %vm929_vm5, %v4604_v26, 0.0 }
0x1437   :  { %2775 = vmax.xlane.f32.xlu1 %v2774_v59  ;;  %v2771_v14 = vmul.f32 0.35355338, %v2767_v61 }
0x1438   :  { %v2651_v32 = vsel %vm929_vm5, %v2647_v56, -inf }
0x1439   :  { %v2773_v1 = vadd.f32 %v2771_v14, %v4090_v57  ;;  %2652 = vmax.xlane.f32.xlu2 %v2651_v32 }
0x143b   :  { %v2777_v11 = vsel %vm929_vm5, %v2773_v1, -inf }
0x143c   :  { %2778 = vmax.xlane.f32.xlu0 %v2777_v11 }
0x1444   :  { %2412 = vadd.xlane.f32.xlu0 %v2411_v35 }
0x1458   :  { %3397 = vrot.lane.b32.xlu0 %v4610_v0, %s3609_s22 }
0x1460   :  { %3407 = vrot.lane.b32.xlu0 %v4610_v0, %s3610_s23 }
0x1494   :  { %v2524_v57 = vpop.xlane.xlu0 %2523 }
0x1495   :  { %v2528_v46 = vsub.f32 %v2520_v28, %v2524_v57 }
0x1497   :  { %v2530_v13 = vmul.f32 1.442695, %v2528_v46 }
0x1499   :  { %3534 = vpow2.f32 %v2530_v13 }
0x149c   :  { %v2527_v21 = vpop.xlane.xlu2 %2526 }
0x149d   :  { %v2529_v38 = vsub.f32 %v2521_v41, %v2527_v21 }
0x149f   :  { %v4616_v16 = vpop.eup %3534  ;;  %v2532_v15 = vmul.f32 1.442695, %v2529_v38 }
0x14a0   :  { %v2534_v19 = vsel %vm719_vm6, %v4616_v16, 0.0 }
0x14a1   :  { %3536 = vpow2.f32 %v2532_v15  ;;  %2535 = vadd.xlane.f32.xlu2 %v2534_v19 }
0x14a2   :  { %v2410_v45 = vpop.xlane.xlu1 %2409 }
0x14a3   :  { %v2650_v36 = vpop.xlane.xlu0 %2649  ;;  %v2425_v39 = vand.u32 2147483648, %v2410_v45  ;;  %vm2419_vm0 = vweird.f32 %v2410_v45  ;;  %v2423_v47 = vand.u32 2147483647, %v2410_v45 }
0x14a4   :  { %v2654_v3 = vsub.f32 %v2646_v33, %v2650_v36 }
0x14a5   :  { %v2426_v49 = vor.u32 1.1754944e-38, %v2425_v39  ;;  %vm2424_vm8 = vcmp.eq.f32.partialorder %v2423_v47, 8.507059e+37 }
0x14a6   :  { %v2656_v24 = vmul.f32 1.442695, %v2654_v3 }
0x14a7   :  { %v4620_v27 = vpop.eup %3536 }
0x14a8   :  { %3538 = vpow2.f32 %v2656_v24  ;;  %v2537_v25 = vsel %vm929_vm5, %v4620_v27, 0.0 }
0x14a9   :  { %2538 = vadd.xlane.f32.xlu1 %v2537_v25  ;;  %3540 = vrcp.f32 %v2410_v45 }
0x14aa   :  { %v2776_v17 = vpop.xlane.xlu1 %2775 }
0x14ab   :  { %v2780_v5 = vsub.f32 %v2772_v43, %v2776_v17 }
0x14ac   :  { %v2653_v18 = vpop.xlane.xlu2 %2652 }
0x14ad   :  { %v2655_v44 = vsub.f32 %v2647_v56, %v2653_v18  ;;  %v2782_v10 = vmul.f32 1.442695, %v2780_v5 }
0x14ae   :  { %v4624_v23 = vpop.eup %3538 }
0x14af   :  { %v2658_v55 = vmul.f32 1.442695, %v2655_v44  ;;  %v2779_v31 = vpop.xlane.xlu0 %2778  ;;  %v2660_v34 = vsel %vm719_vm6, %v4624_v23, 0.0  ;;  %v3541_v62 = vpop.eup %3540 }
0x14b0   :  { %2661 = vadd.xlane.f32.xlu2 %v2660_v34  ;;  %v2781_v20 = vsub.f32 %v2773_v1, %v2779_v31  ;;  %v2415_v28 = vmul.f32 %v3541_v62, %v2410_v45  ;;  %vm2420_vm14 = vweird.f32 %v3541_v62 }
0x14b1   :  { %3542 = vpow2.f32 %v2658_v55  ;;  %vm2421_vm4 = vmor %vm2419_vm0, %vm2420_vm14 }
0x14b2   :  { %3544 = vpow2.f32 %v2782_v10  ;;  %v2784_v37 = vmul.f32 1.442695, %v2781_v20  ;;  %v2416_v40 = vsub.f32 1.0, %v2415_v28 }
0x14b4   :  { %v2417_v63 = vmul.f32 %v3541_v62, %v2416_v40 }
0x14b6   :  { %v2418_v9 = vadd.f32 %v3541_v62, %v2417_v63 }
0x14b7   :  { %v4628_v8 = vpop.eup %3542  ;;  %v2413_v22 = vpop.xlane.xlu0 %2412 }
0x14b8   :  { %3546 = vrcp.f32 %v2413_v22  ;;  %v2663_v29 = vsel %vm929_vm5, %v4628_v8, 0.0  ;;  %v4632_v58 = vpop.eup %3544  ;;  %v2422_v54 = vsel %vm2421_vm4, %v3541_v62, %v2418_v9  ;;  %v2440_v56 = vand.u32 2147483648, %v2413_v22 }
0x14b9   :  { %2664 = vadd.xlane.f32.xlu1 %v2663_v29  ;;  %3548 = vpow2.f32 %v2784_v37  ;;  %v2786_v2 = vsel %vm719_vm6, %v4632_v58, 0.0  ;;  %v2427_v52 = vsel %vm2424_vm8, %v2426_v49, %v2422_v54  ;;  %vm2434_vm12 = vweird.f32 %v2413_v22 }
0x14ba   :  { %v2428_v61 = vmul.f32 %v4592_v30, %v2427_v52  ;;  %v2438_v14 = vand.u32 2147483647, %v2413_v22  ;;  %v2441_v1 = vor.u32 1.1754944e-38, %v2440_v56 }
0x14be   :  { %v3547_v6 = vpop.eup %3546 }
0x14bf   :  { %v2430_v41 = vmul.f32 %v3547_v6, %v2413_v22  ;;  %v4636_v33 = vpop.eup %3548  ;;  %vm2435_vm1 = vweird.f32 %v3547_v6 }
0x14c0   :  { %v2789_v51 = vsel %vm929_vm5, %v4636_v33, 0.0  ;;  %vm2436_vm13 = vmor %vm2434_vm12, %vm2435_vm1  ;;  %vm2439_vm5 = vcmp.eq.f32.partialorder %v2438_v14, 8.507059e+37 }
0x14c1   :  { %2787 = vadd.xlane.f32.xlu1 %v2786_v2  ;;  %v2431_v42 = vsub.f32 1.0, %v2430_v41 }
0x14c3   :  { %v2432_v48 = vmul.f32 %v3547_v6, %v2431_v42 }
0x14c5   :  { %v2433_v53 = vadd.f32 %v3547_v6, %v2432_v48 }
0x14c7   :  { %v2437_v32 = vsel %vm2436_vm13, %v3547_v6, %v2433_v53 }
0x14c8   :  { %3402 = vrot.lane.b32.xlu2 %v4610_v0, %s3608_s2  ;;  %v2442_v57 = vsel %vm2439_vm5, %v2441_v1, %v2437_v32 }
0x14c9   :  { %2790 = vadd.xlane.f32.xlu1 %v2789_v51  ;;  %v2443_v13 = vmul.f32 %v4604_v26, %v2442_v57 }
0x14ca   :  { %v3398_v43 = vpop.permute.xlu0 %3397 }
0x14cb   :  { %v3399_v4 = vunpack.i.l.bf16 %v3398_v43  ;;  %v3400_v59 = vunpack.i.h.bf16 %v3398_v43 }
0x14cd   :  { %2470 = vmatpush.msrb.mxu3 %v3399_v4 }
0x14cf   :  { %2471 = vmatpush.msrb.mxu3 %v3400_v59 }
0x14d0   :  { %3319 = vmatmul.msk.f32.vlgmr.msrb.gmra.mxu3 %vm719_vm6, %v2428_v61 }
0x14d2   :  { %v3408_v11 = vpop.permute.xlu0 %3407 }
0x14d3   :  { %v3409_v35 = vunpack.i.l.bf16 %v3408_v11  ;;  %v3410_v46 = vunpack.i.h.bf16 %v3408_v11 }
0x14d5   :  { %2722 = vmatpush.msra.mxu3 %v3409_v35 }
0x14d7   :  { %2723 = vmatpush.msra.mxu3 %v3410_v46 }
0x14d8   :  { %3320 = vmatmul.msk.f32.gmra.mxu3 %vm719_vm6, %v2443_v13 }
0x14e2   :  { %3412 = vrot.lane.b32.xlu1 %v4610_v0, %s3611_s4 }
0x1514   :  { %v2536_v30 = vpop.xlane.xlu2 %2535 }
0x1515   :  { %3550 = vrcp.f32 %v2536_v30  ;;  %v2551_v26 = vand.u32 2147483648, %v2536_v30  ;;  %vm2545_vm11 = vweird.f32 %v2536_v30  ;;  %v2549_v18 = vand.u32 2147483647, %v2536_v30 }
0x1517   :  { %v2552_v55 = vor.u32 1.1754944e-38, %v2551_v26  ;;  %vm2550_vm0 = vcmp.eq.f32.partialorder %v2549_v18, 8.507059e+37 }
0x151b   :  { %v3551_v21 = vpop.eup %3550 }
0x151c   :  { %v2541_v38 = vmul.f32 %v3551_v21, %v2536_v30  ;;  %v2539_v15 = vpop.xlane.xlu1 %2538  ;;  %vm2546_vm9 = vweird.f32 %v3551_v21 }
0x151d   :  { %3552 = vrcp.f32 %v2539_v15  ;;  %vm2547_vm14 = vmor %vm2545_vm11, %vm2546_vm9  ;;  %vm2560_vm4 = vweird.f32 %v2539_v15  ;;  %v2566_v29 = vand.u32 2147483648, %v2539_v15  ;;  %v2564_v6 = vand.u32 2147483647, %v2539_v15 }
0x151e   :  { %v2542_v19 = vsub.f32 1.0, %v2541_v38 }
0x151f   :  { %v2567_v47 = vor.u32 1.1754944e-38, %v2566_v29  ;;  %vm2565_vm11 = vcmp.eq.f32.partialorder %v2564_v6, 8.507059e+37 }
0x1520   :  { %v2543_v45 = vmul.f32 %v3551_v21, %v2542_v19 }
0x1522   :  { %v2544_v25 = vadd.f32 %v3551_v21, %v2543_v45 }
0x1523   :  { %v3553_v36 = vpop.eup %3552  ;;  %v2662_v3 = vpop.xlane.xlu2 %2661 }
0x1524   :  { %v2556_v24 = vmul.f32 %v3553_v36, %v2539_v15  ;;  %3554 = vrcp.f32 %v2662_v3  ;;  %v2548_v0 = vsel %vm2547_vm14, %v3551_v21, %v2544_v25  ;;  %vm2561_vm8 = vweird.f32 %v3553_v36 }
0x1525   :  { %v2553_v10 = vsel %vm2550_vm0, %v2552_v55, %v2548_v0  ;;  %v2677_v37 = vand.u32 2147483648, %v2662_v3  ;;  %v2675_v41 = vand.u32 2147483647, %v2662_v3  ;;  %vm4650_vm12 = vmor %vm2560_vm4, %vm2561_vm8  ;;  %vm2671_vm13 = vweird.f32 %v2662_v3 }
0x1526   :  { %v2557_v17 = vsub.f32 1.0, %v2556_v24  ;;  %v2554_v2 = vmul.f32 %v4616_v16, %v2553_v10 }
0x1527   :  { %v2678_v54 = vor.u32 1.1754944e-38, %v2677_v37  ;;  %vm2676_vm9 = vcmp.eq.f32.partialorder %v2675_v41, 8.507059e+37  ;;  %v3312_v41 = vld [vmem:[%s4799_s8 + $0x28] sm:$0xff] }
0x1528   :  { %v2558_v44 = vmul.f32 %v3553_v36, %v2557_v17 }
0x152a   :  { %v3555_v5 = vpop.eup %3554  ;;  %v2559_v28 = vadd.f32 %v3553_v36, %v2558_v44 }
0x152b   :  { %v2667_v31 = vmul.f32 %v3555_v5, %v2662_v3  ;;  %v3403_v34 = vpop.permute.xlu2 %3402  ;;  %vm2672_vm1 = vweird.f32 %v3555_v5 }
0x152c   :  { %v3404_v62 = vunpack.i.l.bf16 %v3403_v34  ;;  %v2665_v20 = vpop.xlane.xlu1 %2664  ;;  %v3405_v40 = vunpack.i.h.bf16 %v3403_v34  ;;  %v2563_v39 = vsel %vm4650_vm12, %v3553_v36, %v2559_v28  ;;  %vm2673_vm5 = vmor %vm2671_vm13, %vm2672_vm1 }
0x152d   :  { %v2668_v22 = vsub.f32 1.0, %v2667_v31  ;;  %3556 = vrcp.f32 %v2665_v20  ;;  %v2568_v52 = vsel %vm2565_vm11, %v2567_v47, %v2563_v39  ;;  %v2692_v56 = vand.u32 2147483648, %v2665_v20 }
0x152e   :  { %2596 = vmatpush.msrb.mxu2 %v3404_v62  ;;  %v2569_v59 = vmul.f32 %v4620_v27, %v2568_v52  ;;  %v2690_v14 = vand.u32 2147483647, %v2665_v20  ;;  %vm2686_vm0 = vweird.f32 %v2665_v20 }
0x152f   :  { %v2669_v63 = vmul.f32 %v3555_v5, %v2668_v22  ;;  %v2693_v1 = vor.u32 1.1754944e-38, %v2692_v56 }
0x1530   :  { %2597 = vmatpush.msrb.mxu2 %v3405_v40  ;;  %vm2691_vm8 = vcmp.eq.f32.partialorder %v2690_v14, 8.507059e+37 }
0x1531   :  { %v2670_v42 = vadd.f32 %v3555_v5, %v2669_v63  ;;  %3325 = vmatmul.msk.f32.vlgmr.msrb.gmra.mxu2 %vm719_vm6, %v2554_v2  ;;  %v3313_v63 = vld [vmem:[%s4799_s8 + $0x30] sm:$0xff]  ;;  %v3311_v2 = vld [vmem:[%s4799_s8 + $0x20] sm:$0xff] }
0x1533   :  { %v3557_v48 = vpop.eup %3556  ;;  %v2674_v51 = vsel %vm2673_vm5, %v3555_v5, %v2670_v42 }
0x1534   :  { %v2679_v16 = vsel %vm2676_vm9, %v2678_v54, %v2674_v51  ;;  %v2682_v49 = vmul.f32 %v3557_v48, %v2665_v20  ;;  %v2788_v43 = vpop.xlane.xlu1 %2787  ;;  %vm2687_vm14 = vweird.f32 %v3557_v48 }
0x1535   :  { %v2680_v53 = vmul.f32 %v4624_v23, %v2679_v16  ;;  %3558 = vrcp.f32 %v2788_v43  ;;  %vm2688_vm4 = vmor %vm2686_vm0, %vm2687_vm14  ;;  %v2803_v45 = vand.u32 2147483648, %v2788_v43  ;;  %vm2797_vm12 = vweird.f32 %v2788_v43 }
0x1536   :  { %v2683_v4 = vsub.f32 1.0, %v2682_v49  ;;  %v2801_v36 = vand.u32 2147483647, %v2788_v43 }
0x1537   :  { %3331 = vmatmul.msk.f32.vlgmr.msra.gmra.mxu3 %vm719_vm6, %v2680_v53  ;;  %v2804_v25 = vor.u32 1.1754944e-38, %v2803_v45  ;;  %v4696_v53 = vld [vmem:[%s4803_s12 + $0x10] sm:$0xff] }
0x1538   :  { %v2684_v61 = vmul.f32 %v3557_v48, %v2683_v4  ;;  %vm2802_vm5 = vcmp.eq.f32.partialorder %v2801_v36, 8.507059e+37  ;;  %v2887_v56 = vperm.slane %v4696_v53, 4  ;;  %v3343_v45 = vld [vmem:[%s4801_s10 + $0x30] sm:$0xff]  ;;  %v3342_v36 = vld [vmem:[%s4801_s10 + $0x28] sm:$0xff] }
0x1539   :  { %3326 = vmatmul.msk.f32.gmra.mxu2 %vm719_vm6, %v2569_v59 }
0x153a   :  { %v2685_v32 = vadd.f32 %v3557_v48, %v2684_v61 }
0x153b   :  { %v3559_v46 = vpop.eup %3558 }
0x153c   :  { %v2689_v11 = vsel %vm2688_vm4, %v3557_v48, %v2685_v32  ;;  %v2791_v57 = vpop.xlane.xlu1 %2790  ;;  %v2793_v27 = vmul.f32 %v3559_v46, %v2788_v43  ;;  %vm2798_vm1 = vweird.f32 %v3559_v46 }
0x153d   :  { %v2694_v35 = vsel %vm2691_vm8, %v2693_v1, %v2689_v11  ;;  %3560 = vrcp.f32 %v2791_v57  ;;  %vm2799_vm13 = vmor %vm2797_vm12, %vm2798_vm1  ;;  %v2818_v0 = vand.u32 2147483648, %v2791_v57  ;;  %vm2812_vm11 = vweird.f32 %v2791_v57 }
0x153e   :  { %v2695_v23 = vmul.f32 %v4628_v8, %v2694_v35  ;;  %v2794_v13 = vsub.f32 1.0, %v2793_v27  ;;  %v2816_v55 = vand.u32 2147483647, %v2791_v57 }
0x153f   :  { %v2819_v34 = vor.u32 1.1754944e-38, %v2818_v0 }
0x1540   :  { %3332 = vmatmul.msk.f32.gmra.mxu3 %vm719_vm6, %v2695_v23  ;;  %v2795_v21 = vmul.f32 %v3559_v46, %v2794_v13  ;;  %vm2817_vm0 = vcmp.eq.f32.partialorder %v2816_v55, 8.507059e+37 }
0x1542   :  { %v2796_v15 = vadd.f32 %v3559_v46, %v2795_v21 }
0x1543   :  { %v3561_v30 = vpop.eup %3560 }
0x1544   :  { %v2808_v38 = vmul.f32 %v3561_v30, %v2791_v57  ;;  %v2800_v3 = vsel %vm2799_vm13, %v3559_v46, %v2796_v15  ;;  %vm2813_vm9 = vweird.f32 %v3561_v30 }
0x1545   :  { %v2805_v26 = vsel %vm2802_vm5, %v2804_v25, %v2800_v3  ;;  %vm2814_vm14 = vmor %vm2812_vm11, %vm2813_vm9  ;;  %v3341_v3 = vld [vmem:[%s4801_s10 + $0x20] sm:$0xff] }
0x1546   :  { %v2809_v19 = vsub.f32 1.0, %v2808_v38  ;;  %v2806_v5 = vmul.f32 %v4632_v58, %v2805_v26  ;;  %v3354_v26 = vld [vmem:[%s4802_s11 + $0x78] sm:$0xff] }
0x1547   :  { %3030 = vmatpush.msrb.mxu1 %v3354_v26 }
0x1548   :  { %v2810_v24 = vmul.f32 %v3561_v30, %v2809_v19 }
0x154a   :  { %v2811_v18 = vadd.f32 %v3561_v30, %v2810_v24 }
0x154c   :  { %v2815_v31 = vsel %vm2814_vm14, %v3561_v30, %v2811_v18  ;;  %v3352_v18 = vld [vmem:[%s4802_s11 + $0x68] sm:$0xff] }
0x154d   :  { %v2820_v10 = vsel %vm2817_vm0, %v2819_v34, %v2815_v31 }
0x154e   :  { %v2821_v62 = vmul.f32 %v4636_v33, %v2820_v10  ;;  %v3314_v33 = vld [vmem:[%s4799_s8 + $0x38] sm:$0xff] }
0x154f   :  { %2906 = vmatpush.msrb.mxu0 %v3314_v33  ;;  %v3350_v10 = vld [vmem:[%s4802_s11 + $0x58] sm:$0xff] }
0x1551   :  { %2907 = vmatpush.msrb.mxu0 %v3313_v63  ;;  %v2966_v63 = vperm.slane %v4543_v50, 2 }
0x1553   :  { %v2473_v20 = vpop.f32.mrf.mxu3  ;;  %2908 = vmatpush.msrb.mxu0 %v3312_v41 }
0x1554   :  { %v3413_v8 = vpop.permute.xlu1 %3412 }
0x1555   :  { %v3414_v17 = vunpack.i.l.bf16 %v3413_v8  ;;  %v3415_v44 = vunpack.i.h.bf16 %v3413_v8  ;;  %2909 = vmatpush.msrb.mxu0 %v3311_v2 }
0x1557   :  { %2848 = vmatpush.msra.mxu2 %v3414_v17  ;;  %v3353_v17 = vld [vmem:[%s4802_s11 + $0x70] sm:$0xff] }
0x1558   :  { %3031 = vmatpush.msrb.mxu1 %v3353_v17 }
0x1559   :  { %2849 = vmatpush.msra.mxu2 %v3415_v44 }
0x155a   :  { %3337 = vmatmul.msk.f32.vlgmr.msra.gmra.mxu2 %vm719_vm6, %v2806_v5  ;;  %v3351_v5 = vld [vmem:[%s4802_s11 + $0x60] sm:$0xff]  ;;  %3032 = vmatpush.msrb.mxu1 %v3352_v18 }
0x155b   :  { %v2476_v22 = vpop.f32.mrf.mxu3 }
0x155c   :  { %3033 = vmatpush.msrb.mxu1 %v3351_v5 }
0x155e   :  { %3034 = vmatpush.msrb.mxu1 %v3350_v10 }
0x1562   :  { %3338 = vmatmul.msk.f32.gmra.mxu2 %vm719_vm6, %v2821_v62 }
0x15b4   :  { %v2599_v28 = vpop.f32.mrf.mxu2 }
0x15b5   :  { %2859 = vrot.lane.b32.xlu0 %v2599_v28, %s3620_s30 }
0x15ba   :  { %v2725_v29 = vpop.f32.mrf.mxu3 }
0x15bb   :  { %2867 = vrot.lane.b32.xlu2 %v2725_v29, %s3619_s29 }
0x15bc   :  { %v2602_v58 = vpop.f32.mrf.mxu2 }
0x15c3   :  { %2861 = vrot.lane.b32.xlu2 %v2602_v58, %s3620_s30  ;;  %v2728_v40 = vpop.f32.mrf.mxu3  ;;  %v2963_v58 = vperm.slane %v4543_v50, 1 }
0x15dd   :  { %v2851_v37 = vpop.f32.mrf.mxu2 }
0x15de   :  { %2875 = vrot.lane.b32.xlu0 %v2851_v37, %s3621_s15 }
0x15e5   :  { %v2854_v6 = vpop.f32.mrf.mxu2 }
0x15e6   :  { %2877 = vrot.lane.b32.xlu2 %v2854_v6, %s3621_s15  ;;  %2869 = vrot.lane.b32.xlu0 %v2728_v40, %s3619_s29 }
0x1615   :  { %v2868_v9 = vpop.permute.xlu2 %2867 }
0x161d   :  { %v2862_v48 = vpop.permute.xlu2 %2861 }
0x161e   :  { %v2882_v16 = vsel %vm189_vm3, %v2476_v22, %v2862_v48 }
0x1627   :  { %v2860_v42 = vpop.permute.xlu0 %2859 }
0x1628   :  { %v2881_v39 = vsel %vm189_vm3, %v2473_v20, %v2860_v42 }
0x1629   :  { %v2883_v54 = vsel %vm719_vm6, %v2881_v39, %v2868_v9 }
0x1640   :  { %v2878_v43 = vpop.permute.xlu2 %2877 }
0x1650   :  { %v2876_v47 = vpop.permute.xlu0 %2875 }
0x1651   :  { %v2885_v51 = vsel %vm722_vm7, %v2883_v54, %v2876_v47 }
0x1652   :  { %3339 = vmatmul.msk.f32.vlgmr.msrb.gmra.mxu0 %vm149_vm2, %v2885_v51 }
0x1658   :  { %v2870_v49 = vpop.permute.xlu0 %2869 }
0x1659   :  { %v2884_v52 = vsel %vm719_vm6, %v2882_v16, %v2870_v49  ;;  %v3349_v16 = vld [vmem:[%s4802_s11 + $0x50] sm:$0xff]  ;;  %v3348_v49 = vld [vmem:[%s4802_s11 + $0x48] sm:$0xff] }
0x165a   :  { %v2886_v4 = vsel %vm722_vm7, %v2884_v52, %v2878_v43  ;;  %3035 = vmatpush.msrb.mxu1 %v3349_v16  ;;  %v3347_v43 = vld [vmem:[%s4802_s11 + $0x40] sm:$0xff]  ;;  %v2974_v52 = vperm.slane %v4696_v53, 5 }
0x165b   :  { %3340 = vmatmul.msk.f32.gmra.mxu0 %vm149_vm2, %v2886_v4 }
0x165c   :  { %3036 = vmatpush.msrb.mxu1 %v3348_v49 }
0x165e   :  { %3037 = vmatpush.msrb.mxu1 %v3347_v43 }
0x16cf   :  { %v2911_v59 = vpop.f32.mrf.mxu0 }
0x16d0   :  { %v2912_v61 = vadd.f32 %v2911_v59, %v2887_v56 }
0x16d2   :  { %v2917_v14 = vadd.f32 %v2912_v61, %v4551_v60 }
0x16d4   :  { %v2919_v32 = vsel %vm149_vm2, %v2917_v14, 0.0 }
0x16d5   :  { %2920 = vadd.xlane.f32.xlu1 %v2919_v32 }
0x16d8   :  { %v2914_v1 = vpop.f32.mrf.mxu0 }
0x16d9   :  { %v2915_v11 = vadd.f32 %v2914_v1, %v2887_v56  ;;  %v3015_v1 = vperm.slane %v4696_v53, 6 }
0x16db   :  { %v2918_v35 = vadd.f32 %v2915_v11, %v4555_v7  ;;  %v3344_v7 = vld [vmem:[%s4801_s10 + $0x38] sm:$0xff] }
0x16dc   :  { %2993 = vmatpush.msrb.mxu3 %v3344_v7 }
0x16dd   :  { %v2922_v57 = vsel %vm760_vm10, %v2918_v35, 0.0 }
0x16de   :  { %2923 = vadd.xlane.f32.xlu0 %v2922_v57  ;;  %2994 = vmatpush.msrb.mxu3 %v3343_v45 }
0x16e0   :  { %2995 = vmatpush.msrb.mxu3 %v3342_v36 }
0x16e2   :  { %2996 = vmatpush.msrb.mxu3 %v3341_v3 }
0x1748   :  { %v2921_v23 = vpop.xlane.xlu1 %2920 }
0x1749   :  { %v2925_v46 = vmul.f32 %v2921_v23, %v3998_v12 }
0x174b   :  { %v2927_v27 = vsub.f32 %v2917_v14, %v2925_v46 }
0x174d   :  { %v2929_v13 = vmul.f32 %v2927_v27, %v2927_v27 }
0x174f   :  { %v2931_v30 = vsel %vm149_vm2, %v2929_v13, 0.0 }
0x1750   :  { %2932 = vadd.xlane.f32.xlu2 %v2931_v30 }
0x1751   :  { %v2924_v21 = vpop.xlane.xlu0 %2923 }
0x1752   :  { %v2926_v60 = vmul.f32 %v2924_v21, %v3998_v12 }
0x1754   :  { %v2928_v38 = vsub.f32 %v2918_v35, %v2926_v60 }
0x1756   :  { %v2930_v15 = vmul.f32 %v2928_v38, %v2928_v38 }
0x1758   :  { %v2934_v19 = vsel %vm760_vm10, %v2930_v15, 0.0 }
0x1759   :  { %2935 = vadd.xlane.f32.xlu1 %v2934_v19 }
0x17c3   :  { %v2933_v24 = vpop.xlane.xlu2 %2932 }
0x17c4   :  { %v2937_v25 = vmul.f32 %v2933_v24, %v3998_v12 }
0x17c6   :  { %v2939_v8 = vadd.f32 1e-05, %v2937_v25 }
0x17c8   :  { %3562 = vrsqrt.f32 %v2939_v8  ;;  %vm2947_vm6 = vweird.f32 %v2939_v8 }
0x17cc   :  { %v2936_v0 = vpop.xlane.xlu1 %2935 }
0x17cd   :  { %v2938_v44 = vmul.f32 %v2936_v0, %v3998_v12 }
0x17ce   :  { %v3563_v55 = vpop.eup %3562 }
0x17cf   :  { %v2942_v31 = vmul.f32 %v3563_v55, %v2939_v8  ;;  %v2940_v34 = vadd.f32 1e-05, %v2938_v44  ;;  %vm2948_vm3 = vweird.f32 %v3563_v55 }
0x17d0   :  { %vm2949_vm7 = vmor %vm2947_vm6, %vm2948_vm3 }
0x17d1   :  { %v2943_v62 = vmul.f32 %v3563_v55, %v2942_v31  ;;  %3564 = vrsqrt.f32 %v2940_v34  ;;  %vm2957_vm8 = vweird.f32 %v2940_v34 }
0x17d3   :  { %v2944_v20 = vmul.f32 0.5, %v2943_v62 }
0x17d5   :  { %v2945_v22 = vsub.f32 1.5, %v2944_v20  ;;  %v3091_v20 = vperm.slane %v4543_v50, 3 }
0x17d7   :  { %v3565_v28 = vpop.eup %3564  ;;  %v2946_v29 = vmul.f32 %v3563_v55, %v2945_v22 }
0x17d8   :  { %v2952_v37 = vmul.f32 %v3565_v28, %v2940_v34  ;;  %vm2958_vm4 = vweird.f32 %v3565_v28 }
0x17d9   :  { %v2950_v40 = vsel %vm2949_vm7, %v3563_v55, %v2946_v29  ;;  %vm2959_vm1 = vmor %vm2957_vm8, %vm2958_vm4 }
0x17da   :  { %v2961_v6 = vmul.f32 %v2950_v40, %v2927_v27  ;;  %v2953_v33 = vmul.f32 %v3565_v28, %v2952_v37 }
0x17dc   :  { %v2964_v41 = vmul.f32 %v2963_v58, %v2961_v6  ;;  %v2954_v2 = vmul.f32 0.5, %v2953_v33 }
0x17de   :  { %v2955_v9 = vsub.f32 1.5, %v2954_v2  ;;  %v2967_v42 = vadd.f32 %v2966_v63, %v2964_v41 }
0x17e0   :  { %v2956_v39 = vmul.f32 %v3565_v28, %v2955_v9  ;;  %3345 = vmatmul.msk.f32.vlgmr.msrb.gmra.mxu3 %vm149_vm2, %v2967_v42 }
0x17e2   :  { %v2960_v47 = vsel %vm2959_vm1, %v3565_v28, %v2956_v39 }
0x17e3   :  { %v2962_v54 = vmul.f32 %v2960_v47, %v2928_v38 }
0x17e5   :  { %v2965_v48 = vmul.f32 %v2963_v58, %v2962_v54  ;;  %v3094_v58 = vperm.slane %v4543_v50, 4 }
0x17e7   :  { %v2968_v51 = vadd.f32 %v2966_v63, %v2965_v48 }
0x17e9   :  { %3346 = vmatmul.msk.f32.gmra.mxu3 %vm149_vm2, %v2968_v51 }
0x1863   :  { %v2998_v4 = vpop.f32.mrf.mxu3 }
0x1864   :  { %v2999_v56 = vadd.f32 %v2998_v4, %v2974_v52 }
0x1866   :  { %v3004_v59 = vmax.f32 %v2999_v56, 0.0 }
0x1868   :  { %3355 = vmatmul.msk.f32.vlgmr.msrb.gmra.mxu1 %vm1545_vm15, %v3004_v59  ;;  %v3150_v59 = vld [vmem:[%s4804_s13 + $0x18] sm:$0xff] }
0x1869   :  { %3170 = vmatpush.msrb.mxu2 %v3150_v59 }
0x186c   :  { %v3001_v61 = vpop.f32.mrf.mxu3 }
0x186d   :  { %v3002_v14 = vadd.f32 %v3001_v61, %v2974_v52  ;;  %v3149_v61 = vld [vmem:[%s4804_s13 + $0x10] sm:$0xff] }
0x186e   :  { %3171 = vmatpush.msrb.mxu2 %v3149_v61 }
0x186f   :  { %v3005_v32 = vmax.f32 %v3002_v14, 0.0  ;;  %v3148_v14 = vld [vmem:[%s4804_s13 + $0x8] sm:$0xff] }
0x1870   :  { %3172 = vmatpush.msrb.mxu2 %v3148_v14 }
0x1871   :  { %3356 = vmatmul.msk.f32.gmra.mxu1 %vm1545_vm15, %v3005_v32  ;;  %v3147_v32 = vld [vmem:[%s4804_s13] sm:$0xff] }
0x1872   :  { %3173 = vmatpush.msrb.mxu2 %v3147_v32 }
0x18e5   :  { %v3039_v11 = vpop.f32.mrf.mxu1 }
0x18e6   :  { %v3040_v35 = vadd.f32 %v3039_v11, %v3015_v1 }
0x18e8   :  { %v3045_v57 = vadd.f32 %v3040_v35, %v2967_v42 }
0x18ea   :  { %v3047_v23 = vsel %vm149_vm2, %v3045_v57, 0.0 }
0x18eb   :  { %3048 = vadd.xlane.f32.xlu0 %v3047_v23 }
0x18ee   :  { %v3042_v46 = vpop.f32.mrf.mxu1 }
0x18ef   :  { %v3043_v27 = vadd.f32 %v3042_v46, %v3015_v1 }
0x18f1   :  { %v3046_v13 = vadd.f32 %v3043_v27, %v2968_v51 }
0x18f3   :  { %v3050_v30 = vsel %vm760_vm10, %v3046_v13, 0.0 }
0x18f4   :  { %3051 = vadd.xlane.f32.xlu2 %v3050_v30 }
0x195e   :  { %v3049_v21 = vpop.xlane.xlu0 %3048 }
0x195f   :  { %v3053_v60 = vmul.f32 %v3049_v21, %v3998_v12 }
0x1961   :  { %v3055_v38 = vsub.f32 %v3045_v57, %v3053_v60 }
0x1963   :  { %v3057_v15 = vmul.f32 %v3055_v38, %v3055_v38 }
0x1965   :  { %v3059_v19 = vsel %vm149_vm2, %v3057_v15, 0.0 }
0x1966   :  { %3060 = vadd.xlane.f32.xlu1 %v3059_v19  ;;  %v3579_v19 = vld [vmem:[#allocation2] sm:$0xf] }
0x1967   :  { %v3052_v53 = vpop.xlane.xlu2 %3051 }
0x1968   :  { %v3054_v7 = vmul.f32 %v3052_v53, %v3998_v12  ;;  %v3141_v53 = vperm.slane %v3579_v19, 1 }
0x196a   :  { %v3056_v45 = vsub.f32 %v3046_v13, %v3054_v7 }
0x196c   :  { %v3058_v36 = vmul.f32 %v3056_v45, %v3056_v45 }
0x196e   :  { %v3062_v3 = vsel %vm760_vm10, %v3058_v36, 0.0  ;;  %v3144_v36 = vperm.slane %v3579_v19, 2 }
0x196f   :  { %3063 = vadd.xlane.f32.xlu0 %v3062_v3 }
0x19d9   :  { %v3061_v24 = vpop.xlane.xlu1 %3060 }
0x19da   :  { %v3065_v25 = vmul.f32 %v3061_v24, %v3998_v12 }
0x19dc   :  { %v3067_v8 = vadd.f32 1e-05, %v3065_v25 }
0x19de   :  { %3566 = vrsqrt.f32 %v3067_v8  ;;  %vm3075_vm12 = vweird.f32 %v3067_v8 }
0x19e2   :  { %v3064_v26 = vpop.xlane.xlu0 %3063 }
0x19e3   :  { %v3066_v17 = vmul.f32 %v3064_v26, %v3998_v12 }
0x19e4   :  { %v3567_v18 = vpop.eup %3566 }
0x19e5   :  { %v3070_v0 = vmul.f32 %v3567_v18, %v3067_v8  ;;  %v3068_v44 = vadd.f32 1e-05, %v3066_v17  ;;  %vm3076_vm15 = vweird.f32 %v3567_v18 }
0x19e6   :  { %vm3077_vm13 = vmor %vm3075_vm12, %vm3076_vm15 }
0x19e7   :  { %v3071_v5 = vmul.f32 %v3567_v18, %v3070_v0  ;;  %3568 = vrsqrt.f32 %v3068_v44  ;;  %vm3085_vm9 = vweird.f32 %v3068_v44 }
0x19e9   :  { %v3072_v55 = vmul.f32 0.5, %v3071_v5 }
0x19eb   :  { %v3073_v31 = vsub.f32 1.5, %v3072_v55  ;;  %v3151_v55 = vperm.slane %v3579_v19, 3 }
0x19ed   :  { %v3569_v34 = vpop.eup %3568  ;;  %v3074_v10 = vmul.f32 %v3567_v18, %v3073_v31 }
0x19ee   :  { %v3080_v62 = vmul.f32 %v3569_v34, %v3068_v44  ;;  %vm3086_vm5 = vweird.f32 %v3569_v34 }
0x19ef   :  { %v3078_v22 = vsel %vm3077_vm13, %v3567_v18, %v3074_v10  ;;  %vm3087_vm11 = vmor %vm3085_vm9, %vm3086_vm5 }
0x19f0   :  { %v3081_v28 = vmul.f32 %v3569_v34, %v3080_v62  ;;  %v3089_v29 = vmul.f32 %v3078_v22, %v3055_v38 }
0x19f2   :  { %v3082_v37 = vmul.f32 0.5, %v3081_v28  ;;  %v3092_v40 = vmul.f32 %v3091_v20, %v3089_v29 }
0x19f4   :  { %v3083_v6 = vsub.f32 1.5, %v3082_v37  ;;  %v3095_v33 = vadd.f32 %v3094_v58, %v3092_v40 }
0x19f6   :  { %v3084_v63 = vmul.f32 %v3569_v34, %v3083_v6  ;;  %v3097_v41 = vsel %vm149_vm2, %v3095_v33, 0.0 }
0x19f7   :  { %3098 = vadd.xlane.f32.xlu2 %v3097_v41 }
0x19f8   :  { %v3088_v2 = vsel %vm3087_vm11, %v3569_v34, %v3084_v63 }
0x19f9   :  { %v3090_v9 = vmul.f32 %v3088_v2, %v3056_v45 }
0x19fb   :  { %v3093_v42 = vmul.f32 %v3091_v20, %v3090_v9 }
0x19fd   :  { %v3096_v39 = vadd.f32 %v3094_v58, %v3093_v42 }
0x19ff   :  { %v3100_v47 = vsel %vm760_vm10, %v3096_v39, 0.0 }
0x1a00   :  { %3101 = vadd.xlane.f32.xlu1 %v3100_v47 }
0x1a6a   :  { %v3099_v54 = vpop.xlane.xlu2 %3098 }
0x1a6b   :  { %v3103_v50 = vmul.f32 %v3099_v54, %v3998_v12 }
0x1a6d   :  { %v3105_v48 = vsub.f32 %v3095_v33, %v3103_v50 }
0x1a6f   :  { %v3107_v51 = vmul.f32 %v3105_v48, %v3105_v48 }
0x1a71   :  { %v3109_v16 = vsel %vm149_vm2, %v3107_v51, 0.0 }
0x1a72   :  { %3110 = vadd.xlane.f32.xlu0 %v3109_v16 }
0x1a73   :  { %v3102_v49 = vpop.xlane.xlu1 %3101 }
0x1a74   :  { %v3104_v43 = vmul.f32 %v3102_v49, %v3998_v12 }
0x1a76   :  { %v3106_v52 = vsub.f32 %v3096_v39, %v3104_v43 }
0x1a78   :  { %v3108_v4 = vmul.f32 %v3106_v52, %v3106_v52 }
0x1a7a   :  { %v3112_v56 = vsel %vm760_vm10, %v3108_v4, 0.0 }
0x1a7b   :  { %3113 = vadd.xlane.f32.xlu2 %v3112_v56 }
0x1ae5   :  { %v3111_v1 = vpop.xlane.xlu0 %3110 }
0x1ae6   :  { %v3115_v11 = vmul.f32 %v3111_v1, %v3998_v12 }
0x1ae8   :  { %v3117_v35 = vadd.f32 1e-05, %v3115_v11 }
0x1aea   :  { %3570 = vrsqrt.f32 %v3117_v35  ;;  %vm3125_vm14 = vweird.f32 %v3117_v35 }
0x1aee   :  { %v3114_v57 = vpop.xlane.xlu2 %3113 }
0x1aef   :  { %v3116_v23 = vmul.f32 %v3114_v57, %v3998_v12 }
0x1af0   :  { %v3571_v46 = vpop.eup %3570 }
0x1af1   :  { %v3120_v27 = vmul.f32 %v3571_v46, %v3117_v35  ;;  %v3118_v13 = vadd.f32 1e-05, %v3116_v23  ;;  %vm3126_vm10 = vweird.f32 %v3571_v46 }
0x1af2   :  { %vm3127_vm0 = vmor %vm3125_vm14, %vm3126_vm10 }
0x1af3   :  { %v3121_v30 = vmul.f32 %v3571_v46, %v3120_v27  ;;  %3572 = vrsqrt.f32 %v3118_v13  ;;  %vm3135_vm6 = vweird.f32 %v3118_v13 }
0x1af5   :  { %v3122_v21 = vmul.f32 0.5, %v3121_v30 }
0x1af7   :  { %v3123_v60 = vsub.f32 1.5, %v3122_v21 }
0x1af9   :  { %v3573_v38 = vpop.eup %3572  ;;  %v3124_v15 = vmul.f32 %v3571_v46, %v3123_v60 }
0x1afa   :  { %v3130_v7 = vmul.f32 %v3573_v38, %v3118_v13  ;;  %vm3136_vm3 = vweird.f32 %v3573_v38 }
0x1afb   :  { %v3128_v45 = vsel %vm3127_vm0, %v3571_v46, %v3124_v15  ;;  %vm3137_vm7 = vmor %vm3135_vm6, %vm3136_vm3 }
0x1afc   :  { %v3139_v3 = vmul.f32 %v3128_v45, %v3105_v48  ;;  %v3131_v24 = vmul.f32 %v3573_v38, %v3130_v7 }
0x1afe   :  { %v3142_v12 = vmul.f32 %v3141_v53, %v3139_v3  ;;  %v3132_v25 = vmul.f32 0.5, %v3131_v24 }
0x1b00   :  { %v3133_v8 = vsub.f32 1.5, %v3132_v25  ;;  %v3145_v26 = vadd.f32 %v3144_v36, %v3142_v12 }
0x1b02   :  { %v3134_v17 = vmul.f32 %v3573_v38, %v3133_v8  ;;  %3357 = vmatmul.msk.f32.vlgmr.msrb.gmra.mxu2 %vm149_vm2, %v3145_v26 }
0x1b04   :  { %v3138_v18 = vsel %vm3137_vm7, %v3573_v38, %v3134_v17 }
0x1b05   :  { %v3140_v0 = vmul.f32 %v3138_v18, %v3106_v52 }
0x1b07   :  { %v3143_v44 = vmul.f32 %v3141_v53, %v3140_v0 }
0x1b09   :  { %v3146_v5 = vadd.f32 %v3144_v36, %v3143_v44 }
0x1b0b   :  { %3358 = vmatmul.msk.f32.gmra.mxu2 %vm149_vm2, %v3146_v5 }
0x1b85   :  { %v3175_v31 = vpop.f32.mrf.mxu2 }
0x1b86   :  { %v3176_v34 = vadd.f32 %v3175_v31, %v3151_v55 }
0x1b88   :  { %3181 = vst [vmem:[%s4805_s14] sm:$0xff] %v3176_v34 }
0x1b8e   :  { %v3178_v10 = vpop.f32.mrf.mxu2 }
0x1b8f   :  { %v3179_v62 = vadd.f32 %v3178_v10, %v3151_v55 }
0x1b91   :  { %3182 = vst [vmem:[%s4805_s14 + $0x8] sm:$0xf] %v3179_v62 }
0x1b92   :  { %3187 = vsyncpa [#allocation3], 1 }

</bundles_post_ra>
